<compile_context>
chip_gen: v7x
topology: tpu7x:2x2x1
jax: 0.10.0
libtpu: 0.0.40
codegen_flags: <defaults>
</compile_context>

<pallas_src>
import functools
import math

import jax
import jax.numpy as jnp
from jax.experimental import pallas as pl
from jax.experimental.pallas import tpu as pltpu


# ----------------------------------------------------------------------------
# Fused double_conv Pallas kernel.  One grid step = one batch element.
# ----------------------------------------------------------------------------
def _fused_double_conv_kernel(x_ref, w1_ref, s1_ref, t1_ref, w2_ref, s2_ref,
                              t2_ref, o_ref, mid_ref, *, H, W, TH, apply_relu):
    # x_ref : (1, H+2, W+2, Cin) bf16   concat(x2, up(x1)) with 1-px zero halo
    # w1_ref: (3, 3, Cin, Cp)    bf16   conv1 weight (Cout lane-padded)
    # w2_ref: (3, 3, Cp, Cp)     bf16   conv2 weight (Cin/Cout lane-padded)
    # s*_ref, t*_ref : (1, Cp)   f32    folded BatchNorm scale / shift (+bias)
    # o_ref : (1, H, W, Cp)      bf16   lane-dense output block
    # mid_ref: (H+2, W+2, Cp)    bf16   VMEM scratch, intermediate activation
    cp = o_ref.shape[-1]
    cin = x_ref.shape[-1]
    n_tiles = H // TH

    # ---- zero only the 1-px halo of the mid scratch (interior is fully
    #      rewritten by pass 1 every grid step).
    zr = jnp.zeros((1, W + 2, cp), mid_ref.dtype)
    mid_ref[0:1, :, :] = zr
    mid_ref[H + 1:H + 2, :, :] = zr
    zc = jnp.zeros((H + 2, 1, cp), mid_ref.dtype)
    mid_ref[:, 0:1, :] = zc
    mid_ref[:, W + 1:W + 2, :] = zc

    # Hoisted BN affine params (broadcast against (TH*W, Cp)).
    s1 = s1_ref[...]
    t1 = t1_ref[...]
    s2 = s2_ref[...]
    t2 = t2_ref[...]

    def conv_tile(tap, w_ref, k):
        # 3x3 conv on one row tile as 9 (TH*W, k) x (k, Cp) MXU matmuls with a
        # per-tile f32 accumulator that stays in vregs.
        acc = jnp.zeros((TH * W, cp), jnp.float32)
        for dy in range(3):
            for dx in range(3):
                p = tap(dy, dx).reshape(TH * W, k)
                acc = acc + jax.lax.dot_general(
                    p, w_ref[dy, dx, :, :],
                    dimension_numbers=(((1,), (0,)), ((), ())),
                    preferred_element_type=jnp.float32)
        return acc

    # ---- pass 1: conv1 + folded BN + ReLU -> bf16 mid interior (row-tiled).
    def pass1(t, carry):
        r = pl.multiple_of(t * TH, TH)
        y = conv_tile(
            lambda dy, dx: x_ref[0, pl.ds(r + dy, TH), dx:dx + W, :],
            w1_ref, cin) * s1 + t1
        if apply_relu:
            y = jnp.maximum(y, 0.0)
        mid_ref[pl.ds(r + 1, TH), 1:W + 1, :] = (
            y.astype(mid_ref.dtype).reshape(TH, W, cp))
        return carry

    jax.lax.fori_loop(0, n_tiles, pass1, 0, unroll=True)

    # ---- pass 2: conv2 + folded BN + ReLU -> bf16 output (row-tiled); taps
    #      are read straight from the bf16 VMEM scratch (no HBM round trip,
    #      no per-tap casts).
    def pass2(t, carry):
        r = pl.multiple_of(t * TH, TH)
        y = conv_tile(
            lambda dy, dx: mid_ref[pl.ds(r + dy, TH), dx:dx + W, :],
            w2_ref, cp) * s2 + t2
        if apply_relu:
            y = jnp.maximum(y, 0.0)
        o_ref[0, pl.ds(r, TH), :, :] = y.astype(o_ref.dtype).reshape(TH, W, cp)
        return carry

    jax.lax.fori_loop(0, n_tiles, pass2, 0, unroll=True)


def _pick_row_tile(h):
    """Largest row-tile size <= 8 that divides h (8 = f32 sublane count)."""
    for th in range(min(8, h), 0, -1):
        if h % th == 0:
            return th
    return 1


def _padded_vmem_bytes(shape, dtype):
    """Approximate VMEM footprint of one buffer after lane/sublane padding."""
    itemsize = jnp.dtype(dtype).itemsize
    sub = {4: 8, 2: 16, 1: 32}.get(itemsize, 8)
    dims = list(shape)
    if len(dims) >= 1:
        dims[-1] = -(-dims[-1] // 128) * 128
    if len(dims) >= 2:
        dims[-2] = -(-dims[-2] // sub) * sub
    n = 1
    for d in dims:
        n *= max(int(d), 1)
    return n * itemsize


def fused_double_conv(xp, w1, s1, t1, w2, s2, t2, *, apply_relu=True):
    """xp: [N, H+2, W+2, Cin] bf16 (pre-padded). Returns [N, H, W, Cp] bf16."""
    N, Hp2, Wp2, Cin = xp.shape
    H, W = Hp2 - 2, Wp2 - 2
    Cp = w2.shape[-1]
    TH = _pick_row_tile(H)

    kernel = functools.partial(_fused_double_conv_kernel,
                               H=H, W=W, TH=TH, apply_relu=apply_relu)

    # Explicit VMEM limit sized from the actual buffers (double-buffered
    # in/out blocks + single scratch), with generous headroom.
    buf_bytes = (
        2 * _padded_vmem_bytes((1, Hp2, Wp2, Cin), jnp.bfloat16)
        + 2 * _padded_vmem_bytes((3, 3, Cin, Cp), jnp.bfloat16)
        + 2 * _padded_vmem_bytes((3, 3, Cp, Cp), jnp.bfloat16)
        + 2 * 4 * _padded_vmem_bytes((1, Cp), jnp.float32)
        + 2 * _padded_vmem_bytes((1, H, W, Cp), jnp.bfloat16)
        + _padded_vmem_bytes((Hp2, Wp2, Cp), jnp.bfloat16))
    vmem_limit = min(int(buf_bytes) * 2 + (4 << 20), 128 << 20)

    return pl.pallas_call(
        kernel,
        out_shape=jax.ShapeDtypeStruct((N, H, W, Cp), jnp.bfloat16),
        grid=(N,),
        in_specs=[
            pl.BlockSpec((1, Hp2, Wp2, Cin), lambda n: (n, 0, 0, 0)),
            pl.BlockSpec((3, 3, Cin, Cp), lambda n: (0, 0, 0, 0)),
            pl.BlockSpec((1, Cp), lambda n: (0, 0)),
            pl.BlockSpec((1, Cp), lambda n: (0, 0)),
            pl.BlockSpec((3, 3, Cp, Cp), lambda n: (0, 0, 0, 0)),
            pl.BlockSpec((1, Cp), lambda n: (0, 0)),
            pl.BlockSpec((1, Cp), lambda n: (0, 0)),
        ],
        out_specs=pl.BlockSpec((1, H, W, Cp), lambda n: (n, 0, 0, 0)),
        scratch_shapes=[pltpu.VMEM((Hp2, Wp2, Cp), jnp.bfloat16)],
        compiler_params=pltpu.CompilerParams(
            dimension_semantics=("parallel",),
            vmem_limit_bytes=vmem_limit),
    )(xp, w1, s1, t1, w2, s2, t2)


# ----------------------------------------------------------------------------
# Glue: bilinear upsample (scale_factor=2, align_corners=True).
# ----------------------------------------------------------------------------
def _bilinear_matrix(out_size, in_size):
    """[out_size, in_size] interpolation matrix, align_corners=True."""
    if in_size == 1:
        return jnp.ones((out_size, 1), jnp.float32)
    i = jnp.arange(out_size, dtype=jnp.float32)
    src = i * (in_size - 1) / (out_size - 1)
    i0 = jnp.clip(jnp.floor(src).astype(jnp.int32), 0, in_size - 2)
    frac = src - i0.astype(jnp.float32)
    rows = jnp.arange(out_size)
    m = jnp.zeros((out_size, in_size), jnp.float32)
    m = m.at[rows, i0].add(1.0 - frac)
    m = m.at[rows, i0 + 1].add(frac)
    return m


def bilinear_upsample_x2_nhwc(x):
    """x: [N,H,W,C] -> [N,2H,2W,C]; nn.Upsample(2, bilinear, align_corners=True)."""
    N, H, W, C = x.shape
    mh = _bilinear_matrix(2 * H, H)
    mw = _bilinear_matrix(2 * W, W)
    y = jnp.einsum('oh,nhwc->nowc', mh, x)
    y = jnp.einsum('pw,nowc->nopc', mw, y)
    return y


# ----------------------------------------------------------------------------
# Parameters (deterministic synthetic init).  BatchNorm in inference mode
# (running_mean=0, running_var=1, gamma=1, beta=0, eps=1e-5), folded into a
# per-channel scale/shift; conv bias folds into the shift.
# ----------------------------------------------------------------------------
def init_up_params(key, in_ch, out_ch):
    k1, k2 = jax.random.split(key, 2)
    eps = 1e-5

    def conv_params(k, cin, cout):
        kw, kb = jax.random.split(k)
        fan_in = cin * 9
        bound = 1.0 / math.sqrt(fan_in)
        w = jax.random.uniform(kw, (3, 3, cin, cout), jnp.float32,
                               minval=-bound, maxval=bound)
        b = jax.random.uniform(kb, (cout,), jnp.float32,
                               minval=-bound, maxval=bound)
        return w, b

    w1, b1 = conv_params(k1, in_ch, out_ch)
    w2, b2 = conv_params(k2, out_ch, out_ch)

    gamma = jnp.ones((out_ch,), jnp.float32)
    beta = jnp.zeros((out_ch,), jnp.float32)
    rmean = jnp.zeros((out_ch,), jnp.float32)
    rvar = jnp.ones((out_ch,), jnp.float32)
    bn_scale = gamma / jnp.sqrt(rvar + eps)
    bn_shift = beta - rmean * bn_scale

    scale1 = bn_scale.reshape(1, -1)
    shift1 = (b1 * bn_scale + bn_shift).reshape(1, -1)
    scale2 = bn_scale.reshape(1, -1)
    shift2 = (b2 * bn_scale + bn_shift).reshape(1, -1)
    return dict(w1=w1, scale1=scale1, shift1=shift1,
                w2=w2, scale2=scale2, shift2=shift2)


# ----------------------------------------------------------------------------
# Full `up` forward.  Inputs / output are NCHW to mirror PyTorch.
# ----------------------------------------------------------------------------
def up_forward(params, x1_nchw, x2_nchw, *, apply_relu=True):
    x1 = jnp.transpose(x1_nchw, (0, 2, 3, 1)).astype(jnp.float32)   # NHWC
    x2 = jnp.transpose(x2_nchw, (0, 2, 3, 1)).astype(jnp.float32)

    # 1) bilinear x2 upsample (align_corners=True)
    # TODO(synk): fuse the upsample into the Pallas kernel so the 4x-larger x1
    #             never round-trips HBM (the interp matrices are static).
    x1 = bilinear_upsample_x2_nhwc(x1)

    # 2) F.pad size-match to x2 (negative diff = crop, like F.pad).
    dY = x2.shape[1] - x1.shape[1]
    dX = x2.shape[2] - x1.shape[2]
    x1 = jax.lax.pad(x1, jnp.array(0.0, x1.dtype),
                     ((0, 0, 0), (dY // 2, dY - dY // 2, 0),
                      (dX // 2, dX - dX // 2, 0), (0, 0, 0)))

    # 3) channel concat in the wrapper: with C2+C1 <= 128 it occupies a single
    #    lane-padded tile in VMEM and halves conv1's tap matmul count.
    # TODO(synk): keep a split-input kernel variant for C2, C1 both >= 128.
    x = jnp.concatenate([x2, x1], axis=-1)
    xp = jnp.pad(x, ((0, 0), (1, 1), (1, 1), (0, 0)))   # 1-px conv halo
    xp = xp.astype(jnp.bfloat16)

    Cout = params['w2'].shape[-1]
    Cp = ((Cout + 127) // 128) * 128          # lane-dense channel padding
    po = Cp - Cout
    w1 = jnp.pad(params['w1'].astype(jnp.bfloat16),
                 ((0, 0), (0, 0), (0, 0), (0, po)))
    w2 = jnp.pad(params['w2'].astype(jnp.bfloat16),
                 ((0, 0), (0, 0), (0, po), (0, po)))
    s1 = jnp.pad(params['scale1'], ((0, 0), (0, po)))
    t1 = jnp.pad(params['shift1'], ((0, 0), (0, po)))
    s2 = jnp.pad(params['scale2'], ((0, 0), (0, po)))
    t2 = jnp.pad(params['shift2'], ((0, 0), (0, po)))

    # 4+5) double_conv fused into one Pallas kernel (bf16 in/out, f32 acc).
    y = fused_double_conv(xp, w1, s1, t1, w2, s2, t2, apply_relu=apply_relu)
    y = y[..., :Cout]                          # drop lane padding (still bf16)
    y = jnp.transpose(y, (0, 3, 1, 2))         # NCHW, bf16
    return y.astype(jnp.float32)               # public API dtype (PyTorch f32)


# ----------------------------------------------------------------------------
# Pure-JAX reference (same math & same bf16 operand quantization points).
# ----------------------------------------------------------------------------
def _ref_up_forward(params, x1_nchw, x2_nchw):
    x1 = jnp.transpose(x1_nchw, (0, 2, 3, 1)).astype(jnp.float32)
    x2 = jnp.transpose(x2_nchw, (0, 2, 3, 1)).astype(jnp.float32)
    x1 = bilinear_upsample_x2_nhwc(x1)
    dY = x2.shape[1] - x1.shape[1]
    dX = x2.shape[2] - x1.shape[2]
    x1 = jax.lax.pad(x1, jnp.array(0.0, x1.dtype),
                     ((0, 0, 0), (dY // 2, dY - dY // 2, 0),
                      (dX // 2, dX - dX // 2, 0), (0, 0, 0)))
    x = jnp.concatenate([x2, x1], axis=-1)

    def conv_bn_relu(x, w, s, t):
        # mirror the kernel numerics: bf16-quantized operands, f32 accumulation
        xq = x.astype(jnp.bfloat16).astype(jnp.float32)
        wq = w.astype(jnp.bfloat16).astype(jnp.float32)
        y = jax.lax.conv_general_dilated(
            xq, wq, (1, 1), 'SAME',
            dimension_numbers=('NHWC', 'HWIO', 'NHWC'),
            precision=jax.lax.Precision.HIGHEST)
        y = y * s[0][None, None, None, :] + t[0][None, None, None, :]
        return jnp.maximum(y, 0.0)

    x = conv_bn_relu(x, params['w1'], params['scale1'], params['shift1'])
    x = conv_bn_relu(x, params['w2'], params['scale2'], params['shift2'])
    return jnp.transpose(x, (0, 3, 1, 2))


if __name__ == "__main__":
    key = jax.random.PRNGKey(0)
    k_x1, k_x2, k_p = jax.random.split(key, 3)

    # x1: decoder feature (upsampled 7x7 -> 14x14), x2: skip connection 16x16.
    # diffY = diffX = 2, so the F.pad size-matching path is exercised too.
    N = 2
    C1, H1, W1 = 8, 7, 7
    C2, H2, W2 = 4, 16, 16
    in_ch = C1 + C2               # 12 after concat
    out_ch = 8

    x1 = jax.random.normal(k_x1, (N, C1, H1, W1), jnp.float32)
    x2 = jax.random.normal(k_x2, (N, C2, H2, W2), jnp.float32)
    params = init_up_params(k_p, in_ch, out_ch)

    out = jax.block_until_ready(jax.jit(up_forward)(params, x1, x2))
    ref = jax.block_until_ready(jax.jit(_ref_up_forward)(params, x1, x2))

    assert out.shape == (N, out_ch, H2, W2), out.shape
    # Both sides quantize conv operands and the intermediate activation to
    # bf16 at the same points; the remaining gap is the kernel's final bf16
    # output quantization (<~0.4% relative) plus f32 accumulation-order noise.
    max_err = float(jnp.max(jnp.abs(out - ref)))
    assert jnp.allclose(out, ref, rtol=1e-2, atol=1e-2), max_err

    print("KERNEL_OK")
</pallas_src>

<mosaic_0001>
module attributes {stable_mosaic.version = 11 : i64} {
  func.func @_fused_double_conv_kernel(%arg0: i32, %arg1: memref<1x18x18x12xbf16, #tpu.memory_space<vmem>>, %arg2: memref<3x3x12x128xbf16, #tpu.memory_space<vmem>>, %arg3: memref<1x128xf32, #tpu.memory_space<vmem>>, %arg4: memref<1x128xf32, #tpu.memory_space<vmem>>, %arg5: memref<3x3x128x128xbf16, #tpu.memory_space<vmem>>, %arg6: memref<1x128xf32, #tpu.memory_space<vmem>>, %arg7: memref<1x128xf32, #tpu.memory_space<vmem>>, %arg8: memref<1x16x16x128xbf16, #tpu.memory_space<vmem>>, %arg9: memref<18x18x128xbf16, #tpu.memory_space<vmem>>) attributes {dimension_semantics = [#tpu.dimension_semantics<parallel>], iteration_bounds = array<i64: 2>, scalar_prefetch = 0 : i64, scratch_operands = 1 : i64, tpu.core_type = #tpu.core_type<tc>, window_params = [{transform_indices = @transform_0, window_bounds = array<i64: 1, 18, 18, 12>}, {pipeline_mode = #tpu.pipeline_mode<synchronous>, transform_indices = @transform_1, window_bounds = array<i64: 3, 3, 12, 128>}, {pipeline_mode = #tpu.pipeline_mode<synchronous>, transform_indices = @transform_2, window_bounds = array<i64: 1, 128>}, {pipeline_mode = #tpu.pipeline_mode<synchronous>, transform_indices = @transform_3, window_bounds = array<i64: 1, 128>}, {pipeline_mode = #tpu.pipeline_mode<synchronous>, transform_indices = @transform_4, window_bounds = array<i64: 3, 3, 128, 128>}, {pipeline_mode = #tpu.pipeline_mode<synchronous>, transform_indices = @transform_5, window_bounds = array<i64: 1, 128>}, {pipeline_mode = #tpu.pipeline_mode<synchronous>, transform_indices = @transform_6, window_bounds = array<i64: 1, 128>}, {transform_indices = @transform_7, window_bounds = array<i64: 1, 16, 16, 128>}]} {
    %cst = arith.constant 0.000000e+00 : bf16
    %0 = vector.broadcast %cst : bf16 to vector<1x18x128xbf16>
    %c0 = arith.constant 0 : index
    %c0_0 = arith.constant 0 : index
    %c0_1 = arith.constant 0 : index
    %1 = vector.load %arg9[%c0, %c0_0, %c0_1] : memref<18x18x128xbf16, #tpu.memory_space<vmem>>, vector<1x18x128xbf16>
    tpu.vector_store %arg9[%c0, %c0_0, %c0_1], %0 {strides = array<i32>} : memref<18x18x128xbf16, #tpu.memory_space<vmem>>, vector<1x18x128xbf16>,
    %c17 = arith.constant 17 : index
    %c0_2 = arith.constant 0 : index
    %c0_3 = arith.constant 0 : index
    %2 = vector.load %arg9[%c17, %c0_2, %c0_3] : memref<18x18x128xbf16, #tpu.memory_space<vmem>>, vector<1x18x128xbf16>
    tpu.vector_store %arg9[%c17, %c0_2, %c0_3], %0 {strides = array<i32>} : memref<18x18x128xbf16, #tpu.memory_space<vmem>>, vector<1x18x128xbf16>,
    %cst_4 = arith.constant 0.000000e+00 : bf16
    %3 = vector.broadcast %cst_4 : bf16 to vector<18x1x128xbf16>
    %c0_5 = arith.constant 0 : index
    %c0_6 = arith.constant 0 : index
    %c0_7 = arith.constant 0 : index
    %4 = vector.load %arg9[%c0_5, %c0_6, %c0_7] : memref<18x18x128xbf16, #tpu.memory_space<vmem>>, vector<18x1x128xbf16>
    tpu.vector_store %arg9[%c0_5, %c0_6, %c0_7], %3 {strides = array<i32>} : memref<18x18x128xbf16, #tpu.memory_space<vmem>>, vector<18x1x128xbf16>,
    %c0_8 = arith.constant 0 : index
    %c17_9 = arith.constant 17 : index
    %c0_10 = arith.constant 0 : index
    %5 = vector.load %arg9[%c0_8, %c17_9, %c0_10] : memref<18x18x128xbf16, #tpu.memory_space<vmem>>, vector<18x1x128xbf16>
    tpu.vector_store %arg9[%c0_8, %c17_9, %c0_10], %3 {strides = array<i32>} : memref<18x18x128xbf16, #tpu.memory_space<vmem>>, vector<18x1x128xbf16>,
    %c0_11 = arith.constant 0 : index
    %c0_12 = arith.constant 0 : index
    %6 = vector.load %arg3[%c0_11, %c0_12] : memref<1x128xf32, #tpu.memory_space<vmem>>, vector<1x128xf32>
    %c0_13 = arith.constant 0 : index
    %c0_14 = arith.constant 0 : index
    %7 = vector.load %arg4[%c0_13, %c0_14] : memref<1x128xf32, #tpu.memory_space<vmem>>, vector<1x128xf32>
    %c0_15 = arith.constant 0 : index
    %c0_16 = arith.constant 0 : index
    %8 = vector.load %arg6[%c0_15, %c0_16] : memref<1x128xf32, #tpu.memory_space<vmem>>, vector<1x128xf32>
    %c0_17 = arith.constant 0 : index
    %c0_18 = arith.constant 0 : index
    %9 = vector.load %arg7[%c0_17, %c0_18] : memref<1x128xf32, #tpu.memory_space<vmem>>, vector<1x128xf32>
    %c0_i32 = arith.constant 0 : i32
    %c8_i32 = arith.constant 8 : i32
    %10 = arith.muli %c0_i32, %c8_i32 : i32
    %11 = tpu.assume_multiple %10, 8 : i32
    %cst_19 = arith.constant 0.000000e+00 : f32
    %12 = vector.broadcast %cst_19 : f32 to vector<128x128xf32>
    %c0_i32_20 = arith.constant 0 : i32
    %13 = arith.addi %11, %c0_i32_20 : i32
    %c0_21 = arith.constant 0 : index
    %14 = arith.index_cast %13 : i32 to index
    %c0_22 = arith.constant 0 : index
    %c0_23 = arith.constant 0 : index
    %15 = vector.load %arg1[%c0_21, %14, %c0_22, %c0_23] : memref<1x18x18x12xbf16, #tpu.memory_space<vmem>>, vector<1x8x16x12xbf16>
    %16 = vector.shape_cast %15 : vector<1x8x16x12xbf16> to vector<8x16x12xbf16>
    %17 = vector.shape_cast %16 : vector<8x16x12xbf16> to vector<128x12xbf16>
    %c0_24 = arith.constant 0 : index
    %c0_25 = arith.constant 0 : index
    %c0_26 = arith.constant 0 : index
    %c0_27 = arith.constant 0 : index
    %18 = vector.load %arg2[%c0_24, %c0_25, %c0_26, %c0_27] : memref<3x3x12x128xbf16, #tpu.memory_space<vmem>>, vector<1x1x12x128xbf16>
    %19 = vector.shape_cast %18 : vector<1x1x12x128xbf16> to vector<12x128xbf16>
    %cst_28 = arith.constant dense<0.000000e+00> : vector<128x128xf32>
    %20 = tpu.matmul %17, %19, %cst_28 {dimension_numbers = #tpu.dot_dimension_numbers<[1], [0], [0], [1], [0, 0, 1, 1], [], []>} : vector<128x12xbf16>, vector<12x128xbf16>, vector<128x128xf32> -> vector<128x128xf32>
    %21 = arith.addf %12, %20 : vector<128x128xf32>
    %c0_i32_29 = arith.constant 0 : i32
    %22 = arith.addi %11, %c0_i32_29 : i32
    %c0_30 = arith.constant 0 : index
    %23 = arith.index_cast %22 : i32 to index
    %c1 = arith.constant 1 : index
    %c0_31 = arith.constant 0 : index
    %24 = vector.load %arg1[%c0_30, %23, %c1, %c0_31] : memref<1x18x18x12xbf16, #tpu.memory_space<vmem>>, vector<1x8x16x12xbf16>
    %25 = vector.shape_cast %24 : vector<1x8x16x12xbf16> to vector<8x16x12xbf16>
    %26 = vector.shape_cast %25 : vector<8x16x12xbf16> to vector<128x12xbf16>
    %c0_32 = arith.constant 0 : index
    %c1_33 = arith.constant 1 : index
    %c0_34 = arith.constant 0 : index
    %c0_35 = arith.constant 0 : index
    %27 = vector.load %arg2[%c0_32, %c1_33, %c0_34, %c0_35] : memref<3x3x12x128xbf16, #tpu.memory_space<vmem>>, vector<1x1x12x128xbf16>
    %28 = vector.shape_cast %27 : vector<1x1x12x128xbf16> to vector<12x128xbf16>
    %cst_36 = arith.constant dense<0.000000e+00> : vector<128x128xf32>
    %29 = tpu.matmul %26, %28, %cst_36 {dimension_numbers = #tpu.dot_dimension_numbers<[1], [0], [0], [1], [0, 0, 1, 1], [], []>} : vector<128x12xbf16>, vector<12x128xbf16>, vector<128x128xf32> -> vector<128x128xf32>
    %30 = arith.addf %21, %29 : vector<128x128xf32>
    %c0_i32_37 = arith.constant 0 : i32
    %31 = arith.addi %11, %c0_i32_37 : i32
    %c0_38 = arith.constant 0 : index
    %32 = arith.index_cast %31 : i32 to index
    %c2 = arith.constant 2 : index
    %c0_39 = arith.constant 0 : index
    %33 = vector.load %arg1[%c0_38, %32, %c2, %c0_39] : memref<1x18x18x12xbf16, #tpu.memory_space<vmem>>, vector<1x8x16x12xbf16>
    %34 = vector.shape_cast %33 : vector<1x8x16x12xbf16> to vector<8x16x12xbf16>
    %35 = vector.shape_cast %34 : vector<8x16x12xbf16> to vector<128x12xbf16>
    %c0_40 = arith.constant 0 : index
    %c2_41 = arith.constant 2 : index
    %c0_42 = arith.constant 0 : index
    %c0_43 = arith.constant 0 : index
    %36 = vector.load %arg2[%c0_40, %c2_41, %c0_42, %c0_43] : memref<3x3x12x128xbf16, #tpu.memory_space<vmem>>, vector<1x1x12x128xbf16>
    %37 = vector.shape_cast %36 : vector<1x1x12x128xbf16> to vector<12x128xbf16>
    %cst_44 = arith.constant dense<0.000000e+00> : vector<128x128xf32>
    %38 = tpu.matmul %35, %37, %cst_44 {dimension_numbers = #tpu.dot_dimension_numbers<[1], [0], [0], [1], [0, 0, 1, 1], [], []>} : vector<128x12xbf16>, vector<12x128xbf16>, vector<128x128xf32> -> vector<128x128xf32>
    %39 = arith.addf %30, %38 : vector<128x128xf32>
    %c1_i32 = arith.constant 1 : i32
    %40 = arith.addi %11, %c1_i32 : i32
    %c0_45 = arith.constant 0 : index
    %41 = arith.index_cast %40 : i32 to index
    %c0_46 = arith.constant 0 : index
    %c0_47 = arith.constant 0 : index
    %42 = vector.load %arg1[%c0_45, %41, %c0_46, %c0_47] : memref<1x18x18x12xbf16, #tpu.memory_space<vmem>>, vector<1x8x16x12xbf16>
    %43 = vector.shape_cast %42 : vector<1x8x16x12xbf16> to vector<8x16x12xbf16>
    %44 = vector.shape_cast %43 : vector<8x16x12xbf16> to vector<128x12xbf16>
    %c1_48 = arith.constant 1 : index
    %c0_49 = arith.constant 0 : index
    %c0_50 = arith.constant 0 : index
    %c0_51 = arith.constant 0 : index
    %45 = vector.load %arg2[%c1_48, %c0_49, %c0_50, %c0_51] : memref<3x3x12x128xbf16, #tpu.memory_space<vmem>>, vector<1x1x12x128xbf16>
    %46 = vector.shape_cast %45 : vector<1x1x12x128xbf16> to vector<12x128xbf16>
    %cst_52 = arith.constant dense<0.000000e+00> : vector<128x128xf32>
    %47 = tpu.matmul %44, %46, %cst_52 {dimension_numbers = #tpu.dot_dimension_numbers<[1], [0], [0], [1], [0, 0, 1, 1], [], []>} : vector<128x12xbf16>, vector<12x128xbf16>, vector<128x128xf32> -> vector<128x128xf32>
    %48 = arith.addf %39, %47 : vector<128x128xf32>
    %c1_i32_53 = arith.constant 1 : i32
    %49 = arith.addi %11, %c1_i32_53 : i32
    %c0_54 = arith.constant 0 : index
    %50 = arith.index_cast %49 : i32 to index
    %c1_55 = arith.constant 1 : index
    %c0_56 = arith.constant 0 : index
    %51 = vector.load %arg1[%c0_54, %50, %c1_55, %c0_56] : memref<1x18x18x12xbf16, #tpu.memory_space<vmem>>, vector<1x8x16x12xbf16>
    %52 = vector.shape_cast %51 : vector<1x8x16x12xbf16> to vector<8x16x12xbf16>
    %53 = vector.shape_cast %52 : vector<8x16x12xbf16> to vector<128x12xbf16>
    %c1_57 = arith.constant 1 : index
    %c1_58 = arith.constant 1 : index
    %c0_59 = arith.constant 0 : index
    %c0_60 = arith.constant 0 : index
    %54 = vector.load %arg2[%c1_57, %c1_58, %c0_59, %c0_60] : memref<3x3x12x128xbf16, #tpu.memory_space<vmem>>, vector<1x1x12x128xbf16>
    %55 = vector.shape_cast %54 : vector<1x1x12x128xbf16> to vector<12x128xbf16>
    %cst_61 = arith.constant dense<0.000000e+00> : vector<128x128xf32>
    %56 = tpu.matmul %53, %55, %cst_61 {dimension_numbers = #tpu.dot_dimension_numbers<[1], [0], [0], [1], [0, 0, 1, 1], [], []>} : vector<128x12xbf16>, vector<12x128xbf16>, vector<128x128xf32> -> vector<128x128xf32>
    %57 = arith.addf %48, %56 : vector<128x128xf32>
    %c1_i32_62 = arith.constant 1 : i32
    %58 = arith.addi %11, %c1_i32_62 : i32
    %c0_63 = arith.constant 0 : index
    %59 = arith.index_cast %58 : i32 to index
    %c2_64 = arith.constant 2 : index
    %c0_65 = arith.constant 0 : index
    %60 = vector.load %arg1[%c0_63, %59, %c2_64, %c0_65] : memref<1x18x18x12xbf16, #tpu.memory_space<vmem>>, vector<1x8x16x12xbf16>
    %61 = vector.shape_cast %60 : vector<1x8x16x12xbf16> to vector<8x16x12xbf16>
    %62 = vector.shape_cast %61 : vector<8x16x12xbf16> to vector<128x12xbf16>
    %c1_66 = arith.constant 1 : index
    %c2_67 = arith.constant 2 : index
    %c0_68 = arith.constant 0 : index
    %c0_69 = arith.constant 0 : index
    %63 = vector.load %arg2[%c1_66, %c2_67, %c0_68, %c0_69] : memref<3x3x12x128xbf16, #tpu.memory_space<vmem>>, vector<1x1x12x128xbf16>
    %64 = vector.shape_cast %63 : vector<1x1x12x128xbf16> to vector<12x128xbf16>
    %cst_70 = arith.constant dense<0.000000e+00> : vector<128x128xf32>
    %65 = tpu.matmul %62, %64, %cst_70 {dimension_numbers = #tpu.dot_dimension_numbers<[1], [0], [0], [1], [0, 0, 1, 1], [], []>} : vector<128x12xbf16>, vector<12x128xbf16>, vector<128x128xf32> -> vector<128x128xf32>
    %66 = arith.addf %57, %65 : vector<128x128xf32>
    %c2_i32 = arith.constant 2 : i32
    %67 = arith.addi %11, %c2_i32 : i32
    %c0_71 = arith.constant 0 : index
    %68 = arith.index_cast %67 : i32 to index
    %c0_72 = arith.constant 0 : index
    %c0_73 = arith.constant 0 : index
    %69 = vector.load %arg1[%c0_71, %68, %c0_72, %c0_73] : memref<1x18x18x12xbf16, #tpu.memory_space<vmem>>, vector<1x8x16x12xbf16>
    %70 = vector.shape_cast %69 : vector<1x8x16x12xbf16> to vector<8x16x12xbf16>
    %71 = vector.shape_cast %70 : vector<8x16x12xbf16> to vector<128x12xbf16>
    %c2_74 = arith.constant 2 : index
    %c0_75 = arith.constant 0 : index
    %c0_76 = arith.constant 0 : index
    %c0_77 = arith.constant 0 : index
    %72 = vector.load %arg2[%c2_74, %c0_75, %c0_76, %c0_77] : memref<3x3x12x128xbf16, #tpu.memory_space<vmem>>, vector<1x1x12x128xbf16>
    %73 = vector.shape_cast %72 : vector<1x1x12x128xbf16> to vector<12x128xbf16>
    %cst_78 = arith.constant dense<0.000000e+00> : vector<128x128xf32>
    %74 = tpu.matmul %71, %73, %cst_78 {dimension_numbers = #tpu.dot_dimension_numbers<[1], [0], [0], [1], [0, 0, 1, 1], [], []>} : vector<128x12xbf16>, vector<12x128xbf16>, vector<128x128xf32> -> vector<128x128xf32>
    %75 = arith.addf %66, %74 : vector<128x128xf32>
    %c2_i32_79 = arith.constant 2 : i32
    %76 = arith.addi %11, %c2_i32_79 : i32
    %c0_80 = arith.constant 0 : index
    %77 = arith.index_cast %76 : i32 to index
    %c1_81 = arith.constant 1 : index
    %c0_82 = arith.constant 0 : index
    %78 = vector.load %arg1[%c0_80, %77, %c1_81, %c0_82] : memref<1x18x18x12xbf16, #tpu.memory_space<vmem>>, vector<1x8x16x12xbf16>
    %79 = vector.shape_cast %78 : vector<1x8x16x12xbf16> to vector<8x16x12xbf16>
    %80 = vector.shape_cast %79 : vector<8x16x12xbf16> to vector<128x12xbf16>
    %c2_83 = arith.constant 2 : index
    %c1_84 = arith.constant 1 : index
    %c0_85 = arith.constant 0 : index
    %c0_86 = arith.constant 0 : index
    %81 = vector.load %arg2[%c2_83, %c1_84, %c0_85, %c0_86] : memref<3x3x12x128xbf16, #tpu.memory_space<vmem>>, vector<1x1x12x128xbf16>
    %82 = vector.shape_cast %81 : vector<1x1x12x128xbf16> to vector<12x128xbf16>
    %cst_87 = arith.constant dense<0.000000e+00> : vector<128x128xf32>
    %83 = tpu.matmul %80, %82, %cst_87 {dimension_numbers = #tpu.dot_dimension_numbers<[1], [0], [0], [1], [0, 0, 1, 1], [], []>} : vector<128x12xbf16>, vector<12x128xbf16>, vector<128x128xf32> -> vector<128x128xf32>
    %84 = arith.addf %75, %83 : vector<128x128xf32>
    %c2_i32_88 = arith.constant 2 : i32
    %85 = arith.addi %11, %c2_i32_88 : i32
    %c0_89 = arith.constant 0 : index
    %86 = arith.index_cast %85 : i32 to index
    %c2_90 = arith.constant 2 : index
    %c0_91 = arith.constant 0 : index
    %87 = vector.load %arg1[%c0_89, %86, %c2_90, %c0_91] : memref<1x18x18x12xbf16, #tpu.memory_space<vmem>>, vector<1x8x16x12xbf16>
    %88 = vector.shape_cast %87 : vector<1x8x16x12xbf16> to vector<8x16x12xbf16>
    %89 = vector.shape_cast %88 : vector<8x16x12xbf16> to vector<128x12xbf16>
    %c2_92 = arith.constant 2 : index
    %c2_93 = arith.constant 2 : index
    %c0_94 = arith.constant 0 : index
    %c0_95 = arith.constant 0 : index
    %90 = vector.load %arg2[%c2_92, %c2_93, %c0_94, %c0_95] : memref<3x3x12x128xbf16, #tpu.memory_space<vmem>>, vector<1x1x12x128xbf16>
    %91 = vector.shape_cast %90 : vector<1x1x12x128xbf16> to vector<12x128xbf16>
    %cst_96 = arith.constant dense<0.000000e+00> : vector<128x128xf32>
    %92 = tpu.matmul %89, %91, %cst_96 {dimension_numbers = #tpu.dot_dimension_numbers<[1], [0], [0], [1], [0, 0, 1, 1], [], []>} : vector<128x12xbf16>, vector<12x128xbf16>, vector<128x128xf32> -> vector<128x128xf32>
    %93 = arith.addf %84, %92 : vector<128x128xf32>
    %94 = vector.broadcast %6 : vector<1x128xf32> to vector<128x128xf32>
    %95 = arith.mulf %93, %94 : vector<128x128xf32>
    %96 = vector.broadcast %7 : vector<1x128xf32> to vector<128x128xf32>
    %97 = arith.addf %95, %96 : vector<128x128xf32>
    %cst_97 = arith.constant 0.000000e+00 : f32
    %98 = vector.broadcast %cst_97 : f32 to vector<128x128xf32>
    %99 = arith.maximumf %97, %98 : vector<128x128xf32>
    %100 = arith.truncf %99 : vector<128x128xf32> to vector<128x128xbf16>
    %101 = vector.shape_cast %100 : vector<128x128xbf16> to vector<8x16x128xbf16>
    %c1_i32_98 = arith.constant 1 : i32
    %102 = arith.addi %11, %c1_i32_98 : i32
    %103 = arith.index_cast %102 : i32 to index
    %c1_99 = arith.constant 1 : index
    %c0_100 = arith.constant 0 : index
    %104 = vector.load %arg9[%103, %c1_99, %c0_100] : memref<18x18x128xbf16, #tpu.memory_space<vmem>>, vector<8x16x128xbf16>
    tpu.vector_store %arg9[%103, %c1_99, %c0_100], %101 {strides = array<i32>} : memref<18x18x128xbf16, #tpu.memory_space<vmem>>, vector<8x16x128xbf16>,
    %c1_i32_101 = arith.constant 1 : i32
    %c8_i32_102 = arith.constant 8 : i32
    %105 = arith.muli %c1_i32_101, %c8_i32_102 : i32
    %106 = tpu.assume_multiple %105, 8 : i32
    %cst_103 = arith.constant 0.000000e+00 : f32
    %107 = vector.broadcast %cst_103 : f32 to vector<128x128xf32>
    %c0_i32_104 = arith.constant 0 : i32
    %108 = arith.addi %106, %c0_i32_104 : i32
    %c0_105 = arith.constant 0 : index
    %109 = arith.index_cast %108 : i32 to index
    %c0_106 = arith.constant 0 : index
    %c0_107 = arith.constant 0 : index
    %110 = vector.load %arg1[%c0_105, %109, %c0_106, %c0_107] : memref<1x18x18x12xbf16, #tpu.memory_space<vmem>>, vector<1x8x16x12xbf16>
    %111 = vector.shape_cast %110 : vector<1x8x16x12xbf16> to vector<8x16x12xbf16>
    %112 = vector.shape_cast %111 : vector<8x16x12xbf16> to vector<128x12xbf16>
    %c0_108 = arith.constant 0 : index
    %c0_109 = arith.constant 0 : index
    %c0_110 = arith.constant 0 : index
    %c0_111 = arith.constant 0 : index
    %113 = vector.load %arg2[%c0_108, %c0_109, %c0_110, %c0_111] : memref<3x3x12x128xbf16, #tpu.memory_space<vmem>>, vector<1x1x12x128xbf16>
    %114 = vector.shape_cast %113 : vector<1x1x12x128xbf16> to vector<12x128xbf16>
    %cst_112 = arith.constant dense<0.000000e+00> : vector<128x128xf32>
    %115 = tpu.matmul %112, %114, %cst_112 {dimension_numbers = #tpu.dot_dimension_numbers<[1], [0], [0], [1], [0, 0, 1, 1], [], []>} : vector<128x12xbf16>, vector<12x128xbf16>, vector<128x128xf32> -> vector<128x128xf32>
    %116 = arith.addf %107, %115 : vector<128x128xf32>
    %c0_i32_113 = arith.constant 0 : i32
    %117 = arith.addi %106, %c0_i32_113 : i32
    %c0_114 = arith.constant 0 : index
    %118 = arith.index_cast %117 : i32 to index
    %c1_115 = arith.constant 1 : index
    %c0_116 = arith.constant 0 : index
    %119 = vector.load %arg1[%c0_114, %118, %c1_115, %c0_116] : memref<1x18x18x12xbf16, #tpu.memory_space<vmem>>, vector<1x8x16x12xbf16>
    %120 = vector.shape_cast %119 : vector<1x8x16x12xbf16> to vector<8x16x12xbf16>
    %121 = vector.shape_cast %120 : vector<8x16x12xbf16> to vector<128x12xbf16>
    %c0_117 = arith.constant 0 : index
    %c1_118 = arith.constant 1 : index
    %c0_119 = arith.constant 0 : index
    %c0_120 = arith.constant 0 : index
    %122 = vector.load %arg2[%c0_117, %c1_118, %c0_119, %c0_120] : memref<3x3x12x128xbf16, #tpu.memory_space<vmem>>, vector<1x1x12x128xbf16>
    %123 = vector.shape_cast %122 : vector<1x1x12x128xbf16> to vector<12x128xbf16>
    %cst_121 = arith.constant dense<0.000000e+00> : vector<128x128xf32>
    %124 = tpu.matmul %121, %123, %cst_121 {dimension_numbers = #tpu.dot_dimension_numbers<[1], [0], [0], [1], [0, 0, 1, 1], [], []>} : vector<128x12xbf16>, vector<12x128xbf16>, vector<128x128xf32> -> vector<128x128xf32>
    %125 = arith.addf %116, %124 : vector<128x128xf32>
    %c0_i32_122 = arith.constant 0 : i32
    %126 = arith.addi %106, %c0_i32_122 : i32
    %c0_123 = arith.constant 0 : index
    %127 = arith.index_cast %126 : i32 to index
    %c2_124 = arith.constant 2 : index
    %c0_125 = arith.constant 0 : index
    %128 = vector.load %arg1[%c0_123, %127, %c2_124, %c0_125] : memref<1x18x18x12xbf16, #tpu.memory_space<vmem>>, vector<1x8x16x12xbf16>
    %129 = vector.shape_cast %128 : vector<1x8x16x12xbf16> to vector<8x16x12xbf16>
    %130 = vector.shape_cast %129 : vector<8x16x12xbf16> to vector<128x12xbf16>
    %c0_126 = arith.constant 0 : index
    %c2_127 = arith.constant 2 : index
    %c0_128 = arith.constant 0 : index
    %c0_129 = arith.constant 0 : index
    %131 = vector.load %arg2[%c0_126, %c2_127, %c0_128, %c0_129] : memref<3x3x12x128xbf16, #tpu.memory_space<vmem>>, vector<1x1x12x128xbf16>
    %132 = vector.shape_cast %131 : vector<1x1x12x128xbf16> to vector<12x128xbf16>
    %cst_130 = arith.constant dense<0.000000e+00> : vector<128x128xf32>
    %133 = tpu.matmul %130, %132, %cst_130 {dimension_numbers = #tpu.dot_dimension_numbers<[1], [0], [0], [1], [0, 0, 1, 1], [], []>} : vector<128x12xbf16>, vector<12x128xbf16>, vector<128x128xf32> -> vector<128x128xf32>
    %134 = arith.addf %125, %133 : vector<128x128xf32>
    %c1_i32_131 = arith.constant 1 : i32
    %135 = arith.addi %106, %c1_i32_131 : i32
    %c0_132 = arith.constant 0 : index
    %136 = arith.index_cast %135 : i32 to index
    %c0_133 = arith.constant 0 : index
    %c0_134 = arith.constant 0 : index
    %137 = vector.load %arg1[%c0_132, %136, %c0_133, %c0_134] : memref<1x18x18x12xbf16, #tpu.memory_space<vmem>>, vector<1x8x16x12xbf16>
    %138 = vector.shape_cast %137 : vector<1x8x16x12xbf16> to vector<8x16x12xbf16>
    %139 = vector.shape_cast %138 : vector<8x16x12xbf16> to vector<128x12xbf16>
    %c1_135 = arith.constant 1 : index
    %c0_136 = arith.constant 0 : index
    %c0_137 = arith.constant 0 : index
    %c0_138 = arith.constant 0 : index
    %140 = vector.load %arg2[%c1_135, %c0_136, %c0_137, %c0_138] : memref<3x3x12x128xbf16, #tpu.memory_space<vmem>>, vector<1x1x12x128xbf16>
    %141 = vector.shape_cast %140 : vector<1x1x12x128xbf16> to vector<12x128xbf16>
    %cst_139 = arith.constant dense<0.000000e+00> : vector<128x128xf32>
    %142 = tpu.matmul %139, %141, %cst_139 {dimension_numbers = #tpu.dot_dimension_numbers<[1], [0], [0], [1], [0, 0, 1, 1], [], []>} : vector<128x12xbf16>, vector<12x128xbf16>, vector<128x128xf32> -> vector<128x128xf32>
    %143 = arith.addf %134, %142 : vector<128x128xf32>
    %c1_i32_140 = arith.constant 1 : i32
    %144 = arith.addi %106, %c1_i32_140 : i32
    %c0_141 = arith.constant 0 : index
    %145 = arith.index_cast %144 : i32 to index
    %c1_142 = arith.constant 1 : index
    %c0_143 = arith.constant 0 : index
    %146 = vector.load %arg1[%c0_141, %145, %c1_142, %c0_143] : memref<1x18x18x12xbf16, #tpu.memory_space<vmem>>, vector<1x8x16x12xbf16>
    %147 = vector.shape_cast %146 : vector<1x8x16x12xbf16> to vector<8x16x12xbf16>
    %148 = vector.shape_cast %147 : vector<8x16x12xbf16> to vector<128x12xbf16>
    %c1_144 = arith.constant 1 : index
    %c1_145 = arith.constant 1 : index
    %c0_146 = arith.constant 0 : index
    %c0_147 = arith.constant 0 : index
    %149 = vector.load %arg2[%c1_144, %c1_145, %c0_146, %c0_147] : memref<3x3x12x128xbf16, #tpu.memory_space<vmem>>, vector<1x1x12x128xbf16>
    %150 = vector.shape_cast %149 : vector<1x1x12x128xbf16> to vector<12x128xbf16>
    %cst_148 = arith.constant dense<0.000000e+00> : vector<128x128xf32>
    %151 = tpu.matmul %148, %150, %cst_148 {dimension_numbers = #tpu.dot_dimension_numbers<[1], [0], [0], [1], [0, 0, 1, 1], [], []>} : vector<128x12xbf16>, vector<12x128xbf16>, vector<128x128xf32> -> vector<128x128xf32>
    %152 = arith.addf %143, %151 : vector<128x128xf32>
    %c1_i32_149 = arith.constant 1 : i32
    %153 = arith.addi %106, %c1_i32_149 : i32
    %c0_150 = arith.constant 0 : index
    %154 = arith.index_cast %153 : i32 to index
    %c2_151 = arith.constant 2 : index
    %c0_152 = arith.constant 0 : index
    %155 = vector.load %arg1[%c0_150, %154, %c2_151, %c0_152] : memref<1x18x18x12xbf16, #tpu.memory_space<vmem>>, vector<1x8x16x12xbf16>
    %156 = vector.shape_cast %155 : vector<1x8x16x12xbf16> to vector<8x16x12xbf16>
    %157 = vector.shape_cast %156 : vector<8x16x12xbf16> to vector<128x12xbf16>
    %c1_153 = arith.constant 1 : index
    %c2_154 = arith.constant 2 : index
    %c0_155 = arith.constant 0 : index
    %c0_156 = arith.constant 0 : index
    %158 = vector.load %arg2[%c1_153, %c2_154, %c0_155, %c0_156] : memref<3x3x12x128xbf16, #tpu.memory_space<vmem>>, vector<1x1x12x128xbf16>
    %159 = vector.shape_cast %158 : vector<1x1x12x128xbf16> to vector<12x128xbf16>
    %cst_157 = arith.constant dense<0.000000e+00> : vector<128x128xf32>
    %160 = tpu.matmul %157, %159, %cst_157 {dimension_numbers = #tpu.dot_dimension_numbers<[1], [0], [0], [1], [0, 0, 1, 1], [], []>} : vector<128x12xbf16>, vector<12x128xbf16>, vector<128x128xf32> -> vector<128x128xf32>
    %161 = arith.addf %152, %160 : vector<128x128xf32>
    %c2_i32_158 = arith.constant 2 : i32
    %162 = arith.addi %106, %c2_i32_158 : i32
    %c0_159 = arith.constant 0 : index
    %163 = arith.index_cast %162 : i32 to index
    %c0_160 = arith.constant 0 : index
    %c0_161 = arith.constant 0 : index
    %164 = vector.load %arg1[%c0_159, %163, %c0_160, %c0_161] : memref<1x18x18x12xbf16, #tpu.memory_space<vmem>>, vector<1x8x16x12xbf16>
    %165 = vector.shape_cast %164 : vector<1x8x16x12xbf16> to vector<8x16x12xbf16>
    %166 = vector.shape_cast %165 : vector<8x16x12xbf16> to vector<128x12xbf16>
    %c2_162 = arith.constant 2 : index
    %c0_163 = arith.constant 0 : index
    %c0_164 = arith.constant 0 : index
    %c0_165 = arith.constant 0 : index
    %167 = vector.load %arg2[%c2_162, %c0_163, %c0_164, %c0_165] : memref<3x3x12x128xbf16, #tpu.memory_space<vmem>>, vector<1x1x12x128xbf16>
    %168 = vector.shape_cast %167 : vector<1x1x12x128xbf16> to vector<12x128xbf16>
    %cst_166 = arith.constant dense<0.000000e+00> : vector<128x128xf32>
    %169 = tpu.matmul %166, %168, %cst_166 {dimension_numbers = #tpu.dot_dimension_numbers<[1], [0], [0], [1], [0, 0, 1, 1], [], []>} : vector<128x12xbf16>, vector<12x128xbf16>, vector<128x128xf32> -> vector<128x128xf32>
    %170 = arith.addf %161, %169 : vector<128x128xf32>
    %c2_i32_167 = arith.constant 2 : i32
    %171 = arith.addi %106, %c2_i32_167 : i32
    %c0_168 = arith.constant 0 : index
    %172 = arith.index_cast %171 : i32 to index
    %c1_169 = arith.constant 1 : index
    %c0_170 = arith.constant 0 : index
    %173 = vector.load %arg1[%c0_168, %172, %c1_169, %c0_170] : memref<1x18x18x12xbf16, #tpu.memory_space<vmem>>, vector<1x8x16x12xbf16>
    %174 = vector.shape_cast %173 : vector<1x8x16x12xbf16> to vector<8x16x12xbf16>
    %175 = vector.shape_cast %174 : vector<8x16x12xbf16> to vector<128x12xbf16>
    %c2_171 = arith.constant 2 : index
    %c1_172 = arith.constant 1 : index
    %c0_173 = arith.constant 0 : index
    %c0_174 = arith.constant 0 : index
    %176 = vector.load %arg2[%c2_171, %c1_172, %c0_173, %c0_174] : memref<3x3x12x128xbf16, #tpu.memory_space<vmem>>, vector<1x1x12x128xbf16>
    %177 = vector.shape_cast %176 : vector<1x1x12x128xbf16> to vector<12x128xbf16>
    %cst_175 = arith.constant dense<0.000000e+00> : vector<128x128xf32>
    %178 = tpu.matmul %175, %177, %cst_175 {dimension_numbers = #tpu.dot_dimension_numbers<[1], [0], [0], [1], [0, 0, 1, 1], [], []>} : vector<128x12xbf16>, vector<12x128xbf16>, vector<128x128xf32> -> vector<128x128xf32>
    %179 = arith.addf %170, %178 : vector<128x128xf32>
    %c2_i32_176 = arith.constant 2 : i32
    %180 = arith.addi %106, %c2_i32_176 : i32
    %c0_177 = arith.constant 0 : index
    %181 = arith.index_cast %180 : i32 to index
    %c2_178 = arith.constant 2 : index
    %c0_179 = arith.constant 0 : index
    %182 = vector.load %arg1[%c0_177, %181, %c2_178, %c0_179] : memref<1x18x18x12xbf16, #tpu.memory_space<vmem>>, vector<1x8x16x12xbf16>
    %183 = vector.shape_cast %182 : vector<1x8x16x12xbf16> to vector<8x16x12xbf16>
    %184 = vector.shape_cast %183 : vector<8x16x12xbf16> to vector<128x12xbf16>
    %c2_180 = arith.constant 2 : index
    %c2_181 = arith.constant 2 : index
    %c0_182 = arith.constant 0 : index
    %c0_183 = arith.constant 0 : index
    %185 = vector.load %arg2[%c2_180, %c2_181, %c0_182, %c0_183] : memref<3x3x12x128xbf16, #tpu.memory_space<vmem>>, vector<1x1x12x128xbf16>
    %186 = vector.shape_cast %185 : vector<1x1x12x128xbf16> to vector<12x128xbf16>
    %cst_184 = arith.constant dense<0.000000e+00> : vector<128x128xf32>
    %187 = tpu.matmul %184, %186, %cst_184 {dimension_numbers = #tpu.dot_dimension_numbers<[1], [0], [0], [1], [0, 0, 1, 1], [], []>} : vector<128x12xbf16>, vector<12x128xbf16>, vector<128x128xf32> -> vector<128x128xf32>
    %188 = arith.addf %179, %187 : vector<128x128xf32>
    %189 = vector.broadcast %6 : vector<1x128xf32> to vector<128x128xf32>
    %190 = arith.mulf %188, %189 : vector<128x128xf32>
    %191 = vector.broadcast %7 : vector<1x128xf32> to vector<128x128xf32>
    %192 = arith.addf %190, %191 : vector<128x128xf32>
    %cst_185 = arith.constant 0.000000e+00 : f32
    %193 = vector.broadcast %cst_185 : f32 to vector<128x128xf32>
    %194 = arith.maximumf %192, %193 : vector<128x128xf32>
    %195 = arith.truncf %194 : vector<128x128xf32> to vector<128x128xbf16>
    %196 = vector.shape_cast %195 : vector<128x128xbf16> to vector<8x16x128xbf16>
    %c1_i32_186 = arith.constant 1 : i32
    %197 = arith.addi %106, %c1_i32_186 : i32
    %198 = arith.index_cast %197 : i32 to index
    %c1_187 = arith.constant 1 : index
    %c0_188 = arith.constant 0 : index
    %199 = vector.load %arg9[%198, %c1_187, %c0_188] : memref<18x18x128xbf16, #tpu.memory_space<vmem>>, vector<8x16x128xbf16>
    tpu.vector_store %arg9[%198, %c1_187, %c0_188], %196 {strides = array<i32>} : memref<18x18x128xbf16, #tpu.memory_space<vmem>>, vector<8x16x128xbf16>,
    %c2_i32_189 = arith.constant 2 : i32
    %c0_i32_190 = arith.constant 0 : i32
    %c8_i32_191 = arith.constant 8 : i32
    %200 = arith.muli %c0_i32_190, %c8_i32_191 : i32
    %201 = tpu.assume_multiple %200, 8 : i32
    %cst_192 = arith.constant 0.000000e+00 : f32
    %202 = vector.broadcast %cst_192 : f32 to vector<128x128xf32>
    %c0_i32_193 = arith.constant 0 : i32
    %203 = arith.addi %201, %c0_i32_193 : i32
    %204 = arith.index_cast %203 : i32 to index
    %c0_194 = arith.constant 0 : index
    %c0_195 = arith.constant 0 : index
    %205 = vector.load %arg9[%204, %c0_194, %c0_195] : memref<18x18x128xbf16, #tpu.memory_space<vmem>>, vector<8x16x128xbf16>
    %206 = vector.shape_cast %205 : vector<8x16x128xbf16> to vector<128x128xbf16>
    %c0_196 = arith.constant 0 : index
    %c0_197 = arith.constant 0 : index
    %c0_198 = arith.constant 0 : index
    %c0_199 = arith.constant 0 : index
    %207 = vector.load %arg5[%c0_196, %c0_197, %c0_198, %c0_199] : memref<3x3x128x128xbf16, #tpu.memory_space<vmem>>, vector<1x1x128x128xbf16>
    %208 = vector.shape_cast %207 : vector<1x1x128x128xbf16> to vector<128x128xbf16>
    %cst_200 = arith.constant dense<0.000000e+00> : vector<128x128xf32>
    %209 = tpu.matmul %206, %208, %cst_200 {dimension_numbers = #tpu.dot_dimension_numbers<[1], [0], [0], [1], [0, 0, 1, 1], [], []>} : vector<128x128xbf16>, vector<128x128xbf16>, vector<128x128xf32> -> vector<128x128xf32>
    %210 = arith.addf %202, %209 : vector<128x128xf32>
    %c0_i32_201 = arith.constant 0 : i32
    %211 = arith.addi %201, %c0_i32_201 : i32
    %212 = arith.index_cast %211 : i32 to index
    %c1_202 = arith.constant 1 : index
    %c0_203 = arith.constant 0 : index
    %213 = vector.load %arg9[%212, %c1_202, %c0_203] : memref<18x18x128xbf16, #tpu.memory_space<vmem>>, vector<8x16x128xbf16>
    %214 = vector.shape_cast %213 : vector<8x16x128xbf16> to vector<128x128xbf16>
    %c0_204 = arith.constant 0 : index
    %c1_205 = arith.constant 1 : index
    %c0_206 = arith.constant 0 : index
    %c0_207 = arith.constant 0 : index
    %215 = vector.load %arg5[%c0_204, %c1_205, %c0_206, %c0_207] : memref<3x3x128x128xbf16, #tpu.memory_space<vmem>>, vector<1x1x128x128xbf16>
    %216 = vector.shape_cast %215 : vector<1x1x128x128xbf16> to vector<128x128xbf16>
    %cst_208 = arith.constant dense<0.000000e+00> : vector<128x128xf32>
    %217 = tpu.matmul %214, %216, %cst_208 {dimension_numbers = #tpu.dot_dimension_numbers<[1], [0], [0], [1], [0, 0, 1, 1], [], []>} : vector<128x128xbf16>, vector<128x128xbf16>, vector<128x128xf32> -> vector<128x128xf32>
    %218 = arith.addf %210, %217 : vector<128x128xf32>
    %c0_i32_209 = arith.constant 0 : i32
    %219 = arith.addi %201, %c0_i32_209 : i32
    %220 = arith.index_cast %219 : i32 to index
    %c2_210 = arith.constant 2 : index
    %c0_211 = arith.constant 0 : index
    %221 = vector.load %arg9[%220, %c2_210, %c0_211] : memref<18x18x128xbf16, #tpu.memory_space<vmem>>, vector<8x16x128xbf16>
    %222 = vector.shape_cast %221 : vector<8x16x128xbf16> to vector<128x128xbf16>
    %c0_212 = arith.constant 0 : index
    %c2_213 = arith.constant 2 : index
    %c0_214 = arith.constant 0 : index
    %c0_215 = arith.constant 0 : index
    %223 = vector.load %arg5[%c0_212, %c2_213, %c0_214, %c0_215] : memref<3x3x128x128xbf16, #tpu.memory_space<vmem>>, vector<1x1x128x128xbf16>
    %224 = vector.shape_cast %223 : vector<1x1x128x128xbf16> to vector<128x128xbf16>
    %cst_216 = arith.constant dense<0.000000e+00> : vector<128x128xf32>
    %225 = tpu.matmul %222, %224, %cst_216 {dimension_numbers = #tpu.dot_dimension_numbers<[1], [0], [0], [1], [0, 0, 1, 1], [], []>} : vector<128x128xbf16>, vector<128x128xbf16>, vector<128x128xf32> -> vector<128x128xf32>
    %226 = arith.addf %218, %225 : vector<128x128xf32>
    %c1_i32_217 = arith.constant 1 : i32
    %227 = arith.addi %201, %c1_i32_217 : i32
    %228 = arith.index_cast %227 : i32 to index
    %c0_218 = arith.constant 0 : index
    %c0_219 = arith.constant 0 : index
    %229 = vector.load %arg9[%228, %c0_218, %c0_219] : memref<18x18x128xbf16, #tpu.memory_space<vmem>>, vector<8x16x128xbf16>
    %230 = vector.shape_cast %229 : vector<8x16x128xbf16> to vector<128x128xbf16>
    %c1_220 = arith.constant 1 : index
    %c0_221 = arith.constant 0 : index
    %c0_222 = arith.constant 0 : index
    %c0_223 = arith.constant 0 : index
    %231 = vector.load %arg5[%c1_220, %c0_221, %c0_222, %c0_223] : memref<3x3x128x128xbf16, #tpu.memory_space<vmem>>, vector<1x1x128x128xbf16>
    %232 = vector.shape_cast %231 : vector<1x1x128x128xbf16> to vector<128x128xbf16>
    %cst_224 = arith.constant dense<0.000000e+00> : vector<128x128xf32>
    %233 = tpu.matmul %230, %232, %cst_224 {dimension_numbers = #tpu.dot_dimension_numbers<[1], [0], [0], [1], [0, 0, 1, 1], [], []>} : vector<128x128xbf16>, vector<128x128xbf16>, vector<128x128xf32> -> vector<128x128xf32>
    %234 = arith.addf %226, %233 : vector<128x128xf32>
    %c1_i32_225 = arith.constant 1 : i32
    %235 = arith.addi %201, %c1_i32_225 : i32
    %236 = arith.index_cast %235 : i32 to index
    %c1_226 = arith.constant 1 : index
    %c0_227 = arith.constant 0 : index
    %237 = vector.load %arg9[%236, %c1_226, %c0_227] : memref<18x18x128xbf16, #tpu.memory_space<vmem>>, vector<8x16x128xbf16>
    %238 = vector.shape_cast %237 : vector<8x16x128xbf16> to vector<128x128xbf16>
    %c1_228 = arith.constant 1 : index
    %c1_229 = arith.constant 1 : index
    %c0_230 = arith.constant 0 : index
    %c0_231 = arith.constant 0 : index
    %239 = vector.load %arg5[%c1_228, %c1_229, %c0_230, %c0_231] : memref<3x3x128x128xbf16, #tpu.memory_space<vmem>>, vector<1x1x128x128xbf16>
    %240 = vector.shape_cast %239 : vector<1x1x128x128xbf16> to vector<128x128xbf16>
    %cst_232 = arith.constant dense<0.000000e+00> : vector<128x128xf32>
    %241 = tpu.matmul %238, %240, %cst_232 {dimension_numbers = #tpu.dot_dimension_numbers<[1], [0], [0], [1], [0, 0, 1, 1], [], []>} : vector<128x128xbf16>, vector<128x128xbf16>, vector<128x128xf32> -> vector<128x128xf32>
    %242 = arith.addf %234, %241 : vector<128x128xf32>
    %c1_i32_233 = arith.constant 1 : i32
    %243 = arith.addi %201, %c1_i32_233 : i32
    %244 = arith.index_cast %243 : i32 to index
    %c2_234 = arith.constant 2 : index
    %c0_235 = arith.constant 0 : index
    %245 = vector.load %arg9[%244, %c2_234, %c0_235] : memref<18x18x128xbf16, #tpu.memory_space<vmem>>, vector<8x16x128xbf16>
    %246 = vector.shape_cast %245 : vector<8x16x128xbf16> to vector<128x128xbf16>
    %c1_236 = arith.constant 1 : index
    %c2_237 = arith.constant 2 : index
    %c0_238 = arith.constant 0 : index
    %c0_239 = arith.constant 0 : index
    %247 = vector.load %arg5[%c1_236, %c2_237, %c0_238, %c0_239] : memref<3x3x128x128xbf16, #tpu.memory_space<vmem>>, vector<1x1x128x128xbf16>
    %248 = vector.shape_cast %247 : vector<1x1x128x128xbf16> to vector<128x128xbf16>
    %cst_240 = arith.constant dense<0.000000e+00> : vector<128x128xf32>
    %249 = tpu.matmul %246, %248, %cst_240 {dimension_numbers = #tpu.dot_dimension_numbers<[1], [0], [0], [1], [0, 0, 1, 1], [], []>} : vector<128x128xbf16>, vector<128x128xbf16>, vector<128x128xf32> -> vector<128x128xf32>
    %250 = arith.addf %242, %249 : vector<128x128xf32>
    %c2_i32_241 = arith.constant 2 : i32
    %251 = arith.addi %201, %c2_i32_241 : i32
    %252 = arith.index_cast %251 : i32 to index
    %c0_242 = arith.constant 0 : index
    %c0_243 = arith.constant 0 : index
    %253 = vector.load %arg9[%252, %c0_242, %c0_243] : memref<18x18x128xbf16, #tpu.memory_space<vmem>>, vector<8x16x128xbf16>
    %254 = vector.shape_cast %253 : vector<8x16x128xbf16> to vector<128x128xbf16>
    %c2_244 = arith.constant 2 : index
    %c0_245 = arith.constant 0 : index
    %c0_246 = arith.constant 0 : index
    %c0_247 = arith.constant 0 : index
    %255 = vector.load %arg5[%c2_244, %c0_245, %c0_246, %c0_247] : memref<3x3x128x128xbf16, #tpu.memory_space<vmem>>, vector<1x1x128x128xbf16>
    %256 = vector.shape_cast %255 : vector<1x1x128x128xbf16> to vector<128x128xbf16>
    %cst_248 = arith.constant dense<0.000000e+00> : vector<128x128xf32>
    %257 = tpu.matmul %254, %256, %cst_248 {dimension_numbers = #tpu.dot_dimension_numbers<[1], [0], [0], [1], [0, 0, 1, 1], [], []>} : vector<128x128xbf16>, vector<128x128xbf16>, vector<128x128xf32> -> vector<128x128xf32>
    %258 = arith.addf %250, %257 : vector<128x128xf32>
    %c2_i32_249 = arith.constant 2 : i32
    %259 = arith.addi %201, %c2_i32_249 : i32
    %260 = arith.index_cast %259 : i32 to index
    %c1_250 = arith.constant 1 : index
    %c0_251 = arith.constant 0 : index
    %261 = vector.load %arg9[%260, %c1_250, %c0_251] : memref<18x18x128xbf16, #tpu.memory_space<vmem>>, vector<8x16x128xbf16>
    %262 = vector.shape_cast %261 : vector<8x16x128xbf16> to vector<128x128xbf16>
    %c2_252 = arith.constant 2 : index
    %c1_253 = arith.constant 1 : index
    %c0_254 = arith.constant 0 : index
    %c0_255 = arith.constant 0 : index
    %263 = vector.load %arg5[%c2_252, %c1_253, %c0_254, %c0_255] : memref<3x3x128x128xbf16, #tpu.memory_space<vmem>>, vector<1x1x128x128xbf16>
    %264 = vector.shape_cast %263 : vector<1x1x128x128xbf16> to vector<128x128xbf16>
    %cst_256 = arith.constant dense<0.000000e+00> : vector<128x128xf32>
    %265 = tpu.matmul %262, %264, %cst_256 {dimension_numbers = #tpu.dot_dimension_numbers<[1], [0], [0], [1], [0, 0, 1, 1], [], []>} : vector<128x128xbf16>, vector<128x128xbf16>, vector<128x128xf32> -> vector<128x128xf32>
    %266 = arith.addf %258, %265 : vector<128x128xf32>
    %c2_i32_257 = arith.constant 2 : i32
    %267 = arith.addi %201, %c2_i32_257 : i32
    %268 = arith.index_cast %267 : i32 to index
    %c2_258 = arith.constant 2 : index
    %c0_259 = arith.constant 0 : index
    %269 = vector.load %arg9[%268, %c2_258, %c0_259] : memref<18x18x128xbf16, #tpu.memory_space<vmem>>, vector<8x16x128xbf16>
    %270 = vector.shape_cast %269 : vector<8x16x128xbf16> to vector<128x128xbf16>
    %c2_260 = arith.constant 2 : index
    %c2_261 = arith.constant 2 : index
    %c0_262 = arith.constant 0 : index
    %c0_263 = arith.constant 0 : index
    %271 = vector.load %arg5[%c2_260, %c2_261, %c0_262, %c0_263] : memref<3x3x128x128xbf16, #tpu.memory_space<vmem>>, vector<1x1x128x128xbf16>
    %272 = vector.shape_cast %271 : vector<1x1x128x128xbf16> to vector<128x128xbf16>
    %cst_264 = arith.constant dense<0.000000e+00> : vector<128x128xf32>
    %273 = tpu.matmul %270, %272, %cst_264 {dimension_numbers = #tpu.dot_dimension_numbers<[1], [0], [0], [1], [0, 0, 1, 1], [], []>} : vector<128x128xbf16>, vector<128x128xbf16>, vector<128x128xf32> -> vector<128x128xf32>
    %274 = arith.addf %266, %273 : vector<128x128xf32>
    %275 = vector.broadcast %8 : vector<1x128xf32> to vector<128x128xf32>
    %276 = arith.mulf %274, %275 : vector<128x128xf32>
    %277 = vector.broadcast %9 : vector<1x128xf32> to vector<128x128xf32>
    %278 = arith.addf %276, %277 : vector<128x128xf32>
    %cst_265 = arith.constant 0.000000e+00 : f32
    %279 = vector.broadcast %cst_265 : f32 to vector<128x128xf32>
    %280 = arith.maximumf %278, %279 : vector<128x128xf32>
    %281 = arith.truncf %280 : vector<128x128xf32> to vector<128x128xbf16>
    %282 = vector.shape_cast %281 : vector<128x128xbf16> to vector<8x16x128xbf16>
    %c0_266 = arith.constant 0 : index
    %283 = arith.index_cast %201 : i32 to index
    %c0_267 = arith.constant 0 : index
    %c0_268 = arith.constant 0 : index
    %284 = vector.load %arg8[%c0_266, %283, %c0_267, %c0_268] : memref<1x16x16x128xbf16, #tpu.memory_space<vmem>>, vector<1x8x16x128xbf16>
    %285 = vector.shape_cast %284 : vector<1x8x16x128xbf16> to vector<8x16x128xbf16>
    %286 = vector.shape_cast %282 : vector<8x16x128xbf16> to vector<1x8x16x128xbf16>
    tpu.vector_store %arg8[%c0_266, %283, %c0_267, %c0_268], %286 {strides = array<i32>} : memref<1x16x16x128xbf16, #tpu.memory_space<vmem>>, vector<1x8x16x128xbf16>,
    %c1_i32_269 = arith.constant 1 : i32
    %c8_i32_270 = arith.constant 8 : i32
    %287 = arith.muli %c1_i32_269, %c8_i32_270 : i32
    %288 = tpu.assume_multiple %287, 8 : i32
    %cst_271 = arith.constant 0.000000e+00 : f32
    %289 = vector.broadcast %cst_271 : f32 to vector<128x128xf32>
    %c0_i32_272 = arith.constant 0 : i32
    %290 = arith.addi %288, %c0_i32_272 : i32
    %291 = arith.index_cast %290 : i32 to index
    %c0_273 = arith.constant 0 : index
    %c0_274 = arith.constant 0 : index
    %292 = vector.load %arg9[%291, %c0_273, %c0_274] : memref<18x18x128xbf16, #tpu.memory_space<vmem>>, vector<8x16x128xbf16>
    %293 = vector.shape_cast %292 : vector<8x16x128xbf16> to vector<128x128xbf16>
    %c0_275 = arith.constant 0 : index
    %c0_276 = arith.constant 0 : index
    %c0_277 = arith.constant 0 : index
    %c0_278 = arith.constant 0 : index
    %294 = vector.load %arg5[%c0_275, %c0_276, %c0_277, %c0_278] : memref<3x3x128x128xbf16, #tpu.memory_space<vmem>>, vector<1x1x128x128xbf16>
    %295 = vector.shape_cast %294 : vector<1x1x128x128xbf16> to vector<128x128xbf16>
    %cst_279 = arith.constant dense<0.000000e+00> : vector<128x128xf32>
    %296 = tpu.matmul %293, %295, %cst_279 {dimension_numbers = #tpu.dot_dimension_numbers<[1], [0], [0], [1], [0, 0, 1, 1], [], []>} : vector<128x128xbf16>, vector<128x128xbf16>, vector<128x128xf32> -> vector<128x128xf32>
    %297 = arith.addf %289, %296 : vector<128x128xf32>
    %c0_i32_280 = arith.constant 0 : i32
    %298 = arith.addi %288, %c0_i32_280 : i32
    %299 = arith.index_cast %298 : i32 to index
    %c1_281 = arith.constant 1 : index
    %c0_282 = arith.constant 0 : index
    %300 = vector.load %arg9[%299, %c1_281, %c0_282] : memref<18x18x128xbf16, #tpu.memory_space<vmem>>, vector<8x16x128xbf16>
    %301 = vector.shape_cast %300 : vector<8x16x128xbf16> to vector<128x128xbf16>
    %c0_283 = arith.constant 0 : index
    %c1_284 = arith.constant 1 : index
    %c0_285 = arith.constant 0 : index
    %c0_286 = arith.constant 0 : index
    %302 = vector.load %arg5[%c0_283, %c1_284, %c0_285, %c0_286] : memref<3x3x128x128xbf16, #tpu.memory_space<vmem>>, vector<1x1x128x128xbf16>
    %303 = vector.shape_cast %302 : vector<1x1x128x128xbf16> to vector<128x128xbf16>
    %cst_287 = arith.constant dense<0.000000e+00> : vector<128x128xf32>
    %304 = tpu.matmul %301, %303, %cst_287 {dimension_numbers = #tpu.dot_dimension_numbers<[1], [0], [0], [1], [0, 0, 1, 1], [], []>} : vector<128x128xbf16>, vector<128x128xbf16>, vector<128x128xf32> -> vector<128x128xf32>
    %305 = arith.addf %297, %304 : vector<128x128xf32>
    %c0_i32_288 = arith.constant 0 : i32
    %306 = arith.addi %288, %c0_i32_288 : i32
    %307 = arith.index_cast %306 : i32 to index
    %c2_289 = arith.constant 2 : index
    %c0_290 = arith.constant 0 : index
    %308 = vector.load %arg9[%307, %c2_289, %c0_290] : memref<18x18x128xbf16, #tpu.memory_space<vmem>>, vector<8x16x128xbf16>
    %309 = vector.shape_cast %308 : vector<8x16x128xbf16> to vector<128x128xbf16>
    %c0_291 = arith.constant 0 : index
    %c2_292 = arith.constant 2 : index
    %c0_293 = arith.constant 0 : index
    %c0_294 = arith.constant 0 : index
    %310 = vector.load %arg5[%c0_291, %c2_292, %c0_293, %c0_294] : memref<3x3x128x128xbf16, #tpu.memory_space<vmem>>, vector<1x1x128x128xbf16>
    %311 = vector.shape_cast %310 : vector<1x1x128x128xbf16> to vector<128x128xbf16>
    %cst_295 = arith.constant dense<0.000000e+00> : vector<128x128xf32>
    %312 = tpu.matmul %309, %311, %cst_295 {dimension_numbers = #tpu.dot_dimension_numbers<[1], [0], [0], [1], [0, 0, 1, 1], [], []>} : vector<128x128xbf16>, vector<128x128xbf16>, vector<128x128xf32> -> vector<128x128xf32>
    %313 = arith.addf %305, %312 : vector<128x128xf32>
    %c1_i32_296 = arith.constant 1 : i32
    %314 = arith.addi %288, %c1_i32_296 : i32
    %315 = arith.index_cast %314 : i32 to index
    %c0_297 = arith.constant 0 : index
    %c0_298 = arith.constant 0 : index
    %316 = vector.load %arg9[%315, %c0_297, %c0_298] : memref<18x18x128xbf16, #tpu.memory_space<vmem>>, vector<8x16x128xbf16>
    %317 = vector.shape_cast %316 : vector<8x16x128xbf16> to vector<128x128xbf16>
    %c1_299 = arith.constant 1 : index
    %c0_300 = arith.constant 0 : index
    %c0_301 = arith.constant 0 : index
    %c0_302 = arith.constant 0 : index
    %318 = vector.load %arg5[%c1_299, %c0_300, %c0_301, %c0_302] : memref<3x3x128x128xbf16, #tpu.memory_space<vmem>>, vector<1x1x128x128xbf16>
    %319 = vector.shape_cast %318 : vector<1x1x128x128xbf16> to vector<128x128xbf16>
    %cst_303 = arith.constant dense<0.000000e+00> : vector<128x128xf32>
    %320 = tpu.matmul %317, %319, %cst_303 {dimension_numbers = #tpu.dot_dimension_numbers<[1], [0], [0], [1], [0, 0, 1, 1], [], []>} : vector<128x128xbf16>, vector<128x128xbf16>, vector<128x128xf32> -> vector<128x128xf32>
    %321 = arith.addf %313, %320 : vector<128x128xf32>
    %c1_i32_304 = arith.constant 1 : i32
    %322 = arith.addi %288, %c1_i32_304 : i32
    %323 = arith.index_cast %322 : i32 to index
    %c1_305 = arith.constant 1 : index
    %c0_306 = arith.constant 0 : index
    %324 = vector.load %arg9[%323, %c1_305, %c0_306] : memref<18x18x128xbf16, #tpu.memory_space<vmem>>, vector<8x16x128xbf16>
    %325 = vector.shape_cast %324 : vector<8x16x128xbf16> to vector<128x128xbf16>
    %c1_307 = arith.constant 1 : index
    %c1_308 = arith.constant 1 : index
    %c0_309 = arith.constant 0 : index
    %c0_310 = arith.constant 0 : index
    %326 = vector.load %arg5[%c1_307, %c1_308, %c0_309, %c0_310] : memref<3x3x128x128xbf16, #tpu.memory_space<vmem>>, vector<1x1x128x128xbf16>
    %327 = vector.shape_cast %326 : vector<1x1x128x128xbf16> to vector<128x128xbf16>
    %cst_311 = arith.constant dense<0.000000e+00> : vector<128x128xf32>
    %328 = tpu.matmul %325, %327, %cst_311 {dimension_numbers = #tpu.dot_dimension_numbers<[1], [0], [0], [1], [0, 0, 1, 1], [], []>} : vector<128x128xbf16>, vector<128x128xbf16>, vector<128x128xf32> -> vector<128x128xf32>
    %329 = arith.addf %321, %328 : vector<128x128xf32>
    %c1_i32_312 = arith.constant 1 : i32
    %330 = arith.addi %288, %c1_i32_312 : i32
    %331 = arith.index_cast %330 : i32 to index
    %c2_313 = arith.constant 2 : index
    %c0_314 = arith.constant 0 : index
    %332 = vector.load %arg9[%331, %c2_313, %c0_314] : memref<18x18x128xbf16, #tpu.memory_space<vmem>>, vector<8x16x128xbf16>
    %333 = vector.shape_cast %332 : vector<8x16x128xbf16> to vector<128x128xbf16>
    %c1_315 = arith.constant 1 : index
    %c2_316 = arith.constant 2 : index
    %c0_317 = arith.constant 0 : index
    %c0_318 = arith.constant 0 : index
    %334 = vector.load %arg5[%c1_315, %c2_316, %c0_317, %c0_318] : memref<3x3x128x128xbf16, #tpu.memory_space<vmem>>, vector<1x1x128x128xbf16>
    %335 = vector.shape_cast %334 : vector<1x1x128x128xbf16> to vector<128x128xbf16>
    %cst_319 = arith.constant dense<0.000000e+00> : vector<128x128xf32>
    %336 = tpu.matmul %333, %335, %cst_319 {dimension_numbers = #tpu.dot_dimension_numbers<[1], [0], [0], [1], [0, 0, 1, 1], [], []>} : vector<128x128xbf16>, vector<128x128xbf16>, vector<128x128xf32> -> vector<128x128xf32>
    %337 = arith.addf %329, %336 : vector<128x128xf32>
    %c2_i32_320 = arith.constant 2 : i32
    %338 = arith.addi %288, %c2_i32_320 : i32
    %339 = arith.index_cast %338 : i32 to index
    %c0_321 = arith.constant 0 : index
    %c0_322 = arith.constant 0 : index
    %340 = vector.load %arg9[%339, %c0_321, %c0_322] : memref<18x18x128xbf16, #tpu.memory_space<vmem>>, vector<8x16x128xbf16>
    %341 = vector.shape_cast %340 : vector<8x16x128xbf16> to vector<128x128xbf16>
    %c2_323 = arith.constant 2 : index
    %c0_324 = arith.constant 0 : index
    %c0_325 = arith.constant 0 : index
    %c0_326 = arith.constant 0 : index
    %342 = vector.load %arg5[%c2_323, %c0_324, %c0_325, %c0_326] : memref<3x3x128x128xbf16, #tpu.memory_space<vmem>>, vector<1x1x128x128xbf16>
    %343 = vector.shape_cast %342 : vector<1x1x128x128xbf16> to vector<128x128xbf16>
    %cst_327 = arith.constant dense<0.000000e+00> : vector<128x128xf32>
    %344 = tpu.matmul %341, %343, %cst_327 {dimension_numbers = #tpu.dot_dimension_numbers<[1], [0], [0], [1], [0, 0, 1, 1], [], []>} : vector<128x128xbf16>, vector<128x128xbf16>, vector<128x128xf32> -> vector<128x128xf32>
    %345 = arith.addf %337, %344 : vector<128x128xf32>
    %c2_i32_328 = arith.constant 2 : i32
    %346 = arith.addi %288, %c2_i32_328 : i32
    %347 = arith.index_cast %346 : i32 to index
    %c1_329 = arith.constant 1 : index
    %c0_330 = arith.constant 0 : index
    %348 = vector.load %arg9[%347, %c1_329, %c0_330] : memref<18x18x128xbf16, #tpu.memory_space<vmem>>, vector<8x16x128xbf16>
    %349 = vector.shape_cast %348 : vector<8x16x128xbf16> to vector<128x128xbf16>
    %c2_331 = arith.constant 2 : index
    %c1_332 = arith.constant 1 : index
    %c0_333 = arith.constant 0 : index
    %c0_334 = arith.constant 0 : index
    %350 = vector.load %arg5[%c2_331, %c1_332, %c0_333, %c0_334] : memref<3x3x128x128xbf16, #tpu.memory_space<vmem>>, vector<1x1x128x128xbf16>
    %351 = vector.shape_cast %350 : vector<1x1x128x128xbf16> to vector<128x128xbf16>
    %cst_335 = arith.constant dense<0.000000e+00> : vector<128x128xf32>
    %352 = tpu.matmul %349, %351, %cst_335 {dimension_numbers = #tpu.dot_dimension_numbers<[1], [0], [0], [1], [0, 0, 1, 1], [], []>} : vector<128x128xbf16>, vector<128x128xbf16>, vector<128x128xf32> -> vector<128x128xf32>
    %353 = arith.addf %345, %352 : vector<128x128xf32>
    %c2_i32_336 = arith.constant 2 : i32
    %354 = arith.addi %288, %c2_i32_336 : i32
    %355 = arith.index_cast %354 : i32 to index
    %c2_337 = arith.constant 2 : index
    %c0_338 = arith.constant 0 : index
    %356 = vector.load %arg9[%355, %c2_337, %c0_338] : memref<18x18x128xbf16, #tpu.memory_space<vmem>>, vector<8x16x128xbf16>
    %357 = vector.shape_cast %356 : vector<8x16x128xbf16> to vector<128x128xbf16>
    %c2_339 = arith.constant 2 : index
    %c2_340 = arith.constant 2 : index
    %c0_341 = arith.constant 0 : index
    %c0_342 = arith.constant 0 : index
    %358 = vector.load %arg5[%c2_339, %c2_340, %c0_341, %c0_342] : memref<3x3x128x128xbf16, #tpu.memory_space<vmem>>, vector<1x1x128x128xbf16>
    %359 = vector.shape_cast %358 : vector<1x1x128x128xbf16> to vector<128x128xbf16>
    %cst_343 = arith.constant dense<0.000000e+00> : vector<128x128xf32>
    %360 = tpu.matmul %357, %359, %cst_343 {dimension_numbers = #tpu.dot_dimension_numbers<[1], [0], [0], [1], [0, 0, 1, 1], [], []>} : vector<128x128xbf16>, vector<128x128xbf16>, vector<128x128xf32> -> vector<128x128xf32>
    %361 = arith.addf %353, %360 : vector<128x128xf32>
    %362 = vector.broadcast %8 : vector<1x128xf32> to vector<128x128xf32>
    %363 = arith.mulf %361, %362 : vector<128x128xf32>
    %364 = vector.broadcast %9 : vector<1x128xf32> to vector<128x128xf32>
    %365 = arith.addf %363, %364 : vector<128x128xf32>
    %cst_344 = arith.constant 0.000000e+00 : f32
    %366 = vector.broadcast %cst_344 : f32 to vector<128x128xf32>
    %367 = arith.maximumf %365, %366 : vector<128x128xf32>
    %368 = arith.truncf %367 : vector<128x128xf32> to vector<128x128xbf16>
    %369 = vector.shape_cast %368 : vector<128x128xbf16> to vector<8x16x128xbf16>
    %c0_345 = arith.constant 0 : index
    %370 = arith.index_cast %288 : i32 to index
    %c0_346 = arith.constant 0 : index
    %c0_347 = arith.constant 0 : index
    %371 = vector.load %arg8[%c0_345, %370, %c0_346, %c0_347] : memref<1x16x16x128xbf16, #tpu.memory_space<vmem>>, vector<1x8x16x128xbf16>
    %372 = vector.shape_cast %371 : vector<1x8x16x128xbf16> to vector<8x16x128xbf16>
    %373 = vector.shape_cast %369 : vector<8x16x128xbf16> to vector<1x8x16x128xbf16>
    tpu.vector_store %arg8[%c0_345, %370, %c0_346, %c0_347], %373 {strides = array<i32>} : memref<1x16x16x128xbf16, #tpu.memory_space<vmem>>, vector<1x8x16x128xbf16>,
    %c2_i32_348 = arith.constant 2 : i32
    return
  }
  func.func @transform_0(%arg0: i32) -> (i32, i32, i32, i32) {
    %c0_i32 = arith.constant 0 : i32
    %c0_i32_0 = arith.constant 0 : i32
    %c0_i32_1 = arith.constant 0 : i32
    %c0_i32_2 = arith.constant 0 : i32
    return %arg0, %c0_i32, %c0_i32_0, %c0_i32_1 : i32, i32, i32, i32
  }
  func.func @transform_1(%arg0: i32) -> (i32, i32, i32, i32) {
    %c0_i32 = arith.constant 0 : i32
    %c0_i32_0 = arith.constant 0 : i32
    %c0_i32_1 = arith.constant 0 : i32
    %c0_i32_2 = arith.constant 0 : i32
    %c0_i32_3 = arith.constant 0 : i32
    return %c0_i32, %c0_i32_0, %c0_i32_1, %c0_i32_2 : i32, i32, i32, i32
  }
  func.func @transform_2(%arg0: i32) -> (i32, i32) {
    %c0_i32 = arith.constant 0 : i32
    %c0_i32_0 = arith.constant 0 : i32
    %c0_i32_1 = arith.constant 0 : i32
    return %c0_i32, %c0_i32_0 : i32, i32
  }
  func.func @transform_3(%arg0: i32) -> (i32, i32) {
    %c0_i32 = arith.constant 0 : i32
    %c0_i32_0 = arith.constant 0 : i32
    %c0_i32_1 = arith.constant 0 : i32
    return %c0_i32, %c0_i32_0 : i32, i32
  }
  func.func @transform_4(%arg0: i32) -> (i32, i32, i32, i32) {
    %c0_i32 = arith.constant 0 : i32
    %c0_i32_0 = arith.constant 0 : i32
    %c0_i32_1 = arith.constant 0 : i32
    %c0_i32_2 = arith.constant 0 : i32
    %c0_i32_3 = arith.constant 0 : i32
    return %c0_i32, %c0_i32_0, %c0_i32_1, %c0_i32_2 : i32, i32, i32, i32
  }
  func.func @transform_5(%arg0: i32) -> (i32, i32) {
    %c0_i32 = arith.constant 0 : i32
    %c0_i32_0 = arith.constant 0 : i32
    %c0_i32_1 = arith.constant 0 : i32
    return %c0_i32, %c0_i32_0 : i32, i32
  }
  func.func @transform_6(%arg0: i32) -> (i32, i32) {
    %c0_i32 = arith.constant 0 : i32
    %c0_i32_0 = arith.constant 0 : i32
    %c0_i32_1 = arith.constant 0 : i32
    return %c0_i32, %c0_i32_0 : i32, i32
  }
  func.func @transform_7(%arg0: i32) -> (i32, i32, i32, i32) {
    %c0_i32 = arith.constant 0 : i32
    %c0_i32_0 = arith.constant 0 : i32
    %c0_i32_1 = arith.constant 0 : i32
    %c0_i32_2 = arith.constant 0 : i32
    return %arg0, %c0_i32, %c0_i32_0, %c0_i32_1 : i32, i32, i32, i32
  }
}

</mosaic_0001>

<bundles_post_ra>
// kernel: up_forward.1
= control target key start
LH: loop header
LB: loop body
LE: loop exit
PB: predicated region body
PF: predicated region fallthrough
CT: control target
= control target key end

     0   :  { %s15748_s24 = smov 0   ;;  %s20549_s0 = inlined_call_operand.vmem [shape: bf16[2,18,18,12], index: 0, kind: input, shape index: {}]   ;;  %s20550_s1 = inlined_call_operand.vmem [shape: bf16[3,3,12,128], index: 1, kind: input, shape index: {}]   ;;  %s20551_s2 = inlined_call_operand.vmem [shape: f32[1,128], index: 2, kind: input, shape index: {}]   ;;  %s20552_s3 = inlined_call_operand.vmem [shape: f32[1,128], index: 3, kind: input, shape index: {}]   ;;  %s20553_s4 = inlined_call_operand.vmem [shape: bf16[3,3,128,128], index: 4, kind: input, shape index: {}]   ;;  %s20554_s5 = inlined_call_operand.vmem [shape: f32[1,128], index: 5, kind: input, shape index: {}]   ;;  %s20555_s6 = inlined_call_operand.vmem [shape: f32[1,128], index: 6, kind: input, shape index: {}]   ;;  %s20556_s7 = inlined_call_operand.vmem [shape: bf16[2,16,16,128], index: 7, kind: output, shape index: {}]  }
   0x1 LB: > { %s12090_s25 = sadd.s32 4294967295, %s15705_s24   ;;  %p12094_p0 = scmp.ge.s32.totalorder %s15705_s24, 1  ;;  %s15705_s24 = sphi %s15748_s24, %s17_s24  }
   0x2   : > { %p237_p1 = scmp.lt.s32.totalorder %s15705_s24, 3 }
   0x4   : > { %p238_p2 = pnand %p12094_p0, %p237_p1 }
   0x6   : > { %241 = sbr.rel (%p238_p2) target bundleno = 1174 (0x496), region = 48 }
   0xd   : > { %v15436_v0 = vld [vmem:[%s20550_s1 + $0x8] sm:$0x3f]   ;;  %vm685_vm0 = vcmask 1045504   ;;  %p269_p3 = scmp.lt.s32.totalorder %s12090_s25, 1  ;;  %v15438_v4 = vld [vmem:[%s20550_s1] sm:$0x3f]  }
   0xe   : > { %15408 = vmatprep.subr.msk.bf16.mxu0 %vm685_vm0, %v15436_v0  ;;  %v687_v1 = vsel %vm685_vm0, %v15436_v0, 0  ;;  %v15437_v2 = vld [vmem:[%s20550_s1 + $0x8] sm:$0x3f]   ;;  %vm433_vm1 = vsmask.f32 3328  ;;  %vm660_vm3 = vcmask 97280  }
   0xf   : > { %13997 = vmatpush3.bf16.msra.mxu0 %v687_v1  ;;  %s20861_s25 = smov (!%p269_p3, %s12090_s25), 1  ;;  %15417 = vmatprep.subr.msk.bf16.mxu1 %vm685_vm0, %v15437_v2  ;;  %v3529_v3 = vsel %vm685_vm0, %v15437_v2, 0  ;;  %v15776_v5 = vld [vmem:[%s20550_s1] sm:$0x3f]   ;;  %vm434_vm2 = vsmask.f32 7440 }
  0x10   : > { %14159 = vmatpush3.bf16.msra.mxu1 %v3529_v3  ;;  %s15426_s9 = smul.u32 216, %s20861_s25  ;;  %15409 = vmatprep.subr.msk.bf16.mxu0 %vm685_vm0, %v15438_v4  ;;  %vm15821_vm4 = vmor %vm433_vm1, %vm434_vm2  ;;  %v20647_v31 = vmov 0  ;;  %v15826_v35 = vsel %vm685_vm0, %v15438_v4, 0  ;;  %vm979_vm5 = vcmask 1042432   ;;  %vm980_vm6 = vcmask 1046532   ;;  %s13386_s30 = sshll.u32 %s20861_s25, 7 }
  0x11   : > { %15418 = vmatprep.subr.msk.bf16.mxu1 %vm685_vm0, %v15776_v5  ;;  %v20648_v31 = vsel %vm15821_vm4, 4294967295, %v20647_v31  ;;  %vm16150_vm7 = vmor %vm979_vm5, %vm980_vm6  ;;  %vm287_vm8 = vcmask 1040384   ;;  %vm288_vm9 = vsmask.f32 256  ;;  %vm344_vm11 = vsmask.f32 7938  ;;  %s20472_s10 = scalar_lea.vmem %s20556_s7, %s13386_s30 }
  0x12   : > { %s15781_s14 = scalar_lea.vmem %s20549_s0, %s15426_s9  ;;  %20649 = vst [vmem:[#allocation4_spill] sm:$0xff] %v20648_v31  ;;  %vm18030_vm10 = vmand %vm287_vm8, %vm288_vm9  ;;  %vm3194_vm13 = vcmask 1043456   ;;  %vm3030_vm14 = vsmask.f32 4368 }
  0x13   : > { %v15784_v6 = vld [vmem:[%s15781_s14] sm:$0xf]  ;;  %v15787_v7 = vld [vmem:[%s15781_s14 + $0x4] sm:$0xf]  ;;  %v15790_v8 = vld [vmem:[%s15781_s14 + $0x8] sm:$0x1] }
  0x14   : > { %v437_v9 = vshrl.u32 %v15784_v6, 16  ;;  %v440_v10 = vshll.u32 %v15784_v6, 16  ;;  %v446_v11 = vshll.u32 %v15787_v7, 16  ;;  %v450_v12 = vshrl.u32 %v15787_v7, 16  ;;  %v15799_v13 = vld [vmem:[%s15781_s14 + $0x60] sm:$0xf]  ;;  %vm18204_vm12 = vmand %vm287_vm8, %vm344_vm11 }
  0x15   : > { %v456_v14 = vshll.u32 %v15790_v8, 16  ;;  %v15803_v15 = vld [vmem:[%s15781_s14 + $0x64] sm:$0xf]  ;;  %v15806_v16 = vld [vmem:[%s15781_s14 + $0x68] sm:$0x1]  ;;  %v3282_v22 = vshrl.u32 %v15799_v13, 16  ;;  %vm18374_vm15 = vmand %vm3194_vm13, %vm344_vm11 }
  0x16   : > { %20646 = vst [vmem:[#allocation3_spill] sm:$0xff] %v15806_v16  ;;  %v439_v17 = vrot.slane %v437_v9, 4  ;;  %v442_v18 = vrot.slane %v440_v10, 5  ;;  %v448_v19 = vrot.slane %v446_v11, 5  ;;  %v452_v20 = vrot.slane %v450_v12, 4 }
  0x17   : > { %v458_v21 = vrot.slane %v456_v14, 5  ;;  %v3285_v23 = vshll.u32 %v15799_v13, 16  ;;  %v3291_v24 = vshll.u32 %v15803_v15, 16  ;;  %v3295_v27 = vshrl.u32 %v15803_v15, 16  ;;  %v15814_v29 = vld [vmem:[%s15781_s14 + $0xc] sm:$0xf] }
  0x18   : > { %v443_v25 = vor.u32 %v442_v18, %v439_v17  ;;  %v453_v26 = vor.u32 %v452_v20, %v448_v19  ;;  %v3301_v28 = vshll.u32 %v15806_v16, 16  ;;  %v15817_v30 = vld [vmem:[%s15781_s14 + $0x10] sm:$0xf]  ;;  %v3284_v32 = vrot.slane %v3282_v22, 4  ;;  %v15829_v41 = vld [vmem:[%s15781_s14 + $0x14] sm:$0x1] }
  0x19   : > { %v3287_v33 = vrot.slane %v3285_v23, 5  ;;  %v3293_v34 = vrot.slane %v3291_v24, 5  ;;  %v3297_v38 = vrot.slane %v3295_v27, 4  ;;  %v461_v42 = vshrl.u32 %v15814_v29, 16  ;;  %v15840_v53 = vld [vmem:[%s15781_s14 + $0x6c] sm:$0xf] }
  0x1a   : > { %v444_v36 = vrot.slane %v443_v25, 4  ;;  %v454_v37 = vrot.slane %v453_v26, 4  ;;  %v3303_v39 = vrot.slane %v3301_v28, 5  ;;  %v464_v43 = vshll.u32 %v15814_v29, 16  ;;  %v15844_v58 = vld [vmem:[%s15781_s14 + $0x70] sm:$0xf] }
  0x1b   : > { %v3288_v40 = vor.u32 %v3287_v33, %v3284_v32  ;;  %v470_v44 = vshll.u32 %v15817_v30, 16  ;;  %v3298_v47 = vor.u32 %v3297_v38, %v3293_v34  ;;  %v474_v48 = vshrl.u32 %v15817_v30, 16  ;;  %v15852_v63 = vld [vmem:[%s15781_s14 + $0x74] sm:$0x1]  ;;  %v15868_v23 = vld [vmem:[%s15781_s14 + $0x1c] sm:$0xf] }
  0x1c   : > { %v449_v45 = vsel %vm15821_vm4, %v444_v36, %v448_v19  ;;  %v459_v46 = vsel %vm15821_vm4, %v454_v37, %v458_v21  ;;  %v463_v51 = vrot.slane %v461_v42, 4  ;;  %v466_v52 = vrot.slane %v464_v43, 5  ;;  %v15862_v19 = vld [vmem:[%s15781_s14 + $0x18] sm:$0xf]  ;;  %v15871_v24 = vld [vmem:[%s15781_s14 + $0x20] sm:$0x1] }
  0x1d   : > { %v12100_v49 = vcombine.low %v449_v45, %v459_v46  ;;  %v3289_v50 = vrot.slane %v3288_v40, 4  ;;  %v3299_v54 = vrot.slane %v3298_v47, 4  ;;  %v472_v55 = vrot.slane %v470_v44, 5  ;;  %v15877_v32 = vld [vmem:[%s15781_s14 + $0x78] sm:$0xf] }
  0x1e   : > { %v476_v56 = vrot.slane %v474_v48, 4  ;;  %v480_v57 = vshll.u32 %v15829_v41, 16  ;;  %v467_v62 = vor.u32 %v466_v52, %v463_v51  ;;  %v3306_v3 = vshrl.u32 %v15840_v53, 16  ;;  %v15884_v38 = vld [vmem:[%s20550_s1 + $0x10] sm:$0x3f]  }
  0x1f   : > { %13998 = vmatprep.mubr.msk.bf16.mxu0 %vm660_vm3, %v12100_v49  ;;  %v3294_v60 = vsel %vm15821_vm4, %v3289_v50, %v3293_v34  ;;  %v3304_v0 = vsel %vm15821_vm4, %v3299_v54, %v3303_v39  ;;  %v3309_v10 = vshll.u32 %v15840_v53, 16  ;;  %v3315_v11 = vshll.u32 %v15844_v58, 16  ;;  %v15891_v47 = vld [vmem:[%s15781_s14 + $0x7c] sm:$0xf]  ;;  %v15896_v54 = vld [vmem:[%s15781_s14 + $0x80] sm:$0x1] }
  0x20   : > { %v477_v1 = vor.u32 %v476_v56, %v472_v55  ;;  %v482_v2 = vrot.slane %v480_v57, 5  ;;  %v12431_v4 = vcombine.low %v3294_v60, %v3304_v0  ;;  %v468_v9 = vrot.slane %v467_v62, 4  ;;  %v15902_v62 = vld [vmem:[%s15781_s14 + $0x24] sm:$0xf] }
  0x21   : > { %v3308_v14 = vrot.slane %v3306_v3, 4  ;;  %v3319_v17 = vshrl.u32 %v15844_v58, 16  ;;  %v3325_v18 = vshll.u32 %v15852_v63, 16  ;;  %v3311_v21 = vrot.slane %v3309_v10, 5 }
  0x22   : > { %v478_v12 = vrot.slane %v477_v1, 4  ;;  %14160 = vmatprep.mubr.msk.bf16.mxu1 %vm660_vm3, %v12431_v4  ;;  %v473_v20 = vsel %vm15821_vm4, %v468_v9, %v472_v55  ;;  %v3317_v22 = vrot.slane %v3315_v11, 5  ;;  %v485_v36 = vshrl.u32 %v15862_v19, 16  ;;  %v15912_v11 = vld [vmem:[%s15781_s14 + $0x28] sm:$0xf] }
  0x23   : > { %v3321_v27 = vrot.slane %v3319_v17, 4  ;;  %v3327_v28 = vrot.slane %v3325_v18, 5  ;;  %v3312_v34 = vor.u32 %v3311_v21, %v3308_v14  ;;  %v488_v37 = vshll.u32 %v15862_v19, 16 }
  0x24   : > { %v483_v25 = vsel %vm15821_vm4, %v478_v12, %v482_v2  ;;  %v494_v40 = vshll.u32 %v15868_v23, 16  ;;  %v498_v42 = vshrl.u32 %v15868_v23, 16  ;;  %v504_v43 = vshll.u32 %v15871_v24, 16 }
  0x25   : > { %v12101_v33 = vcombine.low %v473_v20, %v483_v25  ;;  %v3322_v39 = vor.u32 %v3321_v27, %v3317_v22  ;;  %v3313_v44 = vrot.slane %v3312_v34, 4  ;;  %v487_v45 = vrot.slane %v485_v36, 4  ;;  %v15919_v25 = vld [vmem:[%s15781_s14 + $0x2c] sm:$0x1] }
  0x26   : > { %v490_v46 = vrot.slane %v488_v37, 5  ;;  %v3330_v48 = vshrl.u32 %v15877_v32, 16  ;;  %v496_v50 = vrot.slane %v494_v40, 5  ;;  %v500_v51 = vrot.slane %v498_v42, 4  ;;  %20650 = vst [vmem:[#allocation5_spill] sm:$0xff] %v15919_v25 }
  0x27   : > { %13999 = vmatmul.mubr.msk.bf16.vlgmr.msra.gmra.mrb[0].mxu0 %vm660_vm3, %v12101_v33  ;;  %v3323_v49 = vrot.slane %v3322_v39, 4  ;;  %v506_v52 = vrot.slane %v504_v43, 5  ;;  %v3318_v55 = vsel %vm15821_vm4, %v3313_v44, %v3317_v22  ;;  %v3333_v60 = vshll.u32 %v15877_v32, 16  ;;  %v15930_v44 = vld [vmem:[%s15781_s14 + $0x88] sm:$0xf] }
  0x28   : > { %14015 = vmatpush3.bf16.msra.mxu0 %v15826_v35  ;;  %v491_v56 = vor.u32 %v490_v46, %v487_v45  ;;  %v3332_v57 = vrot.slane %v3330_v48, 4  ;;  %v501_v0 = vor.u32 %v500_v51, %v496_v50  ;;  %v3339_v1 = vshll.u32 %v15891_v47, 16 }
  0x29   : > { %15410 = vmatprep.subr.msk.bf16.mxu0 %vm685_vm0, %v15884_v38  ;;  %v3328_v35 = vsel %vm15821_vm4, %v3323_v49, %v3327_v28  ;;  %v3343_v2 = vshrl.u32 %v15891_v47, 16  ;;  %v3335_v9 = vrot.slane %v3333_v60, 5  ;;  %v3349_v10 = vshll.u32 %v15896_v54, 16  ;;  %v15923_v28 = vld [vmem:[%s15781_s14 + $0x84] sm:$0xf] }
  0x2a   : > { %v12432_v3 = vcombine.low %v3318_v55, %v3328_v35  ;;  %v492_v4 = vrot.slane %v491_v56, 4  ;;  %v502_v12 = vrot.slane %v501_v0, 4  ;;  %v3341_v14 = vrot.slane %v3339_v1, 5  ;;  %v15938_v55 = vld [vmem:[%s15781_s14 + $0x8c] sm:$0x1] }
  0x2b   : > { %v3345_v17 = vrot.slane %v3343_v2, 4  ;;  %v509_v18 = vshrl.u32 %v15902_v62, 16  ;;  %v3336_v21 = vor.u32 %v3335_v9, %v3332_v57  ;;  %v3351_v22 = vrot.slane %v3349_v10, 5  ;;  %20651 = vst [vmem:[#allocation6_spill] sm:$0xff] %v15938_v55  ;;  %v15942_v57 = vld [vmem:[%s15781_s14 + $0x30] sm:$0xf] }
  0x2c   : > { %14161 = vmatmul.mubr.msk.bf16.vlgmr.msra.gmra.mrb[0].mxu1 %vm660_vm3, %v12432_v3  ;;  %v497_v20 = vsel %vm15821_vm4, %v492_v4, %v496_v50  ;;  %v512_v27 = vshll.u32 %v15902_v62, 16  ;;  %v507_v33 = vsel %vm15821_vm4, %v502_v12, %v506_v52  ;;  %v518_v37 = vshll.u32 %v15912_v11, 16  ;;  %v15948_v10 = vld [vmem:[%s15781_s14 + $0x34] sm:$0xf] }
  0x2d   : > { %v3346_v34 = vor.u32 %v3345_v17, %v3341_v14  ;;  %v511_v36 = vrot.slane %v509_v18, 4  ;;  %v12102_v39 = vcombine.low %v497_v20, %v507_v33  ;;  %v3337_v40 = vrot.slane %v3336_v21, 4  ;;  %v15953_v18 = vld [vmem:[%s15781_s14 + $0x38] sm:$0x1] }
  0x2e   : > { %v514_v42 = vrot.slane %v512_v27, 5  ;;  %v522_v43 = vshrl.u32 %v15912_v11, 16  ;;  %v520_v46 = vrot.slane %v518_v37, 5  ;;  %v528_v48 = vshll.u32 %v15919_v25, 16  ;;  %20652 = vst [vmem:[#allocation7_spill] sm:$0xff] %v15953_v18 }
  0x2f   : > { %v3347_v45 = vrot.slane %v3346_v34, 4  ;;  %v3354_v49 = vshrl.u32 %v15923_v28, 16  ;;  %14002 = vmatprep.mubr.msk.bf16.mxu0 %vm660_vm3, %v12102_v39  ;;  %v3342_v50 = vsel %vm15821_vm4, %v3337_v40, %v3341_v14  ;;  %v3357_v56 = vshll.u32 %v15923_v28, 16  ;;  %v15961_v34 = vld [vmem:[%s15781_s14 + $0x90] sm:$0xf] }
  0x30   : > { %v515_v51 = vor.u32 %v514_v42, %v511_v36  ;;  %v524_v52 = vrot.slane %v522_v43, 4  ;;  %v530_v35 = vrot.slane %v528_v48, 5  ;;  %v3363_v1 = vshll.u32 %v15930_v44, 16  ;;  %v15965_v42 = vld [vmem:[%s15781_s14 + $0x94] sm:$0xf] }
  0x31   : > { %v3352_v60 = vsel %vm15821_vm4, %v3347_v45, %v3351_v22  ;;  %v3356_v0 = vrot.slane %v3354_v49, 4  ;;  %v3359_v9 = vrot.slane %v3357_v56, 5  ;;  %v3367_v14 = vshrl.u32 %v15930_v44, 16 }
  0x32   : > { %v12433_v2 = vcombine.low %v3342_v50, %v3352_v60  ;;  %v516_v3 = vrot.slane %v515_v51, 4  ;;  %v525_v4 = vor.u32 %v524_v52, %v520_v46  ;;  %v3365_v12 = vrot.slane %v3363_v1, 5  ;;  %v15974_v1 = vld [vmem:[%s15781_s14 + $0x98] sm:$0x1] }
  0x33   : > { %v3373_v17 = vshll.u32 %v15938_v55, 16  ;;  %v533_v20 = vshrl.u32 %v15942_v57, 16  ;;  %v3360_v27 = vor.u32 %v3359_v9, %v3356_v0  ;;  %v536_v33 = vshll.u32 %v15942_v57, 16  ;;  %20653 = vst [vmem:[#allocation8_spill] sm:$0xff] %v15974_v1 }
  0x34   : > { %14164 = vmatprep.mubr.msk.bf16.mxu1 %vm660_vm3, %v12433_v2  ;;  %v521_v21 = vsel %vm15821_vm4, %v516_v3, %v520_v46  ;;  %v526_v22 = vrot.slane %v525_v4, 4  ;;  %v3369_v36 = vrot.slane %v3367_v14, 4  ;;  %v542_v40 = vshll.u32 %v15948_v10, 16 }
  0x35   : > { %v3375_v37 = vrot.slane %v3373_v17, 5  ;;  %v535_v39 = vrot.slane %v533_v20, 4  ;;  %v3361_v45 = vrot.slane %v3360_v27, 4  ;;  %v538_v48 = vrot.slane %v536_v33, 5 }
  0x36   : > { %v531_v43 = vsel %vm15821_vm4, %v526_v22, %v530_v35  ;;  %v546_v46 = vshrl.u32 %v15948_v10, 16  ;;  %v3370_v50 = vor.u32 %v3369_v36, %v3365_v12  ;;  %v544_v51 = vrot.slane %v542_v40, 5 }
  0x37   : > { %v12103_v49 = vcombine.low %v521_v21, %v531_v43  ;;  %v552_v52 = vshll.u32 %v15953_v18, 16  ;;  %v3366_v56 = vsel %vm15821_vm4, %v3361_v45, %v3365_v12  ;;  %v539_v60 = vor.u32 %v538_v48, %v535_v39  ;;  %v15982_v21 = vld [vmem:[%s15781_s14 + $0x3c] sm:$0xf]  ;;  %v15988_v39 = vld [vmem:[%s15781_s14 + $0x40] sm:$0xf] }
  0x38   : > { %v548_v0 = vrot.slane %v546_v46, 4  ;;  %v3378_v35 = vshrl.u32 %v15961_v34, 16  ;;  %v3371_v2 = vrot.slane %v3370_v50, 4  ;;  %v3381_v4 = vshll.u32 %v15961_v34, 16  ;;  %v15993_v50 = vld [vmem:[%s15781_s14 + $0x44] sm:$0x1] }
  0x39   : > { %14003 = vmatmul.mubr.msk.bf16.gmra.mrb[4].mxu0 %vm660_vm3, %v12103_v49  ;;  %v554_v3 = vrot.slane %v552_v52, 5  ;;  %v3387_v9 = vshll.u32 %v15965_v42, 16  ;;  %v540_v14 = vrot.slane %v539_v60, 4  ;;  %v3391_v12 = vshrl.u32 %v15965_v42, 16  ;;  %20654 = vst [vmem:[#allocation9_spill] sm:$0xff] %v15993_v50 }
  0x3a   : > { %v549_v17 = vor.u32 %v548_v0, %v544_v51  ;;  %v3380_v20 = vrot.slane %v3378_v35, 4  ;;  %v3376_v22 = vsel %vm15821_vm4, %v3371_v2, %v3375_v37  ;;  %v3383_v27 = vrot.slane %v3381_v4, 5  ;;  %v16003_v35 = vld [vmem:[%s15781_s14 + $0x9c] sm:$0xf] }
  0x3b   : > { %v3389_v33 = vrot.slane %v3387_v9, 5  ;;  %v3397_v36 = vshll.u32 %v15974_v1, 16  ;;  %v12434_v40 = vcombine.low %v3366_v56, %v3376_v22  ;;  %v545_v43 = vsel %vm15821_vm4, %v540_v14, %v544_v51 }
  0x3c   : > { %v550_v45 = vrot.slane %v549_v17, 4  ;;  %v3393_v48 = vrot.slane %v3391_v12, 4  ;;  %v3384_v46 = vor.u32 %v3383_v27, %v3380_v20  ;;  %v557_v37 = vshrl.u32 %v15982_v21, 16  ;;  %v16006_v17 = vld [vmem:[%s15781_s14 + $0xa0] sm:$0xf] }
  0x3d   : > { %v3399_v49 = vrot.slane %v3397_v36, 5  ;;  %v560_v52 = vshll.u32 %v15982_v21, 16  ;;  %14165 = vmatmul.mubr.msk.bf16.gmra.mrb[4].mxu1 %vm660_vm3, %v12434_v40  ;;  %v566_v51 = vshll.u32 %v15988_v39, 16  ;;  %v570_v0 = vshrl.u32 %v15988_v39, 16  ;;  %v16010_v27 = vld [vmem:[%s15781_s14 + $0xa4] sm:$0x1] }
  0x3e   : > { %v555_v56 = vsel %vm15821_vm4, %v550_v45, %v554_v3  ;;  %v3394_v60 = vor.u32 %v3393_v48, %v3389_v33  ;;  %v3385_v4 = vrot.slane %v3384_v46, 4  ;;  %v559_v9 = vrot.slane %v557_v37, 4  ;;  %20655 = vst [vmem:[#allocation10_spill] sm:$0xff] %v16010_v27  ;;  %v16018_v48 = vld [vmem:[%s15781_s14 + $0x48] sm:$0xf] }
  0x3f   : > { %v12104_v2 = vcombine.low %v545_v43, %v555_v56  ;;  %v562_v14 = vrot.slane %v560_v52, 5  ;;  %v568_v12 = vrot.slane %v566_v51, 5  ;;  %v572_v22 = vrot.slane %v570_v0, 4 }
  0x40   : > { %v3395_v20 = vrot.slane %v3394_v60, 4  ;;  %v576_v3 = vshll.u32 %v15993_v50, 16  ;;  %v3390_v36 = vsel %vm15821_vm4, %v3385_v4, %v3389_v33  ;;  %v3402_v43 = vshrl.u32 %v16003_v35, 16  ;;  %v16024_v60 = vld [vmem:[%s15781_s14 + $0x4c] sm:$0xf] }
  0x41   : > { %14006 = vmatprep.mubr.msk.bf16.mxu0 %vm660_vm3, %v12104_v2  ;;  %v563_v40 = vor.u32 %v562_v14, %v559_v9  ;;  %v3405_v45 = vshll.u32 %v16003_v35, 16  ;;  %v573_v37 = vor.u32 %v572_v22, %v568_v12  ;;  %v3411_v56 = vshll.u32 %v16006_v17, 16  ;;  %v16027_v4 = vld [vmem:[%s15781_s14 + $0x50] sm:$0x1] }
  0x42   : > { %v3400_v46 = vsel %vm15821_vm4, %v3395_v20, %v3399_v49  ;;  %v578_v52 = vrot.slane %v576_v3, 5  ;;  %v3404_v0 = vrot.slane %v3402_v43, 4  ;;  %20656 = vst [vmem:[#allocation11_spill] sm:$0xff] %v16027_v4  ;;  %v3415_v61 = vshrl.u32 %v16006_v17, 16  ;;  %v16032_v49 = vld [vmem:[%s15781_s14 + $0xa8] sm:$0xf] }
  0x43   : > { %v12435_v51 = vcombine.low %v3390_v36, %v3400_v46  ;;  %v564_v33 = vrot.slane %v563_v40, 4  ;;  %v3407_v2 = vrot.slane %v3405_v45, 5  ;;  %v574_v9 = vrot.slane %v573_v37, 4  ;;  %v16040_v40 = vld [vmem:[%s15781_s14 + $0xac] sm:$0xf] }
  0x44   : > { %v3413_v14 = vrot.slane %v3411_v56, 5  ;;  %v3421_v59 = vshll.u32 %v16010_v27, 16  ;;  %v581_v3 = vshrl.u32 %v16018_v48, 16  ;;  %v584_v36 = vshll.u32 %v16018_v48, 16  ;;  %v16048_v27 = vld [vmem:[%s15781_s14 + $0xb0] sm:$0x1] }
  0x45   : > { %14168 = vmatprep.mubr.msk.bf16.mxu1 %vm660_vm3, %v12435_v51  ;;  %v569_v20 = vsel %vm15821_vm4, %v564_v33, %v568_v12  ;;  %v3408_v22 = vor.u32 %v3407_v2, %v3404_v0  ;;  %v579_v43 = vsel %vm15821_vm4, %v574_v9, %v578_v52  ;;  %v3417_v45 = vrot.slane %v3415_v61, 4 }
  0x46   : > { %v3423_v46 = vrot.slane %v3421_v59, 5  ;;  %v590_v37 = vshll.u32 %v16024_v60, 16  ;;  %v12105_v56 = vcombine.low %v569_v20, %v579_v43  ;;  %v583_v26 = vrot.slane %v581_v3, 4  ;;  %v16056_v20 = vld [vmem:[%s15781_s14 + $0x54] sm:$0xf] }
  0x47   : > { %v3409_v51 = vrot.slane %v3408_v22, 4  ;;  %v586_v12 = vrot.slane %v584_v36, 5  ;;  %v3418_v33 = vor.u32 %v3417_v45, %v3413_v14  ;;  %v594_v2 = vshrl.u32 %v16024_v60, 16  ;;  %20657 = vst [vmem:[#allocation12_spill] sm:$0xff] %v16056_v20  ;;  %v16060_v45 = vld [vmem:[%s15781_s14 + $0x58] sm:$0xf] }
  0x48   : > { %v592_v0 = vrot.slane %v590_v37, 5  ;;  %v600_v16 = vshll.u32 %v16027_v4, 16  ;;  %14007 = vmatmul.mubr.msk.bf16.gmra.mrb[8].mxu0 %vm660_vm3, %v12105_v56  ;;  %v3426_v52 = vshrl.u32 %v16032_v49, 16  ;;  %v3429_v9 = vshll.u32 %v16032_v49, 16  ;;  %20658 = vst [vmem:[#allocation13_spill] sm:$0xff] %v16060_v45 }
  0x49   : > { %v3414_v59 = vsel %vm15821_vm4, %v3409_v51, %v3413_v14  ;;  %v587_v61 = vor.u32 %v586_v12, %v583_v26  ;;  %v3419_v22 = vrot.slane %v3418_v33, 4  ;;  %v596_v3 = vrot.slane %v594_v2, 4  ;;  %v16064_v14 = vld [vmem:[%s15781_s14 + $0x5c] sm:$0x1] }
  0x4a   : > { %v602_v36 = vrot.slane %v600_v16, 5  ;;  %v3435_v43 = vshll.u32 %v16040_v40, 16  ;;  %v3428_v56 = vrot.slane %v3426_v52, 4  ;;  %v3431_v4 = vrot.slane %v3429_v9, 5  ;;  %v16072_v52 = vld [vmem:[%s15781_s14 + $0xb4] sm:$0xf] }
  0x4b   : > { %v588_v37 = vrot.slane %v587_v61, 4  ;;  %v3439_v26 = vshrl.u32 %v16040_v40, 16  ;;  %v3424_v51 = vsel %vm15821_vm4, %v3419_v22, %v3423_v46  ;;  %v597_v12 = vor.u32 %v596_v3, %v592_v0  ;;  %v16077_v46 = vld [vmem:[%s15781_s14 + $0xb8] sm:$0xf] }
  0x4c   : > { %v3437_v33 = vrot.slane %v3435_v43, 5  ;;  %v3445_v16 = vshll.u32 %v16048_v27, 16  ;;  %v12436_v2 = vcombine.low %v3414_v59, %v3424_v51  ;;  %v3432_v1 = vor.u32 %v3431_v4, %v3428_v56 }
  0x4d   : > { %v593_v50 = vsel %vm15821_vm4, %v588_v37, %v592_v0  ;;  %v3441_v61 = vrot.slane %v3439_v26, 4  ;;  %v598_v9 = vrot.slane %v597_v12, 4  ;;  %v605_v55 = vshrl.u32 %v16056_v20, 16  ;;  %v16086_v26 = vld [vmem:[%s15781_s14 + $0xbc] sm:$0x1] }
  0x4e   : > { %v3447_v18 = vrot.slane %v3445_v16, 5  ;;  %v608_v25 = vshll.u32 %v16056_v20, 16  ;;  %14169 = vmatmul.mubr.msk.bf16.gmra.mrb[8].mxu1 %vm660_vm3, %v12436_v2  ;;  %v3433_v22 = vrot.slane %v3432_v1, 4  ;;  %v614_v3 = vshll.u32 %v16060_v45, 16 }
  0x4f   : > { %v3442_v59 = vor.u32 %v3441_v61, %v3437_v33  ;;  %v618_v4 = vshrl.u32 %v16060_v45, 16  ;;  %v603_v0 = vsel %vm15821_vm4, %v598_v9, %v602_v36  ;;  %v607_v43 = vrot.slane %v605_v55, 4  ;;  %v16094_v55 = vld [vmem:[%s20550_s1 + $0x10] sm:$0x3f]  }
  0x50   : > { %v610_v37 = vrot.slane %v608_v25, 5  ;;  %v624_v56 = vshll.u32 %v16064_v14, 16  ;;  %v12106_v51 = vcombine.low %v593_v50, %v603_v0  ;;  %v3438_v12 = vsel %vm15821_vm4, %v3433_v22, %v3437_v33 }
  0x51   : > { %v3443_v16 = vrot.slane %v3442_v59, 4  ;;  %v616_v1 = vrot.slane %v614_v3, 5  ;;  %v620_v61 = vrot.slane %v618_v4, 4  ;;  %v3450_v45 = vshrl.u32 %v16072_v52, 16 }
  0x52   : > { %v611_v2 = vor.u32 %v610_v37, %v607_v43  ;;  %v626_v20 = vrot.slane %v624_v56, 5  ;;  %14010 = vmatprep.mubr.msk.bf16.mxu0 %vm660_vm3, %v12106_v51  ;;  %v3453_v50 = vshll.u32 %v16072_v52, 16  ;;  %v3459_v36 = vshll.u32 %v16077_v46, 16 }
  0x53   : > { %v3448_v25 = vsel %vm15821_vm4, %v3443_v16, %v3447_v18  ;;  %v3463_v33 = vshrl.u32 %v16077_v46, 16  ;;  %v621_v59 = vor.u32 %v620_v61, %v616_v1  ;;  %v3452_v3 = vrot.slane %v3450_v45, 4 }
  0x54   : > { %v12437_v9 = vcombine.low %v3438_v12, %v3448_v25  ;;  %v612_v22 = vrot.slane %v611_v2, 4  ;;  %v3455_v4 = vrot.slane %v3453_v50, 5  ;;  %v3461_v0 = vrot.slane %v3459_v36, 5 }
  0x55   : > { %v3465_v43 = vrot.slane %v3463_v33, 4  ;;  %v3469_v37 = vshll.u32 %v16086_v26, 16  ;;  %v622_v56 = vrot.slane %v621_v59, 4  ;;  %v3698_v51 = vsel %vm685_vm0, %v15776_v5, 0 }
  0x56   : > { %14172 = vmatprep.mubr.msk.bf16.mxu1 %vm660_vm3, %v12437_v9  ;;  %v617_v18 = vsel %vm15821_vm4, %v612_v22, %v616_v1  ;;  %v12117_v12 = vcombine.low %v15784_v6, %v15787_v7  ;;  %v3456_v45 = vor.u32 %v3455_v4, %v3452_v3  ;;  %14177 = vmatpush3.bf16.msra.mxu1 %v3698_v51  ;;  %v994_v25 = vrot.slane %v15829_v41, 5  ;;  %v955_v9 = vld [vmem:[%s15781_s14] sm:$0xe]  ;;  %v956_v22 = vld [vmem:[%s15781_s14 + $0xc] sm:$0xe] }
  0x57   : > { %v3466_v16 = vor.u32 %v3465_v43, %v3461_v0  ;;  %v3471_v2 = vrot.slane %v3469_v37, 5  ;;  %v12118_v61 = vcombine.low %v15814_v29, %v15817_v30  ;;  %v3830_v1 = vrot.slane %v15844_v58, 5  ;;  %15419 = vmatprep.subr.msk.bf16.mxu1 %vm685_vm0, %v16094_v55  ;;  %v12466_v37 = vld [vmem:[%s15781_s14 + $0x6c] sm:$0xe]  ;;  %v16156_v51 = vld [vmem:[%s15781_s14 + $0x60] sm:$0xe] }
  0x58   : > { %v627_v50 = vsel %vm15821_vm4, %v622_v56, %v626_v20  ;;  %v12449_v5 = vcombine.low %v15840_v53, %v15844_v58  ;;  %v3457_v36 = vrot.slane %v3456_v45, 4  ;;  %v3833_v29 = vrot.slane %v15852_v63, 5  ;;  %v12470_v53 = vld [vmem:[%s15781_s14 + $0x9c] sm:$0xe] }
  0x59   : > { %v12107_v6 = vcombine.low %v617_v18, %v627_v50  ;;  %v3467_v33 = vrot.slane %v3466_v16, 4  ;;  %v1095_v41 = vsel %vm685_vm0, %v15884_v38, 0  ;;  %v12448_v3 = vcombine.low %v15799_v13, %v15803_v15 }
  0x5a   : > { %v3462_v20 = vsel %vm15821_vm4, %v3457_v36, %v3461_v0  ;;  %v12119_v4 = vcombine.low %v15862_v19, %v15868_v23  ;;  %v12450_v63 = vcombine.low %v15877_v32, %v15891_v47  ;;  %v12120_v38 = vcombine.low %v15902_v62, %v15912_v11 }
  0x5b   : > { %14011 = vmatmul.mubr.msk.bf16.gmra.mrb[12].mxu0 %vm660_vm3, %v12107_v6  ;;  %v3472_v59 = vsel %vm15821_vm4, %v3467_v33, %v3471_v2  ;;  %v12451_v0 = vcombine.low %v15923_v28, %v15930_v44  ;;  %v12121_v18 = vcombine.low %v15942_v57, %v15948_v10  ;;  %v12452_v13 = vcombine.low %v15961_v34, %v15965_v42  ;;  %v20670_v28 = vld [vmem:[#allocation10_spill] sm:$0xff] }
  0x5c   : > { %v12438_v43 = vcombine.low %v3462_v20, %v3472_v59  ;;  %14016 = vmatprep.mubr.msk.bf16.mxu0 %vm660_vm3, %v12117_v12  ;;  %v12122_v19 = vcombine.low %v15982_v21, %v15988_v39  ;;  %v20659_v32 = vmov 0  ;;  %v984_v56 = vrot.slane %v15787_v7, 5  ;;  %v957_v20 = vld [vmem:[%s15781_s14 + $0x18] sm:$0xe] }
  0x5d   : > { %v20660_v32 = vsel %vm16150_vm7, 4294967295, %v20659_v32  ;;  %v12134_v12 = vrot.slane %v955_v9, 9  ;;  %v3823_v45 = vrot.slane %v15803_v15, 5  ;;  %v12135_v16 = vrot.slane %v956_v22, 9  ;;  %v958_v9 = vld [vmem:[%s15781_s14 + $0x24] sm:$0xe] }
  0x5e   : > { %20661 = vst [vmem:[#allocation14_spill] sm:$0xff] %v20660_v32  ;;  %14173 = vmatmul.mubr.msk.bf16.gmra.mrb[12].mxu1 %vm660_vm3, %v12438_v43  ;;  %v20662_v2 = vrot.slane %v15817_v30, 5  ;;  %v12123_v7 = vcombine.low %v16018_v48, %v16024_v60  ;;  %v986_v36 = vrot.slane %v984_v56, 4  ;;  %v12474_v33 = vrot.slane %v12466_v37, 9  ;;  %v16186_v37 = vld [vmem:[%s20550_s1 + $0x18] sm:$0x3f]  }
  0x5f   : > { %14178 = vmatprep.mubr.msk.bf16.mxu1 %vm660_vm3, %v12448_v3  ;;  %v3933_v22 = vsel %vm685_vm0, %v16094_v55, 0  ;;  %v998_v6 = vrot.slane %v15868_v23, 5  ;;  %v20664_v30 = vrot.slane %v15790_v8, 5  ;;  %v3872_v48 = vrot.slane %v16077_v46, 5 }
  0x60   : > { %v993_v50 = vrot.slane %v20662_v2, 4  ;;  %v20663_v59 = vmov %v20662_v2  ;;  %v12467_v2 = vld [vmem:[%s15781_s14 + $0x78] sm:$0xe]  ;;  %v16193_v55 = vsel %vm16150_vm7, %v12474_v33, %v3830_v1 }
  0x61   : > { %v16176_v3 = vsel %vm16150_vm7, %v12135_v16, %v20663_v59  ;;  %v3832_v16 = vrot.slane %v3830_v1, 4  ;;  %v12136_v59 = vrot.slane %v957_v20, 9  ;;  %v16210_v33 = vsel %vm16150_vm7, %v986_v36, %v20664_v30  ;;  %v12468_v20 = vld [vmem:[%s15781_s14 + $0x84] sm:$0xe] }
  0x62   : > { %v16180_v43 = vsel %vm16150_vm7, %v993_v50, %v994_v25  ;;  %v16197_v25 = vsel %vm16150_vm7, %v12134_v12, %v984_v56  ;;  %v16201_v50 = vrot.slane %v3823_v45, 4  ;;  %v1001_v56 = vrot.slane %v15871_v24, 5 }
  0x63   : > { %14017 = vmatmul.mubr.msk.bf16.vlgmr.msra.gmra.mrb[0].mxu0 %vm660_vm3, %v12118_v61  ;;  %v16214_v1 = vsel %vm16150_vm7, %v3832_v16, %v3833_v29  ;;  %v12475_v12 = vrot.slane %v12467_v2, 9  ;;  %v16223_v8 = vsel %vm16150_vm7, %v12136_v59, %v998_v6  ;;  %v1000_v61 = vrot.slane %v998_v6, 4  ;;  %v16229_v29 = vld [vmem:[%s20550_s1 + $0x18] sm:$0x3f]   ;;  %v20665_v2 = vld [vmem:[#allocation5_spill] sm:$0xff] }
  0x64   : > { %14033 = vmatpush3.bf16.msra.mxu0 %v1095_v41  ;;  %14020 = vmatprep.mubr.msk.bf16.mxu0 %vm660_vm3, %v12119_v4  ;;  %v3837_v36 = vrot.slane %v15891_v47, 5  ;;  %v3840_v24 = vrot.slane %v15896_v54, 5  ;;  %v12137_v41 = vrot.slane %v958_v9, 9  ;;  %v1005_v4 = vrot.slane %v15912_v11, 5  ;;  %v959_v16 = vld [vmem:[%s15781_s14 + $0x30] sm:$0xe] }
  0x65   : > { %15411 = vmatprep.subr.msk.bf16.mxu0 %vm685_vm0, %v16186_v37  ;;  %v1008_v30 = vrot.slane %v20665_v2, 5  ;;  %v16243_v47 = vsel %vm16150_vm7, %v1000_v61, %v1001_v56  ;;  %v12476_v9 = vrot.slane %v12468_v20, 9  ;;  %v3844_v59 = vrot.slane %v15930_v44, 5  ;;  %v960_v2 = vld [vmem:[%s15781_s14 + $0x3c] sm:$0xe] }
  0x66   : > { %14179 = vmatmul.mubr.msk.bf16.vlgmr.msra.gmra.mrb[0].mxu1 %vm660_vm3, %v12449_v5  ;;  %v16247_v6 = vsel %vm16150_vm7, %v12475_v12, %v3837_v36  ;;  %v3839_v54 = vrot.slane %v3837_v36, 4  ;;  %v16254_v58 = vsel %vm16150_vm7, %v12137_v41, %v1005_v4  ;;  %v1007_v5 = vrot.slane %v1005_v4, 4  ;;  %v20666_v12 = vld [vmem:[#allocation6_spill] sm:$0xff]  ;;  %v20667_v36 = vld [vmem:[#allocation7_spill] sm:$0xff] }
  0x67   : > { %14182 = vmatprep.mubr.msk.bf16.mxu1 %vm660_vm3, %v12450_v63  ;;  %14195 = vmatpush3.bf16.msra.mxu1 %v3933_v22  ;;  %v3847_v20 = vrot.slane %v20666_v12, 5  ;;  %v12138_v61 = vrot.slane %v959_v16, 9  ;;  %v1012_v63 = vrot.slane %v15948_v10, 5  ;;  %v12469_v22 = vld [vmem:[%s15781_s14 + $0x90] sm:$0xe]  ;;  %v3846_v4 = vrot.slane %v3844_v59, 4 }
  0x68   : > { %v16259_v56 = vsel %vm16150_vm7, %v3839_v54, %v3840_v24  ;;  %15420 = vmatprep.subr.msk.bf16.mxu1 %vm685_vm0, %v16229_v29  ;;  %v16270_v41 = vsel %vm16150_vm7, %v1007_v5, %v1008_v30  ;;  %v16274_v24 = vsel %vm16150_vm7, %v12476_v9, %v3844_v59  ;;  %v1015_v23 = vrot.slane %v20667_v36, 5  ;;  %v20668_v59 = vld [vmem:[#allocation8_spill] sm:$0xff] }
  0x69   : > { %v16281_v54 = vsel %vm16150_vm7, %v12138_v61, %v1012_v63  ;;  %v1014_v12 = vrot.slane %v1012_v63, 4  ;;  %v16290_v30 = vsel %vm16150_vm7, %v3846_v4, %v3847_v20  ;;  %v12477_v9 = vrot.slane %v12469_v22, 9  ;;  %v961_v61 = vld [vmem:[%s15781_s14 + $0x48] sm:$0xe] }
  0x6a   : > { %v3851_v5 = vrot.slane %v15965_v42, 5  ;;  %v3854_v16 = vrot.slane %v20668_v59, 5  ;;  %v12486_v62 = vcombine.low %v16274_v24, %v16290_v30  ;;  %v1019_v20 = vrot.slane %v15988_v39, 5 }
  0x6b   : > { %14021 = vmatmul.mubr.msk.bf16.gmra.mrb[4].mxu0 %vm660_vm3, %v12120_v38  ;;  %v16303_v11 = vsel %vm16150_vm7, %v1014_v12, %v1015_v23  ;;  %v12139_v38 = vrot.slane %v960_v2, 9  ;;  %v12478_v4 = vrot.slane %v12470_v53, 9  ;;  %v3858_v2 = vrot.slane %v16006_v17, 5 }
  0x6c   : > { %14024 = vmatprep.mubr.msk.bf16.mxu0 %vm660_vm3, %v12121_v18  ;;  %v12148_v63 = vcombine.low %v16281_v54, %v16303_v11  ;;  %v16311_v57 = vsel %vm16150_vm7, %v12477_v9, %v3851_v5  ;;  %v3853_v10 = vrot.slane %v3851_v5, 4  ;;  %v20669_v18 = vld [vmem:[#allocation9_spill] sm:$0xff]  ;;  %v1021_v36 = vrot.slane %v1019_v20, 4  ;;  %v16550_v11 = vld [vmem:[%s15781_s14 + $0x80] sm:$0x1] }
  0x6d   : > { %v1022_v22 = vrot.slane %v20669_v18, 5  ;;  %v16320_v23 = vsel %vm16150_vm7, %v12139_v38, %v1019_v20  ;;  %v3861_v44 = vrot.slane %v20670_v28, 5  ;;  %v1026_v9 = vrot.slane %v16024_v60, 5  ;;  %v12471_v5 = vld [vmem:[%s15781_s14 + $0xa8] sm:$0xe]  ;;  %20688 = vst [vmem:[#allocation9_spill] sm:$0xff] %v16550_v11 }
  0x6e   : > { %14183 = vmatmul.mubr.msk.bf16.gmra.mrb[4].mxu1 %vm660_vm3, %v12451_v0  ;;  %v16329_v12 = vsel %vm16150_vm7, %v3853_v10, %v3854_v16  ;;  %v12140_v0 = vrot.slane %v961_v61, 9  ;;  %v16342_v34 = vsel %vm16150_vm7, %v12478_v4, %v3858_v2  ;;  %v3860_v42 = vrot.slane %v3858_v2, 4  ;;  %v20671_v61 = vld [vmem:[#allocation11_spill] sm:$0xff]  ;;  %v12472_v2 = vld [vmem:[%s15781_s14 + $0xb4] sm:$0xe] }
  0x6f   : > { %14186 = vmatprep.mubr.msk.bf16.mxu1 %vm660_vm3, %v12452_v13  ;;  %v12487_v53 = vcombine.low %v16311_v57, %v16329_v12  ;;  %v16338_v59 = vsel %vm16150_vm7, %v1021_v36, %v1022_v22  ;;  %v962_v13 = vld [vmem:[%s15781_s14 + $0x54] sm:$0xe]  ;;  %v1028_v20 = vrot.slane %v1026_v9, 4  ;;  %v1029_v10 = vrot.slane %v20671_v61, 5  ;;  %v16547_v54 = vld [vmem:[%s20550_s1 + $0x28] sm:$0x3f]  }
  0x70   : > { %v12149_v16 = vcombine.low %v16320_v23, %v16338_v59  ;;  %v16349_v38 = vsel %vm16150_vm7, %v12140_v0, %v1026_v9  ;;  %v16354_v18 = vsel %vm16150_vm7, %v3860_v42, %v3861_v44  ;;  %v12479_v22 = vrot.slane %v12471_v5, 9  ;;  %v20672_v9 = vld [vmem:[#allocation13_spill] sm:$0xff] }
  0x71   : > { %v3865_v36 = vrot.slane %v16040_v40, 5  ;;  %v3868_v4 = vrot.slane %v16048_v27, 5  ;;  %v12488_v28 = vcombine.low %v16342_v34, %v16354_v18  ;;  %v16367_v0 = vsel %vm16150_vm7, %v1028_v20, %v1029_v10 }
  0x72   : > { %v12141_v44 = vrot.slane %v962_v13, 9  ;;  %v1033_v5 = vrot.slane %v20672_v9, 5  ;;  %v12150_v21 = vcombine.low %v16349_v38, %v16367_v0  ;;  %v12480_v20 = vrot.slane %v12472_v2, 9  ;;  %v16608_v0 = vld [vmem:[%s15781_s14 + $0x94] sm:$0xf] }
  0x73   : > { %14025 = vmatmul.mubr.msk.bf16.gmra.mrb[8].mxu0 %vm660_vm3, %v12122_v19  ;;  %v16378_v39 = vsel %vm16150_vm7, %v12479_v22, %v3865_v36  ;;  %v3867_v27 = vrot.slane %v3865_v36, 4  ;;  %v1036_v19 = vrot.slane %v16064_v14, 5  ;;  %v20673_v60 = vcombine.low %v16003_v35, %v16006_v17  ;;  %v12196_v22 = vld [vmem:[%s15781_s14 + $0xc] sm:$0xf] }
  0x74   : > { %14028 = vmatprep.mubr.msk.bf16.mxu0 %vm660_vm3, %v12123_v7  ;;  %v16383_v42 = vsel %vm16150_vm7, %v12141_v44, %v1033_v5  ;;  %v1035_v13 = vrot.slane %v1033_v5, 4  ;;  %v20674_v7 = vld [vmem:[#allocation12_spill] sm:$0xff]  ;;  %v3875_v14 = vrot.slane %v16086_v26, 5  ;;  %v20675_v36 = vcombine.low %v16032_v49, %v16040_v40  ;;  %v16413_v26 = vld [vmem:[%s15781_s14 + $0x10] sm:$0xf] }
  0x75   : > { %v12124_v61 = vcombine.low %v20674_v7, %v20672_v9  ;;  %v16394_v10 = vsel %vm16150_vm7, %v3867_v27, %v3868_v4  ;;  %v16410_v2 = vsel %vm16150_vm7, %v12480_v20, %v3872_v48  ;;  %v3874_v4 = vrot.slane %v3872_v48, 4  ;;  %v20677_v9 = vld [vmem:[#allocation3_spill] sm:$0xff] }
  0x76   : > { %14187 = vmatmul.mubr.msk.bf16.gmra.mrb[8].mxu1 %vm660_vm3, %v20673_v60  ;;  %v12489_v35 = vcombine.low %v16378_v39, %v16394_v10  ;;  %v16406_v17 = vsel %vm16150_vm7, %v1035_v13, %v1036_v19  ;;  %v12144_v49 = vcombine.low %v16197_v25, %v16210_v33  ;;  %v20676_v40 = vrot.slane %v16156_v51, 9  ;;  %20693 = vst [vmem:[#allocation3_spill] sm:$0xff] %v16608_v0 }
  0x77   : > { %14190 = vmatprep.mubr.msk.bf16.mxu1 %vm660_vm3, %v20675_v36  ;;  %v20678_v5 = vrot.slane %v20677_v9, 5  ;;  %v12455_v13 = vcombine.low %v16072_v52, %v16077_v46  ;;  %v16434_v15 = vsel %vm16150_vm7, %v3874_v4, %v3875_v14  ;;  %v1443_v51 = vshrl.u32 %v12196_v22, 16  ;;  %v12535_v52 = vld [vmem:[%s15781_s14 + $0x6c] sm:$0xf]  ;;  %v16448_v14 = vld [vmem:[%s15781_s14 + $0x14] sm:$0x1] }
  0x78   : > { %v3824_v44 = vsel %vm16150_vm7, %v20676_v40, %v3823_v45  ;;  %v1446_v25 = vshll.u32 %v12196_v22, 16  ;;  %v1452_v33 = vshll.u32 %v16413_v26, 16  ;;  %v16451_v22 = vld [vmem:[%s15781_s14 + $0x70] sm:$0xf]  ;;  %v4280_v36 = vshrl.u32 %v12535_v52, 16 }
  0x79   : > { %v3827_v27 = vsel %vm16150_vm7, %v16201_v50, %v20678_v5  ;;  %v1456_v50 = vshrl.u32 %v16413_v26, 16  ;;  %v1445_v46 = vrot.slane %v1443_v51, 4  ;;  %v1303_v4 = vsel %vm685_vm0, %v16186_v37, 0  ;;  %v16468_v37 = vld [vmem:[%s15781_s14 + $0x74] sm:$0x1] }
  0x7a   : > { %v12483_v20 = vcombine.low %v3824_v44, %v3827_v27  ;;  %v1448_v48 = vrot.slane %v1446_v25, 5  ;;  %v16444_v60 = vrot.slane %v1452_v33, 5  ;;  %v1462_v9 = vshll.u32 %v16448_v14, 16  ;;  %v15475_v27 = vld [vmem:[%s20550_s1 + $0x20] sm:$0x3f]   ;;  %20680 = vst [vmem:[#allocation5_spill] sm:$0xff] %v16468_v37 }
  0x7b   : > { %14029 = vmatmul.mubr.msk.bf16.gmra.mrb[12].mxu0 %vm660_vm3, %v12124_v61  ;;  %v1458_v7 = vrot.slane %v1456_v50, 4  ;;  %v4283_v61 = vshll.u32 %v12535_v52, 16  ;;  %v20679_v5 = vcombine.low %v16176_v3, %v16180_v43  ;;  %v4293_v51 = vshrl.u32 %v16451_v22, 16  ;;  %v12199_v50 = vld [vmem:[%s15781_s14 + $0x18] sm:$0xf] }
  0x7c   : > { %14034 = vmatprep.mubr.msk.bf16.mxu0 %vm660_vm3, %v12144_v49  ;;  %v15461_v49 = vld [vmem:[%s20550_s1 + $0x20] sm:$0x3f]   ;;  %v1449_v40 = vor.u32 %v1448_v48, %v1445_v46  ;;  %v20681_v25 = vcombine.low %v16223_v8, %v16243_v47  ;;  %v4140_v3 = vsel %vm685_vm0, %v16229_v29, 0  ;;  %v4282_v43 = vrot.slane %v4280_v36, 4 }
  0x7d   : > { %v1459_v44 = vor.u32 %v1458_v7, %v16444_v60  ;;  %v4285_v33 = vrot.slane %v4283_v61, 5  ;;  %v20682_v52 = vcombine.low %v16193_v55, %v16214_v1  ;;  %v1464_v47 = vrot.slane %v1462_v9, 5  ;;  %v12538_v61 = vld [vmem:[%s15781_s14 + $0x78] sm:$0xf]  ;;  %v16505_v9 = vld [vmem:[%s15781_s14 + $0x20] sm:$0x1] }
  0x7e   : > { %14191 = vmatmul.mubr.msk.bf16.gmra.mrb[12].mxu1 %vm660_vm3, %v12455_v13  ;;  %v4289_v13 = vshll.u32 %v16451_v22, 16  ;;  %v1450_v46 = vrot.slane %v1449_v40, 4  ;;  %v4299_v48 = vshll.u32 %v16468_v37, 16  ;;  %v20683_v29 = vcombine.low %v16247_v6, %v16259_v56  ;;  %20684 = vst [vmem:[#allocation6_spill] sm:$0xff] %v16505_v9  ;;  %v15467_v37 = vld [vmem:[%s15781_s14 + $0x30] sm:$0xff]  }
  0x7f   : > { %14196 = vmatprep.mubr.msk.bf16.mxu1 %vm660_vm3, %v12483_v20  ;;  %v16481_v20 = vld [vmem:[%s15781_s14 + $0x1c] sm:$0xf]  ;;  %v1460_v8 = vrot.slane %v1459_v44, 4  ;;  %v4295_v36 = vrot.slane %v4293_v51, 4  ;;  %v1467_v55 = vshrl.u32 %v12199_v50, 16  ;;  %v1470_v1 = vshll.u32 %v12199_v50, 16 }
  0x80   : > { %v16492_v7 = vrot.slane %v4289_v13, 5  ;;  %v1476_v40 = vshll.u32 %v16481_v20, 16  ;;  %v1480_v44 = vshrl.u32 %v16481_v20, 16  ;;  %v16499_v6 = vsel %vm685_vm0, %v15461_v49, 0  ;;  %v16513_v51 = vld [vmem:[%s15781_s14 + $0x7c] sm:$0xf] }
  0x81   : > { %v16502_v56 = vsel %vm685_vm0, %v15475_v27, 0  ;;  %v1465_v13 = vsel %vm15821_vm4, %v1460_v8, %v1464_v47  ;;  %20685 = vst [vmem:[#allocation7_spill] sm:$0xff] %v16513_v51  ;;  %v1472_v50 = vrot.slane %v1470_v1, 5  ;;  %v12541_v47 = vld [vmem:[%s15781_s14 + $0x84] sm:$0xf]  ;;  %v4365_v39 = vshrl.u32 %v16608_v0, 16 }
  0x82   : > { %v16532_v8 = vrot.slane %v1476_v40, 5  ;;  %v4331_v40 = vshll.u32 %v12541_v47, 16 }
  0x83   : > { %14035 = vmatmul.mubr.msk.bf16.vlgmr.msra.gmra.mrb[0].mxu0 %vm660_vm3, %v20679_v5  ;;  %v1455_v5 = vsel %vm15821_vm4, %v1450_v46, %v16444_v60  ;;  %v1469_v60 = vrot.slane %v1467_v55, 4 }
  0x84   : > { %14051 = vmatpush3.bf16.msra.mxu0 %v1303_v4  ;;  %14038 = vmatprep.mubr.msk.bf16.mxu0 %vm660_vm3, %v20681_v25  ;;  %v4286_v4 = vor.u32 %v4285_v33, %v4282_v43  ;;  %v4304_v25 = vshrl.u32 %v12538_v61, 16  ;;  %v12202_v43 = vld [vmem:[%s15781_s14 + $0x24] sm:$0xf]  ;;  %v16521_v33 = vrot.slane %v4299_v48, 5  ;;  %v16536_v48 = vcombine.low %v1455_v5, %v1465_v13 }
  0x85   : > { %15412 = vmatprep.subr.msk.bf16.mxu0 %vm685_vm0, %v15461_v49  ;;  %v20686_v49 = vcombine.low %v16254_v58, %v16270_v41  ;;  %v1482_v58 = vrot.slane %v1480_v44, 4  ;;  %v1486_v41 = vshll.u32 %v16505_v9, 16  ;;  %v1491_v1 = vshrl.u32 %v12202_v43, 16  ;;  %v16578_v44 = vld [vmem:[%s15781_s14 + $0x8c] sm:$0x1] }
  0x86   : > { %14197 = vmatmul.mubr.msk.bf16.vlgmr.msra.gmra.mrb[0].mxu1 %vm660_vm3, %v20682_v52  ;;  %v16524_v52 = vld [vmem:[%s15781_s14 + $0x28] sm:$0xf]  ;;  %v16530_v46 = vrot.slane %v4286_v4, 4  ;;  %v4328_v4 = vshrl.u32 %v12541_v47, 16  ;;  %v1473_v57 = vor.u32 %v1472_v50, %v1469_v60  ;;  %20691 = vst [vmem:[#allocation13_spill] sm:$0xff] %v16578_v44  ;;  %v4347_v18 = vshll.u32 %v16578_v44, 16 }
  0x87   : > { %14200 = vmatprep.mubr.msk.bf16.mxu1 %vm660_vm3, %v20683_v29  ;;  %14213 = vmatpush3.bf16.msra.mxu1 %v4140_v3  ;;  %v4307_v3 = vshll.u32 %v12538_v61, 16  ;;  %20687 = vst [vmem:[#allocation8_spill] sm:$0xff] %v16524_v52  ;;  %v4313_v29 = vshll.u32 %v16513_v51, 16  ;;  %v1494_v61 = vshll.u32 %v12202_v43, 16  ;;  %v1500_v24 = vshll.u32 %v16524_v52, 16 }
  0x88   : > { %15421 = vmatprep.subr.msk.bf16.mxu1 %vm685_vm0, %v15475_v27  ;;  %v4296_v27 = vor.u32 %v4295_v36, %v16492_v7  ;;  %v4317_v36 = vshrl.u32 %v16513_v51, 16  ;;  %v1504_v30 = vshrl.u32 %v16524_v52, 16  ;;  %v16567_v12 = vrot.slane %v1486_v41, 5  ;;  %v16582_v60 = vld [vmem:[%s15781_s14 + $0x34] sm:$0xf] }
  0x89   : > { %v4309_v55 = vrot.slane %v4307_v3, 5  ;;  %v1483_v13 = vor.u32 %v1482_v58, %v16532_v8  ;;  %v4323_v43 = vshll.u32 %v16550_v11, 16  ;;  %v1493_v45 = vrot.slane %v1491_v1, 4  ;;  %20692 = vst [vmem:[#allocation12_spill] sm:$0xff] %v16582_v60  ;;  %v16664_v44 = vld [vmem:[%s15781_s14 + $0xa0] sm:$0xf] }
  0x8a   : > { %v16565_v5 = vrot.slane %v4296_v27, 4  ;;  %v4319_v3 = vrot.slane %v4317_v36, 4  ;;  %v1496_v19 = vrot.slane %v1494_v61, 5  ;;  %v16588_v50 = vrot.slane %v1500_v24, 5  ;;  %20697 = vst [vmem:[#allocation17_spill] sm:$0xff] %v16664_v44 }
  0x8b   : > { %14039 = vmatmul.mubr.msk.bf16.gmra.mrb[4].mxu0 %vm660_vm3, %v20686_v49  ;;  %v16575_v49 = vld [vmem:[%s15781_s14 + $0x2c] sm:$0x1]  ;;  %v1506_v58 = vrot.slane %v1504_v30, 4  ;;  %v4330_v41 = vrot.slane %v4328_v4, 4  ;;  %v16594_v36 = vrot.slane %v1473_v57, 4  ;;  %v16605_v61 = vrot.slane %v4323_v43, 5 }
  0x8c   : > { %14042 = vmatprep.mubr.msk.bf16.mxu0 %vm660_vm3, %v12148_v63  ;;  %v4306_v63 = vrot.slane %v4304_v25, 4  ;;  %v16571_v25 = vrot.slane %v4313_v29, 5  ;;  %20690 = vst [vmem:[#allocation11_spill] sm:$0xff] %v16575_v49  ;;  %v4333_v29 = vrot.slane %v4331_v40, 5  ;;  %v1497_v30 = vor.u32 %v1496_v19, %v1493_v45  ;;  %v12547_v45 = vld [vmem:[%s15781_s14 + $0x9c] sm:$0xf] }
  0x8d   : > { %v1510_v4 = vshll.u32 %v16575_v49, 16  ;;  %v1507_v57 = vor.u32 %v1506_v58, %v16588_v50  ;;  %v1524_v19 = vshll.u32 %v16582_v60, 16  ;;  %v16677_v49 = vld [vmem:[%s15781_s14 + $0x98] sm:$0x1] }
  0x8e   : > { %14201 = vmatmul.mubr.msk.bf16.gmra.mrb[4].mxu1 %vm660_vm3, %v12486_v62  ;;  %v16559_v62 = vld [vmem:[%s15781_s14 + $0x88] sm:$0xf]  ;;  %v4310_v47 = vor.u32 %v4309_v55, %v4306_v63  ;;  %v16598_v63 = vsel %vm685_vm0, %v16547_v54, 0  ;;  %v16602_v55 = vrot.slane %v1483_v13, 4  ;;  %v4320_v1 = vor.u32 %v4319_v3, %v16571_v25  ;;  %20698 = vst [vmem:[#allocation18_spill] sm:$0xff] %v16677_v49 }
  0x8f   : > { %14204 = vmatprep.mubr.msk.bf16.mxu1 %vm660_vm3, %v12487_v53  ;;  %20689 = vst [vmem:[#allocation10_spill] sm:$0xff] %v16559_v62  ;;  %v12205_v53 = vld [vmem:[%s15781_s14 + $0x30] sm:$0xf]  ;;  %v4337_v27 = vshll.u32 %v16559_v62, 16  ;;  %v4341_v23 = vshrl.u32 %v16559_v62, 16  ;;  %v4334_v34 = vor.u32 %v4333_v29, %v4330_v41  ;;  %v1528_v3 = vshrl.u32 %v16582_v60, 16 }
  0x90   : > { %v1515_v59 = vshrl.u32 %v12205_v53, 16  ;;  %v1518_v38 = vshll.u32 %v12205_v53, 16  ;;  %v16615_v24 = vrot.slane %v4310_v47, 4  ;;  %v15462_v53 = vld [vmem:[%s15781_s14 + $0x6c] sm:$0xff]   ;;  %v16641_v58 = vrot.slane %v4320_v1, 4 }
  0x91   : > { %v16618_v40 = vrot.slane %v4337_v27, 5  ;;  %v4343_v10 = vrot.slane %v4341_v23, 4  ;;  %v12208_v27 = vld [vmem:[%s15781_s14 + $0x3c] sm:$0xf]  ;;  %v16643_v41 = vrot.slane %v1510_v4, 5  ;;  %v4361_v29 = vshll.u32 %v16608_v0, 16 }
  0x92   : > { %v1520_v13 = vrot.slane %v1518_v38, 5  ;;  %v16648_v23 = vld [vmem:[%s15781_s14 + $0x40] sm:$0xf]  ;;  %v16654_v38 = vrot.slane %v1497_v30, 4  ;;  %v16658_v1 = vrot.slane %v4334_v34, 4  ;;  %v16660_v4 = vrot.slane %v4347_v18, 5 }
  0x93   : > { %14043 = vmatmul.mubr.msk.bf16.gmra.mrb[8].mxu0 %vm660_vm3, %v12149_v16  ;;  %v12544_v16 = vld [vmem:[%s15781_s14 + $0x90] sm:$0xf]  ;;  %20695 = vst [vmem:[#allocation16_spill] sm:$0xff] %v16648_v23  ;;  %v16672_v30 = vrot.slane %v1524_v19, 5  ;;  %v15463_v34 = vld [vmem:[%s15781_s14 + $0x18] sm:$0xff]   ;;  %v1530_v18 = vrot.slane %v1528_v3, 4 }
  0x94   : > { %14046 = vmatprep.mubr.msk.bf16.mxu0 %vm660_vm3, %v12150_v21  ;;  %v15460_v21 = vld [vmem:[%s15781_s14 + $0xc] sm:$0xff]   ;;  %v4352_v43 = vshrl.u32 %v12544_v16, 16  ;;  %v4355_v47 = vshll.u32 %v12544_v16, 16  ;;  %v16656_v16 = vrot.slane %v1507_v57, 4  ;;  %v16684_v19 = vrot.slane %v4361_v29, 5  ;;  %v15464_v29 = vld [vmem:[%s15781_s14 + $0x78] sm:$0xff]  }
  0x95   : > { %v1542_v62 = vshll.u32 %v12208_v27, 16  ;;  %v4376_v3 = vshrl.u32 %v12547_v45, 16 }
  0x96   : > { %14205 = vmatmul.mubr.msk.bf16.gmra.mrb[8].mxu1 %vm660_vm3, %v12488_v28  ;;  %v16627_v28 = vld [vmem:[%s15781_s14 + $0x38] sm:$0x1]  ;;  %v4354_v0 = vrot.slane %v4352_v43, 4  ;;  %v4357_v60 = vrot.slane %v4355_v47, 5  ;;  %v4385_v43 = vshll.u32 %v16664_v44, 16  ;;  %v4389_v47 = vshrl.u32 %v16664_v44, 16 }
  0x97   : > { %14208 = vmatprep.mubr.msk.bf16.mxu1 %vm660_vm3, %v12489_v35  ;;  %20694 = vst [vmem:[#allocation15_spill] sm:$0xff] %v16627_v28  ;;  %v1517_v35 = vrot.slane %v1515_v59, 4  ;;  %v20696_v59 = vcombine.low %v16383_v42, %v16406_v17  ;;  %v4344_v17 = vor.u32 %v4343_v10, %v16618_v40  ;;  %v1534_v57 = vshll.u32 %v16627_v28, 16  ;;  %v15465_v42 = vld [vmem:[%s15781_s14 + $0x24] sm:$0xff]  }
  0x98   : > { %v4367_v10 = vrot.slane %v4365_v39, 4  ;;  %v1539_v28 = vshrl.u32 %v12208_v27, 16  ;;  %v16698_v39 = vld [vmem:[%s15781_s14 + $0x44] sm:$0x1]  ;;  %v12211_v27 = vld [vmem:[%s15781_s14 + $0x48] sm:$0xf]  ;;  %v4358_v11 = vor.u32 %v4357_v60, %v4354_v0 }
  0x99   : > { %v16709_v52 = vrot.slane %v1534_v57, 5  ;;  %v4371_v44 = vshll.u32 %v16677_v49, 16  ;;  %v15466_v57 = vld [vmem:[%s15781_s14 + $0x84] sm:$0xff]   ;;  %v1544_v51 = vrot.slane %v1542_v62, 5  ;;  %v4378_v0 = vrot.slane %v4376_v3, 4 }
  0x9a   : > { %v1541_v32 = vrot.slane %v1539_v28, 4  ;;  %v16734_v49 = vrot.slane %v4385_v43, 5  ;;  %v4391_v9 = vrot.slane %v4389_v47, 4  ;;  %v1558_v62 = vshll.u32 %v16698_v39, 16 }
  0x9b   : > { %14047 = vmatmul.mubr.msk.bf16.gmra.mrb[12].mxu0 %vm660_vm3, %v20696_v59  ;;  %v1521_v59 = vor.u32 %v1520_v13, %v1517_v35  ;;  %v1552_v13 = vshrl.u32 %v16648_v23, 16  ;;  %v4373_v3 = vrot.slane %v4371_v44, 5  ;;  %v4359_v43 = vrot.slane %v4358_v11, 4  ;;  %v12550_v44 = vld [vmem:[%s15781_s14 + $0xa8] sm:$0xf] }
  0x9c   : > { %14052 = vmatprep.mubr.msk.bf16.mxu0 %vm660_vm3, %v15460_v21  ;;  %v20699_v21 = vcombine.low %v16410_v2, %v16434_v15  ;;  %v1548_v15 = vshll.u32 %v16648_v23, 16  ;;  %v1531_v2 = vor.u32 %v1530_v18, %v16672_v30  ;;  %v16712_v23 = vld [vmem:[%s15781_s14 + $0x4c] sm:$0xf]  ;;  %v4368_v18 = vor.u32 %v4367_v10, %v16684_v19 }
  0x9d   : > { %v16706_v35 = vrot.slane %v1521_v59, 4  ;;  %v16725_v59 = vld [vmem:[%s20550_s1 + $0x28] sm:$0x3f]   ;;  %v1554_v60 = vrot.slane %v1552_v13, 4  ;;  %v1563_v10 = vshrl.u32 %v12211_v27, 16  ;;  %v1576_v13 = vshrl.u32 %v16712_v23, 16 }
  0x9e   : > { %14209 = vmatmul.mubr.msk.bf16.gmra.mrb[12].mxu1 %vm660_vm3, %v20699_v21  ;;  %v16704_v21 = vrot.slane %v4344_v17, 4  ;;  %v16720_v17 = vld [vmem:[%s15781_s14 + $0xa4] sm:$0x1]  ;;  %v4369_v47 = vrot.slane %v4368_v18, 4  ;;  %v1560_v18 = vrot.slane %v1558_v62, 5 }
  0x9f   : > { %14214 = vmatprep.mubr.msk.bf16.mxu1 %vm660_vm3, %v15462_v53  ;;  %v4379_v53 = vshll.u32 %v12547_v45, 16  ;;  %v16730_v45 = vrot.slane %v1548_v15, 5  ;;  %v1566_v15 = vshll.u32 %v12211_v27, 16 }
  0xa1   : > { %v4381_v28 = vrot.slane %v4379_v53, 5  ;;  %v1545_v53 = vor.u32 %v1544_v51, %v1541_v32  ;;  %v4350_v32 = vsel %vm15821_vm4, %v16704_v21, %v16660_v4  ;;  %v1565_v51 = vrot.slane %v1563_v10, 4 }
  0xa2   : > { %v1568_v11 = vrot.slane %v1566_v15, 5  ;;  %v20701_v10 = vsel %vm15821_vm4, %v16530_v46, %v16492_v7  ;;  %v20703_v7 = vsel %vm15821_vm4, %v16594_v36, %v16532_v8 }
  0xa3   : > { %14053 = vmatmul.mubr.msk.bf16.vlgmr.msra.gmra.mrb[0].mxu0 %vm660_vm3, %v15463_v34  ;;  %v1532_v34 = vrot.slane %v1531_v2, 4  ;;  %v1572_v2 = vshll.u32 %v16712_v23, 16  ;;  %v4382_v27 = vor.u32 %v4381_v28, %v4378_v0  ;;  %v1578_v0 = vrot.slane %v1576_v13, 4  ;;  %v15471_v13 = vld [vmem:[%s15781_s14 + $0x48] sm:$0xff]  }
  0xa4   : > { %14069 = vmatpush3.bf16.msra.mxu0 %v16499_v6  ;;  %14056 = vmatprep.mubr.msk.bf16.mxu0 %vm660_vm3, %v15465_v42  ;;  %v15469_v6 = vld [vmem:[%s15781_s14 + $0x3c] sm:$0xff]   ;;  %v1513_v42 = vsel %vm15821_vm4, %v16656_v16, %v16643_v41  ;;  %v1555_v41 = vor.u32 %v1554_v60, %v16730_v45  ;;  %v4395_v16 = vshll.u32 %v16720_v17, 16  ;;  %v1546_v4 = vrot.slane %v1545_v53, 4 }
  0xa5   : > { %15413 = vmatprep.subr.msk.bf16.mxu0 %vm685_vm0, %v16547_v54  ;;  %v4340_v54 = vsel %vm15821_vm4, %v16658_v1, %v16618_v40  ;;  %v4392_v40 = vor.u32 %v4391_v9, %v16734_v49  ;;  %v16758_v1 = vld [vmem:[%s15781_s14 + $0x50] sm:$0x1]  ;;  %v15470_v9 = vld [vmem:[%s15781_s14 + $0x9c] sm:$0xff]   ;;  %v16776_v60 = vrot.slane %v1572_v2, 5  ;;  %v4403_v2 = vshll.u32 %v12550_v44, 16 }
  0xa6   : > { %14215 = vmatmul.mubr.msk.bf16.vlgmr.msra.gmra.mrb[0].mxu1 %vm660_vm3, %v15464_v29  ;;  %v15468_v29 = vld [vmem:[%s15781_s14 + $0x90] sm:$0xff]   ;;  %v1556_v21 = vrot.slane %v1555_v41, 4  ;;  %v4397_v28 = vrot.slane %v4395_v16, 5  ;;  %v15472_v41 = vld [vmem:[%s15781_s14 + $0xa8] sm:$0xff]  }
  0xa7   : > { %14218 = vmatprep.mubr.msk.bf16.mxu1 %vm660_vm3, %v15466_v57  ;;  %14231 = vmatpush3.bf16.msra.mxu1 %v16502_v56  ;;  %v1527_v56 = vsel %vm15821_vm4, %v16706_v35, %v16672_v30  ;;  %v1537_v57 = vsel %vm15821_vm4, %v1532_v34, %v16709_v52  ;;  %v1582_v30 = vshll.u32 %v16758_v1, 16  ;;  %v4364_v35 = vsel %vm15821_vm4, %v4359_v43, %v16684_v19  ;;  %v15473_v16 = vld [vmem:[%s15781_s14 + $0x54] sm:$0xff]  }
  0xa8   : > { %15422 = vmatprep.subr.msk.bf16.mxu1 %vm685_vm0, %v16725_v59  ;;  %v4374_v52 = vsel %vm15821_vm4, %v4369_v47, %v4373_v3  ;;  %v4383_v34 = vrot.slane %v4382_v27, 4  ;;  %v4393_v62 = vrot.slane %v4392_v40, 4  ;;  %v4400_v19 = vshrl.u32 %v12550_v44, 16 }
  0xa9   : > { %v20705_v3 = vsel %vm15821_vm4, %v16615_v24, %v16571_v25  ;;  %v1579_v36 = vor.u32 %v1578_v0, %v16776_v60  ;;  %v16840_v25 = vcombine.low %v4364_v35, %v4374_v52  ;;  %v1551_v24 = vsel %vm15821_vm4, %v1546_v4, %v16730_v45  ;;  %v16862_v45 = vld [vmem:[%s15781_s14 + $0xb8] sm:$0xf] }
  0xaa   : > { %v4388_v43 = vsel %vm15821_vm4, %v4383_v34, %v16734_v49  ;;  %v4398_v47 = vsel %vm15821_vm4, %v4393_v62, %v4397_v28  ;;  %v16859_v27 = vrot.slane %v1582_v30, 5  ;;  %v4433_v35 = vshll.u32 %v16862_v45, 16 }
  0xab   : > { %14057 = vmatmul.mubr.msk.bf16.gmra.mrb[4].mxu0 %vm660_vm3, %v15467_v37  ;;  %v20700_v37 = vsel %vm15821_vm4, %v16565_v5, %v16521_v33  ;;  %v20702_v33 = vsel %vm15821_vm4, %v16602_v55, %v16567_v12  ;;  %v20704_v5 = vsel %vm15821_vm4, %v16641_v58, %v16605_v61  ;;  %v20706_v12 = vsel %vm15821_vm4, %v16654_v38, %v16588_v50  ;;  %v16833_v55 = vld [vmem:[%s15781_s14 + $0xac] sm:$0xf]  ;;  %v12214_v50 = vld [vmem:[%s15781_s14 + $0x54] sm:$0xf]  ;;  %v16847_v38 = vld [vmem:[%s15781_s14 + $0x58] sm:$0xf] }
  0xac   : > { %14060 = vmatprep.mubr.msk.bf16.mxu0 %vm660_vm3, %v15469_v6  ;;  %v16796_v15 = vcombine.low %v20701_v10, %v20700_v37  ;;  %v1569_v6 = vor.u32 %v1568_v11, %v1565_v51  ;;  %v16810_v46 = vcombine.low %v20703_v7, %v20702_v33  ;;  %v16822_v53 = vcombine.low %v20705_v3, %v20704_v5  ;;  %v16870_v11 = vld [vmem:[%s15781_s14 + $0xb0] sm:$0x1]  ;;  %v12556_v5 = vld [vmem:[%s15781_s14 + $0xc0] sm:$0xf] }
  0xad   : > { %v16829_v8 = vcombine.low %v20706_v12, %v1513_v42  ;;  %v16836_v61 = vcombine.low %v4340_v54, %v4350_v32  ;;  %v16838_v58 = vcombine.low %v1527_v56, %v1537_v57  ;;  %v12553_v42 = vld [vmem:[%s15781_s14 + $0xb4] sm:$0xf]  ;;  %v1561_v54 = vsel %vm15821_vm4, %v1556_v21, %v1560_v18 }
  0xae   : > { %14219 = vmatmul.mubr.msk.bf16.gmra.mrb[4].mxu1 %vm660_vm3, %v15468_v29  ;;  %v16864_v40 = vrot.slane %v1569_v6, 4  ;;  %v4402_v29 = vrot.slane %v4400_v19, 4  ;;  %v4405_v32 = vrot.slane %v4403_v2, 5  ;;  %v4409_v56 = vshll.u32 %v16833_v55, 16  ;;  %v15474_v57 = vld [vmem:[%s15781_s14 + $0xb4] sm:$0xff]   ;;  %v15476_v2 = vld [vmem:[%s15781_s14 + $0x60] sm:$0xff]  }
  0xaf   : > { %14222 = vmatprep.mubr.msk.bf16.mxu1 %vm660_vm3, %v15470_v9  ;;  %v16867_v51 = vrot.slane %v1579_v36, 4  ;;  %v4413_v44 = vshrl.u32 %v16833_v55, 16  ;;  %v1587_v49 = vshrl.u32 %v12214_v50, 16  ;;  %v1590_v9 = vshll.u32 %v12214_v50, 16  ;;  %v12217_v6 = vld [vmem:[%s15781_s14 + $0x60] sm:$0xf] }
  0xb0   : > { %v1596_v18 = vshll.u32 %v16847_v38, 16  ;;  %v1600_v0 = vshrl.u32 %v16847_v38, 16  ;;  %v4424_v4 = vshrl.u32 %v12553_v42, 16  ;;  %v4427_v21 = vshll.u32 %v12553_v42, 16  ;;  %v16893_v19 = vld [vmem:[%s15781_s14 + $0x64] sm:$0xf] }
  0xb1   : > { %v16878_v28 = vcombine.low %v1551_v24, %v1561_v54  ;;  %v16880_v30 = vcombine.low %v4388_v43, %v4398_v47  ;;  %v4437_v52 = vshrl.u32 %v16862_v45, 16  ;;  %v1575_v34 = vsel %vm15821_vm4, %v16864_v40, %v16776_v60  ;;  %v16906_v50 = vld [vmem:[%s15781_s14 + $0xc4] sm:$0xf]  ;;  %v16909_v42 = vld [vmem:[%s15781_s14 + $0x5c] sm:$0x1] }
  0xb2   : > { %v4406_v62 = vor.u32 %v4405_v32, %v4402_v29  ;;  %v16888_v37 = vrot.slane %v4409_v56, 5  ;;  %v4419_v10 = vshll.u32 %v16870_v11, 16  ;;  %v4415_v60 = vrot.slane %v4413_v44, 4  ;;  %v16914_v47 = vld [vmem:[%s15781_s14 + $0xbc] sm:$0x1]  ;;  %v15477_v56 = vld [vmem:[%s15781_s14 + $0xc0] sm:$0xff]  }
  0xb3   : > { %14061 = vmatmul.mubr.msk.bf16.gmra.mrb[8].mxu0 %vm660_vm3, %v15471_v13  ;;  %v1585_v13 = vsel %vm15821_vm4, %v16867_v51, %v16859_v27  ;;  %v1589_v33 = vrot.slane %v1587_v49, 4  ;;  %v1592_v7 = vrot.slane %v1590_v9, 5  ;;  %v16903_v3 = vrot.slane %v1596_v18, 5 }
  0xb4   : > { %14064 = vmatprep.mubr.msk.bf16.mxu0 %vm660_vm3, %v15473_v16  ;;  %v1602_v12 = vrot.slane %v1600_v0, 4  ;;  %v4426_v36 = vrot.slane %v4424_v4, 4  ;;  %v4429_v24 = vrot.slane %v4427_v21, 5  ;;  %v4439_v16 = vrot.slane %v4437_v52, 4 }
  0xb5   : > { %v1611_v54 = vshrl.u32 %v12217_v6, 16  ;;  %v1614_v43 = vshll.u32 %v12217_v6, 16  ;;  %v1620_v27 = vshll.u32 %v16893_v19, 16  ;;  %v1624_v40 = vshrl.u32 %v16893_v19, 16  ;;  %v16932_v6 = vld [vmem:[%s15781_s14 + $0x68] sm:$0x1] }
  0xb6   : > { %14223 = vmatmul.mubr.msk.bf16.gmra.mrb[8].mxu1 %vm660_vm3, %v15472_v41  ;;  %v16911_v41 = vrot.slane %v4433_v35, 5  ;;  %v4448_v29 = vshrl.u32 %v12556_v5, 16  ;;  %v4451_v32 = vshll.u32 %v12556_v5, 16  ;;  %v16919_v51 = vrot.slane %v4406_v62, 4 }
  0xb7   : > { %14226 = vmatprep.mubr.msk.bf16.mxu1 %vm660_vm3, %v15474_v57  ;;  %v4416_v44 = vor.u32 %v4415_v60, %v16888_v37  ;;  %v4457_v49 = vshll.u32 %v16906_v50, 16  ;;  %v4461_v9 = vshrl.u32 %v16906_v50, 16  ;;  %v1593_v57 = vor.u32 %v1592_v7, %v1589_v33 }
  0xb8   : > { %v1603_v18 = vor.u32 %v1602_v12, %v16903_v3  ;;  %v1606_v0 = vshll.u32 %v16909_v42, 16  ;;  %v4430_v4 = vor.u32 %v4429_v24, %v4426_v36  ;;  %v4440_v21 = vor.u32 %v4439_v16, %v16911_v41 }
  0xb9   : > { %v4443_v35 = vshll.u32 %v16914_v47, 16  ;;  %v1613_v52 = vrot.slane %v1611_v54, 4  ;;  %v1616_v62 = vrot.slane %v1614_v43, 5  ;;  %v16934_v60 = vrot.slane %v1620_v27, 5  ;;  %v16942_v27 = vld [vmem:[%s15781_s14 + $0xc8] sm:$0x1] }
  0xba   : > { %v4450_v33 = vrot.slane %v4448_v29, 4  ;;  %v4453_v7 = vrot.slane %v4451_v32, 5  ;;  %v4417_v5 = vrot.slane %v4416_v44, 4  ;;  %v4421_v12 = vrot.slane %v4419_v10, 5 }
  0xbb   : > { %14065 = vmatmul.mubr.msk.bf16.gmra.mrb[12].mxu0 %vm660_vm3, %v15476_v2  ;;  %v1626_v2 = vrot.slane %v1624_v40, 4  ;;  %v16937_v36 = vrot.slane %v4457_v49, 5  ;;  %v1594_v24 = vrot.slane %v1593_v57, 4  ;;  %v1604_v16 = vrot.slane %v1603_v18, 4  ;;  %v12239_v18 = vld [vmem:[%s15781_s14 + $0xc] sm:$0xe] }
  0xbc   : > { %14070 = vmatprep.mubr.msk.bf16.mxu0 %vm660_vm3, %v16536_v48  ;;  %v4463_v48 = vrot.slane %v4461_v9, 4  ;;  %v1608_v54 = vrot.slane %v1606_v0, 5  ;;  %v4431_v43 = vrot.slane %v4430_v4, 4  ;;  %v16944_v40 = vcombine.low %v1575_v34, %v1585_v13  ;;  %v16955_v34 = vld [vmem:[%s20550_s1 + $0x30] sm:$0x3f]  }
  0xbd   : > { %v4441_v29 = vrot.slane %v4440_v21, 4  ;;  %v4445_v32 = vrot.slane %v4443_v35, 5  ;;  %v1630_v10 = vshll.u32 %v16932_v6, 16  ;;  %v1627_v44 = vor.u32 %v1626_v2, %v16934_v60  ;;  %v12578_v21 = vld [vmem:[%s15781_s14 + $0x6c] sm:$0xe] }
  0xbe   : > { %14227 = vmatmul.mubr.msk.bf16.gmra.mrb[12].mxu1 %vm660_vm3, %v15477_v56  ;;  %v4412_v56 = vsel %vm15821_vm4, %v16919_v51, %v16888_v37  ;;  %v4454_v49 = vor.u32 %v4453_v7, %v4450_v33  ;;  %v4422_v13 = vsel %vm15821_vm4, %v4417_v5, %v4421_v12  ;;  %v4464_v9 = vor.u32 %v4463_v48, %v16937_v36  ;;  %v20707_v48 = vld [vmem:[#allocation5_spill] sm:$0xff] }
  0xbf   : > { %14232 = vmatprep.mubr.msk.bf16.mxu1 %vm660_vm3, %v16796_v15  ;;  %v1617_v15 = vor.u32 %v1616_v62, %v1613_v52  ;;  %v4467_v57 = vshll.u32 %v16942_v27, 16  ;;  %v1840_v37 = vrot.slane %v16413_v26, 5  ;;  %v1599_v51 = vsel %vm15821_vm4, %v1594_v24, %v16903_v3  ;;  %v12240_v52 = vld [vmem:[%s15781_s14 + $0x18] sm:$0xe] }
  0xc0   : > { %v1609_v0 = vsel %vm15821_vm4, %v1604_v16, %v1608_v54  ;;  %v4436_v4 = vsel %vm15821_vm4, %v4431_v43, %v16911_v41  ;;  %v4676_v35 = vrot.slane %v16451_v22, 5  ;;  %v4446_v26 = vsel %vm15821_vm4, %v4441_v29, %v4445_v32  ;;  %v16987_v41 = vld [vmem:[%s20550_s1 + $0x30] sm:$0x3f]  }
  0xc1   : > { %v4786_v3 = vsel %vm685_vm0, %v16725_v59, 0  ;;  %v1847_v62 = vrot.slane %v16481_v20, 5  ;;  %v1618_v22 = vrot.slane %v1617_v15, 4  ;;  %v1628_v2 = vrot.slane %v1627_v44, 4  ;;  %v20708_v29 = vld [vmem:[#allocation6_spill] sm:$0xff] }
  0xc2   : > { %v12247_v33 = vrot.slane %v12239_v18, 9  ;;  %v4469_v59 = vrot.slane %v4467_v57, 5  ;;  %v1842_v7 = vrot.slane %v1840_v37, 4  ;;  %v1843_v20 = vrot.slane %v16448_v14, 5 }
  0xc3   : > { %14071 = vmatmul.mubr.msk.bf16.vlgmr.msra.gmra.mrb[0].mxu0 %vm660_vm3, %v16810_v46  ;;  %v1632_v46 = vrot.slane %v1630_v10, 5  ;;  %v12586_v5 = vrot.slane %v12578_v21, 9  ;;  %v4678_v12 = vrot.slane %v4676_v35, 4  ;;  %v4679_v24 = vrot.slane %v20707_v48, 5  ;;  %v20709_v10 = vld [vmem:[#allocation7_spill] sm:$0xff]  ;;  %v20711_v21 = vld [vmem:[#allocation9_spill] sm:$0xff] }
  0xc4   : > { %14087 = vmatpush3.bf16.msra.mxu0 %v16598_v63  ;;  %14074 = vmatprep.mubr.msk.bf16.mxu0 %vm660_vm3, %v16829_v8  ;;  %v4455_v63 = vrot.slane %v4454_v49, 4  ;;  %v4465_v8 = vrot.slane %v4464_v9, 4  ;;  %v12248_v16 = vrot.slane %v12240_v52, 9  ;;  %v16997_v54 = vcombine.low %v4412_v56, %v4422_v13  ;;  %v20712_v52 = vld [vmem:[#allocation8_spill] sm:$0xff]  ;;  %v20715_v48 = vld [vmem:[#allocation3_spill] sm:$0xff] }
  0xc5   : > { %15414 = vmatprep.subr.msk.bf16.mxu0 %vm685_vm0, %v16955_v34  ;;  %v1849_v43 = vrot.slane %v1847_v62, 4  ;;  %v1850_v32 = vrot.slane %v20708_v29, 5  ;;  %v4683_v15 = vrot.slane %v20709_v10, 5  ;;  %v12228_v14 = vcombine.low %v1599_v51, %v1609_v0  ;;  %v12241_v0 = vld [vmem:[%s15781_s14 + $0x24] sm:$0xe] }
  0xc6   : > { %14233 = vmatmul.mubr.msk.bf16.vlgmr.msra.gmra.mrb[0].mxu1 %vm660_vm3, %v16822_v53  ;;  %v12579_v53 = vld [vmem:[%s15781_s14 + $0x78] sm:$0xe]  ;;  %v1623_v44 = vsel %vm15821_vm4, %v1618_v22, %v16934_v60  ;;  %v1633_v56 = vsel %vm15821_vm4, %v1628_v2, %v1632_v46  ;;  %v4460_v49 = vsel %vm15821_vm4, %v4455_v63, %v16937_v36  ;;  %v4470_v13 = vsel %vm15821_vm4, %v4465_v8, %v4469_v59  ;;  %v12580_v46 = vld [vmem:[%s15781_s14 + $0x84] sm:$0xe]  ;;  %v20713_v2 = vld [vmem:[#allocation10_spill] sm:$0xff] }
  0xc7   : > { %14236 = vmatprep.mubr.msk.bf16.mxu1 %vm660_vm3, %v16836_v61  ;;  %14249 = vmatpush3.bf16.msra.mxu1 %v4786_v3  ;;  %v17004_v61 = vcombine.low %v4436_v4, %v4446_v26  ;;  %v17018_v57 = vsel %vm16150_vm7, %v12247_v33, %v1840_v37  ;;  %v17022_v18 = vsel %vm16150_vm7, %v1842_v7, %v1843_v20  ;;  %v12587_v51 = vrot.slane %v12579_v53, 9  ;;  %v12242_v63 = vld [vmem:[%s15781_s14 + $0x30] sm:$0xe]  ;;  %v20714_v7 = vld [vmem:[#allocation12_spill] sm:$0xff]  ;;  %v12243_v10 = vld [vmem:[%s15781_s14 + $0x3c] sm:$0xe] }
  0xc8   : > { %15423 = vmatprep.subr.msk.bf16.mxu1 %vm685_vm0, %v16987_v41  ;;  %v17028_v60 = vsel %vm16150_vm7, %v12586_v5, %v4676_v35  ;;  %v17032_v36 = vsel %vm16150_vm7, %v4678_v12, %v4679_v24  ;;  %v17036_v37 = vsel %vm16150_vm7, %v12248_v16, %v1847_v62  ;;  %v4685_v4 = vrot.slane %v4683_v15, 4  ;;  %v20716_v16 = vld [vmem:[#allocation16_spill] sm:$0xff]  ;;  %v12244_v5 = vld [vmem:[%s15781_s14 + $0x48] sm:$0xe] }
  0xc9   : > { %v4686_v35 = vrot.slane %v20711_v21, 5  ;;  %v1854_v26 = vrot.slane %v20712_v52, 5  ;;  %v17048_v3 = vcombine.low %v1623_v44, %v1633_v56  ;;  %v17050_v62 = vcombine.low %v4460_v49, %v4470_v13  ;;  %v20718_v56 = vld [vmem:[#allocation13_spill] sm:$0xff]  ;;  %v20720_v21 = vld [vmem:[#allocation15_spill] sm:$0xff] }
  0xca   : > { %v12257_v22 = vcombine.low %v17018_v57, %v17022_v18  ;;  %v12596_v33 = vcombine.low %v17028_v60, %v17032_v36  ;;  %v17062_v8 = vsel %vm685_vm0, %v16955_v34, 0  ;;  %v12249_v59 = vrot.slane %v12241_v0, 9  ;;  %v20719_v13 = vld [vmem:[#allocation17_spill] sm:$0xff]  ;;  %v17222_v60 = vld [vmem:[%s15781_s14 + $0x7c] sm:$0xf] }
  0xcb   : > { %14075 = vmatmul.mubr.msk.bf16.gmra.mrb[4].mxu0 %vm660_vm3, %v16838_v58  ;;  %v17043_v58 = vsel %vm16150_vm7, %v1849_v43, %v1850_v32  ;;  %v1861_v20 = vrot.slane %v20714_v7, 5  ;;  %v17071_v12 = vsel %vm16150_vm7, %v12587_v51, %v4683_v15  ;;  %v4697_v24 = vrot.slane %v20715_v48, 5  ;;  %v20717_v32 = vld [vmem:[#allocation11_spill] sm:$0xff]  ;;  %v20721_v7 = vld [vmem:[#allocation18_spill] sm:$0xff] }
  0xcc   : > { %14078 = vmatprep.mubr.msk.bf16.mxu0 %vm660_vm3, %v16878_v28  ;;  %v4690_v28 = vrot.slane %v20713_v2, 5  ;;  %v1868_v34 = vrot.slane %v20716_v16, 5  ;;  %v17078_v43 = vsel %vm16150_vm7, %v4685_v4, %v4686_v35  ;;  %v1856_v29 = vrot.slane %v1854_v26, 4  ;;  %v12582_v4 = vld [vmem:[%s15781_s14 + $0x9c] sm:$0xe] }
  0xcd   : > { %v12588_v53 = vrot.slane %v12580_v46, 9  ;;  %v4693_v15 = vrot.slane %v20718_v56, 5  ;;  %v12250_v49 = vrot.slane %v12242_v63, 9  ;;  %v4704_v51 = vrot.slane %v20719_v13, 5 }
  0xce   : > { %14237 = vmatmul.mubr.msk.bf16.gmra.mrb[4].mxu1 %vm660_vm3, %v16840_v25  ;;  %v12581_v25 = vld [vmem:[%s15781_s14 + $0x90] sm:$0xe]  ;;  %v4692_v44 = vrot.slane %v4690_v28, 4  ;;  %v1863_v0 = vrot.slane %v1861_v20, 4  ;;  %v1864_v52 = vrot.slane %v20720_v21, 5  ;;  %v4700_v48 = vrot.slane %v20721_v7, 5 }
  0xcf   : > { %14240 = vmatprep.mubr.msk.bf16.mxu1 %vm660_vm3, %v16880_v30  ;;  %v1857_v30 = vrot.slane %v20717_v32, 5  ;;  %v12589_v2 = vrot.slane %v12581_v25, 9  ;;  %v4699_v35 = vrot.slane %v4697_v24, 4  ;;  %v12251_v46 = vrot.slane %v12243_v10, 9 }
  0xd0   : > { %v1870_v16 = vrot.slane %v1868_v34, 4  ;;  %v1871_v32 = vrot.slane %v16698_v39, 5  ;;  %v12597_v63 = vcombine.low %v17071_v12, %v17078_v43  ;;  %v17096_v25 = vsel %vm16150_vm7, %v12249_v59, %v1854_v26 }
  0xd1   : > { %v17100_v56 = vsel %vm16150_vm7, %v1856_v29, %v1857_v30  ;;  %v17105_v10 = vsel %vm16150_vm7, %v12588_v53, %v4690_v28  ;;  %v12590_v39 = vrot.slane %v12582_v4, 9  ;;  %v4707_v13 = vrot.slane %v16720_v17, 5  ;;  %v12583_v30 = vld [vmem:[%s15781_s14 + $0xa8] sm:$0xe]  ;;  %v17175_v4 = vld [vmem:[%s15781_s14 + $0xb4] sm:$0xe] }
  0xd2   : > { %v17112_v26 = vsel %vm16150_vm7, %v4692_v44, %v4693_v15  ;;  %v17116_v59 = vsel %vm16150_vm7, %v12250_v49, %v1861_v20  ;;  %v12252_v28 = vrot.slane %v12244_v5, 9  ;;  %v17126_v17 = vsel %vm16150_vm7, %v12589_v2, %v4697_v24  ;;  %v17169_v2 = vld [vmem:[%s15781_s14 + $0x1c] sm:$0xf] }
  0xd3   : > { %14079 = vmatmul.mubr.msk.bf16.gmra.mrb[8].mxu0 %vm660_vm3, %v16944_v40  ;;  %v1875_v40 = vrot.slane %v16712_v23, 5  ;;  %v17120_v23 = vsel %vm16150_vm7, %v1863_v0, %v1864_v52  ;;  %v17134_v20 = vsel %vm16150_vm7, %v12251_v46, %v1868_v34  ;;  %v17138_v29 = vsel %vm16150_vm7, %v1870_v16, %v1871_v32  ;;  %v12245_v0 = vld [vmem:[%s15781_s14 + $0x54] sm:$0xe]  ;;  %v12309_v52 = vld [vmem:[%s15781_s14 + $0x18] sm:$0xf] }
  0xd4   : > { %14082 = vmatprep.mubr.msk.bf16.mxu0 %vm660_vm3, %v12228_v14  ;;  %v4706_v14 = vrot.slane %v4704_v51, 4  ;;  %v1878_v24 = vrot.slane %v16758_v1, 5  ;;  %v4711_v53 = vrot.slane %v16833_v55, 5  ;;  %v12598_v34 = vcombine.low %v17105_v10, %v17112_v26  ;;  %v17190_v32 = vld [vmem:[%s15781_s14 + $0x60] sm:$0xe] }
  0xd5   : > { %v1877_v5 = vrot.slane %v1875_v40, 4  ;;  %v17151_v15 = vsel %vm16150_vm7, %v12590_v39, %v4704_v51  ;;  %v17164_v21 = vsel %vm16150_vm7, %v12252_v28, %v1875_v40  ;;  %v1882_v51 = vrot.slane %v16847_v38, 5  ;;  %v17193_v40 = vld [vmem:[%s15781_s14 + $0xc0] sm:$0xe]  ;;  %v12312_v38 = vld [vmem:[%s15781_s14 + $0x24] sm:$0xf] }
  0xd6   : > { %14241 = vmatmul.mubr.msk.bf16.gmra.mrb[8].mxu1 %vm660_vm3, %v16997_v54  ;;  %v17130_v54 = vsel %vm16150_vm7, %v4699_v35, %v4700_v48  ;;  %v17155_v49 = vsel %vm16150_vm7, %v4706_v14, %v4707_v13  ;;  %v12591_v7 = vrot.slane %v12583_v30, 9  ;;  %v4714_v48 = vrot.slane %v16870_v11, 5 }
  0xd7   : > { %14244 = vmatprep.mubr.msk.bf16.mxu1 %vm660_vm3, %v17004_v61  ;;  %v12259_v61 = vcombine.low %v17096_v25, %v17100_v56  ;;  %v20585_v35 = vrot.slane %v16862_v45, 5  ;;  %v20584_v46 = vrot.slane %v16893_v19, 5  ;;  %v4713_v16 = vrot.slane %v4711_v53, 4 }
  0xd8   : > { %v12253_v11 = vrot.slane %v12245_v0, 9  ;;  %v2299_v39 = vshrl.u32 %v12309_v52, 16  ;;  %v2302_v14 = vshll.u32 %v12309_v52, 16  ;;  %v2308_v57 = vshll.u32 %v17169_v2, 16 }
  0xd9   : > { %v2312_v18 = vshrl.u32 %v17169_v2, 16  ;;  %v1884_v13 = vrot.slane %v1882_v51, 4  ;;  %v1885_v28 = vrot.slane %v16909_v42, 5  ;;  %v4720_v30 = vrot.slane %v20585_v35, 4  ;;  %v17216_v42 = vld [vmem:[%s20550_s1 + $0x38] sm:$0x3f]  }
  0xda   : > { %v12254_v0 = vrot.slane %v17190_v32, 9  ;;  %v1892_v52 = vrot.slane %v16932_v6, 5  ;;  %v12593_v36 = vrot.slane %v17193_v40, 9  ;;  %v2301_v1 = vrot.slane %v2299_v39, 4 }
  0xdb   : > { %14083 = vmatmul.mubr.msk.bf16.gmra.mrb[12].mxu0 %vm660_vm3, %v17048_v3  ;;  %v17187_v3 = vsel %vm16150_vm7, %v1877_v5, %v1878_v24  ;;  %v12592_v5 = vrot.slane %v17175_v4, 9  ;;  %v4721_v24 = vrot.slane %v16914_v47, 5  ;;  %v17219_v47 = vld [vmem:[%s15781_s14 + $0x20] sm:$0x1]  ;;  %v2304_v55 = vrot.slane %v2302_v14, 5 }
  0xdc   : > { %14088 = vmatprep.mubr.msk.bf16.mxu0 %vm660_vm3, %v12257_v22  ;;  %v12648_v22 = vld [vmem:[%s15781_s14 + $0x78] sm:$0xf]  ;;  %v17227_v6 = vrot.slane %v2308_v57, 5  ;;  %v2314_v44 = vrot.slane %v2312_v18, 4  ;;  %v17235_v35 = vsel %vm16150_vm7, %v12253_v11, %v1882_v51  ;;  %v5142_v40 = vshll.u32 %v17222_v60, 16 }
  0xdd   : > { %v5133_v4 = vshrl.u32 %v12648_v22, 16  ;;  %v5136_v32 = vshll.u32 %v12648_v22, 16  ;;  %v5146_v39 = vshrl.u32 %v17222_v60, 16  ;;  %v17243_v14 = vld [vmem:[%s15781_s14 + $0x28] sm:$0xf]  ;;  %v20722_v57 = vcombine.low %v17036_v37, %v17043_v58 }
  0xde   : > { %14245 = vmatmul.mubr.msk.bf16.gmra.mrb[12].mxu1 %vm660_vm3, %v17050_v62  ;;  %v1891_v62 = vrot.slane %v20584_v46, 4  ;;  %v17231_v46 = vsel %vm16150_vm7, %v12591_v7, %v4711_v53  ;;  %v17251_v53 = vsel %vm16150_vm7, %v4713_v16, %v4714_v48  ;;  %v17255_v51 = vsel %vm16150_vm7, %v1884_v13, %v1885_v28  ;;  %v17270_v22 = vld [vmem:[%s15781_s14 + $0x80] sm:$0x1]  ;;  %v12651_v13 = vld [vmem:[%s15781_s14 + $0x84] sm:$0xf] }
  0xdf   : > { %14250 = vmatprep.mubr.msk.bf16.mxu1 %vm660_vm3, %v12596_v33  ;;  %v4725_v33 = vrot.slane %v16906_v50, 5  ;;  %v15497_v50 = vld [vmem:[%s20550_s1 + $0x38] sm:$0x3f]   ;;  %v4728_v7 = vrot.slane %v16942_v27, 5  ;;  %v4993_v11 = vsel %vm685_vm0, %v16987_v41, 0  ;;  %v2318_v58 = vshll.u32 %v17219_v47, 16 }
  0xe0   : > { %v5135_v48 = vrot.slane %v5133_v4, 4  ;;  %v5138_v16 = vrot.slane %v5136_v32, 5  ;;  %v2305_v18 = vor.u32 %v2304_v55, %v2301_v1  ;;  %v2315_v27 = vor.u32 %v2314_v44, %v17227_v6  ;;  %v17325_v32 = vld [vmem:[%s15781_s14 + $0x88] sm:$0xf] }
  0xe1   : > { %v4727_v37 = vrot.slane %v4725_v33, 4  ;;  %v2323_v41 = vshrl.u32 %v12312_v38, 16  ;;  %v12262_v25 = vcombine.low %v17164_v21, %v17187_v3  ;;  %v12601_v56 = vcombine.low %v17231_v46, %v17251_v53  ;;  %v17437_v53 = vld [vmem:[%s15781_s14 + $0x44] sm:$0x1] }
  0xe2   : > { %v5148_v1 = vrot.slane %v5146_v39, 4  ;;  %v12263_v12 = vcombine.low %v17235_v35, %v17255_v51  ;;  %v20723_v43 = vrot.slane %v16862_v45, 5  ;;  %v2332_v44 = vshll.u32 %v17243_v14, 16  ;;  %20735 = vst [vmem:[#allocation12_spill] sm:$0xff] %v17437_v53 }
  0xe3   : > { %14089 = vmatmul.mubr.msk.bf16.vlgmr.msra.gmra.mrb[0].mxu0 %vm660_vm3, %v20722_v57  ;;  %v2336_v55 = vshrl.u32 %v17243_v14, 16  ;;  %v17298_v10 = vsel %vm16150_vm7, %v4720_v30, %v4721_v24  ;;  %v20724_v26 = vrot.slane %v16893_v19, 5  ;;  %v17308_v45 = vsel %vm16150_vm7, %v1891_v62, %v1892_v52  ;;  %v17314_v30 = vld [vmem:[%s15781_s14 + $0x2c] sm:$0x1] }
  0xe4   : > { %14105 = vmatpush3.bf16.msra.mxu0 %v17062_v8  ;;  %14092 = vmatprep.mubr.msk.bf16.mxu0 %vm660_vm3, %v12259_v61  ;;  %v2326_v8 = vshll.u32 %v12312_v38, 16  ;;  %v17280_v61 = vrot.slane %v5142_v40, 5  ;;  %v2320_v38 = vrot.slane %v2318_v58, 5  ;;  %v2306_v28 = vrot.slane %v2305_v18, 4  ;;  %20725 = vst [vmem:[#allocation5_spill] sm:$0xff] %v17314_v30 }
  0xe5   : > { %15415 = vmatprep.subr.msk.bf16.mxu0 %vm685_vm0, %v17216_v42  ;;  %v5139_v4 = vor.u32 %v5138_v16, %v5135_v48  ;;  %v5152_v24 = vshll.u32 %v17270_v22, 16  ;;  %v17318_v19 = vsel %vm16150_vm7, %v12593_v36, %v4725_v33  ;;  %v2325_v62 = vrot.slane %v2323_v41, 4  ;;  %v17348_v48 = vld [vmem:[%s15781_s14 + $0x34] sm:$0xf] }
  0xe6   : > { %14251 = vmatmul.mubr.msk.bf16.vlgmr.msra.gmra.mrb[0].mxu1 %vm660_vm3, %v12597_v63  ;;  %v17292_v63 = vsel %vm16150_vm7, %v12592_v5, %v20723_v43  ;;  %v2316_v5 = vrot.slane %v2315_v27, 4  ;;  %v2328_v52 = vrot.slane %v2326_v8, 5  ;;  %v20726_v40 = vcombine.low %v17116_v59, %v17120_v23  ;;  %v12654_v27 = vld [vmem:[%s15781_s14 + $0x90] sm:$0xf] }
  0xe7   : > { %14254 = vmatprep.mubr.msk.bf16.mxu1 %vm660_vm3, %v12598_v34  ;;  %14267 = vmatpush3.bf16.msra.mxu1 %v4993_v11  ;;  %v17304_v34 = vsel %vm16150_vm7, %v12254_v0, %v20724_v26  ;;  %v17322_v0 = vsel %vm16150_vm7, %v4727_v37, %v4728_v7  ;;  %v12602_v39 = vcombine.low %v17292_v63, %v17298_v10  ;;  %v17334_v33 = vrot.slane %v2332_v44, 5  ;;  %v12315_v7 = vld [vmem:[%s15781_s14 + $0x30] sm:$0xf]  ;;  %v17372_v44 = vld [vmem:[%s15781_s14 + $0x94] sm:$0xf] }
  0xe8   : > { %15424 = vmatprep.subr.msk.bf16.mxu1 %vm685_vm0, %v15497_v50  ;;  %v5149_v36 = vor.u32 %v5148_v1, %v17280_v61  ;;  %v2338_v57 = vrot.slane %v2336_v55, 4  ;;  %v20727_v11 = vcombine.low %v17134_v20, %v17138_v29  ;;  %v12264_v59 = vcombine.low %v17304_v34, %v17308_v45  ;;  %20729 = vst [vmem:[#allocation6_spill] sm:$0xff] %v17372_v44 }
  0xe9   : > { %v17345_v23 = vsel %vm685_vm0, %v17216_v42, 0  ;;  %v5157_v37 = vshrl.u32 %v12651_v13, 16  ;;  %v5160_v58 = vshll.u32 %v12651_v13, 16  ;;  %v12603_v16 = vcombine.low %v17318_v19, %v17322_v0 }
  0xea   : > { %v17353_v18 = vsel %vm685_vm0, %v15497_v50, 0  ;;  %v5140_v20 = vrot.slane %v5139_v4, 4  ;;  %v5154_v29 = vrot.slane %v5152_v24, 5  ;;  %v20728_v41 = vcombine.low %v17126_v17, %v17130_v54  ;;  %v17368_v50 = vld [vmem:[%s20550_s1 + $0x40] sm:$0x3f]  }
  0xeb   : > { %14093 = vmatmul.mubr.msk.bf16.gmra.mrb[4].mxu0 %vm660_vm3, %v20726_v40  ;;  %v2311_v42 = vsel %vm15821_vm4, %v2306_v28, %v17227_v6  ;;  %v2321_v8 = vsel %vm15821_vm4, %v2316_v5, %v2320_v38  ;;  %v2329_v1 = vor.u32 %v2328_v52, %v2325_v62  ;;  %v2342_v43 = vshll.u32 %v17314_v30, 16  ;;  %v12318_v62 = vld [vmem:[%s15781_s14 + $0x3c] sm:$0xf] }
  0xec   : > { %14096 = vmatprep.mubr.msk.bf16.mxu0 %vm660_vm3, %v20727_v11  ;;  %v20730_v17 = vcombine.low %v17151_v15, %v17155_v49  ;;  %v5150_v54 = vrot.slane %v5149_v36, 4  ;;  %v2339_v6 = vor.u32 %v2338_v57, %v17334_v33  ;;  %v5166_v55 = vshll.u32 %v17325_v32, 16  ;;  %v17392_v36 = vld [vmem:[%s15781_s14 + $0x8c] sm:$0x1] }
  0xed   : > { %v5170_v26 = vshrl.u32 %v17325_v32, 16  ;;  %v5159_v38 = vrot.slane %v5157_v37, 4  ;;  %v5162_v13 = vrot.slane %v5160_v58, 5  ;;  %v2347_v28 = vshrl.u32 %v12315_v7, 16  ;;  %20731 = vst [vmem:[#allocation7_spill] sm:$0xff] %v17392_v36 }
  0xee   : > { %14255 = vmatmul.mubr.msk.bf16.gmra.mrb[4].mxu1 %vm660_vm3, %v20728_v41  ;;  %v2350_v5 = vshll.u32 %v12315_v7, 16  ;;  %v17381_v4 = vcombine.low %v2311_v42, %v2321_v8  ;;  %v5145_v15 = vsel %vm15821_vm4, %v5140_v20, %v17280_v61  ;;  %v2356_v49 = vshll.u32 %v17348_v48, 16  ;;  %v17416_v41 = vld [vmem:[%s15781_s14 + $0x40] sm:$0xf] }
  0xef   : > { %14258 = vmatprep.mubr.msk.bf16.mxu1 %vm660_vm3, %v20730_v17  ;;  %v2360_v24 = vshrl.u32 %v17348_v48, 16  ;;  %v17389_v52 = vrot.slane %v2329_v1, 4  ;;  %v2344_v40 = vrot.slane %v2342_v43, 5  ;;  %v5181_v57 = vshrl.u32 %v12654_v27, 16  ;;  %20733 = vst [vmem:[#allocation8_spill] sm:$0xff] %v17416_v41 }
  0xf0   : > { %v5184_v7 = vshll.u32 %v12654_v27, 16  ;;  %v17398_v61 = vrot.slane %v5166_v55, 5  ;;  %v5172_v11 = vrot.slane %v5170_v26, 4  ;;  %v5190_v37 = vshll.u32 %v17372_v44, 16 }
  0xf1   : > { %v5194_v58 = vshrl.u32 %v17372_v44, 16  ;;  %v5155_v20 = vsel %vm15821_vm4, %v5150_v54, %v5154_v29  ;;  %v2340_v27 = vrot.slane %v2339_v6, 4  ;;  %v17410_v21 = vsel %vm685_vm0, %v17368_v50, 0  ;;  %v15482_v54 = vld [vmem:[%s15781_s14 + $0x18] sm:$0xff]  }
  0xf2   : > { %v5163_v3 = vor.u32 %v5162_v13, %v5159_v38  ;;  %v2349_v42 = vrot.slane %v2347_v28, 4  ;;  %v2352_v8 = vrot.slane %v2350_v5, 5  ;;  %v17418_v35 = vrot.slane %v2356_v49, 5 }
  0xf3   : > { %14097 = vmatmul.mubr.msk.bf16.gmra.mrb[8].mxu0 %vm660_vm3, %v12262_v25  ;;  %v17413_v25 = vld [vmem:[%s15781_s14 + $0x38] sm:$0x1]  ;;  %v2362_v51 = vrot.slane %v2360_v24, 4  ;;  %v5183_v29 = vrot.slane %v5181_v57, 4  ;;  %v5186_v1 = vrot.slane %v5184_v7, 5  ;;  %v2371_v43 = vshrl.u32 %v12318_v62, 16 }
  0xf4   : > { %14100 = vmatprep.mubr.msk.bf16.mxu0 %vm660_vm3, %v12263_v12  ;;  %20732 = vst [vmem:[#allocation9_spill] sm:$0xff] %v17413_v25  ;;  %v17425_v12 = vld [vmem:[%s15781_s14 + $0x98] sm:$0x1]  ;;  %v2374_v17 = vshll.u32 %v12318_v62, 16  ;;  %v5173_v6 = vor.u32 %v5172_v11, %v17398_v61  ;;  %v5176_v55 = vshll.u32 %v17392_v36, 16  ;;  %v17434_v26 = vrot.slane %v5190_v37, 5 }
  0xf5   : > { %20734 = vst [vmem:[#allocation10_spill] sm:$0xff] %v17425_v12  ;;  %v5196_v46 = vrot.slane %v5194_v58, 4  ;;  %v17440_v38 = vcombine.low %v5145_v15, %v5155_v20  ;;  %v2335_v63 = vsel %vm15821_vm4, %v17389_v52, %v17334_v33  ;;  %v2380_v10 = vshll.u32 %v17416_v41, 16  ;;  %v17455_v52 = vld [vmem:[%s15781_s14 + $0xa0] sm:$0xf] }
  0xf6   : > { %14259 = vmatmul.mubr.msk.bf16.gmra.mrb[8].mxu1 %vm660_vm3, %v12601_v56  ;;  %v12657_v56 = vld [vmem:[%s15781_s14 + $0x9c] sm:$0xf]  ;;  %v2345_v13 = vsel %vm15821_vm4, %v2340_v27, %v2344_v40  ;;  %v17450_v28 = vrot.slane %v5163_v3, 4  ;;  %v2353_v5 = vor.u32 %v2352_v8, %v2349_v42  ;;  %v2366_v49 = vshll.u32 %v17413_v25, 16  ;;  %20736 = vst [vmem:[#allocation3_spill] sm:$0xff] %v17455_v52  ;;  %v15485_v3 = vld [vmem:[%s15781_s14 + $0x24] sm:$0xff]  }
  0xf7   : > { %14262 = vmatprep.mubr.msk.bf16.mxu1 %vm660_vm3, %v12602_v39  ;;  %v2384_v39 = vshrl.u32 %v17416_v41, 16  ;;  %v2363_v15 = vor.u32 %v2362_v51, %v17418_v35  ;;  %v5187_v24 = vor.u32 %v5186_v1, %v5183_v29  ;;  %v2373_v62 = vrot.slane %v2371_v43, 4  ;;  %v15484_v40 = vld [vmem:[%s15781_s14 + $0x78] sm:$0xff]   ;;  %v17474_v27 = vld [vmem:[%s15781_s14 + $0x4c] sm:$0xf]  ;;  %v15487_v43 = vld [vmem:[%s15781_s14 + $0x30] sm:$0xff]  }
  0xf8   : > { %v2376_v33 = vrot.slane %v2374_v17, 5  ;;  %v17462_v57 = vrot.slane %v5173_v6, 4  ;;  %v17464_v7 = vrot.slane %v5176_v55, 5  ;;  %v5197_v11 = vor.u32 %v5196_v46, %v17434_v26  ;;  %20737 = vst [vmem:[#allocation16_spill] sm:$0xff] %v17474_v27  ;;  %v12660_v1 = vld [vmem:[%s15781_s14 + $0xa8] sm:$0xf] }
  0xf9   : > { %v5200_v37 = vshll.u32 %v17425_v12, 16  ;;  %v17469_v58 = vrot.slane %v2380_v10, 5  ;;  %v2386_v20 = vrot.slane %v2384_v39, 4  ;;  %v2390_v34 = vshll.u32 %v17437_v53, 16  ;;  %v17503_v10 = vld [vmem:[%s15781_s14 + $0xa4] sm:$0x1] }
  0xfa   : > { %v5205_v45 = vshrl.u32 %v12657_v56, 16  ;;  %v17477_v42 = vcombine.low %v2335_v63, %v2345_v13  ;;  %v17483_v51 = vrot.slane %v2353_v5, 4  ;;  %v17485_v29 = vrot.slane %v2366_v49, 5  ;;  %20738 = vst [vmem:[#allocation11_spill] sm:$0xff] %v17503_v10  ;;  %v15486_v39 = vld [vmem:[%s15781_s14 + $0x84] sm:$0xff]   ;;  %v15499_v41 = vld [vmem:[%s15781_s14 + $0xcc] sm:$0xff]  }
  0xfb   : > { %14101 = vmatmul.mubr.msk.bf16.gmra.mrb[12].mxu0 %vm660_vm3, %v12264_v59  ;;  %v12321_v59 = vld [vmem:[%s15781_s14 + $0x48] sm:$0xf]  ;;  %v17493_v17 = vrot.slane %v2363_v15, 4  ;;  %v2377_v6 = vor.u32 %v2376_v33, %v2373_v62  ;;  %v5208_v55 = vshll.u32 %v12657_v56, 16  ;;  %v17498_v46 = vrot.slane %v5197_v11, 4  ;;  %v15488_v15 = vld [vmem:[%s15781_s14 + $0x90] sm:$0xff]  }
  0xfc   : > { %14106 = vmatprep.mubr.msk.bf16.mxu0 %vm660_vm3, %v15482_v54  ;;  %v17495_v54 = vrot.slane %v5187_v24, 4  ;;  %v17500_v63 = vrot.slane %v5200_v37, 5  ;;  %v5214_v19 = vshll.u32 %v17455_v52, 16  ;;  %v5218_v0 = vshrl.u32 %v17455_v52, 16  ;;  %v12324_v11 = vld [vmem:[%s15781_s14 + $0x54] sm:$0xf] }
  0xfd   : > { %v2387_v13 = vor.u32 %v2386_v20, %v17469_v58  ;;  %v17516_v5 = vrot.slane %v2390_v34, 5  ;;  %v17518_v49 = vrot.slane %v5205_v45, 4  ;;  %v2395_v24 = vshrl.u32 %v12321_v59, 16  ;;  %v17527_v20 = vld [vmem:[%s15781_s14 + $0x58] sm:$0xf] }
  0xfe   : > { %14263 = vmatmul.mubr.msk.bf16.gmra.mrb[12].mxu1 %vm660_vm3, %v12603_v16  ;;  %v17508_v16 = vld [vmem:[%s15781_s14 + $0xac] sm:$0xf]  ;;  %v2398_v62 = vshll.u32 %v12321_v59, 16  ;;  %v2404_v33 = vshll.u32 %v17474_v27, 16  ;;  %v17524_v37 = vrot.slane %v2377_v6, 4  ;;  %v5210_v8 = vrot.slane %v5208_v55, 5 }
  0xff   : > { %14268 = vmatprep.mubr.msk.bf16.mxu1 %vm660_vm3, %v15484_v40  ;;  %20739 = vst [vmem:[#allocation13_spill] sm:$0xff] %v17508_v16  ;;  %v2408_v40 = vshrl.u32 %v17474_v27, 16  ;;  %v5229_v9 = vshrl.u32 %v12660_v1, 16  ;;  %v5232_v56 = vshll.u32 %v12660_v1, 16  ;;  %20740 = vst [vmem:[#allocation17_spill] sm:$0xff] %v17527_v20  ;;  %v2359_v45 = vsel %vm15821_vm4, %v17483_v51, %v17418_v35 }
 0x100   : > { %v17532_v34 = vld [vmem:[%s20550_s1 + $0x40] sm:$0x3f]   ;;  %v2369_v59 = vsel %vm15821_vm4, %v17493_v17, %v17485_v29  ;;  %v17543_v1 = vrot.slane %v5214_v19, 5  ;;  %v17545_v6 = vrot.slane %v5218_v0, 4  ;;  %v5224_v55 = vshll.u32 %v17503_v10, 16 }
 0x101   : > { %v17551_v53 = vld [vmem:[%s15781_s14 + $0x50] sm:$0x1]  ;;  %v5238_v35 = vshll.u32 %v17508_v16, 16  ;;  %v5242_v51 = vshrl.u32 %v17508_v16, 16  ;;  %v15489_v29 = vld [vmem:[%s15781_s14 + $0x3c] sm:$0xff]   ;;  %v2397_v17 = vrot.slane %v2395_v24, 4 }
 0x102   : > { %20741 = vst [vmem:[#allocation15_spill] sm:$0xff] %v17551_v53  ;;  %v2400_v19 = vrot.slane %v2398_v62, 5  ;;  %v17558_v0 = vrot.slane %v2404_v33, 5  ;;  %v17561_v27 = vld [vmem:[%s15781_s14 + $0xb0] sm:$0x1]  ;;  %v5234_v10 = vrot.slane %v5232_v56, 5  ;;  %v5221_v62 = vor.u32 %v17545_v6, %v17543_v1 }
 0x103   : > { %14107 = vmatmul.mubr.msk.bf16.vlgmr.msra.gmra.mrb[0].mxu0 %vm660_vm3, %v15485_v3  ;;  %v2388_v3 = vrot.slane %v2387_v13, 4  ;;  %20742 = vst [vmem:[#allocation18_spill] sm:$0xff] %v17561_v27  ;;  %v5231_v13 = vrot.slane %v5229_v9, 4  ;;  %v2419_v52 = vshrl.u32 %v12324_v11, 16  ;;  %v2422_v16 = vshll.u32 %v12324_v11, 16  ;;  %v15492_v33 = vld [vmem:[%s15781_s14 + $0xa8] sm:$0xff]  }
 0x104   : > { %14123 = vmatpush3.bf16.msra.mxu0 %v17345_v23  ;;  %14110 = vmatprep.mubr.msk.bf16.mxu0 %vm660_vm3, %v15487_v43  ;;  %v2410_v23 = vrot.slane %v2408_v40, 4  ;;  %v15491_v43 = vld [vmem:[%s15781_s14 + $0x48] sm:$0xff]   ;;  %v5203_v9 = vsel %vm15821_vm4, %v17498_v46, %v17500_v63  ;;  %v2432_v56 = vshrl.u32 %v17527_v20, 16  ;;  %v17582_v24 = vrot.slane %v5238_v35, 5  ;;  %v15490_v46 = vld [vmem:[%s15781_s14 + $0x9c] sm:$0xff]  }
 0x105   : > { %15416 = vmatprep.subr.msk.bf16.mxu0 %vm685_vm0, %v17368_v50  ;;  %v5193_v50 = vsel %vm15821_vm4, %v17495_v54, %v17434_v26  ;;  %v5244_v26 = vrot.slane %v5242_v51, 4  ;;  %v17585_v54 = vld [vmem:[%s15781_s14 + $0x5c] sm:$0x1]  ;;  %v2393_v63 = vsel %vm15821_vm4, %v2388_v3, %v17516_v5  ;;  %v5248_v11 = vshll.u32 %v17561_v27, 16  ;;  %v12669_v27 = vld [vmem:[%s15781_s14 + $0xcc] sm:$0xf] }
 0x106   : > { %14269 = vmatmul.mubr.msk.bf16.vlgmr.msra.gmra.mrb[0].mxu1 %vm660_vm3, %v15486_v39  ;;  %v2428_v39 = vshll.u32 %v17527_v20, 16  ;;  %20743 = vst [vmem:[#allocation19_spill] sm:$0xff] %v17585_v54  ;;  %v2411_v40 = vor.u32 %v2410_v23, %v17558_v0  ;;  %v2424_v35 = vrot.slane %v2422_v16, 5  ;;  %v20744_v5 = vsel %vm15821_vm4, %v17462_v57, %v17464_v7  ;;  %v17618_v16 = vld [vmem:[%s15781_s14 + $0xb8] sm:$0xf]  ;;  %v15498_v20 = vld [vmem:[%s15781_s14 + $0x6c] sm:$0xff]  }
 0x107   : > { %14272 = vmatprep.mubr.msk.bf16.mxu1 %vm660_vm3, %v15488_v15  ;;  %14285 = vmatpush3.bf16.msra.mxu1 %v17353_v18  ;;  %v2383_v18 = vsel %vm15821_vm4, %v17524_v37, %v17469_v58  ;;  %v5211_v15 = vor.u32 %v5210_v8, %v17518_v49  ;;  %v2401_v58 = vor.u32 %v2400_v19, %v2397_v17  ;;  %v2414_v8 = vshll.u32 %v17551_v53, 16  ;;  %v12663_v49 = vld [vmem:[%s15781_s14 + $0xb4] sm:$0xf]  ;;  %v17692_v12 = vld [vmem:[%s15781_s14 + $0x68] sm:$0x1] }
 0x108   : > { %15425 = vmatprep.subr.msk.bf16.mxu1 %vm685_vm0, %v17532_v34  ;;  %v2421_v37 = vrot.slane %v2419_v52, 4  ;;  %v20745_v6 = vsel %vm15821_vm4, %v17450_v28, %v17398_v61  ;;  %v17613_v51 = vcombine.low %v2359_v45, %v2369_v59  ;;  %v17615_v17 = vrot.slane %v2428_v39, 5  ;;  %20746 = vst [vmem:[#allocation20_spill] sm:$0xff] %v17618_v16  ;;  %v12327_v28 = vld [vmem:[%s15781_s14 + $0x60] sm:$0xf]  ;;  %v15493_v19 = vld [vmem:[%s15781_s14 + $0x54] sm:$0xff]  }
 0x109   : > { %v17611_v3 = vcombine.low %v20745_v6, %v20744_v5  ;;  %v2434_v52 = vrot.slane %v2432_v56, 4  ;;  %v17623_v57 = vrot.slane %v5224_v55, 5  ;;  %v5235_v7 = vor.u32 %v5234_v10, %v5231_v13  ;;  %v15495_v55 = vld [vmem:[%s15781_s14 + $0x60] sm:$0xff]   ;;  %v17700_v25 = vld [vmem:[%s15781_s14 + $0xd0] sm:$0xf] }
 0x10a   : > { %v5245_v61 = vor.u32 %v5244_v26, %v17582_v24  ;;  %v17628_v45 = vcombine.low %v5193_v50, %v5203_v9  ;;  %v17630_v59 = vcombine.low %v2383_v18, %v2393_v63  ;;  %v2438_v23 = vshll.u32 %v17585_v54, 16  ;;  %v17645_v9 = vld [vmem:[%s15781_s14 + $0xbc] sm:$0x1]  ;;  %v12666_v63 = vld [vmem:[%s15781_s14 + $0xc0] sm:$0xf]  ;;  %20752 = vst [vmem:[#allocation26_spill] sm:$0xff] %v17700_v25 }
 0x10b   : > { %14111 = vmatmul.mubr.msk.bf16.gmra.mrb[4].mxu0 %vm660_vm3, %v15489_v29  ;;  %v17621_v29 = vrot.slane %v5211_v15, 4  ;;  %v5253_v39 = vshrl.u32 %v12663_v49, 16  ;;  %v5222_v56 = vrot.slane %v5221_v62, 4  ;;  %v17638_v10 = vrot.slane %v2401_v58, 4  ;;  %20749 = vst [vmem:[#allocation23_spill] sm:$0xff] %v17645_v9  ;;  %v15494_v62 = vld [vmem:[%s15781_s14 + $0xb4] sm:$0xff]  }
 0x10c   : > { %14114 = vmatprep.mubr.msk.bf16.mxu0 %vm660_vm3, %v15491_v43  ;;  %20747 = vst [vmem:[#allocation21_spill] sm:$0xff] %v17630_v59  ;;  %v17634_v43 = vld [vmem:[%s15781_s14 + $0x64] sm:$0xf]  ;;  %v17640_v13 = vrot.slane %v2411_v40, 4  ;;  %v17642_v50 = vrot.slane %v2414_v8, 5  ;;  %v17648_v18 = vrot.slane %v5248_v11, 5  ;;  %v2425_v15 = vor.u32 %v2424_v35, %v2421_v37 }
 0x10d   : > { %20748 = vst [vmem:[#allocation22_spill] sm:$0xff] %v17634_v43  ;;  %v2435_v26 = vor.u32 %v2434_v52, %v17615_v17  ;;  %v17653_v58 = vrot.slane %v5235_v7, 4  ;;  %v17655_v40 = vrot.slane %v5245_v61, 4  ;;  %v5262_v8 = vshll.u32 %v17618_v16, 16  ;;  %v17660_v6 = vld [vmem:[%s15781_s14 + $0xc4] sm:$0xf] }
 0x10e   : > { %14273 = vmatmul.mubr.msk.bf16.gmra.mrb[4].mxu1 %vm660_vm3, %v15490_v46  ;;  %v5256_v46 = vshll.u32 %v12663_v49, 16  ;;  %v5266_v5 = vshrl.u32 %v17618_v16, 16  ;;  %20750 = vst [vmem:[#allocation24_spill] sm:$0xff] %v17660_v6  ;;  %v17663_v11 = vrot.slane %v2438_v23, 5  ;;  %v17665_v37 = vrot.slane %v5253_v39, 4 }
 0x10f   : > { %14276 = vmatprep.mubr.msk.bf16.mxu1 %vm660_vm3, %v15492_v33  ;;  %v15496_v33 = vld [vmem:[%s15781_s14 + $0xc0] sm:$0xff]   ;;  %v2443_v49 = vshrl.u32 %v12327_v28, 16  ;;  %v2446_v35 = vshll.u32 %v12327_v28, 16  ;;  %v12330_v52 = vld [vmem:[%s15781_s14 + $0x6c] sm:$0xf]  ;;  %v5217_v7 = vsel %vm15821_vm4, %v17621_v29, %v17543_v1  ;;  %v5227_v61 = vsel %vm15821_vm4, %v5222_v56, %v17623_v57 }
 0x110   : > { %v2452_v16 = vshll.u32 %v17634_v43, 16  ;;  %v2456_v23 = vshrl.u32 %v17634_v43, 16  ;;  %v17678_v39 = vld [vmem:[%s15781_s14 + $0x70] sm:$0xf]  ;;  %v17681_v28 = vrot.slane %v2425_v15, 4  ;;  %v17683_v54 = vrot.slane %v2435_v26, 4 }
 0x111   : > { %20751 = vst [vmem:[#allocation25_spill] sm:$0xff] %v17678_v39  ;;  %v5258_v1 = vrot.slane %v5256_v46, 5  ;;  %v5272_v29 = vshll.u32 %v17645_v9, 16  ;;  %v17688_v57 = vrot.slane %v5262_v8, 5  ;;  %v5268_v56 = vrot.slane %v5266_v5, 4 }
 0x112   : > { %v5277_v43 = vshrl.u32 %v12666_v63, 16  ;;  %v5280_v53 = vshll.u32 %v12666_v63, 16  ;;  %v2448_v15 = vrot.slane %v2446_v35, 5  ;;  %v17695_v26 = vld [vmem:[%s15781_s14 + $0xc8] sm:$0x1]  ;;  %v5286_v46 = vshll.u32 %v17660_v6, 16 }
 0x113   : > { %14115 = vmatmul.mubr.msk.bf16.gmra.mrb[8].mxu0 %vm660_vm3, %v15493_v19  ;;  %v2445_v19 = vrot.slane %v2443_v49, 4  ;;  %v5290_v9 = vshrl.u32 %v17660_v6, 16  ;;  %v2458_v8 = vrot.slane %v2456_v23, 4  ;;  %v2467_v63 = vshrl.u32 %v12330_v52, 16 }
 0x114   : > { %14118 = vmatprep.mubr.msk.bf16.mxu0 %vm660_vm3, %v15495_v55  ;;  %v17703_v55 = vrot.slane %v2452_v16, 5  ;;  %v2470_v5 = vshll.u32 %v12330_v52, 16  ;;  %v17706_v49 = vcombine.low %v5217_v7, %v5227_v61  ;;  %v5259_v35 = vor.u32 %v5258_v1, %v17665_v37  ;;  %v17716_v7 = vld [vmem:[%s15781_s14 + $0x74] sm:$0x1] }
 0x115   : > { %v2476_v59 = vshll.u32 %v17678_v39, 16  ;;  %v2480_v6 = vshrl.u32 %v17678_v39, 16  ;;  %v5279_v44 = vrot.slane %v5277_v43, 4  ;;  %v5282_v36 = vrot.slane %v5280_v53, 5 }
 0x116   : > { %14277 = vmatmul.mubr.msk.bf16.gmra.mrb[8].mxu1 %vm660_vm3, %v15494_v62  ;;  %v5301_v62 = vshrl.u32 %v12669_v27, 16  ;;  %v5304_v16 = vshll.u32 %v12669_v27, 16  ;;  %v5269_v23 = vor.u32 %v5268_v56, %v17688_v57  ;;  %v2449_v30 = vor.u32 %v2448_v15, %v2445_v19  ;;  %v17726_v19 = vld [vmem:[%s15781_s14 + $0xd4] sm:$0x1] }
 0x117   : > { %14280 = vmatprep.mubr.msk.bf16.mxu1 %vm660_vm3, %v15496_v33  ;;  %v17713_v52 = vrot.slane %v5286_v46, 5  ;;  %v5292_v33 = vrot.slane %v5290_v9, 4  ;;  %v2462_v37 = vshll.u32 %v17692_v12, 16  ;;  %v5296_v61 = vshll.u32 %v17695_v26, 16 }
 0x118   : > { %v5310_v1 = vshll.u32 %v17700_v25, 16  ;;  %v5314_v43 = vshrl.u32 %v17700_v25, 16  ;;  %v2469_v53 = vrot.slane %v2467_v63, 4  ;;  %v2472_v27 = vrot.slane %v2470_v5, 5 }
 0x119   : > { %v17723_v39 = vrot.slane %v2476_v59, 5  ;;  %v2482_v56 = vrot.slane %v2480_v6, 4  ;;  %v2407_v9 = vsel %vm15821_vm4, %v17638_v10, %v17558_v0  ;;  %v2459_v15 = vor.u32 %v2458_v8, %v17703_v55 }
 0x11a   : > { %v5303_v46 = vrot.slane %v5301_v62, 4  ;;  %v17735_v63 = vrot.slane %v5259_v35, 4  ;;  %v17737_v59 = vrot.slane %v5272_v29, 5  ;;  %v5283_v6 = vor.u32 %v5282_v36, %v5279_v44  ;;  %v17754_v35 = vld [vmem:[%s15781_s14 + $0x18] sm:$0xe] }
 0x11b   : > { %14119 = vmatmul.mubr.msk.bf16.gmra.mrb[12].mxu0 %vm660_vm3, %v15498_v20  ;;  %v5306_v20 = vrot.slane %v5304_v16, 5  ;;  %v5293_v5 = vor.u32 %v5292_v33, %v17713_v52  ;;  %v2486_v25 = vshll.u32 %v17716_v7, 16  ;;  %v17744_v0 = vrot.slane %v5310_v1, 5  ;;  %v17762_v33 = vld [vmem:[%s15781_s14 + $0x78] sm:$0xe] }
 0x11c   : > { %14124 = vmatprep.mubr.msk.bf16.mxu0 %vm660_vm3, %v17381_v4  ;;  %v17741_v4 = vrot.slane %v5269_v23, 4  ;;  %v5316_v10 = vrot.slane %v5314_v43, 4  ;;  %v17748_v8 = vrot.slane %v2449_v30, 4  ;;  %v17750_v29 = vrot.slane %v2462_v37, 5 }
 0x11d   : > { %v2473_v44 = vor.u32 %v2472_v27, %v2469_v53  ;;  %v2483_v36 = vor.u32 %v2482_v56, %v17723_v39  ;;  %v17758_v62 = vrot.slane %v5296_v61, 5  ;;  %v5307_v16 = vor.u32 %v5306_v20, %v5303_v46 }
 0x11e   : > { %14281 = vmatmul.mubr.msk.bf16.gmra.mrb[12].mxu1 %vm660_vm3, %v15499_v41  ;;  %v17756_v41 = vrot.slane %v2459_v15, 4  ;;  %v5320_v23 = vshll.u32 %v17726_v19, 16  ;;  %v2417_v30 = vsel %vm15821_vm4, %v17640_v13, %v17642_v50  ;;  %v17772_v37 = vrot.slane %v5283_v6, 4  ;;  %v17785_v50 = vld [vmem:[%s15781_s14 + $0x24] sm:$0xe] }
 0x11f   : > { %14286 = vmatprep.mubr.msk.bf16.mxu1 %vm660_vm3, %v17440_v38  ;;  %v5241_v38 = vsel %vm15821_vm4, %v17653_v58, %v17582_v24  ;;  %v17774_v1 = vrot.slane %v5293_v5, 4  ;;  %v5251_v61 = vsel %vm15821_vm4, %v17655_v40, %v17648_v18  ;;  %v17780_v43 = vrot.slane %v2486_v25, 5  ;;  %v17806_v15 = vld [vmem:[%s15781_s14 + $0x84] sm:$0xe]  ;;  %v17811_v6 = vld [vmem:[%s15781_s14 + $0x30] sm:$0xe] }
 0x120   : > { %v5317_v53 = vor.u32 %v5316_v10, %v17744_v0  ;;  %v20633_v13 = vrot.slane %v17169_v2, 5  ;;  %v17789_v24 = vrot.slane %v2473_v44, 4  ;;  %v17791_v58 = vrot.slane %v2483_v36, 4  ;;  %v17830_v44 = vld [vmem:[%s15781_s14 + $0x90] sm:$0xe]  ;;  %v20769_v25 = vld [vmem:[#allocation13_spill] sm:$0xff] }
 0x121   : > { %v5639_v18 = vsel %vm685_vm0, %v17532_v34, 0  ;;  %v17799_v40 = vrot.slane %v5307_v16, 4  ;;  %v17801_v27 = vrot.slane %v5320_v23, 5  ;;  %v20629_v56 = vrot.slane %v17243_v14, 5  ;;  %vm18394_vm0 = vmor %vm288_vm9, %vm3030_vm14 }
 0x122   : > { %v12339_v46 = vcombine.low %v2407_v9, %v2417_v30  ;;  %v12678_v34 = vcombine.low %v5241_v38, %v5251_v61  ;;  %v2441_v9 = vsel %vm15821_vm4, %v17683_v54, %v17663_v11  ;;  %v17823_v5 = vrot.slane %v5317_v53, 4  ;;  %v17839_v11 = vld [vmem:[%s15781_s14 + $0x3c] sm:$0xe] }
 0x123   : > { %14125 = vmatmul.mubr.msk.bf16.vlgmr.msra.gmra.mrb[0].mxu0 %vm660_vm3, %v17477_v42  ;;  %v20632_v42 = vrot.slane %v17222_v60, 5  ;;  %v17827_v10 = vrot.slane %v20633_v13, 4  ;;  %v20631_v54 = vrot.slane %v17348_v48, 5  ;;  %20753 = vst [vmem:[#allocation27_spill] sm:$0xff] %v17839_v11  ;;  %v5265_v36 = vsel %vm15821_vm4, %v17735_v63, %v17688_v57  ;;  %v20754_v63 = vld [vmem:[#allocation5_spill] sm:$0xff]  ;;  %v20756_v61 = vld [vmem:[#allocation7_spill] sm:$0xff] }
 0x124   : > { %14141 = vmatpush3.bf16.msra.mxu0 %v17410_v21  ;;  %14128 = vmatprep.mubr.msk.bf16.mxu0 %vm660_vm3, %v17613_v51  ;;  %v2431_v51 = vsel %vm15821_vm4, %v17681_v28, %v17615_v17  ;;  %v20630_v28 = vrot.slane %v17325_v32, 5  ;;  %v17855_v23 = vrot.slane %v20629_v56, 4  ;;  %v2455_v30 = vsel %vm15821_vm4, %v17748_v8, %v17703_v55  ;;  %v17868_v38 = vld [vmem:[%s15781_s14 + $0x9c] sm:$0xe]  ;;  %v20757_v17 = vld [vmem:[#allocation6_spill] sm:$0xff]  ;;  %v20759_v8 = vld [vmem:[#allocation21_spill] sm:$0xff] }
 0x125   : > { %v17851_v16 = vrot.slane %v20632_v42, 4  ;;  %v2465_v57 = vsel %vm15821_vm4, %v17756_v41, %v17750_v29  ;;  %20755 = vst [vmem:[#allocation5_spill] sm:$0xff] %v17868_v38  ;;  %v17882_v41 = vrot.slane %v20631_v54, 4  ;;  %v20762_v54 = vld [vmem:[#allocation10_spill] sm:$0xff]  ;;  %v17901_v42 = vld [vmem:[%s15781_s14 + $0xa8] sm:$0xe] }
 0x126   : > { %14287 = vmatmul.mubr.msk.bf16.vlgmr.msra.gmra.mrb[0].mxu1 %vm660_vm3, %v17611_v3  ;;  %v20758_v3 = vld [vmem:[#allocation8_spill] sm:$0xff]  ;;  %v17878_v29 = vrot.slane %v20630_v28, 4  ;;  %v5299_v28 = vsel %vm15821_vm4, %v17774_v1, %v17758_v62  ;;  %v17906_v56 = vld [vmem:[%s15781_s14 + $0x54] sm:$0xe]  ;;  %v20790_v31 = vrot.slane %v17270_v22, 5 }
 0x127   : > { %14290 = vmatprep.mubr.msk.bf16.mxu1 %vm660_vm3, %v17628_v45  ;;  %14303 = vmatpush3.bf16.msra.mxu1 %v5639_v18  ;;  %v5275_v45 = vsel %vm15821_vm4, %v17741_v4, %v17737_v59  ;;  %v20760_v4 = vld [vmem:[#allocation9_spill] sm:$0xff]  ;;  %v12340_v18 = vcombine.low %v2431_v51, %v2441_v9  ;;  %v20764_v13 = vld [vmem:[#allocation16_spill] sm:$0xff]  ;;  %v17924_v11 = vld [vmem:[%s15781_s14 + $0xb4] sm:$0xe] }
 0x128   : > { %v17887_v59 = vld [vmem:[%s15781_s14 + $0x48] sm:$0xe]  ;;  %v12679_v20 = vcombine.low %v5265_v36, %v5275_v45  ;;  %v20767_v51 = vld [vmem:[#allocation12_spill] sm:$0xff]  ;;  %v12341_v45 = vcombine.low %v2455_v30, %v2465_v57  ;;  %v20773_v36 = vrot.slane %v20764_v13, 5  ;;  %v17969_v30 = vld [vmem:[%s15781_s14 + $0x6c] sm:$0xe] }
 0x129   : > { %20761 = vst [vmem:[#allocation7_spill] sm:$0xff] %v17887_v59  ;;  %v17937_v57 = vld [vmem:[%s15781_s14 + $0x60] sm:$0xe]  ;;  %v20792_v21 = vld [vmem:[#allocation26_spill] sm:$0xff] }
 0x12a   : > { %v17945_v9 = vrot.slane %v20773_v36, 4  ;;  %v20777_v38 = vld [vmem:[#allocation20_spill] sm:$0xff]  ;;  %v20778_v36 = vrot.slane %v17169_v2, 5  ;;  %v5313_v2 = vsel %vm15821_vm4, %v17799_v40, %v17744_v0  ;;  %v20789_v0 = vld [vmem:[#allocation25_spill] sm:$0xff] }
 0x12b   : > { %14129 = vmatmul.mubr.msk.bf16.gmra.mrb[4].mxu0 %vm660_vm3, %v20759_v8  ;;  %v5289_v8 = vsel %vm15821_vm4, %v17772_v37, %v17713_v52  ;;  %v20765_v52 = vrot.slane %v20757_v17, 5  ;;  %v20766_v37 = vrot.slane %v20758_v3, 5  ;;  %v20640_v59 = vrot.slane %v20777_v38, 5  ;;  %v20786_v40 = vld [vmem:[#allocation24_spill] sm:$0xff] }
 0x12c   : > { %14132 = vmatprep.mubr.msk.bf16.mxu0 %vm660_vm3, %v12339_v46  ;;  %v20763_v46 = vld [vmem:[#allocation3_spill] sm:$0xff]  ;;  %v12680_v53 = vcombine.low %v5289_v8, %v5299_v28  ;;  %v20770_v28 = vld [vmem:[#allocation17_spill] sm:$0xff] }
 0x12d   : > { %v17912_v62 = vrot.slane %v20765_v52, 4  ;;  %v17916_v1 = vrot.slane %v20766_v37, 4  ;;  %v2479_v52 = vsel %vm15821_vm4, %v17789_v24, %v17723_v39  ;;  %v2489_v37 = vsel %vm15821_vm4, %v17791_v58, %v17780_v43  ;;  %v20774_v39 = vld [vmem:[#allocation15_spill] sm:$0xff] }
 0x12e   : > { %14291 = vmatmul.mubr.msk.bf16.gmra.mrb[4].mxu1 %vm660_vm3, %v17706_v49  ;;  %v20771_v8 = vrot.slane %v20763_v46, 5  ;;  %v17954_v46 = vld [vmem:[%s15781_s14 + $0xc0] sm:$0xe]  ;;  %v20779_v24 = vrot.slane %v17754_v35, 9  ;;  %v20781_v58 = vrot.slane %v20769_v25, 5  ;;  %v20783_v35 = vrot.slane %v17219_v47, 5 }
 0x12f   : > { %14294 = vmatprep.mubr.msk.bf16.mxu1 %vm660_vm3, %v12678_v34  ;;  %v20782_v34 = vld [vmem:[#allocation22_spill] sm:$0xff]  ;;  %v296_v47 = vld [vmem:[#allocation2 + $0x18] sm:$0x1] }
 0x130   : > { %v17941_v55 = vrot.slane %v20771_v8, 4  ;;  %v12342_v8 = vcombine.low %v2479_v52, %v2489_v37  ;;  %v2697_v49 = vsel %vm16150_vm7, %v20779_v24, %v20778_v36  ;;  %v17965_v43 = vrot.slane %v20781_v58, 4  ;;  %v17987_v58 = vld [vmem:[%s15781_s14 + $0xcc] sm:$0xe] }
 0x131   : > { %v20784_v52 = vrot.slane %v20770_v28, 5  ;;  %v18006_v24 = vrot.slane %v20640_v59, 4 }
 0x132   : > { %20772 = vst [vmem:[#allocation6_spill] sm:$0xff] %v17941_v55 }
 0x133   : > { %14133 = vmatmul.mubr.msk.bf16.gmra.mrb[8].mxu0 %vm660_vm3, %v12340_v18  ;;  %v2700_v18 = vsel %vm16150_vm7, %v17827_v10, %v20783_v35  ;;  %v17983_v37 = vrot.slane %v20784_v52, 4  ;;  %v5323_v10 = vsel %vm15821_vm4, %v17823_v5, %v17801_v27  ;;  %v20787_v35 = vrot.slane %v17222_v60, 5 }
 0x134   : > { %14136 = vmatprep.mubr.msk.bf16.mxu0 %vm660_vm3, %v12341_v45  ;;  %v20785_v45 = vld [vmem:[#allocation23_spill] sm:$0xff]  ;;  %v20788_v52 = vrot.slane %v17762_v33, 9  ;;  %v5533_v60 = vsel %vm16150_vm7, %v17851_v16, %v20790_v31  ;;  %v20791_v33 = vrot.slane %v20782_v34, 5  ;;  %v12705_v5 = vrot.slane %v17954_v46, 9 }
 0x135   : > { %v12681_v31 = vcombine.low %v5313_v2, %v5323_v10  ;;  %v20794_v16 = vrot.slane %v20789_v0, 5  ;;  %v297_v2 = vsel %vm18030_vm10, 0, %v296_v47  ;;  %v20798_v10 = vrot.slane %v17243_v14, 5 }
 0x136   : > { %14295 = vmatmul.mubr.msk.bf16.gmra.mrb[8].mxu1 %vm660_vm3, %v12679_v20  ;;  %v5530_v36 = vsel %vm16150_vm7, %v20788_v52, %v20787_v35  ;;  %v12370_v20 = vcombine.low %v2697_v49, %v2700_v18  ;;  %v2740_v27 = vrot.slane %v20791_v33, 4  ;;  %v5574_v35 = vrot.slane %v17695_v26, 5  ;;  %298 = vst [vmem:[#allocation2 + $0x18] sm:$0x1] %v297_v2 }
 0x137   : > { %14298 = vmatprep.mubr.msk.bf16.mxu1 %vm660_vm3, %v12680_v53  ;;  %v12367_v52 = vrot.slane %v17969_v30, 9  ;;  %v5578_v53 = vrot.slane %v20792_v21, 5  ;;  %v20793_v49 = vrot.slane %v20786_v40, 5  ;;  %v2747_v33 = vrot.slane %v20794_v16, 4 }
 0x138   : > { %v20795_v26 = vmov 0  ;;  %v12709_v59 = vcombine.low %v5530_v36, %v5533_v60  ;;  %v20799_v16 = vrot.slane %v17785_v50, 9  ;;  %v20800_v18 = vrot.slane %v20754_v63, 5 }
 0x139   : > { %v5573_v22 = vrot.slane %v20793_v49, 4  ;;  %v20796_v26 = vsel %vm18030_vm10, 4294967295, %v20795_v26  ;;  %v5580_v49 = vrot.slane %v5578_v53, 4  ;;  %v20801_v36 = vrot.slane %v17348_v48, 5 }
 0x13a   : > { %20797 = vst [vmem:[#allocation8_spill] sm:$0xff] %v20796_v26  ;;  %v2704_v46 = vsel %vm16150_vm7, %v20799_v16, %v20798_v10  ;;  %v20802_v47 = vrot.slane %v17811_v6, 9  ;;  %v20803_v14 = vrot.slane %v20760_v4, 5  ;;  %v20805_v48 = vrot.slane %v17806_v15, 9  ;;  %v20815_v16 = vld [vmem:[#allocation7_spill] sm:$0xff] }
 0x13b   : > { %14137 = vmatmul.mubr.msk.bf16.gmra.mrb[12].mxu0 %vm660_vm3, %v12342_v8  ;;  %v2707_v8 = vsel %vm16150_vm7, %v17855_v23, %v20800_v18  ;;  %v20804_v23 = vrot.slane %v17325_v32, 5  ;;  %v20806_v60 = vrot.slane %v20756_v61, 5  ;;  %v20809_v32 = vrot.slane %v20762_v54, 5 }
 0x13c   : > { %14142 = vmatprep.mubr.msk.bf16.mxu0 %vm660_vm3, %v12370_v20  ;;  %v2711_v20 = vsel %vm16150_vm7, %v20802_v47, %v20801_v36  ;;  %v2714_v50 = vsel %vm16150_vm7, %v17882_v41, %v20803_v14  ;;  %v12371_v63 = vcombine.low %v2704_v46, %v2707_v8  ;;  %v20807_v41 = vrot.slane %v20757_v17, 5  ;;  %v20811_v17 = vld [vmem:[#allocation27_spill] sm:$0xff]  ;;  %v20820_v14 = vld [vmem:[#allocation5_spill] sm:$0xff] }
 0x13d   : > { %v5537_v6 = vsel %vm16150_vm7, %v20805_v48, %v20804_v23  ;;  %v5540_v4 = vsel %vm16150_vm7, %v17878_v29, %v20806_v60  ;;  %v12372_v18 = vcombine.low %v2711_v20, %v2714_v50  ;;  %v5547_v15 = vsel %vm16150_vm7, %v17912_v62, %v20809_v32  ;;  %v20818_v20 = vld [vmem:[#allocation3_spill] sm:$0xff]  ;;  %v20824_v48 = vld [vmem:[#allocation6_spill] sm:$0xff] }
 0x13e   : > { %14299 = vmatmul.mubr.msk.bf16.gmra.mrb[12].mxu1 %vm660_vm3, %v12681_v31  ;;  %v20808_v31 = vrot.slane %v17830_v44, 9  ;;  %v12710_v46 = vcombine.low %v5537_v6, %v5540_v4  ;;  %v20810_v29 = vrot.slane %v20758_v3, 5  ;;  %v20812_v2 = vrot.slane %v20811_v17, 9 }
 0x13f   : > { %14304 = vmatprep.mubr.msk.bf16.mxu1 %vm660_vm3, %v12709_v59  ;;  %v20813_v10 = vrot.slane %v20767_v51, 5  ;;  %v20814_v62 = vrot.slane %v20764_v13, 5  ;;  %v20816_v8 = vrot.slane %v20815_v16, 9  ;;  %v20817_v3 = vrot.slane %v20774_v39, 5 }
 0x140   : > { %v5544_v59 = vsel %vm16150_vm7, %v20808_v31, %v20807_v41  ;;  %v2718_v44 = vsel %vm16150_vm7, %v20812_v2, %v20810_v29  ;;  %v20821_v13 = vrot.slane %v20820_v14, 9  ;;  %v20826_v60 = vrot.slane %v17901_v42, 9  ;;  %v373_v14 = vld [vmem:[#allocation2 + $0x74] sm:$0x1] }
 0x141   : > { %v12711_v61 = vcombine.low %v5544_v59, %v5547_v15  ;;  %v2721_v54 = vsel %vm16150_vm7, %v17916_v1, %v20813_v10  ;;  %v2725_v36 = vsel %vm16150_vm7, %v20816_v8, %v20814_v62  ;;  %v2728_v47 = vsel %vm16150_vm7, %v17945_v9, %v20817_v3  ;;  %v376_v3 = vld [vmem:[#allocation2 + $0x80] sm:$0x1] }
 0x142   : > { %v12373_v51 = vcombine.low %v2718_v44, %v2721_v54  ;;  %v20819_v1 = vrot.slane %v20818_v20, 5  ;;  %v12374_v6 = vcombine.low %v2725_v36, %v2728_v47  ;;  %v20825_v9 = vrot.slane %v20769_v25, 5  ;;  %v352_v36 = vld [vmem:[#allocation2 + $0x20] sm:$0x1]  ;;  %v349_v20 = vld [vmem:[#allocation2 + $0x14] sm:$0x1] }
 0x143   : > { %14143 = vmatmul.mubr.msk.bf16.vlgmr.msra.gmra.mrb[0].mxu0 %vm660_vm3, %v12371_v63  ;;  %v20822_v63 = vld [vmem:[#allocation11_spill] sm:$0xff]  ;;  %v20829_v15 = vrot.slane %v20770_v28, 5  ;;  %v20830_v25 = vrot.slane %v17906_v56, 9  ;;  %v20834_v17 = vrot.slane %v17937_v57, 9  ;;  %v20835_v28 = vrot.slane %v17692_v12, 5 }
 0x144   : > { %14146 = vmatprep.mubr.msk.bf16.mxu0 %vm660_vm3, %v12372_v18  ;;  %v5551_v50 = vsel %vm16150_vm7, %v20821_v13, %v20819_v1  ;;  %v20823_v23 = vrot.slane %v20822_v63, 5  ;;  %v5558_v4 = vsel %vm16150_vm7, %v20826_v60, %v20825_v9  ;;  %v20827_v18 = vld [vmem:[#allocation18_spill] sm:$0xff]  ;;  %v20836_v10 = vrot.slane %v20777_v38, 5  ;;  %v15502_v13 = vld [vmem:[%s20553_s4 + $0x40] sm:$0xff]  }
 0x145   : > { %v20828_v41 = vrot.slane %v20827_v18, 5  ;;  %v2732_v42 = vsel %vm16150_vm7, %v20830_v25, %v20829_v15  ;;  %v2742_v56 = vsel %vm16150_vm7, %v2740_v27, %v20835_v28  ;;  %v20838_v57 = vrot.slane %v20785_v45, 5  ;;  %14320 = vmatprep.subr.bf16.mxu0 %v15502_v13  ;;  %v302_v63 = vld [vmem:[#allocation2 + $0x30] sm:$0x1]  ;;  %v323_v9 = vld [vmem:[#allocation2 + $0x84] sm:$0x1] }
 0x146   : > { %14305 = vmatmul.mubr.msk.bf16.vlgmr.msra.gmra.mrb[0].mxu1 %vm660_vm3, %v12710_v46  ;;  %v5554_v39 = vsel %vm16150_vm7, %v20824_v48, %v20823_v23  ;;  %v20831_v46 = vld [vmem:[#allocation19_spill] sm:$0xff]  ;;  %v20839_v27 = vrot.slane %v20786_v40, 5  ;;  %v5575_v38 = vsel %vm16150_vm7, %v5573_v22, %v5574_v35  ;;  %v20840_v45 = vrot.slane %v20789_v0, 5  ;;  %14321 = vmatpush3.bf16.msra.mxu0 %v15502_v13  ;;  %v326_v23 = vld [vmem:[#allocation2 + $0x90] sm:$0x1]  ;;  %v15503_v18 = vld [vmem:[%s20553_s4 + $0x48] sm:$0xff]  }
 0x147   : > { %14308 = vmatprep.mubr.msk.bf16.mxu1 %vm660_vm3, %v12711_v61  ;;  %v5561_v31 = vsel %vm16150_vm7, %v17965_v43, %v20828_v41  ;;  %v12712_v59 = vcombine.low %v5551_v50, %v5554_v39  ;;  %v20832_v61 = vrot.slane %v20831_v46, 5  ;;  %v20833_v43 = vrot.slane %v20782_v34, 5  ;;  %14322 = vmatprep.subr.bf16.mxu0 %v15503_v18  ;;  %v358_v41 = vld [vmem:[#allocation2 + $0x38] sm:$0x1]  ;;  %v355_v15 = vld [vmem:[#allocation2 + $0x2c] sm:$0x1] }
 0x148   : > { %v12713_v32 = vcombine.low %v5558_v4, %v5561_v31  ;;  %v5568_v12 = vsel %vm16150_vm7, %v18006_v24, %v20838_v57  ;;  %v5572_v62 = vsel %vm16150_vm7, %v12705_v5, %v20839_v27  ;;  %v2746_v24 = vsel %vm16150_vm7, %v12367_v52, %v20840_v45  ;;  %v382_v31 = vld [vmem:[#allocation2 + $0x98] sm:$0x1]  ;;  %v15504_v25 = vld [vmem:[%s20553_s4 + $0x50] sm:$0xff]   ;;  %v379_v46 = vld [vmem:[#allocation2 + $0x8c] sm:$0x1] }
 0x149   : > { %v2735_v29 = vsel %vm16150_vm7, %v17983_v37, %v20832_v61  ;;  %v2739_v2 = vsel %vm16150_vm7, %v20834_v17, %v20833_v43  ;;  %v20837_v37 = vrot.slane %v17924_v11, 9  ;;  %v12715_v11 = vcombine.low %v5572_v62, %v5575_v38  ;;  %v332_v43 = vld [vmem:[#allocation2 + $0xa8] sm:$0x1]  ;;  %v305_v28 = vld [vmem:[#allocation2 + $0x3c] sm:$0x1] }
 0x14a   : > { %v12375_v44 = vcombine.low %v2732_v42, %v2735_v29  ;;  %v12376_v54 = vcombine.low %v2739_v2, %v2742_v56  ;;  %v20841_v40 = vrot.slane %v17716_v7, 5  ;;  %v20842_v22 = vrot.slane %v17987_v58, 9  ;;  %v320_v58 = vld [vmem:[#allocation2 + $0x78] sm:$0x1]  ;;  %14323 = vmatpush3.bf16.msra.mxu0 %v15503_v18  ;;  %v308_v29 = vld [vmem:[#allocation2 + $0x48] sm:$0x1] }
 0x14b   : > { %14147 = vmatmul.mubr.msk.bf16.gmra.mrb[4].mxu0 %vm660_vm3, %v12373_v51  ;;  %v5565_v34 = vsel %vm16150_vm7, %v20837_v37, %v20836_v10  ;;  %v20843_v0 = vrot.slane %v17726_v19, 5  ;;  %v20844_v21 = vmov 0  ;;  %v293_v19 = vld [vmem:[#allocation2 + $0xc] sm:$0x1]  ;;  %v353_v47 = vsel %vm18204_vm12, 0, %v352_v36  ;;  %14324 = vmatprep.subr.bf16.mxu0 %v15504_v25 }
 0x14c   : > { %14150 = vmatprep.mubr.msk.bf16.mxu0 %vm660_vm3, %v12374_v6  ;;  %v12714_v16 = vcombine.low %v5565_v34, %v5568_v12  ;;  %v2749_v5 = vsel %vm16150_vm7, %v2747_v33, %v20841_v40  ;;  %v5579_v30 = vsel %vm16150_vm7, %v20842_v22, %v5578_v53  ;;  %v20845_v21 = vsel %vm18204_vm12, 4294967295, %v20844_v21  ;;  %v317_v33 = vld [vmem:[#allocation2 + $0x6c] sm:$0x1]  ;;  %354 = vst [vmem:[#allocation2 + $0x20] sm:$0x1] %v353_v47  ;;  %v15506_v12 = vld [vmem:[%s20553_s4 + $0x60] sm:$0xff]  }
 0x14d   : > { %v12377_v35 = vcombine.low %v2746_v24, %v2749_v5  ;;  %v5582_v7 = vsel %vm16150_vm7, %v5580_v49, %v20843_v0  ;;  %20846 = vst [vmem:[#allocation21_spill] sm:$0xff] %v20845_v21  ;;  %v321_v53 = vsel %vm18030_vm10, 0, %v320_v58  ;;  %v294_v49 = vsel %vm18030_vm10, 0, %v293_v19  ;;  %v299_v6 = vld [vmem:[#allocation2 + $0x24] sm:$0x1] }
 0x14e   : > { %14309 = vmatmul.mubr.msk.bf16.gmra.mrb[4].mxu1 %vm660_vm3, %v12712_v59  ;;  %v12716_v52 = vcombine.low %v5579_v30, %v5582_v7  ;;  %322 = vst [vmem:[#allocation2 + $0x78] sm:$0x1] %v321_v53  ;;  %v318_v8 = vsel %vm18030_vm10, 0, %v317_v33  ;;  %295 = vst [vmem:[#allocation2 + $0xc] sm:$0x1] %v294_v49  ;;  %v377_v51 = vsel %vm18204_vm12, 0, %v376_v3  ;;  %14325 = vmatpush3.bf16.msra.mxu0 %v15504_v25 }
 0x14f   : > { %14312 = vmatprep.mubr.msk.bf16.mxu1 %vm660_vm3, %v12713_v32  ;;  %319 = vst [vmem:[#allocation2 + $0x6c] sm:$0x1] %v318_v8  ;;  %378 = vst [vmem:[#allocation2 + $0x80] sm:$0x1] %v377_v51  ;;  %v350_v1 = vsel %vm18204_vm12, 0, %v349_v20  ;;  %v374_v50 = vsel %vm18204_vm12, 0, %v373_v14 }
 0x150   : > { %351 = vst [vmem:[#allocation2 + $0x14] sm:$0x1] %v350_v1  ;;  %375 = vst [vmem:[#allocation2 + $0x74] sm:$0x1] %v374_v50  ;;  %v303_v48 = vsel %vm18030_vm10, 0, %v302_v63  ;;  %v327_v39 = vsel %vm18030_vm10, 0, %v326_v23 }
 0x151   : > { %304 = vst [vmem:[#allocation2 + $0x30] sm:$0x1] %v303_v48  ;;  %328 = vst [vmem:[#allocation2 + $0x90] sm:$0x1] %v327_v39  ;;  %v300_v60 = vsel %vm18030_vm10, 0, %v299_v6  ;;  %v324_v4 = vsel %vm18030_vm10, 0, %v323_v9 }
 0x152   : > { %301 = vst [vmem:[#allocation2 + $0x24] sm:$0x1] %v300_v60  ;;  %325 = vst [vmem:[#allocation2 + $0x84] sm:$0x1] %v324_v4  ;;  %v359_v59 = vsel %vm18204_vm12, 0, %v358_v41  ;;  %v383_v32 = vsel %vm18204_vm12, 0, %v382_v31 }
 0x153   : > { %14151 = vmatmul.mubr.msk.bf16.gmra.mrb[8].mxu0 %vm660_vm3, %v12375_v44  ;;  %360 = vst [vmem:[#allocation2 + $0x38] sm:$0x1] %v359_v59  ;;  %384 = vst [vmem:[#allocation2 + $0x98] sm:$0x1] %v383_v32  ;;  %v356_v42 = vsel %vm18204_vm12, 0, %v355_v15  ;;  %v380_v61 = vsel %vm18204_vm12, 0, %v379_v46 }
 0x154   : > { %14154 = vmatprep.mubr.msk.bf16.mxu0 %vm660_vm3, %v12376_v54  ;;  %357 = vst [vmem:[#allocation2 + $0x2c] sm:$0x1] %v356_v42  ;;  %381 = vst [vmem:[#allocation2 + $0x8c] sm:$0x1] %v380_v61  ;;  %v309_v17 = vsel %vm18030_vm10, 0, %v308_v29  ;;  %v333_v2 = vsel %vm18030_vm10, 0, %v332_v43 }
 0x155   : > { %310 = vst [vmem:[#allocation2 + $0x48] sm:$0x1] %v309_v17  ;;  %334 = vst [vmem:[#allocation2 + $0xa8] sm:$0x1] %v333_v2  ;;  %v306_v56 = vsel %vm18030_vm10, 0, %v305_v28  ;;  %v15505_v44 = vld [vmem:[%s20553_s4 + $0x58] sm:$0xff]  }
 0x156   : > { %14313 = vmatmul.mubr.msk.bf16.gmra.mrb[8].mxu1 %vm660_vm3, %v12714_v16  ;;  %307 = vst [vmem:[#allocation2 + $0x3c] sm:$0x1] %v306_v56  ;;  %v329_v10 = vld [vmem:[#allocation2 + $0x9c] sm:$0x1]  ;;  %14326 = vmatprep.subr.bf16.mxu0 %v15505_v44  ;;  %v364_v34 = vld [vmem:[#allocation2 + $0x50] sm:$0x1] }
 0x157   : > { %14316 = vmatprep.mubr.msk.bf16.mxu1 %vm660_vm3, %v12715_v11  ;;  %v330_v37 = vsel %vm18030_vm10, 0, %v329_v10  ;;  %14327 = vmatpush3.bf16.msra.mxu0 %v15505_v44  ;;  %v365_v57 = vsel %vm18204_vm12, 0, %v364_v34  ;;  %v388_v54 = vld [vmem:[#allocation2 + $0xb0] sm:$0x1]  ;;  %v361_v62 = vld [vmem:[#allocation2 + $0x44] sm:$0x1] }
 0x158   : > { %331 = vst [vmem:[#allocation2 + $0x9c] sm:$0x1] %v330_v37  ;;  %366 = vst [vmem:[#allocation2 + $0x50] sm:$0x1] %v365_v57  ;;  %v389_v27 = vsel %vm18204_vm12, 0, %v388_v54  ;;  %14328 = vmatprep.subr.bf16.mxu0 %v15506_v12  ;;  %v362_v16 = vsel %vm18204_vm12, 0, %v361_v62 }
 0x159   : > { %v385_v38 = vld [vmem:[#allocation2 + $0xa4] sm:$0x1]  ;;  %390 = vst [vmem:[#allocation2 + $0xb0] sm:$0x1] %v389_v27  ;;  %363 = vst [vmem:[#allocation2 + $0x44] sm:$0x1] %v362_v16 }
 0x15a   : > { %v386_v11 = vsel %vm18204_vm12, 0, %v385_v38  ;;  %v15707_v45 = vmov 0   ;;  %v314_v24 = vld [vmem:[#allocation2 + $0x60] sm:$0x1]  ;;  %v311_v22 = vld [vmem:[#allocation2 + $0x54] sm:$0x1] }
 0x15b   : > { %14155 = vmatmul.mubr.msk.bf16.gmra.mrb[12].mxu0 %vm660_vm3, %v12377_v35  ;;  %387 = vst [vmem:[#allocation2 + $0xa4] sm:$0x1] %v386_v11  ;;  %280 = vst [vmem:[#allocation2] sm:$0xf] %v15707_v45  ;;  %v338_v40 = vld [vmem:[#allocation2 + $0xc0] sm:$0x1] }
 0x15c   : > { %14329 = vmatpush3.bf16.msra.mxu0 %v15506_v12  ;;  %281 = vst [vmem:[#allocation2 + $0x4] sm:$0xf] %v15707_v45  ;;  %282 = vst [vmem:[#allocation2 + $0x8] sm:$0x1] %v15707_v45  ;;  %v315_v5 = vsel %vm18030_vm10, 0, %v314_v24  ;;  %v339_v35 = vsel %vm18030_vm10, 0, %v338_v40 }
 0x15d   : > { %284 = vst [vmem:[#allocation2 + $0xcc] sm:$0xf] %v15707_v45  ;;  %285 = vst [vmem:[#allocation2 + $0xd0] sm:$0xf] %v15707_v45  ;;  %v312_v0 = vsel %vm18030_vm10, 0, %v311_v22  ;;  %v15508_v39 = vld [vmem:[%s20553_s4 + $0x40] sm:$0xff]  }
 0x15e   : > { %14317 = vmatmul.mubr.msk.bf16.gmra.mrb[12].mxu1 %vm660_vm3, %v12716_v52  ;;  %286 = vst [vmem:[#allocation2 + $0xd4] sm:$0x1] %v15707_v45  ;;  %316 = vst [vmem:[#allocation2 + $0x60] sm:$0x1] %v315_v5  ;;  %v15507_v52 = vld [vmem:[%s20553_s4 + $0x68] sm:$0xff]   ;;  %v15509_v6 = vld [vmem:[%s20553_s4 + $0x70] sm:$0xff]   ;;  %14608 = vmatprep.subr.bf16.mxu1 %v15508_v39 }
 0x15f   : > { %340 = vst [vmem:[#allocation2 + $0xc0] sm:$0x1] %v339_v35  ;;  %313 = vst [vmem:[#allocation2 + $0x54] sm:$0x1] %v312_v0  ;;  %v335_v58 = vld [vmem:[#allocation2 + $0xb4] sm:$0x1]  ;;  %14330 = vmatprep.subr.bf16.mxu0 %v15507_v52  ;;  %14609 = vmatpush3.bf16.msra.mxu1 %v15508_v39 }
 0x160   : > { %v336_v19 = vsel %vm18030_vm10, 0, %v335_v58  ;;  %14331 = vmatpush3.bf16.msra.mxu0 %v15507_v52  ;;  %v370_v49 = vld [vmem:[#allocation2 + $0x68] sm:$0x1]  ;;  %v367_v20 = vld [vmem:[#allocation2 + $0x5c] sm:$0x1]  ;;  %v15512_v28 = vld [vmem:[%s20553_s4 + $0x50] sm:$0xff]  }
 0x161   : > { %337 = vst [vmem:[#allocation2 + $0xb4] sm:$0x1] %v336_v19  ;;  %v394_v8 = vld [vmem:[#allocation2 + $0xc8] sm:$0x1]  ;;  %v371_v36 = vsel %vm18204_vm12, 0, %v370_v49  ;;  %v368_v63 = vsel %vm18204_vm12, 0, %v367_v20  ;;  %14332 = vmatprep.subr.bf16.mxu0 %v15509_v6 }
 0x162   : > { %v290_v30 = vld [vmem:[#allocation2] sm:$0x1]  ;;  %v395_v3 = vsel %vm18204_vm12, 0, %v394_v8  ;;  %372 = vst [vmem:[#allocation2 + $0x68] sm:$0x1] %v371_v36  ;;  %v15510_v15 = vld [vmem:[%s20553_s4 + $0x48] sm:$0xff]  }
 0x163   : > { %v291_v7 = vsel %vm18030_vm10, 0, %v290_v30  ;;  %v346_v53 = vld [vmem:[#allocation2 + $0x8] sm:$0x1]  ;;  %396 = vst [vmem:[#allocation2 + $0xc8] sm:$0x1] %v395_v3  ;;  %v15511_v25 = vld [vmem:[%s20553_s4 + $0x78] sm:$0xff]   ;;  %14610 = vmatprep.subr.bf16.mxu1 %v15510_v15 }
 0x164   : > { %292 = vst [vmem:[#allocation2] sm:$0x1] %v291_v7  ;;  %v347_v33 = vsel %vm18204_vm12, 0, %v346_v53  ;;  %v6071_v51 = vld [vmem:[#allocation2 + $0x4] sm:$0xf]  ;;  %14333 = vmatpush3.bf16.msra.mxu0 %v15509_v6  ;;  %14611 = vmatpush3.bf16.msra.mxu1 %v15510_v15  ;;  %v15514_v44 = vld [vmem:[%s20553_s4 + $0x58] sm:$0xff]  }
 0x165   : > { %348 = vst [vmem:[#allocation2 + $0x8] sm:$0x1] %v347_v33  ;;  %v6120_v13 = vshll.u32 %v6071_v51, 16  ;;  %v6124_v50 = vshrl.u32 %v6071_v51, 16  ;;  %v391_v23 = vld [vmem:[#allocation2 + $0xbc] sm:$0x1]  ;;  %14334 = vmatprep.subr.bf16.mxu0 %v15511_v25  ;;  %14612 = vmatprep.subr.bf16.mxu1 %v15512_v28 }
 0x166   : > { %369 = vst [vmem:[#allocation2 + $0x5c] sm:$0x1] %v368_v63  ;;  %v392_v48 = vsel %vm18204_vm12, 0, %v391_v23  ;;  %v15513_v56 = vld [vmem:[%s20553_s4] sm:$0xff]   ;;  %v15518_v37 = vld [vmem:[%s20553_s4 + $0x68] sm:$0xff]   ;;  %v15520_v34 = vld [vmem:[%s20553_s4 + $0x70] sm:$0xff]  }
 0x167   : > { %v6122_v4 = vrot.slane %v6120_v13, 5  ;;  %393 = vst [vmem:[#allocation2 + $0xbc] sm:$0x1] %v392_v48  ;;  %v6126_v41 = vrot.slane %v6124_v50, 4  ;;  %v15516_v10 = vld [vmem:[%s20553_s4 + $0x60] sm:$0xff]   ;;  %v15522_v57 = vld [vmem:[%s20553_s4 + $0x78] sm:$0xff]  }
 0x168   : > { %14335 = vmatpush3.bf16.msra.mxu0 %v15511_v25  ;;  %14613 = vmatpush3.bf16.msra.mxu1 %v15512_v28  ;;  %v15524_v12 = vld [vmem:[%s20553_s4] sm:$0xff]  }
 0x169   : > { %v6127_v32 = vor.u32 %v6126_v41, %v6122_v4  ;;  %14352 = vmatprep.subr.bf16.mxu0 %v15513_v56  ;;  %14614 = vmatprep.subr.bf16.mxu1 %v15514_v44  ;;  %v18335_v54 = vld [vmem:[%s20551_s2] ss:$0 sm:$0xff] }
 0x16a   : > { %v18340_v27 = vld [vmem:[%s20552_s3] ss:$0 sm:$0xff] }
 0x16b   : > { %v6070_v47 = vld [vmem:[#allocation2] sm:$0xf]  ;;  %v6128_v61 = vrot.slane %v6127_v32, 4 }
 0x16c   : > { %v6111_v1 = vshrl.u32 %v6070_v47, 16  ;;  %v6114_v14 = vshll.u32 %v6070_v47, 16  ;;  %v6102_v18 = vld [vmem:[#allocation2 + $0x8] sm:$0x1]  ;;  %14615 = vmatpush3.bf16.msra.mxu1 %v15514_v44 }
 0x16d   : > { %v6130_v59 = vshll.u32 %v6102_v18, 16  ;;  %14616 = vmatprep.subr.bf16.mxu1 %v15516_v10 }
 0x16e   : > { %v6113_v9 = vrot.slane %v6111_v1, 4  ;;  %v6116_v60 = vrot.slane %v6114_v14, 5 }
 0x16f   : > { %v6132_v46 = vrot.slane %v6130_v59, 5 }
 0x170   : > { %v6117_v31 = vor.u32 %v6116_v60, %v6113_v9  ;;  %14617 = vmatpush3.bf16.msra.mxu1 %v15516_v10 }
 0x171   : > { %v6133_v17 = vsel %vm15821_vm4, %v6128_v61, %v6132_v46  ;;  %14618 = vmatprep.subr.bf16.mxu1 %v15518_v37 }
 0x172   : > { %v6118_v42 = vrot.slane %v6117_v31, 4 }
 0x174   : > { %v6123_v43 = vsel %vm15821_vm4, %v6118_v42, %v6122_v4  ;;  %14619 = vmatpush3.bf16.msra.mxu1 %v15518_v37 }
 0x175   : > { %v12758_v2 = vcombine.low %v6123_v43, %v6133_v17  ;;  %14620 = vmatprep.subr.bf16.mxu1 %v15520_v34  ;;  %v3203_v17 = vld [vmem:[#allocation2 + $0x18] sm:$0xf] }
 0x177   : > { %14336 = vmatprep.mubr.bf16.mxu0 %v12758_v2 }
 0x178   : > { %14621 = vmatpush3.bf16.msra.mxu1 %v15520_v34 }
 0x179   : > { %14622 = vmatprep.subr.bf16.mxu1 %v15522_v57 }
 0x17c   : > { %14623 = vmatpush3.bf16.msra.mxu1 %v15522_v57  ;;  %v3196_v57 = vld [vmem:[#allocation2 + $0xc] sm:$0xf] }
 0x17d   : > { %14640 = vmatprep.subr.bf16.mxu1 %v15524_v12 }
 0x216   : > { %v14144_v62 = vpop.f32.mrb[0].mxu0 }
 0x217   : > { %v2930_v38 = vmul.f32 %v14144_v62, %v18335_v54  ;;  %v2843_v16 = vpop.f32.mrb[1].mxu0 }
 0x218   : > { %v2928_v11 = vmul.f32 %v18335_v54, %v2843_v16  ;;  %v14145_v45 = vpop.f32.mrb[2].mxu0 }
 0x219   : > { %v2952_v24 = vadd.f32 %v18340_v27, %v2930_v38  ;;  %v14306_v40 = vpop.f32.mrb[0].mxu1  ;;  %v2931_v5 = vmul.f32 %v14145_v45, %v18335_v54  ;;  %v2846_v35 = vpop.f32.mrb[3].mxu0 }
 0x21a   : > { %v5756_v22 = vmul.f32 %v14306_v40, %v18335_v54  ;;  %v2950_v30 = vadd.f32 %v18340_v27, %v2928_v11  ;;  %v5675_v0 = vpop.f32.mrb[1].mxu1  ;;  %v2929_v7 = vmul.f32 %v18335_v54, %v2846_v35  ;;  %v6019_v35 = vld [vmem:[#allocation2 + $0x78] sm:$0xf] }
 0x21b   : > { %v2968_v52 = vmax.f32 %v2952_v24, 0.0  ;;  %v5754_v58 = vmul.f32 %v18335_v54, %v5675_v0  ;;  %v2953_v53 = vadd.f32 %v18340_v27, %v2931_v5  ;;  %v14307_v19 = vpop.f32.mrb[2].mxu1 }
 0x21c   : > { %v5772_v33 = vadd.f32 %v18340_v27, %v5756_v22  ;;  %v2966_v49 = vmax.f32 %v2950_v30, 0.0  ;;  %v5757_v8 = vmul.f32 %v14307_v19, %v18335_v54  ;;  %v18354_v36 = vadd.f32 %v18340_v27, %v2929_v7  ;;  %v5678_v3 = vpop.f32.mrb[3].mxu1  ;;  %v6012_v19 = vld [vmem:[#allocation2 + $0x6c] sm:$0xf] }
 0x21d   : > { %v13389_v47 = vpack.c.bf16 %v2968_v52, %v2968_v52  ;;  %v5770_v51 = vadd.f32 %v18340_v27, %v5754_v58  ;;  %v2969_v20 = vmax.f32 %v2953_v53, 0.0  ;;  %v18358_v1 = vmul.f32 %v18335_v54, %v5678_v3 }
 0x21e   : > { %v5788_v14 = vmax.f32 %v5772_v33, 0.0  ;;  %v13387_v13 = vpack.c.bf16 %v2966_v49, %v2966_v49  ;;  %v5773_v50 = vadd.f32 %v18340_v27, %v5757_v8  ;;  %v2967_v63 = vmax.f32 %v18354_v36, 0.0  ;;  %v18362_v23 = vpop.f32.mrb[4].mxu0  ;;  %v3207_v49 = vld [vmem:[#allocation2 + $0x20] sm:$0x1] }
 0x21f   : > { %v3050_v48 = vshrl.u32 %v13389_v47, 16  ;;  %v3053_v39 = vshll.u32 %v13389_v47, 16  ;;  %v5786_v6 = vmax.f32 %v5770_v51, 0.0  ;;  %v13390_v9 = vpack.c.bf16 %v2969_v20, %v2969_v20  ;;  %v18364_v60 = vpop.f32.mrb[5].mxu0 }
 0x220   : > { %v13405_v4 = vpack.c.bf16 %v5788_v14, %v5788_v14  ;;  %v3033_v18 = vshrl.u32 %v13387_v13, 16  ;;  %v3036_v41 = vshll.u32 %v13387_v13, 16  ;;  %v5789_v31 = vmax.f32 %v5773_v50, 0.0  ;;  %v18366_v59 = vpop.f32.mrb[6].mxu0  ;;  %v6023_v50 = vld [vmem:[#allocation2 + $0x80] sm:$0x1] }
 0x221   : > { %v3052_v32 = vrot.slane %v3050_v48, 7  ;;  %v13403_v15 = vpack.c.bf16 %v5786_v6, %v5786_v6  ;;  %v3058_v25 = vshrl.u32 %v13390_v9, 16  ;;  %v3061_v42 = vshll.u32 %v13390_v9, 16  ;;  %v18368_v46 = vpop.f32.mrb[4].mxu1  ;;  %v18370_v61 = vpop.f32.mrb[7].mxu0 }
 0x222   : > { %v5868_v2 = vshrl.u32 %v13405_v4, 16  ;;  %v5871_v28 = vshll.u32 %v13405_v4, 16  ;;  %v18378_v56 = vrot.slane %v3033_v18, 7  ;;  %v13406_v44 = vpack.c.bf16 %v5789_v31, %v5789_v31  ;;  %v18380_v10 = vpop.f32.mrb[5].mxu1 }
 0x223   : > { %v3055_v37 = vor.u32 %v3053_v39, %v3052_v32  ;;  %v3056_v34 = vrot.slane %v3052_v32, 4  ;;  %v5851_v12 = vshrl.u32 %v13403_v15, 16  ;;  %v5854_v62 = vshll.u32 %v13403_v15, 16  ;;  %v18382_v38 = vpop.f32.mrb[6].mxu1 }
 0x224   : > { %v5870_v16 = vrot.slane %v5868_v2, 7  ;;  %v3038_v11 = vor.u32 %v3036_v41, %v18378_v56  ;;  %v3039_v45 = vrot.slane %v18378_v56, 4  ;;  %v3060_v24 = vrot.slane %v3058_v25, 7  ;;  %v18386_v40 = vpop.f32.mrb[7].mxu1 }
 0x225   : > { %v3204_v5 = vsel %vm18374_vm15, %v3055_v37, %v3203_v17  ;;  %v18390_v22 = vrot.slane %v5851_v12, 7  ;;  %v5876_v0 = vshrl.u32 %v13406_v44, 16  ;;  %v5879_v7 = vshll.u32 %v13406_v44, 16 }
 0x226   : > { %3205 = vst [vmem:[#allocation2 + $0x18] sm:$0xf] %v3204_v5  ;;  %v5873_v52 = vor.u32 %v5871_v28, %v5870_v16  ;;  %v5874_v58 = vrot.slane %v5870_v16, 4  ;;  %v3197_v53 = vsel %vm18374_vm15, %v3038_v11, %v3196_v57  ;;  %v3063_v33 = vor.u32 %v3061_v42, %v3060_v24  ;;  %v18400_v8 = vpop.f32.mrb[8].mxu0  ;;  %v3200_v16 = vld [vmem:[#allocation2 + $0x14] sm:$0x1] }
 0x227   : > { %3198 = vst [vmem:[#allocation2 + $0xc] sm:$0xf] %v3197_v53  ;;  %v5856_v36 = vor.u32 %v5854_v62, %v18390_v22  ;;  %v5857_v3 = vrot.slane %v18390_v22, 4  ;;  %v3065_v47 = vrot.slane %v3060_v24, 4  ;;  %v5878_v51 = vrot.slane %v5876_v0, 7  ;;  %v18404_v20 = vpop.f32.mrb[9].mxu0 }
 0x228   : > { %v6020_v14 = vsel %vm18374_vm15, %v5873_v52, %v6019_v35  ;;  %v3064_v13 = vsel %vm18394_vm0, %v3056_v34, %v3063_v33  ;;  %v13388_v48 = vpack.c.bf16 %v2967_v63, %v2967_v63  ;;  %v5771_v39 = vadd.f32 %v18340_v27, %v18358_v1  ;;  %v18412_v6 = vpop.f32.mrb[10].mxu0 }
 0x229   : > { %6021 = vst [vmem:[#allocation2 + $0x78] sm:$0xf] %v6020_v14  ;;  %v6013_v9 = vsel %vm18374_vm15, %v5856_v36, %v6012_v19  ;;  %3206 = vst [vmem:[#allocation2 + $0x1c] sm:$0xf] %v3064_v13  ;;  %v3208_v4 = vsel %vm18030_vm10, %v3065_v47, %v3207_v49  ;;  %v5881_v18 = vor.u32 %v5879_v7, %v5878_v51  ;;  %v5883_v41 = vrot.slane %v5878_v51, 4  ;;  %v18418_v31 = vpop.f32.mrb[8].mxu1 }
 0x22a   : > { %v18420_v32 = vpop.f32.mrb[11].mxu0  ;;  %6014 = vst [vmem:[#allocation2 + $0x6c] sm:$0xf] %v6013_v9  ;;  %3209 = vst [vmem:[#allocation2 + $0x20] sm:$0x1] %v3208_v4  ;;  %v3041_v63 = vshrl.u32 %v13388_v48, 16  ;;  %v2934_v25 = vmul.f32 %v18362_v23, %v18335_v54  ;;  %v5760_v28 = vmul.f32 %v18368_v46, %v18335_v54  ;;  %v2932_v44 = vmul.f32 %v18335_v54, %v18364_v60 }
 0x22b   : > { %v3044_v1 = vshll.u32 %v13388_v48, 16  ;;  %v5787_v15 = vmax.f32 %v5771_v39, 0.0  ;;  %v18424_v42 = vpop.f32.mrb[9].mxu1  ;;  %v5882_v17 = vsel %vm18394_vm0, %v5874_v58, %v5881_v18  ;;  %v6024_v2 = vsel %vm18030_vm10, %v5883_v41, %v6023_v50  ;;  %v6016_v51 = vld [vmem:[#allocation2 + $0x74] sm:$0x1] }
 0x22c   : > { %v18434_v37 = vpop.f32.mrb[10].mxu1  ;;  %6022 = vst [vmem:[#allocation2 + $0x7c] sm:$0xf] %v5882_v17  ;;  %6025 = vst [vmem:[#allocation2 + $0x80] sm:$0x1] %v6024_v2  ;;  %v3043_v34 = vrot.slane %v3041_v63, 7  ;;  %v2956_v57 = vadd.f32 %v18340_v27, %v2934_v25  ;;  %v5758_v12 = vmul.f32 %v18335_v54, %v18380_v10  ;;  %v5776_v11 = vadd.f32 %v18340_v27, %v5760_v28 }
 0x22d   : > { %v13404_v23 = vpack.c.bf16 %v5787_v15, %v5787_v15  ;;  %v18439_v62 = vpop.f32.mrb[11].mxu1  ;;  %v2954_v46 = vadd.f32 %v18340_v27, %v2932_v44  ;;  %v2935_v60 = vmul.f32 %v18366_v59, %v18335_v54  ;;  %v5761_v24 = vmul.f32 %v18382_v38, %v18335_v54 }
 0x22e   : > { %v3046_v5 = vor.u32 %v3044_v1, %v3043_v34  ;;  %v3048_v35 = vrot.slane %v3043_v34, 4  ;;  %v18447_v52 = vpop.f32.mrb[12].mxu0  ;;  %v2972_v10 = vmax.f32 %v2956_v57, 0.0  ;;  %v5792_v58 = vmax.f32 %v5776_v11, 0.0  ;;  %v6033_v11 = vld [vmem:[#allocation2 + $0x90] sm:$0xf] }
 0x22f   : > { %v5859_v0 = vshrl.u32 %v13404_v23, 16  ;;  %v5862_v7 = vshll.u32 %v13404_v23, 16  ;;  %v2970_v53 = vmax.f32 %v2954_v46, 0.0  ;;  %v5774_v19 = vadd.f32 %v18340_v27, %v5758_v12  ;;  %v18450_v33 = vpop.f32.mrb[13].mxu0  ;;  %v3217_v12 = vld [vmem:[#allocation2 + $0x30] sm:$0xf] }
 0x230   : > { %v3047_v59 = vsel %vm18394_vm0, %v3039_v45, %v3046_v5  ;;  %v3201_v38 = vsel %vm18030_vm10, %v3048_v35, %v3200_v16  ;;  %v2957_v36 = vadd.f32 %v18340_v27, %v2935_v60  ;;  %v18459_v47 = vpop.f32.mrb[14].mxu0  ;;  %v13393_v14 = vpack.c.bf16 %v2972_v10, %v2972_v10 }
 0x231   : > { %v5861_v49 = vrot.slane %v5859_v0, 7  ;;  %3199 = vst [vmem:[#allocation2 + $0x10] sm:$0xf] %v3047_v59  ;;  %3202 = vst [vmem:[#allocation2 + $0x14] sm:$0x1] %v3201_v38  ;;  %v13409_v13 = vpack.c.bf16 %v5792_v58, %v5792_v58  ;;  %v13391_v50 = vpack.c.bf16 %v2970_v53, %v2970_v53  ;;  %v5790_v48 = vmax.f32 %v5774_v19, 0.0 }
 0x232   : > { %v18461_v39 = vpop.f32.mrb[12].mxu1  ;;  %v18463_v56 = vpop.f32.mrb[15].mxu0  ;;  %v2973_v4 = vmax.f32 %v2957_v36, 0.0  ;;  %v5777_v18 = vadd.f32 %v18340_v27, %v5761_v24  ;;  %v3084_v63 = vshrl.u32 %v13393_v14, 16  ;;  %v3087_v1 = vshll.u32 %v13393_v14, 16 }
 0x233   : > { %v5864_v45 = vor.u32 %v5862_v7, %v5861_v49  ;;  %v5866_v9 = vrot.slane %v5861_v49, 4  ;;  %v18466_v41 = vpop.f32.mrb[13].mxu1  ;;  %v5902_v15 = vshrl.u32 %v13409_v13, 16  ;;  %v5905_v25 = vshll.u32 %v13409_v13, 16  ;;  %v3210_v24 = vld [vmem:[#allocation2 + $0x24] sm:$0xf] }
 0x234   : > { %v18468_v17 = vpop.f32.mrb[14].mxu1  ;;  %v3067_v44 = vshrl.u32 %v13391_v50, 16  ;;  %v3070_v34 = vshll.u32 %v13391_v50, 16  ;;  %v3086_v57 = vrot.slane %v3084_v63, 7  ;;  %v13407_v46 = vpack.c.bf16 %v5790_v48, %v5790_v48  ;;  %v6026_v36 = vld [vmem:[#allocation2 + $0x84] sm:$0xf] }
 0x235   : > { %v5865_v2 = vsel %vm18394_vm0, %v5857_v3, %v5864_v45  ;;  %v6017_v28 = vsel %vm18030_vm10, %v5866_v9, %v6016_v51  ;;  %v18476_v23 = vpop.f32.mrb[15].mxu1  ;;  %v18478_v16 = vrot.slane %v5902_v15, 7  ;;  %v13394_v60 = vpack.c.bf16 %v2973_v4, %v2973_v4  ;;  %v3221_v15 = vld [vmem:[#allocation2 + $0x38] sm:$0x1] }
 0x236   : > { %6015 = vst [vmem:[#allocation2 + $0x70] sm:$0xf] %v5865_v2  ;;  %6018 = vst [vmem:[#allocation2 + $0x74] sm:$0x1] %v6017_v28  ;;  %v18480_v22 = vrot.slane %v3067_v44, 7  ;;  %v5793_v3 = vmax.f32 %v5777_v18, 0.0  ;;  %v2933_v5 = vmul.f32 %v18335_v54, %v18370_v61  ;;  %v5759_v35 = vmul.f32 %v18335_v54, %v18386_v40 }
 0x237   : > { %v3089_v0 = vor.u32 %v3087_v1, %v3086_v57  ;;  %v3090_v7 = vrot.slane %v3086_v57, 4  ;;  %v5907_v10 = vor.u32 %v5905_v25, %v18478_v16  ;;  %v5908_v58 = vrot.slane %v18478_v16, 4 }
 0x238   : > { %v3072_v53 = vor.u32 %v3070_v34, %v18480_v22  ;;  %v3073_v19 = vrot.slane %v18480_v22, 4  ;;  %v5885_v59 = vshrl.u32 %v13407_v46, 16  ;;  %v5888_v38 = vshll.u32 %v13407_v46, 16  ;;  %v18641_v43 = vld [vmem:[#allocation2 + $0x14] sm:$0x1] }
 0x239   : > { %v3218_v49 = vsel %vm18374_vm15, %v3089_v0, %v3217_v12  ;;  %v6034_v61 = vsel %vm18374_vm15, %v5907_v10, %v6033_v11  ;;  %v3092_v40 = vshrl.u32 %v13394_v60, 16  ;;  %v3095_v51 = vshll.u32 %v13394_v60, 16  ;;  %v6037_v60 = vld [vmem:[#allocation2 + $0x98] sm:$0x1] }
 0x23a   : > { %3219 = vst [vmem:[#allocation2 + $0x30] sm:$0xf] %v3218_v49  ;;  %6035 = vst [vmem:[#allocation2 + $0x90] sm:$0xf] %v6034_v61  ;;  %v3211_v14 = vsel %vm18374_vm15, %v3072_v53, %v3210_v24  ;;  %v18496_v13 = vrot.slane %v5885_v59, 7  ;;  %v13410_v50 = vpack.c.bf16 %v5793_v3, %v5793_v3  ;;  %v2955_v48 = vadd.f32 %v18340_v27, %v2933_v5 }
 0x23b   : > { %3212 = vst [vmem:[#allocation2 + $0x24] sm:$0xf] %v3211_v14  ;;  %v3094_v45 = vrot.slane %v3092_v40, 7  ;;  %v5775_v9 = vadd.f32 %v18340_v27, %v5759_v35  ;;  %v2938_v4 = vmul.f32 %v18400_v8, %v18335_v54  ;;  %v5764_v18 = vmul.f32 %v18418_v31, %v18335_v54  ;;  %v3214_v14 = vld [vmem:[#allocation2 + $0x2c] sm:$0x1] }
 0x23c   : > { %v5890_v63 = vor.u32 %v5888_v38, %v18496_v13  ;;  %v5891_v1 = vrot.slane %v18496_v13, 4  ;;  %v5910_v25 = vshrl.u32 %v13410_v50, 16  ;;  %v5913_v2 = vshll.u32 %v13410_v50, 16 }
 0x23d   : > { %v3097_v28 = vor.u32 %v3095_v51, %v3094_v45  ;;  %v3099_v44 = vrot.slane %v3094_v45, 4  ;;  %v2971_v34 = vmax.f32 %v2955_v48, 0.0  ;;  %v5791_v57 = vmax.f32 %v5775_v9, 0.0  ;;  %v6030_v45 = vld [vmem:[#allocation2 + $0x8c] sm:$0x1] }
 0x23e   : > { %v6027_v12 = vsel %vm18374_vm15, %v5890_v63, %v6026_v36  ;;  %v5912_v16 = vrot.slane %v5910_v25, 7  ;;  %v2960_v8 = vadd.f32 %v18340_v27, %v2938_v4  ;;  %v5780_v11 = vadd.f32 %v18340_v27, %v5764_v18 }
 0x23f   : > { %6028 = vst [vmem:[#allocation2 + $0x84] sm:$0xf] %v6027_v12  ;;  %v3098_v31 = vsel %vm18394_vm0, %v3090_v7, %v3097_v28  ;;  %v3222_v46 = vsel %vm18030_vm10, %v3099_v44, %v3221_v15  ;;  %v13392_v24 = vpack.c.bf16 %v2971_v34, %v2971_v34  ;;  %v13408_v3 = vpack.c.bf16 %v5791_v57, %v5791_v57 }
 0x240   : > { %3220 = vst [vmem:[#allocation2 + $0x34] sm:$0xf] %v3098_v31  ;;  %3223 = vst [vmem:[#allocation2 + $0x38] sm:$0x1] %v3222_v46  ;;  %v5915_v5 = vor.u32 %v5913_v2, %v5912_v16  ;;  %v5917_v35 = vrot.slane %v5912_v16, 4  ;;  %v2976_v0 = vmax.f32 %v2960_v8, 0.0  ;;  %v2936_v50 = vmul.f32 %v18335_v54, %v18404_v20 }
 0x241   : > { %v5796_v10 = vmax.f32 %v5780_v11, 0.0  ;;  %v3075_v53 = vshrl.u32 %v13392_v24, 16  ;;  %v3078_v59 = vshll.u32 %v13392_v24, 16  ;;  %v5893_v38 = vshrl.u32 %v13408_v3, 16  ;;  %v3231_v8 = vld [vmem:[#allocation2 + $0x48] sm:$0xf] }
 0x242   : > { %v5896_v49 = vshll.u32 %v13408_v3, 16  ;;  %v5916_v61 = vsel %vm18394_vm0, %v5908_v58, %v5915_v5  ;;  %v6038_v7 = vsel %vm18030_vm10, %v5917_v35, %v6037_v60  ;;  %v13397_v36 = vpack.c.bf16 %v2976_v0, %v2976_v0  ;;  %v6047_v11 = vld [vmem:[#allocation2 + $0xa8] sm:$0xf]  ;;  %v18681_v30 = vld [vmem:[#allocation2 + $0x30] sm:$0xf] }
 0x243   : > { %v13413_v40 = vpack.c.bf16 %v5796_v10, %v5796_v10  ;;  %6036 = vst [vmem:[#allocation2 + $0x94] sm:$0xf] %v5916_v61  ;;  %6039 = vst [vmem:[#allocation2 + $0x98] sm:$0x1] %v6038_v7  ;;  %v3077_v51 = vrot.slane %v3075_v53, 7  ;;  %v5895_v13 = vrot.slane %v5893_v38, 7  ;;  %v5762_v48 = vmul.f32 %v18335_v54, %v18424_v42 }
 0x244   : > { %v3118_v9 = vshrl.u32 %v13397_v36, 16  ;;  %v3121_v4 = vshll.u32 %v13397_v36, 16  ;;  %v2958_v34 = vadd.f32 %v18340_v27, %v2936_v50  ;;  %v5765_v3 = vmul.f32 %v18434_v37, %v18335_v54 }
 0x245   : > { %v5936_v58 = vshrl.u32 %v13413_v40, 16  ;;  %v5939_v18 = vshll.u32 %v13413_v40, 16  ;;  %v3080_v63 = vor.u32 %v3078_v59, %v3077_v51  ;;  %v3082_v15 = vrot.slane %v3077_v51, 4 }
 0x246   : > { %v5898_v25 = vor.u32 %v5896_v49, %v5895_v13  ;;  %v5900_v2 = vrot.slane %v5895_v13, 4  ;;  %v18522_v28 = vrot.slane %v3118_v9, 7  ;;  %v5778_v20 = vadd.f32 %v18340_v27, %v5762_v48 }
 0x247   : > { %v18524_v44 = vrot.slane %v5936_v58, 7  ;;  %v3081_v42 = vsel %vm18394_vm0, %v3073_v19, %v3080_v63  ;;  %v3215_v57 = vsel %vm18030_vm10, %v3082_v15, %v3214_v14  ;;  %v2974_v60 = vmax.f32 %v2958_v34, 0.0  ;;  %v3224_v58 = vld [vmem:[#allocation2 + $0x3c] sm:$0xf] }
 0x248   : > { %v5899_v12 = vsel %vm18394_vm0, %v5891_v1, %v5898_v25  ;;  %v6031_v16 = vsel %vm18030_vm10, %v5900_v2, %v6030_v45  ;;  %3213 = vst [vmem:[#allocation2 + $0x28] sm:$0xf] %v3081_v42  ;;  %3216 = vst [vmem:[#allocation2 + $0x2c] sm:$0x1] %v3215_v57  ;;  %v3123_v22 = vor.u32 %v3121_v4, %v18522_v28  ;;  %v3124_v31 = vrot.slane %v18522_v28, 4 }
 0x249   : > { %6029 = vst [vmem:[#allocation2 + $0x88] sm:$0xf] %v5899_v12  ;;  %6032 = vst [vmem:[#allocation2 + $0x8c] sm:$0x1] %v6031_v16  ;;  %v5941_v19 = vor.u32 %v5939_v18, %v18524_v44  ;;  %v5942_v46 = vrot.slane %v18524_v44, 4  ;;  %v5794_v24 = vmax.f32 %v5778_v20, 0.0  ;;  %v2939_v1 = vmul.f32 %v18412_v6, %v18335_v54 }
 0x24a   : > { %v3232_v5 = vsel %vm18374_vm15, %v3123_v22, %v3231_v8  ;;  %v2937_v0 = vmul.f32 %v18335_v54, %v18420_v32  ;;  %v5763_v10 = vmul.f32 %v18335_v54, %v18439_v62  ;;  %v13395_v53 = vpack.c.bf16 %v2974_v60, %v2974_v60 }
 0x24b   : > { %v6048_v35 = vsel %vm18374_vm15, %v5941_v19, %v6047_v11  ;;  %3233 = vst [vmem:[#allocation2 + $0x48] sm:$0xf] %v3232_v5  ;;  %v13411_v59 = vpack.c.bf16 %v5794_v24, %v5794_v24  ;;  %v2961_v6 = vadd.f32 %v18340_v27, %v2939_v1  ;;  %v5781_v37 = vadd.f32 %v18340_v27, %v5765_v3  ;;  %v3235_v24 = vld [vmem:[#allocation2 + $0x50] sm:$0x1] }
 0x24c   : > { %6049 = vst [vmem:[#allocation2 + $0xa8] sm:$0xf] %v6048_v35  ;;  %v2959_v38 = vadd.f32 %v18340_v27, %v2937_v0  ;;  %v5779_v49 = vadd.f32 %v18340_v27, %v5763_v10  ;;  %v2942_v61 = vmul.f32 %v18447_v52, %v18335_v54  ;;  %v5768_v32 = vmul.f32 %v18461_v39, %v18335_v54  ;;  %v6040_v52 = vld [vmem:[#allocation2 + $0x9c] sm:$0xf]  ;;  %v6051_v35 = vld [vmem:[#allocation2 + $0xb0] sm:$0x1] }
 0x24d   : > { %v3101_v7 = vshrl.u32 %v13395_v53, 16  ;;  %v3104_v62 = vshll.u32 %v13395_v53, 16  ;;  %v5919_v36 = vshrl.u32 %v13411_v59, 16  ;;  %v5922_v40 = vshll.u32 %v13411_v59, 16 }
 0x24e   : > { %v2977_v51 = vmax.f32 %v2961_v6, 0.0  ;;  %v5797_v14 = vmax.f32 %v5781_v37, 0.0  ;;  %v2975_v13 = vmax.f32 %v2959_v38, 0.0  ;;  %v5795_v50 = vmax.f32 %v5779_v49, 0.0 }
 0x24f   : > { %v3103_v48 = vrot.slane %v3101_v7, 7  ;;  %v18562_v45 = vrot.slane %v5919_v36, 7  ;;  %v2964_v9 = vadd.f32 %v18340_v27, %v2942_v61  ;;  %v5784_v4 = vadd.f32 %v18340_v27, %v5768_v32  ;;  %v3228_v61 = vld [vmem:[#allocation2 + $0x44] sm:$0x1] }
 0x250   : > { %v13398_v18 = vpack.c.bf16 %v2977_v51, %v2977_v51  ;;  %v13414_v63 = vpack.c.bf16 %v5797_v14, %v5797_v14  ;;  %v13396_v39 = vpack.c.bf16 %v2975_v13, %v2975_v13  ;;  %v13412_v15 = vpack.c.bf16 %v5795_v50, %v5795_v50  ;;  %v6044_v13 = vld [vmem:[#allocation2 + $0xa4] sm:$0x1] }
 0x251   : > { %v3106_v25 = vor.u32 %v3104_v62, %v3103_v48  ;;  %v3107_v2 = vrot.slane %v3103_v48, 4  ;;  %v5924_v34 = vor.u32 %v5922_v40, %v18562_v45  ;;  %v5925_v20 = vrot.slane %v18562_v45, 4 }
 0x252   : > { %v3126_v42 = vshrl.u32 %v13398_v18, 16  ;;  %v3129_v57 = vshll.u32 %v13398_v18, 16  ;;  %v5944_v12 = vshrl.u32 %v13414_v63, 16  ;;  %v5947_v16 = vshll.u32 %v13414_v63, 16 }
 0x253   : > { %v3225_v8 = vsel %vm18374_vm15, %v3106_v25, %v3224_v58  ;;  %v6041_v11 = vsel %vm18374_vm15, %v5924_v34, %v6040_v52  ;;  %v3109_v22 = vshrl.u32 %v13396_v39, 16  ;;  %v3112_v19 = vshll.u32 %v13396_v39, 16 }
 0x254   : > { %3226 = vst [vmem:[#allocation2 + $0x3c] sm:$0xf] %v3225_v8  ;;  %6042 = vst [vmem:[#allocation2 + $0x9c] sm:$0xf] %v6041_v11  ;;  %v3128_v60 = vrot.slane %v3126_v42, 7  ;;  %v5946_v1 = vrot.slane %v5944_v12, 7  ;;  %v2940_v59 = vmul.f32 %v18335_v54, %v18450_v33  ;;  %v5766_v52 = vmul.f32 %v18335_v54, %v18466_v41 }
 0x255   : > { %v5927_v3 = vshrl.u32 %v13412_v15, 16  ;;  %v5930_v5 = vshll.u32 %v13412_v15, 16  ;;  %v3111_v0 = vrot.slane %v3109_v22, 7  ;;  %v2980_v10 = vmax.f32 %v2964_v9, 0.0  ;;  %v6061_v8 = vld [vmem:[#allocation2 + $0xc0] sm:$0xf] }
 0x256   : > { %v5800_v53 = vmax.f32 %v5784_v4, 0.0  ;;  %v3131_v6 = vor.u32 %v3129_v57, %v3128_v60  ;;  %v3133_v37 = vrot.slane %v3128_v60, 4  ;;  %v5949_v38 = vor.u32 %v5947_v16, %v5946_v1 }
 0x257   : > { %v5951_v49 = vrot.slane %v5946_v1, 4  ;;  %v3114_v32 = vor.u32 %v3112_v19, %v3111_v0  ;;  %v3116_v7 = vrot.slane %v3111_v0, 4  ;;  %v5929_v62 = vrot.slane %v5927_v3, 7 }
 0x258   : > { %v13401_v36 = vpack.c.bf16 %v2980_v10, %v2980_v10  ;;  %v3132_v40 = vsel %vm18394_vm0, %v3124_v31, %v3131_v6  ;;  %v3236_v51 = vsel %vm18030_vm10, %v3133_v37, %v3235_v24  ;;  %v5950_v33 = vsel %vm18394_vm0, %v5942_v46, %v5949_v38  ;;  %v18621_v37 = vld [vmem:[#allocation2 + $0xc] sm:$0xf]  ;;  %v3238_v38 = vld [vmem:[#allocation2 + $0x54] sm:$0xf] }
 0x259   : > { %v6052_v14 = vsel %vm18030_vm10, %v5951_v49, %v6051_v35  ;;  %3234 = vst [vmem:[#allocation2 + $0x4c] sm:$0xf] %v3132_v40  ;;  %3237 = vst [vmem:[#allocation2 + $0x50] sm:$0x1] %v3236_v51  ;;  %v3115_v28 = vsel %vm18394_vm0, %v3107_v2, %v3114_v32  ;;  %v3229_v31 = vsel %vm18030_vm10, %v3116_v7, %v3228_v61  ;;  %v5934_v48 = vrot.slane %v5929_v62, 4 }
 0x25a   : > { %6050 = vst [vmem:[#allocation2 + $0xac] sm:$0xf] %v5950_v33  ;;  %6053 = vst [vmem:[#allocation2 + $0xb0] sm:$0x1] %v6052_v14  ;;  %v5932_v50 = vor.u32 %v5930_v5, %v5929_v62  ;;  %v3152_v44 = vshrl.u32 %v13401_v36, 16  ;;  %v3155_v46 = vshll.u32 %v13401_v36, 16  ;;  %v13417_v45 = vpack.c.bf16 %v5800_v53, %v5800_v53 }
 0x25b   : > { %3227 = vst [vmem:[#allocation2 + $0x40] sm:$0xf] %v3115_v28  ;;  %3230 = vst [vmem:[#allocation2 + $0x44] sm:$0x1] %v3229_v31  ;;  %v2962_v9 = vadd.f32 %v18340_v27, %v2940_v59  ;;  %v6045_v58 = vsel %vm18030_vm10, %v5934_v48, %v6044_v13  ;;  %v2943_v18 = vmul.f32 %v18459_v47, %v18335_v54  ;;  %v3245_v2 = vld [vmem:[#allocation2 + $0x60] sm:$0xf] }
 0x25c   : > { %v5933_v4 = vsel %vm18394_vm0, %v5925_v20, %v5932_v50  ;;  %6046 = vst [vmem:[#allocation2 + $0xa4] sm:$0x1] %v6045_v58  ;;  %v18599_v63 = vrot.slane %v3152_v44, 7  ;;  %v5970_v39 = vshrl.u32 %v13417_v45, 16  ;;  %v5973_v15 = vshll.u32 %v13417_v45, 16 }
 0x25d   : > { %6043 = vst [vmem:[#allocation2 + $0xa0] sm:$0xf] %v5933_v4  ;;  %v2978_v25 = vmax.f32 %v2962_v9, 0.0  ;;  %v5782_v34 = vadd.f32 %v18340_v27, %v5766_v52  ;;  %v2965_v20 = vadd.f32 %v18340_v27, %v2943_v18  ;;  %v5769_v42 = vmul.f32 %v18468_v17, %v18335_v54  ;;  %v6054_v40 = vld [vmem:[#allocation2 + $0xb4] sm:$0xf] }
 0x25e   : > { %v2941_v41 = vmul.f32 %v18335_v54, %v18463_v56  ;;  %v3157_v47 = vor.u32 %v3155_v46, %v18599_v63  ;;  %v3158_v57 = vrot.slane %v18599_v63, 4  ;;  %v18609_v12 = vrot.slane %v5970_v39, 7  ;;  %v3249_v51 = vld [vmem:[#allocation2 + $0x68] sm:$0x1]  ;;  %v18631_v39 = vld [vmem:[#allocation2 + $0x10] sm:$0xf] }
 0x25f   : > { %v13399_v16 = vpack.c.bf16 %v2978_v25, %v2978_v25  ;;  %v5798_v11 = vmax.f32 %v5782_v34, 0.0  ;;  %v2981_v22 = vmax.f32 %v2965_v20, 0.0  ;;  %v5785_v19 = vadd.f32 %v18340_v27, %v5769_v42  ;;  %v6065_v58 = vld [vmem:[#allocation2 + $0xc8] sm:$0x1]  ;;  %v3242_v34 = vld [vmem:[#allocation2 + $0x5c] sm:$0x1] }
 0x260   : > { %v2963_v60 = vadd.f32 %v18340_v27, %v2941_v41  ;;  %v3246_v17 = vsel %vm18374_vm15, %v3157_v47, %v3245_v2  ;;  %v5975_v24 = vor.u32 %v5973_v15, %v18609_v12  ;;  %v5976_v56 = vrot.slane %v18609_v12, 4 }
 0x261   : > { %v3135_v1 = vshrl.u32 %v13399_v16, 16  ;;  %3247 = vst [vmem:[#allocation2 + $0x60] sm:$0xf] %v3246_v17  ;;  %v3138_v3 = vshll.u32 %v13399_v16, 16  ;;  %v13415_v5 = vpack.c.bf16 %v5798_v11, %v5798_v11  ;;  %v13402_v35 = vpack.c.bf16 %v2981_v22, %v2981_v22  ;;  %v18639_v16 = vld [vmem:[#allocation2 + $0x18] sm:$0xf] }
 0x262   : > { %v5801_v0 = vmax.f32 %v5785_v19, 0.0  ;;  %v6062_v10 = vsel %vm18374_vm15, %v5975_v24, %v6061_v8  ;;  %v2979_v59 = vmax.f32 %v2963_v60, 0.0  ;;  %v5767_v6 = vmul.f32 %v18335_v54, %v18476_v23 }
 0x263   : > { %v3137_v53 = vrot.slane %v3135_v1, 7  ;;  %6063 = vst [vmem:[#allocation2 + $0xc0] sm:$0xf] %v6062_v10  ;;  %v5953_v49 = vshrl.u32 %v13415_v5, 16  ;;  %v5956_v61 = vshll.u32 %v13415_v5, 16  ;;  %v3160_v32 = vshrl.u32 %v13402_v35, 16 }
 0x264   : > { %v3163_v7 = vshll.u32 %v13402_v35, 16  ;;  %v13418_v33 = vpack.c.bf16 %v5801_v0, %v5801_v0  ;;  %v13400_v14 = vpack.c.bf16 %v2979_v59, %v2979_v59  ;;  %v5783_v31 = vadd.f32 %v18340_v27, %v5767_v6  ;;  %v18654_v1 = vld [vmem:[#allocation2 + $0x1c] sm:$0xf]  ;;  %v18657_v59 = vld [vmem:[#allocation2 + $0x20] sm:$0x1] }
 0x265   : > { %v3140_v62 = vor.u32 %v3138_v3, %v3137_v53  ;;  %v3141_v36 = vrot.slane %v3137_v53, 4  ;;  %v18623_v13 = vrot.slane %v5953_v49, 7  ;;  %v3162_v28 = vrot.slane %v3160_v32, 7 }
 0x266   : > { %v6135_v54 = vshrl.u32 %v18621_v37, 16  ;;  %v5978_v50 = vshrl.u32 %v13418_v33, 16  ;;  %v5981_v48 = vshll.u32 %v13418_v33, 16  ;;  %v3143_v44 = vshrl.u32 %v13400_v14, 16 }
 0x267   : > { %v3239_v23 = vsel %vm18374_vm15, %v3140_v62, %v3238_v38  ;;  %v5958_v46 = vor.u32 %v5956_v61, %v18623_v13  ;;  %v5959_v45 = vrot.slane %v18623_v13, 4  ;;  %v3165_v9 = vor.u32 %v3163_v7, %v3162_v28  ;;  %v18663_v62 = vld [vmem:[#allocation2 + $0x24] sm:$0xf] }
 0x268   : > { %3240 = vst [vmem:[#allocation2 + $0x54] sm:$0xf] %v3239_v23  ;;  %v3167_v4 = vrot.slane %v3162_v28, 4  ;;  %v5980_v52 = vrot.slane %v5978_v50, 7  ;;  %v3145_v18 = vrot.slane %v3143_v44, 7  ;;  %v3146_v63 = vshll.u32 %v13400_v14, 16 }
 0x269   : > { %v5799_v27 = vmax.f32 %v5783_v31, 0.0  ;;  %v6055_v15 = vsel %vm18374_vm15, %v5958_v46, %v6054_v40  ;;  %v3166_v25 = vsel %vm18394_vm0, %v3158_v57, %v3165_v9  ;;  %v6137_v20 = vrot.slane %v6135_v54, 4  ;;  %v18666_v46 = vld [vmem:[#allocation2 + $0x28] sm:$0xf] }
 0x26a   : > { %v3250_v2 = vsel %vm18030_vm10, %v3167_v4, %v3249_v51  ;;  %6056 = vst [vmem:[#allocation2 + $0xb4] sm:$0xf] %v6055_v15  ;;  %3248 = vst [vmem:[#allocation2 + $0x64] sm:$0xf] %v3166_v25  ;;  %v5983_v42 = vor.u32 %v5981_v48, %v5980_v52  ;;  %v5985_v41 = vrot.slane %v5980_v52, 4  ;;  %v3148_v47 = vor.u32 %v3146_v63, %v3145_v18 }
 0x26b   : > { %3251 = vst [vmem:[#allocation2 + $0x68] sm:$0x1] %v3250_v2  ;;  %v3150_v12 = vrot.slane %v3145_v18, 4  ;;  %v13416_v8 = vpack.c.bf16 %v5799_v27, %v5799_v27  ;;  %v6138_v11 = vshll.u32 %v18621_v37, 16  ;;  %v6144_v57 = vshll.u32 %v18631_v39, 16  ;;  %v15515_v2 = vld [vmem:[%s20553_s4 + $0x8] sm:$0xff]  }
 0x26c   : > { %v6148_v22 = vshrl.u32 %v18631_v39, 16  ;;  %v5984_v19 = vsel %vm18394_vm0, %v5976_v56, %v5983_v42  ;;  %v6066_v60 = vsel %vm18030_vm10, %v5985_v41, %v6065_v58  ;;  %v3149_v17 = vsel %vm18394_vm0, %v3141_v36, %v3148_v47  ;;  %v6058_v56 = vld [vmem:[#allocation2 + $0xbc] sm:$0x1]  ;;  %v18676_v52 = vld [vmem:[#allocation2 + $0x2c] sm:$0x1] }
 0x26d   : > { %v3243_v24 = vsel %vm18030_vm10, %v3150_v12, %v3242_v34  ;;  %6064 = vst [vmem:[#allocation2 + $0xc4] sm:$0xf] %v5984_v19  ;;  %6067 = vst [vmem:[#allocation2 + $0xc8] sm:$0x1] %v6066_v60  ;;  %v5961_v3 = vshrl.u32 %v13416_v8, 16  ;;  %v5964_v5 = vshll.u32 %v13416_v8, 16 }
 0x26e   : > { %3241 = vst [vmem:[#allocation2 + $0x58] sm:$0xf] %v3149_v17  ;;  %3244 = vst [vmem:[#allocation2 + $0x5c] sm:$0x1] %v3243_v24  ;;  %v6140_v35 = vrot.slane %v6138_v11, 5  ;;  %v6146_v0 = vrot.slane %v6144_v57, 5 }
 0x26f   : > { %v6150_v10 = vrot.slane %v6148_v22, 4  ;;  %v6154_v53 = vshll.u32 %v18641_v43, 16  ;;  %v6159_v6 = vshrl.u32 %v18639_v16, 16  ;;  %v6162_v38 = vshll.u32 %v18639_v16, 16  ;;  %v18694_v22 = vld [vmem:[#allocation2 + $0x38] sm:$0x1] }
 0x270   : > { %v5963_v49 = vrot.slane %v5961_v3, 7  ;;  %v6141_v61 = vor.u32 %v6140_v35, %v6137_v20  ;;  %v6168_v32 = vshll.u32 %v18654_v1, 16  ;;  %v6172_v7 = vshrl.u32 %v18654_v1, 16  ;;  %v15694_v24 = vld [vmem:[%s20553_s4] sm:$0xff]   ;;  %v15517_v35 = vld [vmem:[%s20553_s4 + $0x10] sm:$0xff]  }
 0x271   : > { %v6151_v36 = vor.u32 %v6150_v10, %v6146_v0  ;;  %v6156_v40 = vrot.slane %v6154_v53, 5  ;;  %v6161_v51 = vrot.slane %v6159_v6, 4  ;;  %v6164_v33 = vrot.slane %v6162_v38, 5 }
 0x272   : > { %v5966_v14 = vor.u32 %v5964_v5, %v5963_v49  ;;  %v5968_v28 = vrot.slane %v5963_v49, 4  ;;  %v6142_v31 = vrot.slane %v6141_v61, 4  ;;  %v6170_v54 = vrot.slane %v6168_v32, 5  ;;  %v18709_v49 = vld [vmem:[#allocation2 + $0x40] sm:$0xf] }
 0x273   : > { %v6152_v23 = vrot.slane %v6151_v36, 4  ;;  %v6165_v50 = vor.u32 %v6164_v33, %v6161_v51  ;;  %v6174_v48 = vrot.slane %v6172_v7, 4  ;;  %v6178_v44 = vshll.u32 %v18657_v59, 16 }
 0x274   : > { %v5967_v9 = vsel %vm18394_vm0, %v5959_v45, %v5966_v14  ;;  %v6059_v4 = vsel %vm18030_vm10, %v5968_v28, %v6058_v56  ;;  %v6147_v58 = vsel %vm15821_vm4, %v6142_v31, %v6146_v0  ;;  %v6183_v18 = vshrl.u32 %v18663_v62, 16  ;;  %v18683_v45 = vld [vmem:[#allocation2 + $0x34] sm:$0xf]  ;;  %v18707_v56 = vld [vmem:[#allocation2 + $0x3c] sm:$0xf] }
 0x275   : > { %6057 = vst [vmem:[#allocation2 + $0xb8] sm:$0xf] %v5967_v9  ;;  %6060 = vst [vmem:[#allocation2 + $0xbc] sm:$0x1] %v6059_v4  ;;  %v6157_v63 = vsel %vm15821_vm4, %v6152_v23, %v6156_v40  ;;  %v6166_v27 = vrot.slane %v6165_v50, 4  ;;  %v6175_v13 = vor.u32 %v6174_v48, %v6170_v54  ;;  %v6180_v15 = vrot.slane %v6178_v44, 5 }
 0x276   : > { %v12759_v25 = vcombine.low %v6147_v58, %v6157_v63  ;;  %v6185_v34 = vrot.slane %v6183_v18, 4  ;;  %v6186_v20 = vshll.u32 %v18663_v62, 16  ;;  %v6192_v42 = vshll.u32 %v18666_v46, 16  ;;  %v18715_v28 = vld [vmem:[#allocation2 + $0x48] sm:$0xf]  ;;  %v15519_v4 = vld [vmem:[%s20553_s4 + $0x18] sm:$0xff]  }
 0x277   : > { %v6171_v41 = vsel %vm15821_vm4, %v6166_v27, %v6170_v54  ;;  %v6176_v47 = vrot.slane %v6175_v13, 4  ;;  %v6196_v12 = vshrl.u32 %v18666_v46, 16  ;;  %v6202_v8 = vshll.u32 %v18676_v52, 16  ;;  %v18717_v50 = vld [vmem:[#allocation2 + $0x44] sm:$0x1] }
 0x278   : > { %14337 = vmatmul.mubr.bf16.vlgmr.msra.gmra.mrb[16].mxu0 %v12759_v25  ;;  %v6188_v11 = vrot.slane %v6186_v20, 5  ;;  %v6194_v57 = vrot.slane %v6192_v42, 5  ;;  %v6207_v19 = vshrl.u32 %v18681_v30, 16  ;;  %v6210_v60 = vshll.u32 %v18681_v30, 16  ;;  %v18728_v25 = vld [vmem:[#allocation2 + $0x4c] sm:$0xf] }
 0x279   : > { %v6181_v17 = vsel %vm15821_vm4, %v6176_v47, %v6180_v15  ;;  %14353 = vmatpush3.bf16.msra.mxu0 %v15694_v24  ;;  %v6198_v3 = vrot.slane %v6196_v12, 4  ;;  %v6204_v5 = vrot.slane %v6202_v8, 5  ;;  %v6216_v0 = vshll.u32 %v18683_v45, 16  ;;  %v18736_v8 = vld [vmem:[#allocation2 + $0x50] sm:$0x1] }
 0x27a   : > { %v12760_v10 = vcombine.low %v6171_v41, %v6181_v17  ;;  %14354 = vmatprep.subr.bf16.mxu0 %v15515_v2  ;;  %v6189_v53 = vor.u32 %v6188_v11, %v6185_v34  ;;  %v6209_v6 = vrot.slane %v6207_v19, 4  ;;  %v6212_v38 = vrot.slane %v6210_v60, 5  ;;  %v15521_v41 = vld [vmem:[%s20553_s4 + $0x20] sm:$0xff]  }
 0x27b   : > { %v6199_v61 = vor.u32 %v6198_v3, %v6194_v57  ;;  %v6218_v32 = vrot.slane %v6216_v0, 5  ;;  %v6220_v7 = vshrl.u32 %v18683_v45, 16  ;;  %v6226_v36 = vshll.u32 %v18694_v22, 16  ;;  %v18742_v3 = vld [vmem:[#allocation2 + $0x60] sm:$0xf] }
 0x27c   : > { %14340 = vmatprep.mubr.bf16.mxu0 %v12760_v10  ;;  %v6190_v40 = vrot.slane %v6189_v53, 4  ;;  %v6213_v51 = vor.u32 %v6212_v38, %v6209_v6  ;;  %v6231_v33 = vshrl.u32 %v18707_v56, 16  ;;  %v6234_v14 = vshll.u32 %v18707_v56, 16  ;;  %v18746_v53 = vld [vmem:[#allocation2 + $0x64] sm:$0xf] }
 0x27d   : > { %14355 = vmatpush3.bf16.msra.mxu0 %v15515_v2  ;;  %v6200_v31 = vrot.slane %v6199_v61, 4  ;;  %v6222_v54 = vrot.slane %v6220_v7, 4  ;;  %v6228_v23 = vrot.slane %v6226_v36, 5  ;;  %v6240_v48 = vshll.u32 %v18709_v49, 16 }
 0x27e   : > { %v6195_v44 = vsel %vm15821_vm4, %v6190_v40, %v6194_v57  ;;  %14356 = vmatprep.subr.bf16.mxu0 %v15517_v35  ;;  %v6214_v9 = vrot.slane %v6213_v51, 4  ;;  %v6233_v58 = vrot.slane %v6231_v33, 4  ;;  %v6236_v18 = vrot.slane %v6234_v14, 5  ;;  %v18752_v33 = vld [vmem:[#allocation2 + $0x54] sm:$0xf] }
 0x27f   : > { %v6205_v63 = vsel %vm15821_vm4, %v6200_v31, %v6204_v5  ;;  %v6223_v27 = vor.u32 %v6222_v54, %v6218_v32  ;;  %v6242_v13 = vrot.slane %v6240_v48, 5  ;;  %v6244_v15 = vshrl.u32 %v18709_v49, 16  ;;  %v15523_v31 = vld [vmem:[%s20553_s4 + $0x28] sm:$0xff]  }
 0x280   : > { %v12761_v2 = vcombine.low %v6195_v44, %v6205_v63  ;;  %v6219_v34 = vsel %vm15821_vm4, %v6214_v9, %v6218_v32  ;;  %v6237_v20 = vor.u32 %v6236_v18, %v6233_v58  ;;  %v6250_v42 = vshll.u32 %v18717_v50, 16  ;;  %v18757_v54 = vld [vmem:[#allocation2 + $0x68] sm:$0x1]  ;;  %v18764_v63 = vld [vmem:[#allocation2 + $0x58] sm:$0xf] }
 0x281   : > { %v6224_v47 = vrot.slane %v6223_v27, 4  ;;  %14357 = vmatpush3.bf16.msra.mxu0 %v15517_v35  ;;  %v6246_v12 = vrot.slane %v6244_v15, 4  ;;  %v6255_v11 = vshrl.u32 %v18715_v28, 16  ;;  %v6258_v57 = vshll.u32 %v18715_v28, 16 }
 0x282   : > { %14341 = vmatmul.mubr.bf16.gmra.mrb[20].mxu0 %v12761_v2  ;;  %14358 = vmatprep.subr.bf16.mxu0 %v15519_v4  ;;  %v6238_v19 = vrot.slane %v6237_v20, 4  ;;  %v6252_v60 = vrot.slane %v6250_v42, 5  ;;  %v6264_v17 = vshll.u32 %v18728_v25, 16  ;;  %v6268_v24 = vshrl.u32 %v18728_v25, 16 }
 0x283   : > { %v6229_v5 = vsel %vm15821_vm4, %v6224_v47, %v6228_v23  ;;  %v6247_v35 = vor.u32 %v6246_v12, %v6242_v13  ;;  %v6257_v0 = vrot.slane %v6255_v11, 4  ;;  %v6260_v10 = vrot.slane %v6258_v57, 5 }
 0x284   : > { %v12762_v6 = vcombine.low %v6219_v34, %v6229_v5  ;;  %v6243_v38 = vsel %vm15821_vm4, %v6238_v19, %v6242_v13  ;;  %v6266_v61 = vrot.slane %v6264_v17, 5  ;;  %v6270_v32 = vrot.slane %v6268_v24, 4  ;;  %v18779_v5 = vld [vmem:[#allocation2 + $0x5c] sm:$0x1] }
 0x285   : > { %14359 = vmatpush3.bf16.msra.mxu0 %v15519_v4  ;;  %v6248_v7 = vrot.slane %v6247_v35, 4  ;;  %v6261_v36 = vor.u32 %v6260_v10, %v6257_v0  ;;  %v6274_v40 = vshll.u32 %v18736_v8, 16  ;;  %v9099_v51 = vshrl.u32 %v18742_v3, 16  ;;  %v18781_v0 = vld [vmem:[#allocation2 + $0x70] sm:$0xf] }
 0x286   : > { %14344 = vmatprep.mubr.bf16.mxu0 %v12762_v6  ;;  %14360 = vmatprep.subr.bf16.mxu0 %v15521_v41  ;;  %v6271_v14 = vor.u32 %v6270_v32, %v6266_v61  ;;  %v9102_v23 = vshll.u32 %v18742_v3, 16  ;;  %v9108_v48 = vshll.u32 %v18746_v53, 16  ;;  %v9112_v44 = vshrl.u32 %v18746_v53, 16 }
 0x287   : > { %v6253_v9 = vsel %vm15821_vm4, %v6248_v7, %v6252_v60  ;;  %v6262_v4 = vrot.slane %v6261_v36, 4  ;;  %v6276_v58 = vrot.slane %v6274_v40, 5  ;;  %v9101_v18 = vrot.slane %v9099_v51, 4  ;;  %v15525_v60 = vld [vmem:[%s20553_s4 + $0x30] sm:$0xff]   ;;  %v18786_v51 = vld [vmem:[#allocation2 + $0x78] sm:$0xf] }
 0x288   : > { %v12763_v27 = vcombine.low %v6243_v38, %v6253_v9  ;;  %v6272_v13 = vrot.slane %v6271_v14, 4  ;;  %v9104_v15 = vrot.slane %v9102_v23, 5  ;;  %v9110_v2 = vrot.slane %v9108_v48, 5 }
 0x289   : > { %v6267_v34 = vsel %vm15821_vm4, %v6262_v4, %v6266_v61  ;;  %14361 = vmatpush3.bf16.msra.mxu0 %v15521_v41  ;;  %v9114_v20 = vrot.slane %v9112_v44, 4  ;;  %v9118_v42 = vshll.u32 %v18757_v54, 16  ;;  %v6279_v47 = vshrl.u32 %v18752_v33, 16  ;;  %v18777_v41 = vld [vmem:[#allocation2 + $0x6c] sm:$0xf] }
 0x28a   : > { %14345 = vmatmul.mubr.bf16.gmra.mrb[24].mxu0 %v12763_v27  ;;  %v6277_v12 = vsel %vm15821_vm4, %v6272_v13, %v6276_v58  ;;  %14362 = vmatprep.subr.bf16.mxu0 %v15523_v31  ;;  %v9105_v11 = vor.u32 %v9104_v15, %v9101_v18  ;;  %v6282_v57 = vshll.u32 %v18752_v33, 16  ;;  %v6288_v19 = vshll.u32 %v18764_v63, 16  ;;  %v18789_v44 = vld [vmem:[#allocation2 + $0x74] sm:$0x1]  ;;  %v18799_v13 = vld [vmem:[#allocation2 + $0x7c] sm:$0xf] }
 0x28b   : > { %v12764_v17 = vcombine.low %v6267_v34, %v6277_v12  ;;  %v9115_v24 = vor.u32 %v9114_v20, %v9110_v2  ;;  %v6281_v35 = vrot.slane %v6279_v47, 4  ;;  %v6292_v61 = vshrl.u32 %v18764_v63, 16 }
 0x28c   : > { %v9106_v10 = vrot.slane %v9105_v11, 4  ;;  %v6284_v6 = vrot.slane %v6282_v57, 5  ;;  %v6290_v38 = vrot.slane %v6288_v19, 5  ;;  %v9120_v7 = vrot.slane %v9118_v42, 5 }
 0x28d   : > { %14348 = vmatprep.mubr.bf16.mxu0 %v12764_v17  ;;  %14363 = vmatpush3.bf16.msra.mxu0 %v15523_v31  ;;  %v9116_v32 = vrot.slane %v9115_v24, 4  ;;  %v9123_v36 = vshrl.u32 %v18777_v41, 16  ;;  %v9126_v40 = vshll.u32 %v18777_v41, 16  ;;  %v6294_v23 = vrot.slane %v6292_v61, 4  ;;  %v15527_v31 = vld [vmem:[%s20553_s4 + $0x38] sm:$0xff]  }
 0x28e   : > { %v6285_v14 = vor.u32 %v6284_v6, %v6281_v35  ;;  %v6298_v48 = vshll.u32 %v18779_v5, 16  ;;  %14364 = vmatprep.subr.bf16.mxu0 %v15525_v60  ;;  %v9132_v9 = vshll.u32 %v18781_v0, 16  ;;  %v9111_v4 = vsel %vm15821_vm4, %v9106_v10, %v9110_v2  ;;  %v18807_v2 = vld [vmem:[%s20553_s4 + $0x80] sm:$0xff]  }
 0x28f   : > { %v9121_v58 = vsel %vm15821_vm4, %v9116_v32, %v9120_v7  ;;  %v9125_v18 = vrot.slane %v9123_v36, 4  ;;  %v9128_v27 = vrot.slane %v9126_v40, 5  ;;  %v6295_v20 = vor.u32 %v6294_v23, %v6290_v38  ;;  %v18809_v24 = vld [vmem:[#allocation2 + $0x80] sm:$0x1]  ;;  %v18818_v23 = vld [vmem:[#allocation2 + $0x84] sm:$0xf] }
 0x290   : > { %v13072_v15 = vcombine.low %v9111_v4, %v9121_v58  ;;  %v6286_v34 = vrot.slane %v6285_v14, 4  ;;  %v9134_v42 = vrot.slane %v9132_v9, 5  ;;  %v9136_v12 = vshrl.u32 %v18781_v0, 16 }
 0x291   : > { %v9129_v47 = vor.u32 %v9128_v27, %v9125_v18  ;;  %v9142_v11 = vshll.u32 %v18789_v44, 16  ;;  %14365 = vmatpush3.bf16.msra.mxu0 %v15525_v60  ;;  %v9147_v57 = vshrl.u32 %v18786_v51, 16  ;;  %v6296_v19 = vrot.slane %v6295_v20, 4  ;;  %v18821_v18 = vld [vmem:[#allocation2 + $0x88] sm:$0xf] }
 0x292   : > { %14624 = vmatprep.mubr.bf16.mxu1 %v13072_v15  ;;  %v6300_v17 = vrot.slane %v6298_v48, 5  ;;  %v9150_v35 = vshll.u32 %v18786_v51, 16  ;;  %v9156_v10 = vshll.u32 %v18799_v13, 16  ;;  %14366 = vmatprep.subr.bf16.mxu0 %v15527_v31  ;;  %v6291_v60 = vsel %vm15821_vm4, %v6286_v34, %v6290_v38  ;;  %v15695_v34 = vld [vmem:[#allocation2] sm:$0xf] }
 0x293   : > { %v9130_v6 = vrot.slane %v9129_v47, 4  ;;  %v9138_v61 = vrot.slane %v9136_v12, 4  ;;  %v9149_v32 = vrot.slane %v9147_v57, 4  ;;  %v9160_v14 = vshrl.u32 %v18799_v13, 16  ;;  %v18825_v20 = vld [vmem:[#allocation2 + $0x4] sm:$0xf] }
 0x294   : > { %v6301_v7 = vsel %vm15821_vm4, %v6296_v19, %v6300_v17  ;;  %v9152_v36 = vrot.slane %v9150_v35, 5  ;;  %v9158_v40 = vrot.slane %v9156_v10, 5  ;;  %v9144_v4 = vrot.slane %v9142_v11, 5 }
 0x295   : > { %v12765_v48 = vcombine.low %v6291_v60, %v6301_v7  ;;  %v9139_v9 = vor.u32 %v9138_v61, %v9134_v42  ;;  %v9166_v58 = vshll.u32 %v18809_v24, 16  ;;  %14367 = vmatpush3.bf16.msra.mxu0 %v15527_v31  ;;  %v9135_v38 = vsel %vm15821_vm4, %v9130_v6, %v9134_v42  ;;  %v18831_v31 = vld [vmem:[#allocation2 + $0x8c] sm:$0x1]  ;;  %v18837_v60 = vld [vmem:[#allocation2 + $0x90] sm:$0xf] }
 0x296   : > { %v9153_v27 = vor.u32 %v9152_v36, %v9149_v32  ;;  %v9162_v15 = vrot.slane %v9160_v14, 4  ;;  %v12774_v47 = vcombine.low %v15695_v34, %v18825_v20  ;;  %14384 = vmatprep.subr.bf16.mxu0 %v18807_v2  ;;  %v12775_v11 = vcombine.low %v18621_v37, %v18631_v39  ;;  %v18841_v7 = vld [vmem:[#allocation2 + $0x94] sm:$0xf] }
 0x297   : > { %14349 = vmatmul.mubr.bf16.gmra.mrb[28].mxu0 %v12765_v48  ;;  %v9140_v12 = vrot.slane %v9139_v9, 4  ;;  %v9171_v57 = vshrl.u32 %v18818_v23, 16  ;;  %v9174_v42 = vshll.u32 %v18818_v23, 16  ;;  %v9180_v35 = vshll.u32 %v18821_v18, 16  ;;  %v15526_v48 = vld [vmem:[%s20553_s4 + $0x8] sm:$0xff]  }
 0x298   : > { %v9154_v19 = vrot.slane %v9153_v27, 4  ;;  %v9163_v17 = vor.u32 %v9162_v15, %v9158_v40  ;;  %14368 = vmatprep.mubr.bf16.mxu0 %v12774_v47  ;;  %v9184_v10 = vshrl.u32 %v18821_v18, 16  ;;  %v9168_v61 = vrot.slane %v9166_v58, 5  ;;  %v18851_v58 = vld [vmem:[#allocation2 + $0x98] sm:$0x1] }
 0x299   : > { %v9145_v6 = vsel %vm15821_vm4, %v9140_v12, %v9144_v4  ;;  %v9173_v37 = vrot.slane %v9171_v57, 4  ;;  %v9176_v32 = vrot.slane %v9174_v42, 5  ;;  %v9182_v9 = vrot.slane %v9180_v35, 5 }
 0x29a   : > { %v13073_v36 = vcombine.low %v9135_v38, %v9145_v6  ;;  %v9164_v14 = vrot.slane %v9163_v17, 4  ;;  %v9190_v27 = vshll.u32 %v18831_v31, 16  ;;  %v9159_v15 = vsel %vm15821_vm4, %v9154_v19, %v9158_v40  ;;  %v15697_v40 = vld [vmem:[%s20553_s4] sm:$0xff]   ;;  %v15534_v6 = vld [vmem:[%s20553_s4 + $0x88] sm:$0xff]  }
 0x29b   : > { %v9177_v34 = vor.u32 %v9176_v32, %v9173_v37  ;;  %v9186_v47 = vrot.slane %v9184_v10, 4  ;;  %v12776_v4 = vcombine.low %v18639_v16, %v18654_v1  ;;  %v9195_v12 = vshrl.u32 %v18837_v60, 16  ;;  %v15529_v16 = vld [vmem:[%s20553_s4 + $0x10] sm:$0xff]  }
 0x29c   : > { %14625 = vmatmul.mubr.bf16.vlgmr.msra.gmra.mrb[16].mxu1 %v13073_v36  ;;  %v9169_v38 = vsel %vm15821_vm4, %v9164_v14, %v9168_v61  ;;  %v9198_v57 = vshll.u32 %v18837_v60, 16  ;;  %v9204_v42 = vshll.u32 %v18841_v7, 16  ;;  %v9208_v10 = vshrl.u32 %v18841_v7, 16  ;;  %v18868_v61 = vld [vmem:[#allocation2 + $0x9c] sm:$0xf] }
 0x29d   : > { %14641 = vmatpush3.bf16.msra.mxu1 %v15697_v40  ;;  %v13074_v19 = vcombine.low %v9159_v15, %v9169_v38  ;;  %v9178_v17 = vrot.slane %v9177_v34, 4  ;;  %v9187_v35 = vor.u32 %v9186_v47, %v9182_v9  ;;  %20852 = vst [vmem:[#allocation9_spill] sm:$0xff] %v18868_v61  ;;  %v9197_v37 = vrot.slane %v9195_v12, 4  ;;  %v18871_v15 = vld [vmem:[#allocation2 + $0xa0] sm:$0xf] }
 0x29e   : > { %14642 = vmatprep.subr.bf16.mxu1 %v15526_v48  ;;  %v9200_v32 = vrot.slane %v9198_v57, 5  ;;  %v9206_v36 = vrot.slane %v9204_v42, 5  ;;  %v9214_v14 = vshll.u32 %v18851_v58, 16  ;;  %v9192_v38 = vrot.slane %v9190_v27, 5  ;;  %v18876_v12 = vld [vmem:[#allocation2 + $0xa4] sm:$0x1] }
 0x29f   : > { %14628 = vmatprep.mubr.bf16.mxu1 %v13074_v19  ;;  %14369 = vmatmul.mubr.bf16.vlgmr.msra.gmra.mrb[16].mxu0 %v12775_v11  ;;  %v9183_v34 = vsel %vm15821_vm4, %v9178_v17, %v9182_v9  ;;  %v9188_v47 = vrot.slane %v9187_v35, 4  ;;  %v9210_v40 = vrot.slane %v9208_v10, 4  ;;  %20853 = vst [vmem:[#allocation10_spill] sm:$0xff] %v18876_v12  ;;  %v9219_v57 = vshrl.u32 %v18868_v61, 16  ;;  %v15537_v9 = vld [vmem:[%s20553_s4 + $0x90] sm:$0xff]  }
 0x2a0   : > { %14372 = vmatprep.mubr.bf16.mxu0 %v12776_v4  ;;  %14385 = vmatpush3.bf16.msra.mxu0 %v18807_v2  ;;  %v9201_v21 = vor.u32 %v9200_v32, %v9197_v37  ;;  %v9216_v26 = vrot.slane %v9214_v14, 5  ;;  %v9222_v42 = vshll.u32 %v18868_v61, 16  ;;  %v9228_v2 = vshll.u32 %v18871_v15, 16  ;;  %v18887_v4 = vld [vmem:[#allocation2 + $0xa8] sm:$0xf] }
 0x2a1   : > { %14643 = vmatpush3.bf16.msra.mxu1 %v15526_v48  ;;  %v9193_v11 = vsel %vm15821_vm4, %v9188_v47, %v9192_v38  ;;  %v9211_v19 = vor.u32 %v9210_v40, %v9206_v36  ;;  %14386 = vmatprep.subr.bf16.mxu0 %v15534_v6  ;;  %v9232_v27 = vshrl.u32 %v18871_v15, 16  ;;  %v15533_v48 = vld [vmem:[%s20553_s4 + $0x18] sm:$0xff]   ;;  %v9221_v10 = vrot.slane %v9219_v57, 4  ;;  %v18892_v32 = vld [vmem:[#allocation2 + $0xac] sm:$0xf] }
 0x2a2   : > { %14644 = vmatprep.subr.bf16.mxu1 %v15529_v16  ;;  %v13075_v17 = vcombine.low %v9183_v34, %v9193_v11  ;;  %v9202_v35 = vrot.slane %v9201_v21, 4  ;;  %v9224_v37 = vrot.slane %v9222_v42, 5  ;;  %v9230_v47 = vrot.slane %v9228_v2, 5  ;;  %v18895_v61 = vld [vmem:[#allocation2 + $0xb0] sm:$0x1]  ;;  %v15535_v2 = vld [vmem:[%s20553_s4 + $0x20] sm:$0xff]  }
 0x2a3   : > { %v9212_v14 = vrot.slane %v9211_v19, 4  ;;  %v9234_v38 = vrot.slane %v9232_v27, 4  ;;  %v9238_v40 = vshll.u32 %v18876_v12, 16  ;;  %20854 = vst [vmem:[#allocation16_spill] sm:$0xff] %v18895_v61  ;;  %v12777_v21 = vcombine.low %v18663_v62, %v18666_v46  ;;  %v18902_v42 = vld [vmem:[#allocation2 + $0xb4] sm:$0xf] }
 0x2a4   : > { %14629 = vmatmul.mubr.bf16.gmra.mrb[20].mxu1 %v13075_v17  ;;  %v9207_v34 = vsel %vm15821_vm4, %v9202_v35, %v9206_v36  ;;  %14387 = vmatpush3.bf16.msra.mxu0 %v15534_v6  ;;  %v9225_v11 = vor.u32 %v9224_v37, %v9221_v10  ;;  %v9243_v57 = vshrl.u32 %v18887_v4, 16  ;;  %v12778_v6 = vcombine.low %v18681_v30, %v18683_v45  ;;  %v18917_v12 = vld [vmem:[#allocation2 + $0xb8] sm:$0xf] }
 0x2a5   : > { %14645 = vmatpush3.bf16.msra.mxu1 %v15529_v16  ;;  %v9217_v19 = vsel %vm15821_vm4, %v9212_v14, %v9216_v26  ;;  %14388 = vmatprep.subr.bf16.mxu0 %v15537_v9  ;;  %v9235_v27 = vor.u32 %v9234_v38, %v9230_v47  ;;  %v9246_v62 = vshll.u32 %v18887_v4, 16  ;;  %v9252_v16 = vshll.u32 %v18892_v32, 16  ;;  %v15540_v26 = vld [vmem:[%s20553_s4 + $0x98] sm:$0xff]  }
 0x2a6   : > { %v13076_v36 = vcombine.low %v9207_v34, %v9217_v19  ;;  %14646 = vmatprep.subr.bf16.mxu1 %v15533_v48  ;;  %v9226_v17 = vrot.slane %v9225_v11, 4  ;;  %v9245_v35 = vrot.slane %v9243_v57, 4  ;;  %v9240_v37 = vrot.slane %v9238_v40, 5 }
 0x2a7   : > { %14373 = vmatmul.mubr.bf16.gmra.mrb[20].mxu0 %v12777_v21  ;;  %v9236_v10 = vrot.slane %v9235_v27, 4  ;;  %v9248_v14 = vrot.slane %v9246_v62, 5  ;;  %v9256_v38 = vshrl.u32 %v18892_v32, 16  ;;  %v9254_v30 = vrot.slane %v9252_v16, 5  ;;  %v15539_v27 = vld [vmem:[%s20553_s4 + $0x28] sm:$0xff]  }
 0x2a8   : > { %14632 = vmatprep.mubr.bf16.mxu1 %v13076_v36  ;;  %14376 = vmatprep.mubr.bf16.mxu0 %v12778_v6  ;;  %v9262_v34 = vshll.u32 %v18895_v61, 16  ;;  %v9267_v11 = vshrl.u32 %v18902_v42, 16  ;;  %v9231_v57 = vsel %vm15821_vm4, %v9226_v17, %v9230_v47  ;;  %v18928_v6 = vld [vmem:[#allocation2 + $0xbc] sm:$0x1]  ;;  %v9270_v36 = vshll.u32 %v18902_v42, 16 }
 0x2a9   : > { %14647 = vmatpush3.bf16.msra.mxu1 %v15533_v48  ;;  %v9241_v21 = vsel %vm15821_vm4, %v9236_v10, %v9240_v37  ;;  %14389 = vmatpush3.bf16.msra.mxu0 %v15537_v9  ;;  %v9249_v40 = vor.u32 %v9248_v14, %v9245_v35  ;;  %v9258_v19 = vrot.slane %v9256_v38, 4  ;;  %v15543_v48 = vld [vmem:[%s20553_s4 + $0xa0] sm:$0xff]   ;;  %v9276_v9 = vshll.u32 %v18917_v12, 16 }
 0x2aa   : > { %14648 = vmatprep.subr.bf16.mxu1 %v15535_v2  ;;  %v13077_v62 = vcombine.low %v9231_v57, %v9241_v21  ;;  %14390 = vmatprep.subr.bf16.mxu0 %v15540_v26  ;;  %v9269_v47 = vrot.slane %v9267_v11, 4  ;;  %v9280_v16 = vshrl.u32 %v18917_v12, 16  ;;  %v6689_v10 = vld [vmem:[#allocation2] sm:$0xe]  ;;  %v9272_v37 = vrot.slane %v9270_v36, 5 }
 0x2ab   : > { %v9250_v17 = vrot.slane %v9249_v40, 4  ;;  %v9259_v35 = vor.u32 %v9258_v19, %v9254_v30  ;;  %v9278_v14 = vrot.slane %v9276_v9, 5  ;;  %v9286_v38 = vshll.u32 %v18928_v6, 16  ;;  %v15541_v40 = vld [vmem:[%s20553_s4 + $0x30] sm:$0xff]   ;;  %v15547_v9 = vld [vmem:[%s20553_s4 + $0xa8] sm:$0xff]  }
 0x2ac   : > { %14633 = vmatmul.mubr.bf16.gmra.mrb[24].mxu1 %v13077_v62  ;;  %v9264_v21 = vrot.slane %v9262_v34, 5  ;;  %v12779_v11 = vcombine.low %v18707_v56, %v18709_v49  ;;  %v9282_v61 = vrot.slane %v9280_v16, 4  ;;  %v9273_v19 = vor.u32 %v9272_v37, %v9269_v47  ;;  %v6690_v37 = vld [vmem:[#allocation2 + $0xc] sm:$0xe] }
 0x2ad   : > { %14649 = vmatpush3.bf16.msra.mxu1 %v15535_v2  ;;  %v9260_v57 = vrot.slane %v9259_v35, 4  ;;  %14391 = vmatpush3.bf16.msra.mxu0 %v15540_v26  ;;  %v12780_v62 = vcombine.low %v18715_v28, %v18728_v25  ;;  %v13088_v2 = vcombine.low %v18742_v3, %v18746_v53  ;;  %v12790_v36 = vrot.slane %v6689_v10, 9  ;;  %v15698_v3 = vld [vmem:[#allocation2 + $0x8] sm:$0x1] }
 0x2ae   : > { %14650 = vmatprep.subr.bf16.mxu1 %v15539_v27  ;;  %14392 = vmatprep.subr.bf16.mxu0 %v15543_v48  ;;  %v9255_v26 = vsel %vm15821_vm4, %v9250_v17, %v9254_v30  ;;  %v9283_v34 = vor.u32 %v9282_v61, %v9278_v14  ;;  %v6715_v47 = vrot.slane %v18825_v20, 5  ;;  %v9274_v28 = vrot.slane %v9273_v19, 4 }
 0x2af   : > { %v9265_v56 = vsel %vm15821_vm4, %v9260_v57, %v9264_v21  ;;  %14377 = vmatmul.mubr.bf16.gmra.mrb[24].mxu0 %v12779_v11  ;;  %v9288_v16 = vrot.slane %v9286_v38, 5  ;;  %v6718_v10 = vrot.slane %v15698_v3, 5  ;;  %v6722_v57 = vrot.slane %v18631_v39, 5  ;;  %v15546_v38 = vld [vmem:[%s20553_s4 + $0x38] sm:$0xff]   ;;  %v6692_v11 = vld [vmem:[#allocation2 + $0x24] sm:$0xe] }
 0x2b0   : > { %v13078_v35 = vcombine.low %v9255_v26, %v9265_v56  ;;  %14380 = vmatprep.mubr.bf16.mxu0 %v12780_v62  ;;  %v9284_v30 = vrot.slane %v9283_v34, 4  ;;  %v6716_v17 = vsel %vm16150_vm7, %v12790_v36, %v6715_v47  ;;  %v6717_v61 = vrot.slane %v6715_v47, 4  ;;  %v6691_v21 = vld [vmem:[#allocation2 + $0x18] sm:$0xe]  ;;  %v15550_v26 = vld [vmem:[%s20553_s4 + $0xb0] sm:$0xff]  }
 0x2b1   : > { %14651 = vmatpush3.bf16.msra.mxu1 %v15539_v27  ;;  %14393 = vmatpush3.bf16.msra.mxu0 %v15543_v48  ;;  %v9279_v20 = vsel %vm15821_vm4, %v9274_v28, %v9278_v14  ;;  %v12781_v27 = vcombine.low %v18752_v33, %v18764_v63  ;;  %v13089_v48 = vcombine.low %v18777_v41, %v18781_v0  ;;  %v6724_v14 = vrot.slane %v6722_v57, 4  ;;  %v18974_v33 = vld [vmem:[%s20553_s4 + $0x80] sm:$0xff]   ;;  %v6693_v3 = vld [vmem:[#allocation2 + $0x30] sm:$0xe] }
 0x2b2   : > { %14636 = vmatprep.mubr.bf16.mxu1 %v13078_v35  ;;  %14652 = vmatprep.subr.bf16.mxu1 %v15541_v40  ;;  %v9289_v39 = vsel %vm15821_vm4, %v9284_v30, %v9288_v16  ;;  %v6719_v19 = vsel %vm16150_vm7, %v6717_v61, %v6718_v10  ;;  %v6725_v62 = vrot.slane %v18641_v43, 5  ;;  %v12791_v34 = vrot.slane %v6690_v37, 9  ;;  %v15554_v10 = vld [vmem:[%s20553_s4 + $0xb8] sm:$0xff]  }
 0x2b3   : > { %14394 = vmatprep.subr.bf16.mxu0 %v15547_v9  ;;  %v13079_v36 = vcombine.low %v9279_v20, %v9289_v39  ;;  %v12814_v56 = vcombine.low %v6716_v17, %v6719_v19  ;;  %v6729_v47 = vrot.slane %v18654_v1, 5  ;;  %v13090_v35 = vcombine.low %v18786_v51, %v18799_v13  ;;  %v6694_v30 = vld [vmem:[#allocation2 + $0x3c] sm:$0xe] }
 0x2b4   : > { %v18984_v43 = vsel %vm16150_vm7, %v6724_v14, %v6725_v62  ;;  %v12792_v28 = vrot.slane %v6691_v21, 9  ;;  %v6736_v16 = vrot.slane %v18666_v46, 5  ;;  %v18992_v1 = vsel %vm16150_vm7, %v12791_v34, %v6722_v57  ;;  %v6695_v21 = vld [vmem:[#allocation2 + $0x48] sm:$0xe] }
 0x2b5   : > { %14653 = vmatpush3.bf16.msra.mxu1 %v15541_v40  ;;  %14395 = vmatpush3.bf16.msra.mxu0 %v15547_v9  ;;  %v6731_v40 = vrot.slane %v6729_v47, 4  ;;  %v6732_v9 = vrot.slane %v18657_v59, 5  ;;  %v12793_v37 = vrot.slane %v6692_v11, 9  ;;  %v12815_v46 = vcombine.low %v18992_v1, %v18984_v43  ;;  %v15553_v43 = vld [vmem:[%s20553_s4 + $0x88] sm:$0xff]   ;;  %v6696_v1 = vld [vmem:[#allocation2 + $0x54] sm:$0xe] }
 0x2b6   : > { %14637 = vmatmul.mubr.bf16.gmra.mrb[28].mxu1 %v13079_v36  ;;  %14654 = vmatprep.subr.bf16.mxu1 %v15546_v38  ;;  %v13091_v17 = vcombine.low %v18818_v23, %v18821_v18  ;;  %v6738_v61 = vrot.slane %v6736_v16, 4  ;;  %v6739_v20 = vrot.slane %v18676_v52, 5  ;;  %v6730_v57 = vsel %vm16150_vm7, %v12792_v28, %v6729_v47  ;;  %v15556_v52 = vld [vmem:[%s20553_s4 + $0xc0] sm:$0xff]  }
 0x2b7   : > { %14656 = vmatprep.mubr.bf16.mxu1 %v13088_v2  ;;  %14381 = vmatmul.mubr.bf16.gmra.mrb[28].mxu0 %v12781_v27  ;;  %v6733_v59 = vsel %vm16150_vm7, %v6731_v40, %v6732_v9  ;;  %v19006_v2 = vsel %vm16150_vm7, %v12793_v37, %v6736_v16  ;;  %v6743_v27 = vrot.slane %v18683_v45, 5  ;;  %v12794_v39 = vrot.slane %v6693_v3, 9 }
 0x2b8   : > { %14396 = vmatprep.subr.bf16.mxu0 %v15550_v26  ;;  %14400 = vmatprep.mubr.bf16.mxu0 %v12814_v56  ;;  %v19014_v11 = vsel %vm16150_vm7, %v6738_v61, %v6739_v20  ;;  %v12795_v19 = vrot.slane %v6694_v30, 9  ;;  %v6750_v14 = vrot.slane %v18709_v49, 5  ;;  %v12816_v62 = vcombine.low %v6730_v57, %v6733_v59  ;;  %v9677_v30 = vld [vmem:[#allocation2 + $0x6c] sm:$0xe]  ;;  %v15555_v59 = vld [vmem:[%s20553_s4 + $0x90] sm:$0xff]  }
 0x2b9   : > { %14655 = vmatpush3.bf16.msra.mxu1 %v15546_v38  ;;  %14397 = vmatpush3.bf16.msra.mxu0 %v15550_v26  ;;  %v12817_v45 = vcombine.low %v19006_v2, %v19014_v11  ;;  %v6745_v38 = vrot.slane %v6743_v27, 4  ;;  %v6746_v36 = vrot.slane %v18694_v22, 5  ;;  %v9676_v26 = vld [vmem:[#allocation2 + $0x60] sm:$0xe]  ;;  %v19023_v56 = vsel %vm16150_vm7, %v12794_v39, %v6743_v27  ;;  %v9678_v27 = vld [vmem:[#allocation2 + $0x78] sm:$0xe] }
 0x2ba   : > { %14672 = vmatprep.subr.bf16.mxu1 %v18974_v33  ;;  %14398 = vmatprep.subr.bf16.mxu0 %v15554_v10  ;;  %v19027_v34 = vsel %vm16150_vm7, %v12795_v19, %v6750_v14  ;;  %v6752_v49 = vrot.slane %v6750_v14, 4  ;;  %v6753_v47 = vrot.slane %v18717_v50, 5  ;;  %v12796_v22 = vrot.slane %v6695_v21, 9  ;;  %v9679_v19 = vld [vmem:[#allocation2 + $0x84] sm:$0xe]  ;;  %v20855_v2 = vld [vmem:[#allocation10_spill] sm:$0xff] }
 0x2bb   : > { %v19035_v28 = vsel %vm16150_vm7, %v6745_v38, %v6746_v36  ;;  %v6757_v16 = vrot.slane %v18728_v25, 5  ;;  %v6760_v3 = vrot.slane %v18736_v8, 5  ;;  %v13104_v9 = vrot.slane %v9676_v26, 9  ;;  %v15560_v25 = vld [vmem:[%s20553_s4 + $0xc8] sm:$0xff]  }
 0x2bc   : > { %v12818_v40 = vcombine.low %v19023_v56, %v19035_v28  ;;  %v19043_v50 = vsel %vm16150_vm7, %v6752_v49, %v6753_v47  ;;  %v9702_v37 = vrot.slane %v18746_v53, 5  ;;  %v9705_v53 = vrot.slane %v18757_v54, 5  ;;  %v9680_v49 = vld [vmem:[#allocation2 + $0x90] sm:$0xe]  ;;  %v15559_v47 = vld [vmem:[%s20553_s4 + $0x98] sm:$0xff]  }
 0x2bd   : > { %14399 = vmatpush3.bf16.msra.mxu0 %v15554_v10  ;;  %v12819_v8 = vcombine.low %v19027_v34, %v19043_v50  ;;  %v19056_v10 = vsel %vm16150_vm7, %v12796_v22, %v6757_v16  ;;  %v6759_v61 = vrot.slane %v6757_v16, 4  ;;  %v12797_v20 = vrot.slane %v6696_v1, 9  ;;  %v9681_v1 = vld [vmem:[#allocation2 + $0x9c] sm:$0xe]  ;;  %v9683_v28 = vld [vmem:[#allocation2 + $0xb4] sm:$0xe] }
 0x2be   : > { %14657 = vmatmul.mubr.bf16.vlgmr.msra.gmra.mrb[16].mxu1 %v13089_v48  ;;  %14416 = vmatprep.subr.bf16.mxu0 %v15556_v52  ;;  %v19065_v41 = vsel %vm16150_vm7, %v13104_v9, %v9702_v37  ;;  %v9704_v48 = vrot.slane %v9702_v37, 4  ;;  %v6764_v57 = vrot.slane %v18764_v63, 5  ;;  %v6767_v51 = vrot.slane %v18779_v5, 5  ;;  %v15562_v5 = vld [vmem:[%s20553_s4 + $0xd0] sm:$0xff]   ;;  %v15570_v50 = vld [vmem:[%s20553_s4 + $0xb8] sm:$0xff]  }
 0x2bf   : > { %14673 = vmatpush3.bf16.msra.mxu1 %v18974_v33  ;;  %14660 = vmatprep.mubr.bf16.mxu1 %v13090_v35  ;;  %v19073_v54 = vsel %vm16150_vm7, %v6759_v61, %v6760_v3  ;;  %v13105_v33 = vrot.slane %v9677_v30, 9  ;;  %v9709_v35 = vrot.slane %v18781_v0, 5  ;;  %v9712_v39 = vrot.slane %v18789_v44, 5  ;;  %v15566_v30 = vld [vmem:[%s20553_s4 + $0xd8] sm:$0xff]  }
 0x2c0   : > { %14674 = vmatprep.subr.bf16.mxu1 %v15553_v43  ;;  %14401 = vmatmul.mubr.bf16.vlgmr.msra.gmra.mrb[16].mxu0 %v12815_v46  ;;  %v12820_v63 = vcombine.low %v19056_v10, %v19073_v54  ;;  %v19081_v21 = vsel %vm16150_vm7, %v9704_v48, %v9705_v53  ;;  %v6766_v46 = vrot.slane %v6764_v57, 4  ;;  %v13106_v38 = vrot.slane %v9678_v27, 9  ;;  %v15561_v48 = vld [vmem:[%s20553_s4 + $0xa0] sm:$0xff]  }
 0x2c1   : > { %14404 = vmatprep.mubr.bf16.mxu0 %v12816_v62  ;;  %14417 = vmatpush3.bf16.msra.mxu0 %v15556_v52  ;;  %v13128_v0 = vcombine.low %v19065_v41, %v19081_v21  ;;  %v19091_v52 = vsel %vm16150_vm7, %v12797_v20, %v6764_v57  ;;  %v19095_v14 = vsel %vm16150_vm7, %v13105_v33, %v9709_v35  ;;  %v9711_v62 = vrot.slane %v9709_v35, 4  ;;  %v15579_v21 = vld [vmem:[%s20553_s4 + $0x100] sm:$0xff]  }
 0x2c2   : > { %14418 = vmatprep.subr.bf16.mxu0 %v15560_v25  ;;  %v19099_v44 = vsel %vm16150_vm7, %v6766_v46, %v6767_v51  ;;  %v9716_v36 = vrot.slane %v18799_v13, 5  ;;  %v9719_v26 = vrot.slane %v18809_v24, 5  ;;  %v13107_v16 = vrot.slane %v9679_v19, 9 }
 0x2c3   : > { %14675 = vmatpush3.bf16.msra.mxu1 %v15553_v43  ;;  %v12821_v22 = vcombine.low %v19091_v52, %v19099_v44  ;;  %v19110_v43 = vsel %vm16150_vm7, %v9711_v62, %v9712_v39  ;;  %v9723_v3 = vrot.slane %v18821_v18, 5  ;;  %v13092_v13 = vcombine.low %v18837_v60, %v18841_v7  ;;  %v20856_v39 = vld [vmem:[#allocation9_spill] sm:$0xff]  ;;  %v19246_v52 = vld [vmem:[#allocation2 + $0x14] sm:$0x1] }
 0x2c4   : > { %14676 = vmatprep.subr.bf16.mxu1 %v15555_v59  ;;  %v13129_v24 = vcombine.low %v19095_v14, %v19110_v43  ;;  %v9718_v9 = vrot.slane %v9716_v36, 4  ;;  %v9726_v37 = vrot.slane %v18831_v31, 5  ;;  %v19126_v61 = vsel %vm16150_vm7, %v13106_v38, %v9716_v36  ;;  %v19248_v44 = vld [vmem:[#allocation2 + $0x28] sm:$0xf] }
 0x2c5   : > { %14419 = vmatpush3.bf16.msra.mxu0 %v15560_v25  ;;  %v9725_v60 = vrot.slane %v9723_v3, 4  ;;  %v13108_v25 = vrot.slane %v9680_v49, 9  ;;  %v9730_v53 = vrot.slane %v18841_v7, 5  ;;  %v19135_v23 = vsel %vm16150_vm7, %v13107_v16, %v9723_v3  ;;  %v15573_v3 = vld [vmem:[%s20553_s4 + $0xf0] sm:$0xff]   ;;  %v15580_v14 = vld [vmem:[#allocation2 + $0x24] sm:$0xff]  }
 0x2c6   : > { %14661 = vmatmul.mubr.bf16.gmra.mrb[20].mxu1 %v13091_v17  ;;  %14420 = vmatprep.subr.bf16.mxu0 %v15562_v5  ;;  %v19131_v31 = vsel %vm16150_vm7, %v9718_v9, %v9719_v26  ;;  %v9733_v18 = vrot.slane %v18851_v58, 5  ;;  %v9737_v17 = vrot.slane %v18871_v15, 5  ;;  %v13109_v58 = vrot.slane %v9681_v1, 9  ;;  %v19214_v1 = vld [vmem:[#allocation2 + $0x10] sm:$0xf]  ;;  %v15576_v9 = vld [vmem:[%s20553_s4 + $0xf8] sm:$0xff]  }
 0x2c7   : > { %14677 = vmatpush3.bf16.msra.mxu1 %v15555_v59  ;;  %14664 = vmatprep.mubr.bf16.mxu1 %v13092_v13  ;;  %v13130_v7 = vcombine.low %v19126_v61, %v19131_v31  ;;  %v19149_v20 = vsel %vm16150_vm7, %v9725_v60, %v9726_v37  ;;  %v9732_v57 = vrot.slane %v9730_v53, 4  ;;  %v9740_v11 = vrot.slane %v20855_v2, 5  ;;  %v19216_v13 = vld [vmem:[#allocation2 + $0x1c] sm:$0xf] }
 0x2c8   : > { %14678 = vmatprep.subr.bf16.mxu1 %v15559_v47  ;;  %14405 = vmatmul.mubr.bf16.gmra.mrb[20].mxu0 %v12817_v45  ;;  %v13131_v59 = vcombine.low %v19135_v23, %v19149_v20  ;;  %v9739_v51 = vrot.slane %v9737_v17, 4  ;;  %v15568_v45 = vld [vmem:[%s20553_s4 + $0xe0] sm:$0xff]   ;;  %v19162_v33 = vsel %vm16150_vm7, %v13108_v25, %v9730_v53  ;;  %v19172_v35 = vsel %vm16150_vm7, %v13109_v58, %v9737_v17  ;;  %v19309_v23 = vld [vmem:[#allocation2 + $0x38] sm:$0x1] }
 0x2c9   : > { %14408 = vmatprep.mubr.bf16.mxu0 %v12818_v40  ;;  %14421 = vmatpush3.bf16.msra.mxu0 %v15562_v5  ;;  %v19166_v56 = vsel %vm16150_vm7, %v9732_v57, %v9733_v18  ;;  %v9751_v46 = vrot.slane %v18917_v12, 5  ;;  %v13093_v19 = vcombine.low %v20856_v39, %v18871_v15  ;;  %v15565_v5 = vld [vmem:[%s20553_s4 + $0xa8] sm:$0xff]   ;;  %v13094_v38 = vcombine.low %v18887_v4, %v18892_v32  ;;  %v7227_v57 = vld [vmem:[#allocation2 + $0x24] sm:$0xf] }
 0x2ca   : > { %14422 = vmatprep.subr.bf16.mxu0 %v15566_v30  ;;  %v13132_v40 = vcombine.low %v19162_v33, %v19166_v56  ;;  %v19176_v27 = vsel %vm16150_vm7, %v9739_v51, %v9740_v11  ;;  %v13111_v36 = vrot.slane %v9683_v28, 9  ;;  %v9754_v49 = vrot.slane %v18928_v6, 5  ;;  %v15571_v15 = vld [vmem:[%s20553_s4 + $0xe8] sm:$0xff]   ;;  %v15567_v6 = vld [vmem:[%s20553_s4 + $0xb0] sm:$0xff]  }
 0x2cb   : > { %14679 = vmatpush3.bf16.msra.mxu1 %v15559_v47  ;;  %v13133_v62 = vcombine.low %v19172_v35, %v19176_v27  ;;  %v9753_v26 = vrot.slane %v9751_v46, 4  ;;  %v13095_v34 = vcombine.low %v18902_v42, %v18917_v12  ;;  %v7255_v10 = vshll.u32 %v19214_v1, 16  ;;  %v15574_v42 = vld [vmem:[#allocation2 + $0xc] sm:$0xff]  }
 0x2cc   : > { %14680 = vmatprep.subr.bf16.mxu1 %v15561_v48  ;;  %v19194_v47 = vsel %vm16150_vm7, %v13111_v36, %v9751_v46  ;;  %v7259_v54 = vshrl.u32 %v19214_v1, 16  ;;  %v7279_v37 = vshll.u32 %v19216_v13, 16  ;;  %v7283_v12 = vshrl.u32 %v19216_v13, 16  ;;  %v19255_v46 = vld [vmem:[#allocation2 + $0x20] sm:$0x1] }
 0x2cd   : > { %14423 = vmatpush3.bf16.msra.mxu0 %v15566_v30  ;;  %v19198_v4 = vsel %vm16150_vm7, %v9753_v26, %v9754_v49  ;;  %v15572_v30 = vld [vmem:[%s20553_s4 + $0xc0] sm:$0xff]   ;;  %v19239_v17 = vrot.slane %v7255_v10, 5  ;;  %v7294_v39 = vshrl.u32 %v7227_v57, 16  ;;  %v7297_v36 = vshll.u32 %v7227_v57, 16  ;;  %v15585_v10 = vld [vmem:[%s20553_s4 + $0x110] sm:$0xff]  }
 0x2ce   : > { %14665 = vmatmul.mubr.bf16.gmra.mrb[24].mxu1 %v13093_v19  ;;  %14424 = vmatprep.subr.bf16.mxu0 %v15568_v45  ;;  %v13135_v16 = vcombine.low %v19194_v47, %v19198_v4  ;;  %v7261_v41 = vrot.slane %v7259_v54, 4  ;;  %v15578_v19 = vld [vmem:[#allocation2 + $0x18] sm:$0xff]   ;;  %v7303_v26 = vshll.u32 %v19248_v44, 16  ;;  %v7307_v49 = vshrl.u32 %v19248_v44, 16 }
 0x2cf   : > { %14681 = vmatpush3.bf16.msra.mxu1 %v15561_v48  ;;  %14668 = vmatprep.mubr.bf16.mxu1 %v13094_v38  ;;  %v7285_v48 = vrot.slane %v7283_v12, 4  ;;  %v7265_v43 = vshll.u32 %v19246_v52, 16  ;;  %v20857_v12 = vld [vmem:[#allocation16_spill] sm:$0xff]  ;;  %v7233_v57 = vld [vmem:[#allocation2 + $0x3c] sm:$0xf] }
 0x2d0   : > { %14682 = vmatprep.subr.bf16.mxu1 %v15565_v5  ;;  %14409 = vmatmul.mubr.bf16.gmra.mrb[24].mxu0 %v12819_v8  ;;  %v7221_v8 = vld [vmem:[#allocation2 + $0xc] sm:$0xf]  ;;  %v7262_v28 = vor.u32 %v7261_v41, %v19239_v17 }
 0x2d1   : > { %14412 = vmatprep.mubr.bf16.mxu0 %v12820_v63  ;;  %14425 = vmatpush3.bf16.msra.mxu0 %v15568_v45  ;;  %v7224_v63 = vld [vmem:[#allocation2 + $0x18] sm:$0xf]  ;;  %v7246_v60 = vshrl.u32 %v7221_v8, 16  ;;  %v7249_v25 = vshll.u32 %v7221_v8, 16  ;;  %v9744_v45 = vrot.slane %v18892_v32, 5  ;;  %v7296_v8 = vrot.slane %v7294_v39, 4 }
 0x2d2   : > { %14426 = vmatprep.subr.bf16.mxu0 %v15571_v15  ;;  %v7270_v53 = vshrl.u32 %v7224_v63, 16  ;;  %v7273_v18 = vshll.u32 %v7224_v63, 16  ;;  %v7263_v31 = vrot.slane %v7262_v28, 4  ;;  %v7299_v63 = vrot.slane %v7297_v36, 5  ;;  %v15586_v28 = vld [vmem:[#allocation2 + $0x3c] sm:$0xff]  }
 0x2d3   : > { %14683 = vmatpush3.bf16.msra.mxu1 %v15565_v5  ;;  %v7248_v58 = vrot.slane %v7246_v60, 4  ;;  %v7251_v51 = vrot.slane %v7249_v25, 5  ;;  %v15582_v5 = vld [vmem:[%s20553_s4 + $0x108] sm:$0xff]   ;;  %v9746_v61 = vrot.slane %v9744_v45, 4  ;;  %v19284_v60 = vld [vmem:[#allocation2 + $0x34] sm:$0xf] }
 0x2d4   : > { %14684 = vmatprep.subr.bf16.mxu1 %v15567_v6  ;;  %v7272_v2 = vrot.slane %v7270_v53, 4  ;;  %v7275_v11 = vrot.slane %v7273_v18, 5  ;;  %v15581_v18 = vld [vmem:[%s20553_s4 + $0xd8] sm:$0xff]   ;;  %v7327_v36 = vshll.u32 %v19284_v60, 16  ;;  %v15591_v32 = vld [vmem:[%s20553_s4 + $0x120] sm:$0xff]  }
 0x2d5   : > { %14427 = vmatpush3.bf16.msra.mxu0 %v15571_v15  ;;  %v9682_v15 = vld [vmem:[#allocation2 + $0xa8] sm:$0xe]  ;;  %v15588_v39 = vld [vmem:[%s20553_s4 + $0x118] sm:$0xff]  }
 0x2d6   : > { %14669 = vmatmul.mubr.bf16.gmra.mrb[28].mxu1 %v13095_v34  ;;  %14428 = vmatprep.subr.bf16.mxu0 %v15573_v3  ;;  %v7289_v34 = vshll.u32 %v19255_v46, 16 }
 0x2d7   : > { %14685 = vmatpush3.bf16.msra.mxu1 %v15567_v6  ;;  %14688 = vmatprep.mubr.bf16.mxu1 %v13128_v0  ;;  %v19244_v0 = vrot.slane %v7279_v37, 5  ;;  %v7252_v6 = vor.u32 %v7251_v51, %v7248_v58  ;;  %v7309_v37 = vrot.slane %v7307_v49, 4  ;;  %v13110_v58 = vrot.slane %v9682_v15, 9 }
 0x2d8   : > { %14686 = vmatprep.subr.bf16.mxu1 %v15570_v50  ;;  %14413 = vmatmul.mubr.bf16.gmra.mrb[28].mxu0 %v12821_v22  ;;  %v15575_v22 = vld [vmem:[%s20553_s4 + $0xc8] sm:$0xff]   ;;  %v7342_v49 = vshrl.u32 %v7233_v57, 16 }
 0x2d9   : > { %14429 = vmatpush3.bf16.msra.mxu0 %v15573_v3  ;;  %14432 = vmatprep.mubr.bf16.mxu0 %v15574_v42  ;;  %v7286_v38 = vor.u32 %v7285_v48, %v19244_v0  ;;  %v7276_v3 = vor.u32 %v7275_v11, %v7272_v2  ;;  %v9747_v42 = vrot.slane %v20857_v12, 5  ;;  %v7253_v41 = vrot.slane %v7252_v6, 4  ;;  %v15584_v11 = vld [vmem:[#allocation2 + $0x30] sm:$0xff]   ;;  %v19347_v12 = vld [vmem:[#allocation2 + $0x58] sm:$0xf] }
 0x2da   : > { %14430 = vmatprep.subr.bf16.mxu0 %v15576_v9  ;;  %v7291_v48 = vrot.slane %v7289_v34, 5  ;;  %v19337_v34 = vld [vmem:[#allocation2 + $0x4c] sm:$0xf]  ;;  %v7399_v35 = vshll.u32 %v19347_v12, 16  ;;  %v7403_v27 = vshrl.u32 %v19347_v12, 16 }
 0x2db   : > { %14687 = vmatpush3.bf16.msra.mxu1 %v15570_v50  ;;  %v7230_v50 = vld [vmem:[#allocation2 + $0x30] sm:$0xf]  ;;  %v7287_v54 = vrot.slane %v7286_v38, 4  ;;  %v7258_v33 = vsel %vm15821_vm4, %v7253_v41, %v19239_v17 }
 0x2dc   : > { %14704 = vmatprep.subr.bf16.mxu1 %v15572_v30  ;;  %v7318_v25 = vshrl.u32 %v7230_v50, 16  ;;  %v7321_v53 = vshll.u32 %v7230_v50, 16 }
 0x2dd   : > { %14431 = vmatpush3.bf16.msra.mxu0 %v15576_v9  ;;  %v19281_v9 = vrot.slane %v7303_v26, 5  ;;  %v7331_v26 = vshrl.u32 %v19284_v60, 16 }
 0x2de   : > { %14689 = vmatmul.mubr.bf16.vlgmr.msra.gmra.mrb[16].mxu1 %v13129_v24  ;;  %14448 = vmatprep.subr.bf16.mxu0 %v15579_v21  ;;  %v15577_v24 = vld [vmem:[%s20553_s4 + $0xd0] sm:$0xff]   ;;  %v7320_v20 = vrot.slane %v7318_v25, 4 }
 0x2df   : > { %14705 = vmatpush3.bf16.msra.mxu1 %v15572_v30  ;;  %14692 = vmatprep.mubr.bf16.mxu1 %v13130_v7  ;;  %v19276_v7 = vld [vmem:[#allocation2 + $0x2c] sm:$0x1]  ;;  %v7267_v30 = vrot.slane %v7265_v43, 5  ;;  %v7310_v38 = vor.u32 %v7309_v37, %v19281_v9  ;;  %v9745_v43 = vsel %vm16150_vm7, %v13110_v58, %v9744_v45 }
 0x2e0   : > { %14706 = vmatprep.subr.bf16.mxu1 %v15575_v22  ;;  %14433 = vmatmul.mubr.bf16.vlgmr.msra.gmra.mrb[16].mxu0 %v15578_v19  ;;  %v7313_v2 = vshll.u32 %v19276_v7, 16  ;;  %v7292_v19 = vsel %vm15821_vm4, %v7287_v54, %v7291_v48  ;;  %v19344_v54 = vrot.slane %v7331_v26, 4  ;;  %v7379_v48 = vshrl.u32 %v19337_v34, 16 }
 0x2e1   : > { %14436 = vmatprep.mubr.bf16.mxu0 %v15580_v14  ;;  %14449 = vmatpush3.bf16.msra.mxu0 %v15579_v21  ;;  %v7277_v21 = vrot.slane %v7276_v3, 4  ;;  %v7268_v51 = vsel %vm15821_vm4, %v7263_v31, %v7267_v30  ;;  %v15583_v14 = vld [vmem:[%s20553_s4 + $0xe0] sm:$0xff]   ;;  %v7236_v3 = vld [vmem:[#allocation2 + $0x48] sm:$0xf]  ;;  %v7311_v50 = vrot.slane %v7310_v38, 4  ;;  %v7337_v31 = vshll.u32 %v19309_v23, 16 }
 0x2e2   : > { %14450 = vmatprep.subr.bf16.mxu0 %v15582_v5  ;;  %v19331_v45 = vcombine.low %v7258_v33, %v7268_v51  ;;  %v19335_v17 = vrot.slane %v7313_v2, 5  ;;  %v7369_v41 = vshll.u32 %v7236_v3, 16  ;;  %v15592_v51 = vld [vmem:[#allocation2 + $0x54] sm:$0xff]   ;;  %v15595_v2 = vld [vmem:[%s20553_s4 + $0x128] sm:$0xff]  }
 0x2e3   : > { %14707 = vmatpush3.bf16.msra.mxu1 %v15575_v22  ;;  %v19291_v22 = vsel %vm16150_vm7, %v9746_v61, %v9747_v42  ;;  %v7282_v56 = vsel %vm15821_vm4, %v7277_v21, %v19244_v0  ;;  %v19341_v61 = vrot.slane %v7327_v36, 5  ;;  %v15587_v42 = vld [vmem:[%s20553_s4 + $0xe8] sm:$0xff]   ;;  %v7375_v21 = vshll.u32 %v19337_v34, 16  ;;  %v15598_v36 = vld [vmem:[%s20553_s4 + $0x130] sm:$0xff]  }
 0x2e4   : > { %14708 = vmatprep.subr.bf16.mxu1 %v15577_v24  ;;  %v13134_v15 = vcombine.low %v9745_v43, %v19291_v22  ;;  %v19333_v6 = vcombine.low %v7282_v56, %v7292_v19  ;;  %v19361_v22 = vld [vmem:[%s20553_s4 + $0xf0] sm:$0xff]   ;;  %v10206_v38 = vld [vmem:[#allocation2 + $0x6c] sm:$0xf]  ;;  %v7381_v56 = vrot.slane %v7379_v48, 4 }
 0x2e5   : > { %14451 = vmatpush3.bf16.msra.mxu0 %v15582_v5  ;;  %v7300_v5 = vor.u32 %v7299_v63, %v7296_v8  ;;  %v7239_v8 = vld [vmem:[#allocation2 + $0x54] sm:$0xf]  ;;  %v7344_v63 = vrot.slane %v7342_v49, 4  ;;  %v7334_v19 = vor.u32 %v19344_v54, %v19341_v61  ;;  %v7371_v49 = vrot.slane %v7369_v41, 5  ;;  %v19390_v43 = vld [vmem:[#allocation2 + $0x50] sm:$0x1] }
 0x2e6   : > { %14693 = vmatmul.mubr.bf16.gmra.mrb[20].mxu1 %v13131_v59  ;;  %14452 = vmatprep.subr.bf16.mxu0 %v15585_v10  ;;  %v7323_v59 = vrot.slane %v7321_v53, 5  ;;  %v7366_v53 = vshrl.u32 %v7236_v3, 16  ;;  %v7393_v58 = vshll.u32 %v7239_v8, 16  ;;  %v19392_v33 = vrot.slane %v7375_v21, 5  ;;  %v15593_v41 = vld [vmem:[#allocation2 + $0x6c] sm:$0xff]  }
 0x2e7   : > { %14709 = vmatpush3.bf16.msra.mxu1 %v15577_v24  ;;  %14696 = vmatprep.mubr.bf16.mxu1 %v13132_v40  ;;  %v19325_v40 = vld [vmem:[#allocation2 + $0x40] sm:$0xf]  ;;  %v7345_v24 = vshll.u32 %v7233_v57, 16  ;;  %v19339_v0 = vrot.slane %v7300_v5, 4  ;;  %v7390_v57 = vshrl.u32 %v7239_v8, 16  ;;  %v19396_v3 = vrot.slane %v7399_v35, 5 }
 0x2e8   : > { %14710 = vmatprep.subr.bf16.mxu1 %v15581_v18  ;;  %14437 = vmatmul.mubr.bf16.gmra.mrb[20].mxu0 %v15584_v11  ;;  %v7351_v37 = vshll.u32 %v19325_v40, 16  ;;  %v7355_v25 = vshrl.u32 %v19325_v40, 16  ;;  %v19381_v5 = vld [vmem:[#allocation2 + $0x44] sm:$0x1]  ;;  %v7368_v26 = vrot.slane %v7366_v53, 4  ;;  %v7382_v21 = vor.u32 %v7381_v56, %v19392_v33 }
 0x2e9   : > { %14440 = vmatprep.mubr.bf16.mxu0 %v15586_v28  ;;  %14453 = vmatpush3.bf16.msra.mxu0 %v15585_v10  ;;  %v7324_v10 = vor.u32 %v7323_v59, %v7320_v20  ;;  %v7347_v30 = vrot.slane %v7345_v24, 5  ;;  %v7306_v11 = vsel %vm15821_vm4, %v19339_v0, %v19281_v9  ;;  %v19370_v28 = vrot.slane %v7337_v31, 5  ;;  %v7242_v53 = vld [vmem:[#allocation2 + $0x60] sm:$0xf] }
 0x2ea   : > { %14454 = vmatprep.subr.bf16.mxu0 %v15588_v39  ;;  %v19383_v9 = vrot.slane %v7351_v37, 5  ;;  %v7357_v59 = vrot.slane %v7355_v25, 4  ;;  %v7392_v24 = vrot.slane %v7390_v57, 4  ;;  %v7405_v0 = vrot.slane %v7403_v27, 4 }
 0x2eb   : > { %14711 = vmatpush3.bf16.msra.mxu1 %v15581_v18  ;;  %v15590_v18 = vld [vmem:[#allocation2 + $0x48] sm:$0xff]   ;;  %v7348_v20 = vor.u32 %v7347_v30, %v7344_v63  ;;  %v10234_v31 = vshll.u32 %v10206_v38, 16  ;;  %v15594_v63 = vld [vmem:[%s20553_s4 + $0xf8] sm:$0xff]   ;;  %v7385_v48 = vshll.u32 %v19390_v43, 16  ;;  %v7414_v4 = vshrl.u32 %v7242_v53, 16 }
 0x2ec   : > { %14712 = vmatprep.subr.bf16.mxu1 %v15583_v14  ;;  %v7358_v25 = vor.u32 %v7357_v59, %v19383_v9  ;;  %v7406_v35 = vor.u32 %v7405_v0, %v19396_v3 }
 0x2ed   : > { %14455 = vmatpush3.bf16.msra.mxu0 %v15588_v39  ;;  %v19377_v39 = vrot.slane %v7324_v10, 4  ;;  %v19413_v30 = vrot.slane %v7348_v20, 4  ;;  %v15596_v20 = vld [vmem:[%s20553_s4 + $0x100] sm:$0xff]   ;;  %v7387_v0 = vrot.slane %v7385_v48, 5 }
 0x2ee   : > { %14697 = vmatmul.mubr.bf16.gmra.mrb[24].mxu1 %v13133_v62  ;;  %14456 = vmatprep.subr.bf16.mxu0 %v15591_v32  ;;  %v7316_v62 = vsel %vm15821_vm4, %v7311_v50, %v19335_v17  ;;  %v19394_v17 = vld [vmem:[#allocation2 + $0x5c] sm:$0x1]  ;;  %v10231_v50 = vshrl.u32 %v10206_v38, 16  ;;  %v19445_v56 = vrot.slane %v7358_v25, 4 }
 0x2ef   : > { %14713 = vmatpush3.bf16.msra.mxu1 %v15583_v14  ;;  %14700 = vmatprep.mubr.bf16.mxu1 %v13134_v15  ;;  %v19388_v14 = vld [vmem:[#allocation2 + $0x70] sm:$0xf]  ;;  %v7395_v15 = vrot.slane %v7393_v58, 5  ;;  %v19398_v8 = vcombine.low %v7306_v11, %v7316_v62  ;;  %v7330_v37 = vsel %vm15821_vm4, %v19377_v39, %v19341_v61  ;;  %v7409_v57 = vshll.u32 %v19394_v17, 16  ;;  %v19419_v58 = vld [vmem:[#allocation2 + $0x64] sm:$0xf] }
 0x2f0   : > { %14714 = vmatprep.subr.bf16.mxu1 %v15587_v42  ;;  %14441 = vmatmul.mubr.bf16.gmra.mrb[24].mxu0 %v15590_v18  ;;  %v10240_v10 = vshll.u32 %v19388_v14, 16  ;;  %v10244_v54 = vshrl.u32 %v19388_v14, 16  ;;  %v7372_v18 = vor.u32 %v7371_v49, %v7368_v26  ;;  %v15602_v11 = vld [vmem:[%s20553_s4 + $0x138] sm:$0xff]   ;;  %v10233_v27 = vrot.slane %v10231_v50, 4 }
 0x2f1   : > { %14444 = vmatprep.mubr.bf16.mxu0 %v15592_v51  ;;  %14457 = vmatpush3.bf16.msra.mxu0 %v15591_v32  ;;  %v7361_v32 = vshll.u32 %v19381_v5, 16  ;;  %v15597_v51 = vld [vmem:[#allocation2 + $0x60] sm:$0xff]   ;;  %v10236_v62 = vrot.slane %v10234_v31, 5  ;;  %v7423_v26 = vshll.u32 %v19419_v58, 16  ;;  %v7427_v49 = vshrl.u32 %v19419_v58, 16  ;;  %v15599_v31 = vld [vmem:[#allocation2 + $0x78] sm:$0xff]  }
 0x2f2   : > { %14458 = vmatprep.subr.bf16.mxu0 %v15595_v2  ;;  %v19431_v38 = vrot.slane %v10240_v10, 5  ;;  %v10246_v47 = vrot.slane %v10244_v54, 4  ;;  %v10209_v50 = vld [vmem:[#allocation2 + $0x78] sm:$0xf]  ;;  %v7407_v54 = vrot.slane %v7406_v35, 4  ;;  %v7411_v25 = vrot.slane %v7409_v57, 5 }
 0x2f3   : > { %14715 = vmatpush3.bf16.msra.mxu1 %v15587_v42  ;;  %v19411_v42 = vrot.slane %v7334_v19, 4  ;;  %v19429_v19 = vld [vmem:[#allocation2 + $0x74] sm:$0x1]  ;;  %v19463_v35 = vld [vmem:[#allocation2 + $0x7c] sm:$0xf]  ;;  %v15608_v57 = vld [vmem:[%s20553_s4 + $0x148] sm:$0xff]  }
 0x2f4   : > { %14716 = vmatprep.subr.bf16.mxu1 %v19361_v22 }
 0x2f5   : > { %14459 = vmatpush3.bf16.msra.mxu0 %v15595_v2  ;;  %v7396_v2 = vor.u32 %v7395_v15, %v7392_v24  ;;  %v7340_v59 = vsel %vm15821_vm4, %v19411_v42, %v19370_v28  ;;  %v19447_v24 = vrot.slane %v7372_v18, 4  ;;  %v19449_v15 = vrot.slane %v7382_v21, 4  ;;  %v19459_v18 = vld [vmem:[#allocation2 + $0x68] sm:$0x1]  ;;  %v10215_v42 = vld [vmem:[#allocation2 + $0x90] sm:$0xf] }
 0x2f6   : > { %14701 = vmatmul.mubr.bf16.gmra.mrb[28].mxu1 %v13135_v16  ;;  %14460 = vmatprep.subr.bf16.mxu0 %v15598_v36  ;;  %v7417_v16 = vshll.u32 %v7242_v53, 16  ;;  %v10237_v53 = vor.u32 %v10236_v62, %v10233_v27  ;;  %v7416_v21 = vrot.slane %v7414_v4, 4  ;;  %v10255_v27 = vshrl.u32 %v10209_v50, 16 }
 0x2f7   : > { %14717 = vmatpush3.bf16.msra.mxu1 %v19361_v22  ;;  %14720 = vmatprep.mubr.bf16.mxu1 %v15593_v41  ;;  %v19440_v22 = vrot.slane %v7361_v32, 5  ;;  %v15604_v32 = vld [vmem:[%s20553_s4 + $0x140] sm:$0xff]   ;;  %v7397_v10 = vrot.slane %v7396_v2, 4  ;;  %v10247_v41 = vor.u32 %v10246_v47, %v19431_v38  ;;  %v7429_v2 = vrot.slane %v7427_v49, 4 }
 0x2f8   : > { %14718 = vmatprep.subr.bf16.mxu1 %v15594_v63  ;;  %14445 = vmatmul.mubr.bf16.gmra.mrb[28].mxu0 %v15597_v51  ;;  %v7419_v48 = vrot.slane %v7417_v16, 5  ;;  %v19461_v51 = vrot.slane %v7423_v26, 5  ;;  %v10258_v62 = vshll.u32 %v10209_v50, 16  ;;  %v7354_v47 = vsel %vm15821_vm4, %v19413_v30, %v19383_v9  ;;  %v10212_v49 = vld [vmem:[#allocation2 + $0x84] sm:$0xf] }
 0x2f9   : > { %14461 = vmatpush3.bf16.msra.mxu0 %v15598_v36  ;;  %14464 = vmatprep.mubr.bf16.mxu0 %v19331_v45  ;;  %v10250_v36 = vshll.u32 %v19429_v19, 16  ;;  %v15601_v45 = vld [vmem:[%s20553_s4 + $0x108] sm:$0xff]   ;;  %v7364_v4 = vsel %vm15821_vm4, %v19445_v56, %v19440_v22  ;;  %v7378_v16 = vsel %vm15821_vm4, %v19447_v24, %v19392_v33  ;;  %v7402_v9 = vsel %vm15821_vm4, %v7397_v10, %v19396_v3  ;;  %v15603_v3 = vld [vmem:[%s20553_s4 + $0x110] sm:$0xff]  }
 0x2fa   : > { %14462 = vmatprep.subr.bf16.mxu0 %v15602_v11  ;;  %v7412_v30 = vsel %vm15821_vm4, %v7407_v54, %v7411_v25  ;;  %v10238_v26 = vrot.slane %v10237_v53, 4  ;;  %v19488_v56 = vld [vmem:[#allocation2 + $0x88] sm:$0xf]  ;;  %v10248_v33 = vrot.slane %v10247_v41, 4  ;;  %v7420_v24 = vor.u32 %v7419_v48, %v7416_v21  ;;  %v15605_v41 = vld [vmem:[#allocation2 + $0x90] sm:$0xff]  }
 0x2fb   : > { %14719 = vmatpush3.bf16.msra.mxu1 %v15594_v63  ;;  %v15600_v63 = vld [vmem:[#allocation2 + $0x84] sm:$0xff]   ;;  %v10252_v22 = vrot.slane %v10250_v36, 5  ;;  %v7430_v50 = vor.u32 %v7429_v2, %v19461_v51  ;;  %v10260_v10 = vrot.slane %v10258_v62, 5  ;;  %v10279_v54 = vshrl.u32 %v10212_v49, 16  ;;  %v19518_v2 = vld [vmem:[#allocation2 + $0x80] sm:$0x1] }
 0x2fc   : > { %14736 = vmatprep.subr.bf16.mxu1 %v15596_v20  ;;  %v10282_v53 = vshll.u32 %v10212_v49, 16  ;;  %v10288_v36 = vshll.u32 %v19488_v56, 16  ;;  %v10292_v25 = vshrl.u32 %v19488_v56, 16  ;;  %v19516_v48 = vcombine.low %v7402_v9, %v7412_v30  ;;  %v15607_v62 = vld [vmem:[%s20553_s4 + $0x118] sm:$0xff]  }
 0x2fd   : > { %14463 = vmatpush3.bf16.msra.mxu0 %v15602_v11  ;;  %v7388_v11 = vsel %vm15821_vm4, %v19449_v15, %v7387_v0  ;;  %v7433_v15 = vshll.u32 %v19459_v18, 16  ;;  %v10264_v0 = vshll.u32 %v19463_v35, 16  ;;  %v10243_v28 = vsel %vm15821_vm4, %v10238_v26, %v19431_v38  ;;  %v19532_v38 = vld [vmem:[#allocation2 + $0x8c] sm:$0x1] }
 0x2fe   : > { %14721 = vmatmul.mubr.bf16.vlgmr.msra.gmra.mrb[16].mxu1 %v15599_v31  ;;  %14480 = vmatprep.subr.bf16.mxu0 %v15604_v32  ;;  %v10257_v31 = vrot.slane %v10255_v27, 4  ;;  %v19514_v21 = vcombine.low %v7378_v16, %v7388_v11  ;;  %v15606_v27 = vld [vmem:[#allocation2 + $0x9c] sm:$0xff]   ;;  %v10253_v61 = vsel %vm15821_vm4, %v10248_v33, %v10252_v22  ;;  %v7421_v39 = vrot.slane %v7420_v24, 4  ;;  %v7647_v16 = vld [vmem:[#allocation2 + $0xc] sm:$0xe] }
 0x2ff   : > { %14737 = vmatpush3.bf16.msra.mxu1 %v15596_v20  ;;  %14724 = vmatprep.mubr.bf16.mxu1 %v15600_v63  ;;  %v10268_v20 = vshrl.u32 %v19463_v35, 16  ;;  %v7431_v63 = vrot.slane %v7430_v50, 4  ;;  %v10281_v11 = vrot.slane %v10279_v54, 4  ;;  %v10284_v9 = vrot.slane %v10282_v53, 5  ;;  %v15614_v22 = vld [vmem:[%s20553_s4 + $0x158] sm:$0xff]  }
 0x300   : > { %14738 = vmatprep.subr.bf16.mxu1 %v15601_v45  ;;  %14465 = vmatmul.mubr.bf16.vlgmr.msra.gmra.mrb[16].mxu0 %v19333_v6  ;;  %v12881_v6 = vcombine.low %v7330_v37, %v7340_v59  ;;  %v7435_v37 = vrot.slane %v7433_v15, 5  ;;  %v19525_v59 = vld [vmem:[#allocation2 + $0x94] sm:$0xf]  ;;  %v19534_v30 = vrot.slane %v10288_v36, 5  ;;  %v10294_v26 = vrot.slane %v10292_v25, 4 }
 0x301   : > { %14468 = vmatprep.mubr.bf16.mxu0 %v19398_v8  ;;  %14481 = vmatpush3.bf16.msra.mxu0 %v15604_v32  ;;  %v15610_v8 = vld [vmem:[%s20553_s4 + $0x150] sm:$0xff]   ;;  %v12882_v32 = vcombine.low %v7354_v47, %v7364_v4  ;;  %v19530_v47 = vrot.slane %v10264_v0, 5  ;;  %v10270_v4 = vrot.slane %v10268_v20, 4  ;;  %v10303_v49 = vshrl.u32 %v10215_v42, 16 }
 0x302   : > { %14482 = vmatprep.subr.bf16.mxu0 %v15608_v57  ;;  %v10306_v33 = vshll.u32 %v10215_v42, 16  ;;  %v10312_v24 = vshll.u32 %v19525_v59, 16  ;;  %v10316_v15 = vshrl.u32 %v19525_v59, 16  ;;  %v10274_v0 = vshll.u32 %v19518_v2, 16 }
 0x303   : > { %14739 = vmatpush3.bf16.msra.mxu1 %v15601_v45  ;;  %v10261_v45 = vor.u32 %v10260_v10, %v10257_v31  ;;  %v12894_v50 = vrot.slane %v7647_v16, 9  ;;  %v7681_v31 = vrot.slane %v19214_v1, 5  ;;  %v15609_v10 = vld [vmem:[%s20553_s4 + $0x120] sm:$0xff]   ;;  %v7426_v20 = vsel %vm15821_vm4, %v7421_v39, %v19461_v51 }
 0x304   : > { %14740 = vmatprep.subr.bf16.mxu1 %v15603_v3  ;;  %v10271_v53 = vor.u32 %v10270_v4, %v19530_v47  ;;  %v10285_v1 = vor.u32 %v10284_v9, %v10281_v11  ;;  %v10295_v36 = vor.u32 %v10294_v26, %v19534_v30  ;;  %v10298_v25 = vshll.u32 %v19532_v38, 16  ;;  %v15616_v51 = vld [vmem:[%s20553_s4 + $0x160] sm:$0xff]   ;;  %v10218_v9 = vld [vmem:[#allocation2 + $0x9c] sm:$0xf] }
 0x305   : > { %14483 = vmatpush3.bf16.msra.mxu0 %v15608_v57  ;;  %v19541_v57 = vcombine.low %v10243_v28, %v10253_v61  ;;  %v19553_v54 = vrot.slane %v10261_v45, 4  ;;  %v10308_v28 = vrot.slane %v10306_v33, 5  ;;  %v19562_v61 = vrot.slane %v10312_v24, 5  ;;  %v19580_v26 = vld [vmem:[#allocation2 + $0xa0] sm:$0xf] }
 0x306   : > { %14725 = vmatmul.mubr.bf16.gmra.mrb[20].mxu1 %v15605_v41  ;;  %14484 = vmatprep.subr.bf16.mxu0 %v15610_v8  ;;  %v7648_v41 = vld [vmem:[#allocation2 + $0x18] sm:$0xe]  ;;  %v10318_v39 = vrot.slane %v10316_v15, 4  ;;  %v19567_v42 = vrot.slane %v10274_v0, 5  ;;  %v7684_v45 = vrot.slane %v19246_v52, 5  ;;  %v10272_v16 = vrot.slane %v10271_v53, 4 }
 0x307   : > { %14741 = vmatpush3.bf16.msra.mxu1 %v15603_v3  ;;  %14728 = vmatprep.mubr.bf16.mxu1 %v15606_v27  ;;  %v7436_v3 = vsel %vm15821_vm4, %v7431_v63, %v7435_v37  ;;  %v10305_v27 = vrot.slane %v10303_v49, 4  ;;  %v15613_v37 = vld [vmem:[%s20553_s4 + $0x128] sm:$0xff]   ;;  %v7683_v63 = vrot.slane %v7681_v31, 4  ;;  %v12895_v11 = vrot.slane %v7648_v41, 9  ;;  %v19582_v0 = vld [vmem:[#allocation2 + $0x98] sm:$0x1] }
 0x308   : > { %14742 = vmatprep.subr.bf16.mxu1 %v15607_v62  ;;  %14469 = vmatmul.mubr.bf16.gmra.mrb[20].mxu0 %v12881_v6  ;;  %v7688_v6 = vrot.slane %v19216_v13, 5  ;;  %v19571_v13 = vsel %vm16150_vm7, %v12894_v50, %v7681_v31  ;;  %v19574_v4 = vcombine.low %v7426_v20, %v7436_v3  ;;  %v10286_v49 = vrot.slane %v10285_v1, 4  ;;  %v15619_v52 = vld [vmem:[%s20553_s4 + $0x168] sm:$0xff]  }
 0x309   : > { %14472 = vmatprep.mubr.bf16.mxu0 %v12882_v32  ;;  %14485 = vmatpush3.bf16.msra.mxu0 %v15610_v8  ;;  %v15611_v8 = vld [vmem:[#allocation2 + $0xa8] sm:$0xff]   ;;  %v15612_v32 = vld [vmem:[#allocation2 + $0xb4] sm:$0xff]   ;;  %v10296_v33 = vrot.slane %v10295_v36, 4  ;;  %v10300_v24 = vrot.slane %v10298_v25, 5  ;;  %v10309_v50 = vor.u32 %v10308_v28, %v10305_v27  ;;  %v10319_v31 = vor.u32 %v10318_v39, %v19562_v61 }
 0x30a   : > { %14486 = vmatprep.subr.bf16.mxu0 %v15614_v22  ;;  %v7690_v15 = vrot.slane %v7688_v6, 4  ;;  %v7695_v20 = vrot.slane %v19248_v44, 5  ;;  %v10327_v3 = vshrl.u32 %v10218_v9, 16  ;;  %v10336_v53 = vshll.u32 %v19580_v26, 16  ;;  %v15615_v36 = vld [vmem:[%s20553_s4 + $0x130] sm:$0xff]  }
 0x30b   : > { %14743 = vmatpush3.bf16.msra.mxu1 %v15607_v62  ;;  %v10267_v62 = vsel %vm15821_vm4, %v19553_v54, %v19530_v47  ;;  %v7691_v47 = vrot.slane %v19255_v46, 5  ;;  %v10330_v54 = vshll.u32 %v10218_v9, 16  ;;  %v10340_v1 = vshrl.u32 %v19580_v26, 16  ;;  %v19616_v28 = vld [vmem:[#allocation2 + $0xac] sm:$0xf] }
 0x30c   : > { %14744 = vmatprep.subr.bf16.mxu1 %v15609_v10  ;;  %v10277_v44 = vsel %vm15821_vm4, %v10272_v16, %v19567_v42  ;;  %v7685_v46 = vsel %vm16150_vm7, %v7683_v63, %v7684_v45  ;;  %v10322_v25 = vshll.u32 %v19582_v0, 16  ;;  %v10301_v41 = vsel %vm15821_vm4, %v10296_v33, %v10300_v24  ;;  %v15617_v16 = vld [vmem:[#allocation2 + $0xc0] sm:$0xff]  }
 0x30d   : > { %14487 = vmatpush3.bf16.msra.mxu0 %v15614_v22  ;;  %v7649_v22 = vld [vmem:[#allocation2 + $0x24] sm:$0xe]  ;;  %v19614_v27 = vsel %vm16150_vm7, %v7690_v15, %v7691_v47  ;;  %v10332_v42 = vrot.slane %v10330_v54, 5  ;;  %v19623_v63 = vrot.slane %v10336_v53, 5  ;;  %v10342_v45 = vrot.slane %v10340_v1, 4 }
 0x30e   : > { %14729 = vmatmul.mubr.bf16.gmra.mrb[24].mxu1 %v15611_v8  ;;  %14488 = vmatprep.subr.bf16.mxu0 %v15616_v51  ;;  %v12896_v39 = vrot.slane %v7649_v22, 9  ;;  %v7697_v8 = vrot.slane %v7695_v20, 4  ;;  %v10324_v9 = vrot.slane %v10322_v25, 5  ;;  %v10360_v33 = vshll.u32 %v19616_v28, 16  ;;  %v15620_v25 = vld [vmem:[%s20553_s4 + $0x140] sm:$0xff]  }
 0x30f   : > { %14745 = vmatpush3.bf16.msra.mxu1 %v15609_v10  ;;  %14732 = vmatprep.mubr.bf16.mxu1 %v15612_v32  ;;  %v19603_v10 = vsel %vm16150_vm7, %v12895_v11, %v7688_v6  ;;  %v15621_v6 = vld [vmem:[%s20553_s4 + $0x170] sm:$0xff]   ;;  %v10329_v32 = vrot.slane %v10327_v3, 4  ;;  %v15618_v11 = vld [vmem:[%s20553_s4 + $0x138] sm:$0xff]   ;;  %v13193_v24 = vcombine.low %v10267_v62, %v10277_v44  ;;  %v12918_v15 = vcombine.low %v19571_v13, %v7685_v46 }
 0x310   : > { %14746 = vmatprep.subr.bf16.mxu1 %v15613_v37  ;;  %14473 = vmatmul.mubr.bf16.gmra.mrb[24].mxu0 %v19514_v21  ;;  %v10291_v21 = vsel %vm15821_vm4, %v10286_v49, %v19534_v30  ;;  %v19621_v30 = vld [vmem:[#allocation2 + $0xa4] sm:$0x1]  ;;  %v7698_v49 = vrot.slane %v19276_v7, 5  ;;  %v15623_v7 = vld [vmem:[%s20553_s4 + $0x178] sm:$0xff]   ;;  %v19643_v62 = vsel %vm16150_vm7, %v12896_v39, %v7695_v20  ;;  %v10343_v1 = vor.u32 %v10342_v45, %v19623_v63  ;;  %v7650_v20 = vld [vmem:[#allocation2 + $0x30] sm:$0xe] }
 0x311   : > { %14476 = vmatprep.mubr.bf16.mxu0 %v19516_v48  ;;  %14489 = vmatpush3.bf16.msra.mxu0 %v15616_v51  ;;  %v10310_v48 = vrot.slane %v10309_v50, 4  ;;  %v10320_v51 = vrot.slane %v10319_v31, 4  ;;  %v19632_v47 = vcombine.low %v10291_v21, %v10301_v41  ;;  %v12919_v50 = vcombine.low %v19603_v10, %v19614_v27  ;;  %v10221_v31 = vld [vmem:[#allocation2 + $0xa8] sm:$0xf]  ;;  %v19650_v3 = vld [vmem:[#allocation2 + $0xb8] sm:$0xf] }
 0x312   : > { %14490 = vmatprep.subr.bf16.mxu0 %v15619_v52  ;;  %v19647_v13 = vsel %vm16150_vm7, %v7697_v8, %v7698_v49  ;;  %v10333_v53 = vor.u32 %v10332_v42, %v10329_v32  ;;  %v7702_v44 = vrot.slane %v19284_v60, 5  ;;  %v10224_v46 = vld [vmem:[#allocation2 + $0xb4] sm:$0xf]  ;;  %v19662_v21 = vrot.slane %v10360_v33, 5  ;;  %v19670_v39 = vld [vmem:[#allocation2 + $0xc4] sm:$0xf] }
 0x313   : > { %14747 = vmatpush3.bf16.msra.mxu1 %v15613_v37  ;;  %v10364_v37 = vshrl.u32 %v19616_v28, 16  ;;  %v10325_v22 = vsel %vm15821_vm4, %v10320_v51, %v10324_v9  ;;  %v10315_v54 = vsel %vm15821_vm4, %v10310_v48, %v19562_v61  ;;  %v12920_v60 = vcombine.low %v19643_v62, %v19647_v13  ;;  %v10227_v33 = vld [vmem:[#allocation2 + $0xc0] sm:$0xf]  ;;  %v15629_v27 = vld [vmem:[%s20553_s4 + $0x190] sm:$0xff]  }
 0x314   : > { %14748 = vmatprep.subr.bf16.mxu1 %v15615_v36  ;;  %v19664_v61 = vcombine.low %v10315_v54, %v10325_v22  ;;  %v10384_v48 = vshll.u32 %v19650_v3, 16  ;;  %v10388_v51 = vshrl.u32 %v19650_v3, 16  ;;  %v10375_v32 = vshrl.u32 %v10224_v46, 16 }
 0x315   : > { %14491 = vmatpush3.bf16.msra.mxu0 %v15619_v52  ;;  %v10346_v52 = vshll.u32 %v19621_v30, 16  ;;  %v10366_v41 = vrot.slane %v10364_v37, 4  ;;  %v10378_v42 = vshll.u32 %v10224_v46, 16  ;;  %v19677_v45 = vrot.slane %v10333_v53, 4  ;;  %v15622_v37 = vld [vmem:[%s20553_s4 + $0x148] sm:$0xff]  }
 0x316   : > { %14733 = vmatmul.mubr.bf16.gmra.mrb[28].mxu1 %v15617_v16  ;;  %14492 = vmatprep.subr.bf16.mxu0 %v15621_v6  ;;  %v19679_v16 = vrot.slane %v10343_v1, 4  ;;  %v7704_v9 = vrot.slane %v7702_v44, 4  ;;  %v7705_v49 = vrot.slane %v19309_v23, 5  ;;  %v19689_v13 = vrot.slane %v10384_v48, 5  ;;  %v15627_v53 = vld [vmem:[%s20553_s4 + $0x188] sm:$0xff]  }
 0x317   : > { %14749 = vmatpush3.bf16.msra.mxu1 %v15615_v36  ;;  %14752 = vmatprep.mubr.bf16.mxu1 %v19541_v57  ;;  %v10351_v36 = vshrl.u32 %v10221_v31, 16  ;;  %v10354_v57 = vshll.u32 %v10221_v31, 16  ;;  %v19675_v8 = vrot.slane %v10346_v52, 5  ;;  %v10367_v62 = vor.u32 %v10366_v41, %v19662_v21  ;;  %v7651_v41 = vld [vmem:[#allocation2 + $0x3c] sm:$0xe] }
 0x318   : > { %14750 = vmatprep.subr.bf16.mxu1 %v15618_v11  ;;  %14477 = vmatmul.mubr.bf16.gmra.mrb[28].mxu0 %v19574_v4  ;;  %v15625_v4 = vld [vmem:[%s20553_s4 + $0x180] sm:$0xff]   ;;  %v10390_v52 = vrot.slane %v10388_v51, 4  ;;  %v10408_v23 = vshll.u32 %v19670_v39, 16  ;;  %v10412_v54 = vshrl.u32 %v19670_v39, 16  ;;  %v10377_v1 = vrot.slane %v10375_v32, 4 }
 0x319   : > { %14493 = vmatpush3.bf16.msra.mxu0 %v15621_v6  ;;  %14496 = vmatprep.mubr.bf16.mxu0 %v12918_v15  ;;  %v12897_v6 = vrot.slane %v7650_v20, 9  ;;  %v19685_v15 = vld [vmem:[#allocation2 + $0xb0] sm:$0x1]  ;;  %v10353_v31 = vrot.slane %v10351_v36, 4  ;;  %v10356_v22 = vrot.slane %v10354_v57, 5  ;;  %v10380_v20 = vrot.slane %v10378_v42, 5 }
 0x31a   : > { %14494 = vmatprep.subr.bf16.mxu0 %v15623_v7  ;;  %v10399_v46 = vshrl.u32 %v10227_v33, 16  ;;  %v10402_v36 = vshll.u32 %v10227_v33, 16  ;;  %v10370_v57 = vshll.u32 %v19685_v15, 16  ;;  %v19716_v48 = vld [vmem:[#allocation2 + $0xbc] sm:$0x1]  ;;  %v7716_v51 = vrot.slane %v19337_v34, 5 }
 0x31b   : > { %14751 = vmatpush3.bf16.msra.mxu1 %v15618_v11  ;;  %v7709_v11 = vrot.slane %v19325_v40, 5  ;;  %v10339_v40 = vsel %vm15821_vm4, %v19677_v45, %v19623_v63  ;;  %v10349_v63 = vsel %vm15821_vm4, %v19679_v16, %v19675_v8  ;;  %v10391_v32 = vor.u32 %v10390_v52, %v19689_v13 }
 0x31c   : > { %14768 = vmatprep.subr.bf16.mxu1 %v15620_v25  ;;  %v19721_v42 = vrot.slane %v10408_v23, 5  ;;  %v10414_v10 = vrot.slane %v10412_v54, 4  ;;  %v10381_v8 = vor.u32 %v10380_v20, %v10377_v1  ;;  %v10401_v45 = vrot.slane %v10399_v46, 4  ;;  %v7652_v54 = vld [vmem:[#allocation2 + $0x48] sm:$0xe] }
 0x31d   : > { %14495 = vmatpush3.bf16.msra.mxu0 %v15623_v7  ;;  %v7706_v7 = vsel %vm16150_vm7, %v7704_v9, %v7705_v49  ;;  %v10404_v16 = vrot.slane %v10402_v36, 5  ;;  %v15626_v9 = vld [vmem:[%s20553_s4 + $0x158] sm:$0xff]   ;;  %v10392_v23 = vrot.slane %v10391_v32, 4  ;;  %v7730_v32 = vrot.slane %v19419_v58, 5 }
 0x31e   : > { %14753 = vmatmul.mubr.bf16.vlgmr.msra.gmra.mrb[16].mxu1 %v13193_v24  ;;  %14512 = vmatprep.subr.bf16.mxu0 %v15625_v4  ;;  %v7703_v24 = vsel %vm16150_vm7, %v12897_v6, %v7702_v44  ;;  %v7711_v44 = vrot.slane %v7709_v11, 4  ;;  %v7712_v6 = vrot.slane %v19381_v5, 5  ;;  %v10394_v5 = vshll.u32 %v19716_v48, 16 }
 0x31f   : > { %14769 = vmatpush3.bf16.msra.mxu1 %v15620_v25  ;;  %14756 = vmatprep.mubr.bf16.mxu1 %v19632_v47  ;;  %v15624_v25 = vld [vmem:[%s20553_s4 + $0x150] sm:$0xff]   ;;  %v10357_v47 = vor.u32 %v10356_v22, %v10353_v31  ;;  %v12921_v34 = vcombine.low %v7703_v24, %v7706_v7  ;;  %v7718_v31 = vrot.slane %v7716_v51, 4  ;;  %v19732_v22 = vld [vmem:[#allocation2 + $0xc8] sm:$0x1]  ;;  %v10415_v1 = vor.u32 %v10414_v10, %v19721_v42  ;;  %v15628_v7 = vld [vmem:[%s20553_s4 + $0x160] sm:$0xff]  }
 0x320   : > { %14770 = vmatprep.subr.bf16.mxu1 %v15622_v37  ;;  %14497 = vmatmul.mubr.bf16.vlgmr.msra.gmra.mrb[16].mxu0 %v12919_v50  ;;  %v10368_v50 = vrot.slane %v10367_v62, 4  ;;  %v7713_v33 = vsel %vm16150_vm7, %v7711_v44, %v7712_v6  ;;  %v7723_v62 = vrot.slane %v19347_v12, 5  ;;  %v10382_v46 = vrot.slane %v10381_v8, 4  ;;  %v15631_v12 = vld [vmem:[%s20553_s4 + $0x198] sm:$0xff]   ;;  %v7653_v44 = vld [vmem:[#allocation2 + $0x54] sm:$0xe] }
 0x321   : > { %14500 = vmatprep.mubr.bf16.mxu0 %v12920_v60  ;;  %14513 = vmatpush3.bf16.msra.mxu0 %v15625_v4  ;;  %v10372_v60 = vrot.slane %v10370_v57, 5  ;;  %v12898_v4 = vrot.slane %v7651_v41, 9  ;;  %v10358_v49 = vrot.slane %v10357_v47, 4  ;;  %v10405_v36 = vor.u32 %v10404_v16, %v10401_v45  ;;  %v10631_v6 = vld [vmem:[#allocation2 + $0x6c] sm:$0xe] }
 0x322   : > { %14514 = vmatprep.subr.bf16.mxu0 %v15627_v53  ;;  %v10418_v24 = vshll.u32 %v19732_v22, 16  ;;  %v10416_v47 = vrot.slane %v10415_v1, 4  ;;  %v7726_v8 = vrot.slane %v19394_v17, 5  ;;  %v10672_v58 = vrot.slane %v19463_v35, 5 }
 0x323   : > { %14771 = vmatpush3.bf16.msra.mxu1 %v15622_v37  ;;  %v13196_v37 = vcombine.low %v10339_v40, %v10349_v63  ;;  %v7710_v52 = vsel %vm16150_vm7, %v12898_v4, %v7709_v11  ;;  %v10373_v20 = vsel %vm15821_vm4, %v10368_v50, %v10372_v60  ;;  %v10396_v40 = vrot.slane %v10394_v5, 5 }
 0x324   : > { %14772 = vmatprep.subr.bf16.mxu1 %v15624_v25  ;;  %v12922_v11 = vcombine.low %v7710_v52, %v7713_v33  ;;  %v10363_v57 = vsel %vm15821_vm4, %v10358_v49, %v19662_v21  ;;  %v10387_v21 = vsel %vm15821_vm4, %v10382_v46, %v19689_v13  ;;  %v10406_v50 = vrot.slane %v10405_v36, 4  ;;  %v15630_v13 = vld [vmem:[%s20553_s4 + $0x168] sm:$0xff]   ;;  %v7654_v49 = vld [vmem:[#allocation2 + $0x60] sm:$0xe] }
 0x325   : > { %14515 = vmatpush3.bf16.msra.mxu0 %v15627_v53  ;;  %v7719_v53 = vrot.slane %v19390_v43, 5  ;;  %v12899_v43 = vrot.slane %v7652_v54, 9  ;;  %v13197_v63 = vcombine.low %v10363_v57, %v10373_v20  ;;  %v10420_v16 = vrot.slane %v10418_v24, 5  ;;  %v15635_v52 = vld [vmem:[%s20553_s4 + $0x1a8] sm:$0xff]   ;;  %v10634_v24 = vld [vmem:[#allocation2 + $0x90] sm:$0xe] }
 0x326   : > { %14757 = vmatmul.mubr.bf16.gmra.mrb[20].mxu1 %v19664_v61  ;;  %14516 = vmatprep.subr.bf16.mxu0 %v15629_v27  ;;  %v10665_v61 = vrot.slane %v19388_v14, 5  ;;  %v10397_v14 = vsel %vm15821_vm4, %v10392_v23, %v10396_v40  ;;  %v13208_v5 = vrot.slane %v10631_v6, 9  ;;  %v7732_v33 = vrot.slane %v7730_v32, 4  ;;  %v15634_v6 = vld [vmem:[%s20553_s4 + $0x178] sm:$0xff]  }
 0x327   : > { %14773 = vmatpush3.bf16.msra.mxu1 %v15624_v25  ;;  %14760 = vmatprep.mubr.bf16.mxu1 %v13196_v37  ;;  %v7720_v41 = vsel %vm16150_vm7, %v7718_v31, %v7719_v53  ;;  %v7725_v25 = vrot.slane %v7723_v62, 4  ;;  %v7717_v10 = vsel %vm16150_vm7, %v12899_v43, %v7716_v51  ;;  %v13198_v60 = vcombine.low %v10387_v21, %v10397_v14 }
 0x328   : > { %14774 = vmatprep.subr.bf16.mxu1 %v15626_v9  ;;  %14501 = vmatmul.mubr.bf16.gmra.mrb[20].mxu0 %v12921_v34  ;;  %v12923_v45 = vcombine.low %v7717_v10, %v7720_v41  ;;  %v10667_v34 = vrot.slane %v10665_v61, 4  ;;  %v12900_v51 = vrot.slane %v7653_v44, 9  ;;  %v10421_v17 = vsel %vm15821_vm4, %v10416_v47, %v10420_v16  ;;  %v8189_v44 = vld [vmem:[#allocation2 + $0x18] sm:$0xf] }
 0x329   : > { %14504 = vmatprep.mubr.bf16.mxu0 %v12922_v11  ;;  %14517 = vmatpush3.bf16.msra.mxu0 %v15629_v27  ;;  %v15633_v27 = vld [vmem:[%s20553_s4 + $0x1a0] sm:$0xff]   ;;  %v7727_v4 = vsel %vm16150_vm7, %v7725_v25, %v7726_v8  ;;  %v10679_v35 = vrot.slane %v19488_v56, 5  ;;  %v10411_v31 = vsel %vm15821_vm4, %v10406_v50, %v19721_v42  ;;  %v7733_v23 = vrot.slane %v19459_v18, 5  ;;  %v10635_v25 = vld [vmem:[#allocation2 + $0x9c] sm:$0xe] }
 0x32a   : > { %14518 = vmatprep.subr.bf16.mxu0 %v15631_v12  ;;  %v7724_v37 = vsel %vm16150_vm7, %v12900_v51, %v7723_v62  ;;  %v10686_v54 = vrot.slane %v19525_v59, 5  ;;  %v10674_v20 = vrot.slane %v10672_v58, 4  ;;  %v10633_v42 = vld [vmem:[#allocation2 + $0x84] sm:$0xe]  ;;  %v10693_v46 = vrot.slane %v19580_v26, 5  ;;  %v15632_v62 = vld [vmem:[%s20553_s4 + $0x170] sm:$0xff]  }
 0x32b   : > { %14775 = vmatpush3.bf16.msra.mxu1 %v15626_v9  ;;  %v10668_v9 = vrot.slane %v19429_v19, 5  ;;  %v10632_v19 = vld [vmem:[#allocation2 + $0x78] sm:$0xe]  ;;  %v12924_v56 = vcombine.low %v7724_v37, %v7727_v4  ;;  %v13199_v18 = vcombine.low %v10411_v31, %v10421_v17  ;;  %v10666_v59 = vsel %vm16150_vm7, %v13208_v5, %v10665_v61  ;;  %v15637_v61 = vld [vmem:[%s20553_s4 + $0x1b0] sm:$0xff]   ;;  %v19819_v50 = vld [vmem:[#allocation2 + $0x1c] sm:$0xf] }
 0x32c   : > { %14776 = vmatprep.subr.bf16.mxu1 %v15628_v7  ;;  %v7734_v53 = vsel %vm16150_vm7, %v7732_v33, %v7733_v23  ;;  %v13209_v36 = vrot.slane %v10632_v19, 9  ;;  %v10675_v11 = vrot.slane %v19518_v2, 5  ;;  %v10681_v40 = vrot.slane %v10679_v35, 4 }
 0x32d   : > { %14519 = vmatpush3.bf16.msra.mxu0 %v15631_v12  ;;  %v10669_v1 = vsel %vm16150_vm7, %v10667_v34, %v10668_v9  ;;  %v12901_v12 = vrot.slane %v7654_v49, 9  ;;  %v13210_v43 = vrot.slane %v10633_v42, 9  ;;  %v10688_v41 = vrot.slane %v10686_v54, 4  ;;  %v10636_v34 = vld [vmem:[#allocation2 + $0xa8] sm:$0xe]  ;;  %v15636_v49 = vld [vmem:[%s20553_s4 + $0x180] sm:$0xff]  }
 0x32e   : > { %14761 = vmatmul.mubr.bf16.gmra.mrb[24].mxu1 %v13197_v63  ;;  %14520 = vmatprep.subr.bf16.mxu0 %v15633_v27  ;;  %v19805_v63 = vsel %vm16150_vm7, %v13209_v36, %v10672_v58  ;;  %v19809_v2 = vsel %vm16150_vm7, %v10674_v20, %v10675_v11  ;;  %v10682_v14 = vrot.slane %v19532_v38, 5  ;;  %v10695_v47 = vrot.slane %v10693_v46, 4  ;;  %v15639_v36 = vld [vmem:[%s20553_s4 + $0x188] sm:$0xff]  }
 0x32f   : > { %14777 = vmatpush3.bf16.msra.mxu1 %v15628_v7  ;;  %14764 = vmatprep.mubr.bf16.mxu1 %v13198_v60  ;;  %v13232_v7 = vcombine.low %v10666_v59, %v10669_v1  ;;  %v7731_v57 = vsel %vm16150_vm7, %v12901_v12, %v7730_v32  ;;  %v13211_v21 = vrot.slane %v10634_v24, 9  ;;  %v10689_v10 = vrot.slane %v19582_v0, 5  ;;  %v10637_v60 = vld [vmem:[#allocation2 + $0xb4] sm:$0xe]  ;;  %v19864_v1 = vld [vmem:[#allocation2 + $0x28] sm:$0xf] }
 0x330   : > { %14778 = vmatprep.subr.bf16.mxu1 %v15630_v13  ;;  %14505 = vmatmul.mubr.bf16.gmra.mrb[24].mxu0 %v12923_v45  ;;  %v12925_v32 = vcombine.low %v7731_v57, %v7734_v53  ;;  %v19823_v38 = vsel %vm16150_vm7, %v13210_v43, %v10679_v35  ;;  %v19827_v8 = vsel %vm16150_vm7, %v10681_v40, %v10682_v14  ;;  %v13212_v45 = vrot.slane %v10635_v25, 9  ;;  %v8195_v53 = vld [vmem:[#allocation2 + $0x30] sm:$0xf]  ;;  %v15642_v25 = vld [vmem:[#allocation2 + $0x24] sm:$0xff]  }
 0x331   : > { %14508 = vmatprep.mubr.bf16.mxu0 %v12924_v56  ;;  %14521 = vmatpush3.bf16.msra.mxu0 %v15633_v27  ;;  %v10700_v27 = vrot.slane %v19616_v28, 5  ;;  %v10696_v16 = vrot.slane %v19621_v30, 5  ;;  %v13233_v0 = vcombine.low %v19805_v63, %v19809_v2  ;;  %v15640_v28 = vld [vmem:[%s20553_s4 + $0x1b8] sm:$0xff]   ;;  %v19837_v58 = vsel %vm16150_vm7, %v10688_v41, %v10689_v10  ;;  %v8192_v56 = vld [vmem:[#allocation2 + $0x24] sm:$0xf]  ;;  %v15646_v63 = vld [vmem:[%s20553_s4 + $0x1c8] sm:$0xff]  }
 0x332   : > { %14522 = vmatprep.subr.bf16.mxu0 %v15635_v52  ;;  %v8217_v51 = vshll.u32 %v8189_v44, 16  ;;  %v15638_v30 = vld [vmem:[#allocation2 + $0x18] sm:$0xff]   ;;  %v19841_v4 = vsel %vm16150_vm7, %v13211_v21, %v10686_v54  ;;  %v8223_v17 = vshll.u32 %v19819_v50, 16  ;;  %v8227_v9 = vshrl.u32 %v19819_v50, 16 }
 0x333   : > { %14779 = vmatpush3.bf16.msra.mxu1 %v15630_v13  ;;  %v8214_v13 = vshrl.u32 %v8189_v44, 16  ;;  %v19845_v5 = vsel %vm16150_vm7, %v10695_v47, %v10696_v16  ;;  %v13234_v33 = vcombine.low %v19823_v38, %v19827_v8  ;;  %v13213_v35 = vrot.slane %v10636_v34, 9  ;;  %v19903_v38 = vld [vmem:[#allocation2 + $0x2c] sm:$0x1]  ;;  %v15641_v8 = vld [vmem:[%s20553_s4 + $0x190] sm:$0xff]  }
 0x334   : > { %14780 = vmatprep.subr.bf16.mxu1 %v15632_v62  ;;  %v10702_v31 = vrot.slane %v10700_v27, 4  ;;  %v10707_v37 = vrot.slane %v19650_v3, 5  ;;  %v19861_v23 = vsel %vm16150_vm7, %v13212_v45, %v10693_v46  ;;  %v10703_v19 = vrot.slane %v19685_v15, 5  ;;  %v15643_v3 = vld [vmem:[%s20553_s4 + $0x1c0] sm:$0xff]  }
 0x335   : > { %14523 = vmatpush3.bf16.msra.mxu0 %v15635_v52  ;;  %v13235_v52 = vcombine.low %v19841_v4, %v19837_v58  ;;  %v13214_v54 = vrot.slane %v10637_v60, 9  ;;  %v13236_v20 = vcombine.low %v19861_v23, %v19845_v5  ;;  %v19873_v26 = vsel %vm16150_vm7, %v13213_v35, %v10700_v27  ;;  %v15647_v58 = vld [vmem:[%s20553_s4 + $0x1a0] sm:$0xff]   ;;  %v19970_v23 = vld [vmem:[#allocation2 + $0x58] sm:$0xf] }
 0x336   : > { %14765 = vmatmul.mubr.bf16.gmra.mrb[28].mxu1 %v13199_v18  ;;  %14524 = vmatprep.subr.bf16.mxu0 %v15637_v61  ;;  %v8216_v42 = vrot.slane %v8214_v13, 4  ;;  %v8219_v46 = vrot.slane %v8217_v51, 5  ;;  %v10710_v15 = vrot.slane %v19716_v48, 5  ;;  %v10714_v18 = vrot.slane %v19670_v39, 5  ;;  %v10638_v48 = vld [vmem:[#allocation2 + $0xc0] sm:$0xe] }
 0x337   : > { %14781 = vmatpush3.bf16.msra.mxu1 %v15632_v62  ;;  %14784 = vmatprep.mubr.bf16.mxu1 %v13232_v7  ;;  %v19875_v62 = vld [vmem:[#allocation2 + $0x34] sm:$0xf]  ;;  %v19879_v59 = vrot.slane %v8223_v17, 5  ;;  %v8229_v12 = vrot.slane %v8227_v9, 4  ;;  %v19886_v11 = vsel %vm16150_vm7, %v10702_v31, %v10703_v19  ;;  %v19890_v40 = vsel %vm16150_vm7, %v13214_v54, %v10707_v37  ;;  %v19894_v7 = vld [vmem:[#allocation2 + $0x20] sm:$0x1] }
 0x338   : > { %14782 = vmatprep.subr.bf16.mxu1 %v15634_v6  ;;  %14509 = vmatmul.mubr.bf16.gmra.mrb[28].mxu0 %v12925_v32  ;;  %v8247_v39 = vshll.u32 %v19864_v1, 16  ;;  %v8251_v24 = vshrl.u32 %v19864_v1, 16  ;;  %v8238_v57 = vshrl.u32 %v8192_v56, 16  ;;  %v8271_v43 = vshll.u32 %v19875_v62, 16  ;;  %v15649_v17 = vld [vmem:[%s20553_s4 + $0x1d0] sm:$0xff]  }
 0x339   : > { %14525 = vmatpush3.bf16.msra.mxu0 %v15637_v61  ;;  %14528 = vmatprep.mubr.bf16.mxu0 %v15638_v30  ;;  %v8241_v61 = vshll.u32 %v8192_v56, 16  ;;  %v8275_v41 = vshrl.u32 %v19875_v62, 16  ;;  %v10709_v2 = vrot.slane %v10707_v37, 4  ;;  %v8220_v14 = vor.u32 %v8219_v46, %v8216_v42  ;;  %v341_v30 = vld [vmem:[#allocation2 + $0xcc] sm:$0x1] }
 0x33a   : > { %14526 = vmatprep.subr.bf16.mxu0 %v15640_v28  ;;  %v8262_v47 = vshrl.u32 %v8195_v53, 16  ;;  %v8265_v44 = vshll.u32 %v8195_v53, 16  ;;  %v13215_v32 = vrot.slane %v10638_v48, 9  ;;  %v10716_v21 = vrot.slane %v10714_v18, 4  ;;  %v19933_v56 = vld [vmem:[#allocation2 + $0x38] sm:$0x1] }
 0x33b   : > { %14783 = vmatpush3.bf16.msra.mxu1 %v15634_v6  ;;  %v15644_v6 = vld [vmem:[#allocation2 + $0x30] sm:$0xff]   ;;  %v10717_v10 = vrot.slane %v19732_v22, 5  ;;  %v8230_v27 = vor.u32 %v8229_v12, %v19879_v59  ;;  %v13237_v45 = vcombine.low %v19873_v26, %v19886_v11  ;;  %v8233_v16 = vshll.u32 %v19894_v7, 16  ;;  %v8198_v46 = vld [vmem:[#allocation2 + $0x3c] sm:$0xf] }
 0x33c   : > { %14800 = vmatprep.subr.bf16.mxu1 %v15636_v49  ;;  %v19911_v34 = vrot.slane %v8247_v39, 5  ;;  %v8240_v22 = vrot.slane %v8238_v57, 4  ;;  %v8243_v60 = vrot.slane %v8241_v61, 5  ;;  %v19915_v13 = vrot.slane %v8271_v43, 5  ;;  %v15648_v61 = vld [vmem:[#allocation2 + $0x3c] sm:$0xff]  }
 0x33d   : > { %14527 = vmatpush3.bf16.msra.mxu0 %v15640_v28  ;;  %v19913_v28 = vld [vmem:[#allocation2 + $0x40] sm:$0xf]  ;;  %v8277_v51 = vrot.slane %v8275_v41, 4  ;;  %v19922_v9 = vsel %vm16150_vm7, %v10709_v2, %v10710_v15  ;;  %v8267_v35 = vrot.slane %v8265_v44, 5  ;;  %v19926_v31 = vsel %vm16150_vm7, %v13215_v32, %v10714_v18  ;;  %v15652_v43 = vld [vmem:[%s20553_s4 + $0x1d8] sm:$0xff]  }
 0x33e   : > { %14785 = vmatmul.mubr.bf16.vlgmr.msra.gmra.mrb[16].mxu1 %v13233_v0  ;;  %14544 = vmatprep.subr.bf16.mxu0 %v15643_v3  ;;  %v8253_v0 = vrot.slane %v8251_v24, 4  ;;  %v19930_v37 = vsel %vm16150_vm7, %v10716_v21, %v10717_v10  ;;  %v8231_v19 = vrot.slane %v8230_v27, 4  ;;  %v8257_v54 = vshll.u32 %v19903_v38, 16  ;;  %v8201_v2 = vld [vmem:[#allocation2 + $0x48] sm:$0xf] }
 0x33f   : > { %14801 = vmatpush3.bf16.msra.mxu1 %v15636_v49  ;;  %14788 = vmatprep.mubr.bf16.mxu1 %v13234_v33  ;;  %v8221_v49 = vrot.slane %v8220_v14, 4  ;;  %v8264_v33 = vrot.slane %v8262_v47, 4  ;;  %v8295_v15 = vshll.u32 %v19913_v28, 16  ;;  %v8299_v18 = vshrl.u32 %v19913_v28, 16  ;;  %v19966_v44 = vld [vmem:[#allocation2 + $0x4c] sm:$0xf] }
 0x340   : > { %14802 = vmatprep.subr.bf16.mxu1 %v15639_v36  ;;  %14529 = vmatmul.mubr.bf16.vlgmr.msra.gmra.mrb[16].mxu0 %v15642_v25  ;;  %v8254_v42 = vor.u32 %v8253_v0, %v19911_v34  ;;  %v342_v53 = vsel %vm18030_vm10, 0, %v341_v30  ;;  %v13238_v48 = vcombine.low %v19890_v40, %v19922_v9  ;;  %v8235_v39 = vrot.slane %v8233_v16, 5  ;;  %v19972_v10 = vld [vmem:[#allocation2 + $0x44] sm:$0x1]  ;;  %v19997_v12 = vld [vmem:[#allocation2 + $0x50] sm:$0x1] }
 0x341   : > { %14532 = vmatprep.mubr.bf16.mxu0 %v15644_v6  ;;  %14545 = vmatpush3.bf16.msra.mxu0 %v15643_v3  ;;  %v15645_v3 = vld [vmem:[%s20553_s4 + $0x198] sm:$0xff]   ;;  %v8244_v24 = vor.u32 %v8243_v60, %v8240_v22  ;;  %v8278_v57 = vor.u32 %v8277_v51, %v19915_v13  ;;  %343 = vst [vmem:[#allocation2 + $0xcc] sm:$0x1] %v342_v53  ;;  %v8281_v14 = vshll.u32 %v19933_v56, 16  ;;  %v8286_v47 = vshrl.u32 %v8198_v46, 16  ;;  %v15655_v16 = vld [vmem:[%s20553_s4 + $0x1e0] sm:$0xff]  }
 0x342   : > { %14546 = vmatprep.subr.bf16.mxu0 %v15646_v63  ;;  %v13239_v41 = vcombine.low %v19926_v31, %v19930_v37  ;;  %v8226_v25 = vsel %vm15821_vm4, %v8221_v49, %v19879_v59  ;;  %v8236_v4 = vsel %vm15821_vm4, %v8231_v19, %v8235_v39  ;;  %v8255_v59 = vrot.slane %v8254_v42, 4  ;;  %v8204_v49 = vld [vmem:[#allocation2 + $0x54] sm:$0xf]  ;;  %v15651_v19 = vld [vmem:[%s20553_s4 + $0x1a8] sm:$0xff]   ;;  %v19999_v39 = vld [vmem:[#allocation2 + $0x64] sm:$0xf] }
 0x343   : > { %14803 = vmatpush3.bf16.msra.mxu1 %v15639_v36  ;;  %v15650_v36 = vld [vmem:[#allocation2 + $0x48] sm:$0xff]   ;;  %v8289_v6 = vshll.u32 %v8198_v46, 16  ;;  %v19968_v32 = vrot.slane %v8295_v15, 5  ;;  %v8301_v5 = vrot.slane %v8299_v18, 4  ;;  %v8279_v21 = vrot.slane %v8278_v57, 4 }
 0x344   : > { %14804 = vmatprep.subr.bf16.mxu1 %v15641_v8  ;;  %v8310_v27 = vshrl.u32 %v8201_v2, 16  ;;  %v19977_v0 = vcombine.low %v8226_v25, %v8236_v4  ;;  %v8319_v60 = vshll.u32 %v19966_v44, 16  ;;  %v8323_v51 = vshrl.u32 %v19966_v44, 16  ;;  %v15659_v57 = vld [vmem:[%s20553_s4 + $0x1e8] sm:$0xff]   ;;  %v8207_v4 = vld [vmem:[#allocation2 + $0x60] sm:$0xf] }
 0x345   : > { %14547 = vmatpush3.bf16.msra.mxu0 %v15646_v63  ;;  %v8268_v63 = vor.u32 %v8267_v35, %v8264_v33  ;;  %v8283_v30 = vrot.slane %v8281_v14, 5  ;;  %v8343_v33 = vshll.u32 %v19970_v23, 16  ;;  %v8347_v35 = vshrl.u32 %v19970_v23, 16  ;;  %v20029_v14 = vld [vmem:[#allocation2 + $0x7c] sm:$0xf] }
 0x346   : > { %14789 = vmatmul.mubr.bf16.gmra.mrb[20].mxu1 %v13235_v52  ;;  %14548 = vmatprep.subr.bf16.mxu0 %v15649_v17  ;;  %v8259_v52 = vrot.slane %v8257_v54, 5  ;;  %v8291_v42 = vrot.slane %v8289_v6, 5  ;;  %v8302_v46 = vor.u32 %v8301_v5, %v19968_v32  ;;  %v8312_v53 = vrot.slane %v8310_v27, 4  ;;  %v11171_v5 = vld [vmem:[#allocation2 + $0x78] sm:$0xf] }
 0x347   : > { %14805 = vmatpush3.bf16.msra.mxu1 %v15641_v8  ;;  %14792 = vmatprep.mubr.bf16.mxu1 %v13236_v20  ;;  %v8245_v20 = vrot.slane %v8244_v24, 4  ;;  %v8313_v8 = vshll.u32 %v8201_v2, 16  ;;  %v8269_v22 = vrot.slane %v8268_v63, 4  ;;  %v8284_v18 = vsel %vm15821_vm4, %v8279_v21, %v8283_v30  ;;  %v15654_v24 = vld [vmem:[#allocation2 + $0x54] sm:$0xff]   ;;  %v15656_v63 = vld [vmem:[#allocation2 + $0x60] sm:$0xff]  }
 0x348   : > { %14806 = vmatprep.subr.bf16.mxu1 %v15645_v3  ;;  %14533 = vmatmul.mubr.bf16.gmra.mrb[20].mxu0 %v15648_v61  ;;  %v8260_v54 = vsel %vm15821_vm4, %v8255_v59, %v8259_v52  ;;  %v8325_v61 = vrot.slane %v8323_v51, 4  ;;  %v8337_v25 = vshll.u32 %v8204_v49, 16  ;;  %v20017_v11 = vrot.slane %v8343_v33, 5  ;;  %v15658_v33 = vld [vmem:[%s20553_s4 + $0x1b8] sm:$0xff]  }
 0x349   : > { %14536 = vmatprep.mubr.bf16.mxu0 %v15650_v36  ;;  %14549 = vmatpush3.bf16.msra.mxu0 %v15649_v17  ;;  %v19981_v17 = vrot.slane %v8286_v47, 4  ;;  %v8250_v15 = vsel %vm15821_vm4, %v8245_v20, %v19911_v34  ;;  %v8315_v36 = vrot.slane %v8313_v8, 5  ;;  %v20007_v34 = vrot.slane %v8319_v60, 5  ;;  %v15662_v20 = vld [vmem:[%s20553_s4 + $0x1f0] sm:$0xff]  }
 0x34a   : > { %14550 = vmatprep.subr.bf16.mxu0 %v15652_v43  ;;  %v20012_v2 = vcombine.low %v8250_v15, %v8260_v54  ;;  %v8274_v26 = vsel %vm15821_vm4, %v8269_v22, %v19915_v13  ;;  %v20025_v9 = vrot.slane %v8302_v46, 4  ;;  %v8329_v47 = vshll.u32 %v19997_v12, 16 }
 0x34b   : > { %14807 = vmatpush3.bf16.msra.mxu1 %v15645_v3  ;;  %v8305_v3 = vshll.u32 %v19972_v10, 16  ;;  %v20022_v52 = vcombine.low %v8274_v26, %v8284_v18  ;;  %v8292_v40 = vor.u32 %v8291_v42, %v19981_v17  ;;  %v8316_v13 = vor.u32 %v8315_v36, %v8312_v53  ;;  %v8210_v36 = vld [vmem:[#allocation2 + $0x6c] sm:$0xf] }
 0x34c   : > { %14808 = vmatprep.subr.bf16.mxu1 %v15647_v58  ;;  %v8367_v59 = vshll.u32 %v19999_v39, 16  ;;  %v8371_v6 = vshrl.u32 %v19999_v39, 16  ;;  %v8326_v21 = vor.u32 %v8325_v61, %v20007_v34  ;;  %v8339_v8 = vrot.slane %v8337_v25, 5 }
 0x34d   : > { %14551 = vmatpush3.bf16.msra.mxu0 %v15652_v43  ;;  %v8334_v43 = vshrl.u32 %v8204_v49, 16  ;;  %v8358_v22 = vshrl.u32 %v8207_v4, 16  ;;  %v8361_v51 = vshll.u32 %v8207_v4, 16  ;;  %v11205_v30 = vshll.u32 %v20029_v14, 16  ;;  %v15657_v49 = vld [vmem:[#allocation2 + $0x78] sm:$0xff]   ;;  %v15660_v4 = vld [vmem:[%s20553_s4 + $0x1c0] sm:$0xff]  }
 0x34e   : > { %14793 = vmatmul.mubr.bf16.gmra.mrb[24].mxu1 %v13237_v45  ;;  %14552 = vmatprep.subr.bf16.mxu0 %v15655_v16  ;;  %v8349_v45 = vrot.slane %v8347_v35, 4  ;;  %v11209_v17 = vshrl.u32 %v20029_v14, 16  ;;  %v15661_v35 = vld [vmem:[#allocation2 + $0x6c] sm:$0xff]   ;;  %v8293_v54 = vrot.slane %v8292_v40, 4  ;;  %v11196_v42 = vshrl.u32 %v11171_v5, 16 }
 0x34f   : > { %14809 = vmatpush3.bf16.msra.mxu1 %v15647_v58  ;;  %14796 = vmatprep.mubr.bf16.mxu1 %v13238_v48  ;;  %v15653_v58 = vld [vmem:[%s20553_s4 + $0x1b0] sm:$0xff]   ;;  %v20027_v48 = vrot.slane %v8305_v3, 5  ;;  %v8336_v27 = vrot.slane %v8334_v43, 4  ;;  %v11199_v46 = vshll.u32 %v11171_v5, 16  ;;  %v20050_v3 = vrot.slane %v8316_v13, 4  ;;  %v15668_v5 = vld [vmem:[%s20553_s4 + $0x200] sm:$0xff]  }
 0x350   : > { %14810 = vmatprep.subr.bf16.mxu1 %v15651_v19  ;;  %14537 = vmatmul.mubr.bf16.gmra.mrb[24].mxu0 %v15654_v24  ;;  %v8350_v60 = vor.u32 %v8349_v45, %v20017_v11  ;;  %v20052_v15 = vrot.slane %v8329_v47, 5  ;;  %v20054_v18 = vrot.slane %v8367_v59, 5  ;;  %v8373_v53 = vrot.slane %v8371_v6, 4  ;;  %v15666_v24 = vld [vmem:[%s20553_s4 + $0x1f8] sm:$0xff]   ;;  %v20069_v45 = vld [vmem:[#allocation2 + $0x68] sm:$0x1] }
 0x351   : > { %14540 = vmatprep.mubr.bf16.mxu0 %v15656_v63  ;;  %14553 = vmatpush3.bf16.msra.mxu0 %v15655_v16  ;;  %v20038_v16 = vld [vmem:[#allocation2 + $0x5c] sm:$0x1]  ;;  %v20062_v61 = vrot.slane %v8326_v21, 4  ;;  %v8360_v25 = vrot.slane %v8358_v22, 4  ;;  %v20065_v63 = vld [vmem:[#allocation2 + $0x70] sm:$0xf] }
 0x352   : > { %14554 = vmatprep.subr.bf16.mxu0 %v15659_v57  ;;  %v8353_v43 = vshll.u32 %v20038_v16, 16  ;;  %v20067_v26 = vrot.slane %v8350_v60, 4  ;;  %v8363_v31 = vrot.slane %v8361_v51, 5  ;;  %v20071_v37 = vrot.slane %v11205_v30, 5  ;;  %v11174_v30 = vld [vmem:[#allocation2 + $0x84] sm:$0xf] }
 0x353   : > { %14811 = vmatpush3.bf16.msra.mxu1 %v15651_v19  ;;  %v8308_v19 = vsel %vm15821_vm4, %v20025_v9, %v20027_v48  ;;  %v11198_v40 = vrot.slane %v11196_v42, 4  ;;  %v11201_v9 = vrot.slane %v11199_v46, 5  ;;  %v8382_v48 = vshrl.u32 %v8210_v36, 16 }
 0x354   : > { %14812 = vmatprep.subr.bf16.mxu1 %v15653_v58  ;;  %v8385_v13 = vshll.u32 %v8210_v36, 16  ;;  %v8374_v47 = vor.u32 %v8373_v53, %v20054_v18  ;;  %v8391_v59 = vshll.u32 %v20065_v63, 16  ;;  %v8395_v6 = vshrl.u32 %v20065_v63, 16 }
 0x355   : > { %14555 = vmatpush3.bf16.msra.mxu0 %v15659_v57  ;;  %v8340_v57 = vor.u32 %v8339_v8, %v8336_v27  ;;  %v20096_v27 = vld [vmem:[#allocation2 + $0x80] sm:$0x1]  ;;  %v8364_v22 = vor.u32 %v8363_v31, %v8360_v25  ;;  %v8377_v60 = vshll.u32 %v20069_v45, 16 }
 0x356   : > { %14797 = vmatmul.mubr.bf16.gmra.mrb[28].mxu1 %v13239_v41  ;;  %14556 = vmatprep.subr.bf16.mxu0 %v15662_v20  ;;  %v11211_v41 = vrot.slane %v11209_v17, 4  ;;  %v20100_v17 = vld [vmem:[#allocation2 + $0x88] sm:$0xf]  ;;  %v8387_v42 = vrot.slane %v8385_v13, 5  ;;  %v8375_v46 = vrot.slane %v8374_v47, 4  ;;  %v20111_v53 = vrot.slane %v8391_v59, 5 }
 0x357   : > { %14813 = vmatpush3.bf16.msra.mxu1 %v15653_v58  ;;  %14816 = vmatprep.mubr.bf16.mxu1 %v15657_v49  ;;  %v8298_v58 = vsel %vm15821_vm4, %v8293_v54, %v19968_v32  ;;  %v8332_v32 = vsel %vm15821_vm4, %v20062_v61, %v20052_v15  ;;  %v8341_v8 = vrot.slane %v8340_v57, 4  ;;  %v15664_v49 = vld [vmem:[#allocation2 + $0x90] sm:$0xff]   ;;  %v11202_v54 = vor.u32 %v11201_v9, %v11198_v40  ;;  %v15672_v61 = vld [vmem:[%s20553_s4 + $0x208] sm:$0xff]  }
 0x358   : > { %14814 = vmatprep.subr.bf16.mxu1 %v15658_v33  ;;  %14541 = vmatmul.mubr.bf16.gmra.mrb[28].mxu0 %v15661_v35  ;;  %v20086_v21 = vcombine.low %v8298_v58, %v8308_v19  ;;  %v11212_v51 = vor.u32 %v11211_v41, %v20071_v37  ;;  %v15665_v35 = vld [vmem:[%s20553_s4 + $0x1c8] sm:$0xff]   ;;  %v8384_v19 = vrot.slane %v8382_v48, 4  ;;  %v20109_v15 = vld [vmem:[#allocation2 + $0x74] sm:$0x1]  ;;  %v8397_v36 = vrot.slane %v8395_v6, 4 }
 0x359   : > { %14557 = vmatpush3.bf16.msra.mxu0 %v15662_v20  ;;  %14560 = vmatprep.mubr.bf16.mxu0 %v19977_v0  ;;  %v8322_v0 = vsel %vm15821_vm4, %v20050_v3, %v20007_v34  ;;  %v8355_v20 = vrot.slane %v8353_v43, 5  ;;  %v15663_v34 = vld [vmem:[#allocation2 + $0x84] sm:$0xff]   ;;  %v11215_v3 = vshll.u32 %v20096_v27, 16  ;;  %v11220_v57 = vshrl.u32 %v11174_v30, 16  ;;  %v15667_v9 = vld [vmem:[%s20553_s4 + $0x1d0] sm:$0xff]  }
 0x35a   : > { %14558 = vmatprep.subr.bf16.mxu0 %v15666_v24  ;;  %v11223_v43 = vshll.u32 %v11174_v30, 16  ;;  %v11229_v25 = vshll.u32 %v20100_v17, 16  ;;  %v8365_v31 = vrot.slane %v8364_v22, 4  ;;  %v8379_v41 = vrot.slane %v8377_v60, 5  ;;  %v20127_v47 = vld [vmem:[#allocation2 + $0x94] sm:$0xf] }
 0x35b   : > { %14815 = vmatpush3.bf16.msra.mxu1 %v15658_v33  ;;  %v8356_v33 = vsel %vm15821_vm4, %v20067_v26, %v8355_v20  ;;  %v8346_v26 = vsel %vm15821_vm4, %v8341_v8, %v20017_v11  ;;  %v11213_v40 = vrot.slane %v11212_v51, 4  ;;  %v12986_v48 = vcombine.low %v8322_v0, %v8332_v32  ;;  %v20134_v8 = vld [vmem:[#allocation2 + $0x8c] sm:$0x1]  ;;  %v15674_v0 = vld [vmem:[%s20553_s4 + $0x210] sm:$0xff]   ;;  %v15669_v60 = vld [vmem:[#allocation2 + $0x9c] sm:$0xff]  }
 0x35c   : > { %14832 = vmatprep.subr.bf16.mxu1 %v15660_v4  ;;  %v20125_v13 = vcombine.low %v8346_v26, %v8356_v33  ;;  %v11203_v58 = vrot.slane %v11202_v54, 4  ;;  %v8380_v11 = vsel %vm15821_vm4, %v8375_v46, %v8379_v41  ;;  %v11217_v59 = vrot.slane %v11215_v3, 5  ;;  %v15670_v33 = vld [vmem:[#allocation2 + $0xa8] sm:$0xff]   ;;  %v15671_v54 = vld [vmem:[%s20553_s4 + $0x1d8] sm:$0xff]  }
 0x35d   : > { %14559 = vmatpush3.bf16.msra.mxu0 %v15666_v24  ;;  %v11233_v24 = vshrl.u32 %v20100_v17, 16  ;;  %v8398_v6 = vor.u32 %v8397_v36, %v20111_v53  ;;  %v8401_v20 = vshll.u32 %v20109_v15, 16  ;;  %v11222_v32 = vrot.slane %v11220_v57, 4  ;;  %v11180_v46 = vld [vmem:[#allocation2 + $0x9c] sm:$0xf] }
 0x35e   : > { %14817 = vmatmul.mubr.bf16.vlgmr.msra.gmra.mrb[16].mxu1 %v15663_v34  ;;  %14576 = vmatprep.subr.bf16.mxu0 %v15668_v5  ;;  %v11225_v22 = vrot.slane %v11223_v43, 5  ;;  %v8370_v51 = vsel %vm15821_vm4, %v8365_v31, %v20054_v18  ;;  %v11218_v30 = vsel %vm15821_vm4, %v11213_v40, %v11217_v59  ;;  %v11253_v34 = vshll.u32 %v20127_v47, 16 }
 0x35f   : > { %14833 = vmatpush3.bf16.msra.mxu1 %v15660_v4  ;;  %14820 = vmatprep.mubr.bf16.mxu1 %v15664_v49  ;;  %v8388_v4 = vor.u32 %v8387_v42, %v8384_v19  ;;  %v11257_v49 = vshrl.u32 %v20127_v47, 16  ;;  %v20151_v19 = vcombine.low %v8370_v51, %v8380_v11  ;;  %v8649_v42 = vrot.slane %v19819_v50, 5  ;;  %v15673_v11 = vld [vmem:[%s20553_s4 + $0x1e0] sm:$0xff]  }
 0x360   : > { %14834 = vmatprep.subr.bf16.mxu1 %v15665_v35  ;;  %14561 = vmatmul.mubr.bf16.vlgmr.msra.gmra.mrb[16].mxu0 %v20012_v2  ;;  %v11177_v2 = vld [vmem:[#allocation2 + $0x90] sm:$0xf]  ;;  %v8403_v3 = vrot.slane %v8401_v20, 5  ;;  %v11239_v36 = vshll.u32 %v20134_v8, 16  ;;  %v11226_v31 = vor.u32 %v11225_v22, %v11222_v32  ;;  %v20166_v41 = vrot.slane %v11253_v34, 5 }
 0x361   : > { %14564 = vmatprep.mubr.bf16.mxu0 %v20022_v52  ;;  %14577 = vmatpush3.bf16.msra.mxu0 %v15668_v5  ;;  %v20139_v52 = vrot.slane %v11229_v25, 5  ;;  %v11235_v5 = vrot.slane %v11233_v24, 4  ;;  %v8389_v18 = vrot.slane %v8388_v4, 4  ;;  %v11244_v57 = vshrl.u32 %v11177_v2, 16  ;;  %v20158_v25 = vld [vmem:[#allocation2 + $0xa0] sm:$0xf] }
 0x362   : > { %14578 = vmatprep.subr.bf16.mxu0 %v15672_v61  ;;  %v11247_v43 = vshll.u32 %v11177_v2, 16  ;;  %v15678_v24 = vld [vmem:[%s20553_s4 + $0x218] sm:$0xff]   ;;  %v11259_v40 = vrot.slane %v11257_v49, 4  ;;  %v11271_v4 = vshll.u32 %v11180_v46, 16  ;;  %v11281_v20 = vshrl.u32 %v20158_v25, 16 }
 0x363   : > { %14835 = vmatpush3.bf16.msra.mxu1 %v15665_v35  ;;  %v11208_v35 = vsel %vm15821_vm4, %v11203_v58, %v20071_v37  ;;  %v8399_v37 = vrot.slane %v8398_v6, 4  ;;  %v11236_v50 = vor.u32 %v11235_v5, %v20139_v52  ;;  %v11268_v58 = vshrl.u32 %v11180_v46, 16  ;;  %v15677_v46 = vld [vmem:[%s20553_s4 + $0x1e8] sm:$0xff]  }
 0x364   : > { %14836 = vmatprep.subr.bf16.mxu1 %v15667_v9  ;;  %v20163_v26 = vcombine.low %v11208_v35, %v11218_v30  ;;  %v8394_v59 = vsel %vm15821_vm4, %v8389_v18, %v20111_v53  ;;  %v8651_v6 = vrot.slane %v8649_v42, 4  ;;  %v20177_v2 = vrot.slane %v11239_v36, 5  ;;  %v20185_v30 = vld [vmem:[#allocation2 + $0x98] sm:$0x1]  ;;  %v11183_v35 = vld [vmem:[#allocation2 + $0xa8] sm:$0xf] }
 0x365   : > { %14579 = vmatpush3.bf16.msra.mxu0 %v15672_v61  ;;  %v8615_v61 = vld [vmem:[#allocation2 + $0x18] sm:$0xe]  ;;  %v11246_v22 = vrot.slane %v11244_v57, 4  ;;  %v11249_v5 = vrot.slane %v11247_v43, 5  ;;  %v8404_v53 = vsel %vm15821_vm4, %v8399_v37, %v8403_v3  ;;  %v8652_v51 = vrot.slane %v19894_v7, 5  ;;  %v15676_v57 = vld [vmem:[#allocation2 + $0xc0] sm:$0xff]  }
 0x366   : > { %14821 = vmatmul.mubr.bf16.gmra.mrb[20].mxu1 %v15669_v60  ;;  %14580 = vmatprep.subr.bf16.mxu0 %v15674_v0  ;;  %v12998_v32 = vrot.slane %v8615_v61, 9  ;;  %v11227_v60 = vrot.slane %v11226_v31, 4  ;;  %v11260_v34 = vor.u32 %v11259_v40, %v20166_v41  ;;  %v11270_v49 = vrot.slane %v11268_v58, 4  ;;  %v15675_v18 = vld [vmem:[#allocation2 + $0xb4] sm:$0xff]   ;;  %v20206_v61 = vld [vmem:[#allocation2 + $0xac] sm:$0xf] }
 0x367   : > { %14837 = vmatpush3.bf16.msra.mxu1 %v15667_v9  ;;  %14824 = vmatprep.mubr.bf16.mxu1 %v15670_v33  ;;  %v11277_v9 = vshll.u32 %v20158_v25, 16  ;;  %v11273_v33 = vrot.slane %v11271_v4, 5  ;;  %v20198_v3 = vsel %vm16150_vm7, %v8651_v6, %v8652_v51  ;;  %v11283_v36 = vrot.slane %v11281_v20, 4 }
 0x368   : > { %14838 = vmatprep.subr.bf16.mxu1 %v15671_v54  ;;  %14565 = vmatmul.mubr.bf16.gmra.mrb[20].mxu0 %v20086_v21  ;;  %v15680_v21 = vld [vmem:[%s20553_s4 + $0x220] sm:$0xff]   ;;  %v20194_v7 = vsel %vm16150_vm7, %v12998_v32, %v8649_v42  ;;  %v20202_v43 = vcombine.low %v8394_v59, %v8404_v53  ;;  %v11250_v37 = vor.u32 %v11249_v5, %v11246_v22  ;;  %v11263_v31 = vshll.u32 %v20185_v30, 16  ;;  %v15683_v42 = vld [vmem:[%s20553_s4 + $0x228] sm:$0xff]  }
 0x369   : > { %14568 = vmatprep.mubr.bf16.mxu0 %v12986_v48  ;;  %14581 = vmatpush3.bf16.msra.mxu0 %v15674_v0  ;;  %v8656_v48 = vrot.slane %v19864_v1, 5  ;;  %v11237_v0 = vrot.slane %v11236_v50, 4  ;;  %v8663_v50 = vrot.slane %v19875_v62, 5  ;;  %v11232_v40 = vsel %vm15821_vm4, %v11227_v60, %v20139_v52  ;;  %v20221_v32 = vld [vmem:[#allocation2 + $0xa4] sm:$0x1]  ;;  %v15679_v52 = vld [vmem:[%s20553_s4 + $0x1f0] sm:$0xff]  }
 0x36a   : > { %14582 = vmatprep.subr.bf16.mxu0 %v15678_v24  ;;  %v11292_v4 = vshrl.u32 %v11183_v35, 16  ;;  %v11295_v59 = vshll.u32 %v11183_v35, 16  ;;  %v11261_v20 = vrot.slane %v11260_v34, 4  ;;  %v11274_v22 = vor.u32 %v11273_v33, %v11270_v49  ;;  %v8617_v34 = vld [vmem:[#allocation2 + $0x30] sm:$0xe] }
 0x36b   : > { %14839 = vmatpush3.bf16.msra.mxu1 %v15671_v54  ;;  %v20200_v54 = vrot.slane %v11277_v9, 5  ;;  %v8658_v58 = vrot.slane %v8656_v48, 4  ;;  %v11242_v6 = vsel %vm15821_vm4, %v11237_v0, %v20177_v2  ;;  %v13022_v9 = vcombine.low %v20194_v7, %v20198_v3  ;;  %v15681_v33 = vld [vmem:[#allocation2 + $0xcc] sm:$0xff]  }
 0x36c   : > { %14840 = vmatprep.subr.bf16.mxu1 %v15673_v11  ;;  %v11301_v2 = vshll.u32 %v20206_v61, 16  ;;  %v11305_v53 = vshrl.u32 %v20206_v61, 16  ;;  %v11251_v60 = vrot.slane %v11250_v37, 4  ;;  %v11265_v51 = vrot.slane %v11263_v31, 5  ;;  %v397_v31 = vld [vmem:[#allocation2 + $0xd4] sm:$0x1] }
 0x36d   : > { %14583 = vmatpush3.bf16.msra.mxu0 %v15678_v24  ;;  %v8616_v24 = vld [vmem:[#allocation2 + $0x24] sm:$0xe]  ;;  %v11284_v5 = vor.u32 %v11283_v36, %v20200_v54  ;;  %v8665_v49 = vrot.slane %v8663_v50, 4  ;;  %v11297_v35 = vrot.slane %v11295_v59, 5  ;;  %v8666_v37 = vrot.slane %v19933_v56, 5  ;;  %v15686_v7 = vld [vmem:[%s20553_s4 + $0x208] sm:$0xff]  }
 0x36e   : > { %14825 = vmatmul.mubr.bf16.gmra.mrb[24].mxu1 %v15675_v18  ;;  %14584 = vmatprep.subr.bf16.mxu0 %v15680_v21  ;;  %v12999_v0 = vrot.slane %v8616_v24, 9  ;;  %v20242_v18 = vcombine.low %v11232_v40, %v11242_v6  ;;  %v11266_v36 = vsel %vm15821_vm4, %v11261_v20, %v11265_v51  ;;  %v15682_v24 = vld [vmem:[%s20553_s4 + $0x1f8] sm:$0xff]   ;;  %v20256_v40 = vld [vmem:[#allocation2 + $0xb0] sm:$0x1]  ;;  %v11307_v59 = vrot.slane %v11305_v53, 4 }
 0x36f   : > { %14841 = vmatpush3.bf16.msra.mxu1 %v15673_v11  ;;  %14828 = vmatprep.mubr.bf16.mxu1 %v15676_v57  ;;  %v8659_v11 = vrot.slane %v19903_v38, 5  ;;  %v15685_v38 = vld [vmem:[%s20553_s4 + $0x230] sm:$0xff]   ;;  %v11275_v57 = vrot.slane %v11274_v22, 4  ;;  %v11256_v56 = vsel %vm15821_vm4, %v11251_v60, %v20166_v41  ;;  %v13000_v20 = vrot.slane %v8617_v34, 9  ;;  %v8618_v34 = vld [vmem:[#allocation2 + $0x3c] sm:$0xe] }
 0x370   : > { %14842 = vmatprep.subr.bf16.mxu1 %v15677_v46  ;;  %14569 = vmatmul.mubr.bf16.gmra.mrb[24].mxu0 %v20125_v13  ;;  %v20267_v1 = vsel %vm16150_vm7, %v8665_v49, %v8666_v37  ;;  %v13298_v22 = vcombine.low %v11256_v56, %v11266_v36  ;;  %v398_v53 = vsel %vm18204_vm12, 0, %v397_v31  ;;  %v8670_v49 = vrot.slane %v19913_v28, 5 }
 0x371   : > { %14572 = vmatprep.mubr.bf16.mxu0 %v20151_v19  ;;  %14585 = vmatpush3.bf16.msra.mxu0 %v15680_v21  ;;  %v20239_v13 = vsel %vm16150_vm7, %v8658_v58, %v8659_v11  ;;  %v11287_v19 = vshll.u32 %v20221_v32, 16  ;;  %v11294_v21 = vrot.slane %v11292_v4, 4  ;;  %v20254_v58 = vsel %vm16150_vm7, %v12999_v0, %v8656_v48  ;;  %v11186_v48 = vld [vmem:[#allocation2 + $0xb4] sm:$0xf]  ;;  %399 = vst [vmem:[#allocation2 + $0xd4] sm:$0x1] %v398_v53 }
 0x372   : > { %14586 = vmatprep.subr.bf16.mxu0 %v15683_v42  ;;  %v20258_v4 = vrot.slane %v11301_v2, 5  ;;  %v13023_v6 = vcombine.low %v20254_v58, %v20239_v13  ;;  %v20272_v2 = vld [vmem:[#allocation2 + $0xb8] sm:$0xf]  ;;  %v11280_v60 = vsel %vm15821_vm4, %v11275_v57, %v20200_v54  ;;  %v8664_v51 = vsel %vm16150_vm7, %v13000_v20, %v8663_v50 }
 0x373   : > { %14843 = vmatpush3.bf16.msra.mxu1 %v15677_v46  ;;  %v11285_v46 = vrot.slane %v11284_v5, 4  ;;  %v11289_v11 = vrot.slane %v11287_v19, 5  ;;  %v11298_v5 = vor.u32 %v11297_v35, %v11294_v21  ;;  %v11311_v0 = vshll.u32 %v20256_v40, 16  ;;  %v11189_v35 = vld [vmem:[#allocation2 + $0xc0] sm:$0xf] }
 0x374   : > { %14844 = vmatprep.subr.bf16.mxu1 %v15679_v52  ;;  %v13024_v54 = vcombine.low %v8664_v51, %v20267_v1  ;;  %v11308_v50 = vor.u32 %v11307_v59, %v20258_v4  ;;  %v11316_v28 = vshrl.u32 %v11186_v48, 16  ;;  %v11325_v19 = vshll.u32 %v20272_v2, 16  ;;  %v8619_v51 = vld [vmem:[#allocation2 + $0x48] sm:$0xe] }
 0x375   : > { %14587 = vmatpush3.bf16.msra.mxu0 %v15683_v42  ;;  %v15687_v42 = vld [vmem:[%s20553_s4 + $0x238] sm:$0xff]   ;;  %v11290_v62 = vsel %vm15821_vm4, %v11285_v46, %v11289_v11  ;;  %v11329_v21 = vshrl.u32 %v20272_v2, 16  ;;  %v13001_v36 = vrot.slane %v8618_v34, 9  ;;  %v8673_v31 = vrot.slane %v19972_v10, 5  ;;  %v20309_v46 = vld [vmem:[#allocation2 + $0xd0] sm:$0xf] }
 0x376   : > { %14829 = vmatmul.mubr.bf16.gmra.mrb[28].mxu1 %v15681_v33  ;;  %14588 = vmatprep.subr.bf16.mxu0 %v15685_v38  ;;  %v20286_v33 = vld [vmem:[#allocation2 + $0xc4] sm:$0xf]  ;;  %v13299_v3 = vcombine.low %v11280_v60, %v11290_v62  ;;  %v11309_v59 = vrot.slane %v11308_v50, 4  ;;  %v8677_v56 = vrot.slane %v19966_v44, 5  ;;  %v11340_v20 = vshrl.u32 %v11189_v35, 16 }
 0x377   : > { %14845 = vmatpush3.bf16.msra.mxu1 %v15679_v52  ;;  %14848 = vmatprep.mubr.bf16.mxu1 %v20163_v26  ;;  %v15684_v26 = vld [vmem:[%s20553_s4 + $0x200] sm:$0xff]   ;;  %v11319_v52 = vshll.u32 %v11186_v48, 16  ;;  %v11349_v57 = vshll.u32 %v20286_v33, 16  ;;  %v11353_v37 = vshrl.u32 %v20286_v33, 16  ;;  %v11343_v1 = vshll.u32 %v11189_v35, 16 }
 0x378   : > { %14846 = vmatprep.subr.bf16.mxu1 %v15682_v24  ;;  %14573 = vmatmul.mubr.bf16.gmra.mrb[28].mxu0 %v20202_v43  ;;  %v20301_v43 = vrot.slane %v11298_v5, 4  ;;  %v11192_v48 = vld [vmem:[#allocation2 + $0xcc] sm:$0xf]  ;;  %v20312_v5 = vrot.slane %v11325_v19, 5  ;;  %v11331_v41 = vrot.slane %v11329_v21, 4  ;;  %v8671_v53 = vsel %vm16150_vm7, %v13001_v36, %v8670_v49 }
 0x379   : > { %14589 = vmatpush3.bf16.msra.mxu0 %v15685_v38  ;;  %14592 = vmatprep.mubr.bf16.mxu0 %v13022_v9  ;;  %v11313_v9 = vrot.slane %v11311_v0, 5  ;;  %v8672_v38 = vrot.slane %v8670_v49, 4  ;;  %v11321_v11 = vrot.slane %v11319_v52, 5  ;;  %v20321_v44 = vld [vmem:[#allocation2 + $0xbc] sm:$0x1]  ;;  %v20323_v60 = vrot.slane %v11349_v57, 5 }
 0x37a   : > { %14590 = vmatprep.subr.bf16.mxu0 %v15687_v42  ;;  %v11304_v10 = vsel %vm15821_vm4, %v20301_v43, %v20258_v4  ;;  %v11364_v0 = vshrl.u32 %v11192_v48, 16  ;;  %v11367_v34 = vshll.u32 %v11192_v48, 16  ;;  %v11377_v62 = vshrl.u32 %v20309_v46, 16  ;;  %v15688_v4 = vld [vmem:[%s20553_s4 + $0x210] sm:$0xff]   ;;  %v20339_v35 = vld [vmem:[#allocation2 + $0xc8] sm:$0x1] }
 0x37b   : > { %14847 = vmatpush3.bf16.msra.mxu1 %v15682_v24  ;;  %v11318_v24 = vrot.slane %v11316_v28, 4  ;;  %v8674_v49 = vsel %vm16150_vm7, %v8672_v38, %v8673_v31  ;;  %v11345_v50 = vrot.slane %v11343_v1, 5  ;;  %v11314_v28 = vsel %vm15821_vm4, %v11309_v59, %v11313_v9  ;;  %v15689_v9 = vld [vmem:[%s20553_s4 + $0x218] sm:$0xff]   ;;  %v20352_v59 = vld [vmem:[#allocation2 + $0xd4] sm:$0x1] }
 0x37c   : > { %14864 = vmatprep.subr.bf16.mxu1 %v15684_v26  ;;  %v11332_v19 = vor.u32 %v11331_v41, %v20312_v5  ;;  %v11335_v21 = vshll.u32 %v20321_v44, 16  ;;  %v13002_v43 = vrot.slane %v8619_v51, 9  ;;  %v8680_v13 = vrot.slane %v19997_v12, 5 }
 0x37d   : > { %14591 = vmatpush3.bf16.msra.mxu0 %v15687_v42  ;;  %v11355_v42 = vrot.slane %v11353_v37, 4  ;;  %v11322_v52 = vor.u32 %v11321_v11, %v11318_v24  ;;  %v11366_v36 = vrot.slane %v11364_v0, 4  ;;  %v11379_v37 = vrot.slane %v11377_v62, 4 }
 0x37e   : > { %14849 = vmatmul.mubr.bf16.vlgmr.msra.gmra.mrb[16].mxu1 %v20242_v18  ;;  %v11373_v18 = vshll.u32 %v20309_v46, 16  ;;  %v11359_v12 = vshll.u32 %v20339_v35, 16  ;;  %v11333_v48 = vrot.slane %v11332_v19, 4  ;;  %v11337_v24 = vrot.slane %v11335_v21, 5 }
 0x37f   : > { %14865 = vmatpush3.bf16.msra.mxu1 %v15684_v26  ;;  %14852 = vmatprep.mubr.bf16.mxu1 %v13298_v22  ;;  %v8679_v22 = vrot.slane %v8677_v56, 4  ;;  %v11342_v26 = vrot.slane %v11340_v20, 4  ;;  %v11356_v58 = vor.u32 %v11355_v42, %v20323_v60  ;;  %v13025_v20 = vcombine.low %v8671_v53, %v8674_v49  ;;  %v8620_v42 = vld [vmem:[#allocation2 + $0x54] sm:$0xe] }
 0x380   : > { %14866 = vmatprep.subr.bf16.mxu1 %v15686_v7  ;;  %14593 = vmatmul.mubr.bf16.vlgmr.msra.gmra.mrb[16].mxu0 %v13023_v6  ;;  %v8684_v6 = vrot.slane %v19970_v23, 5  ;;  %v20344_v57 = vrot.slane %v11373_v18, 5  ;;  %v8691_v23 = vrot.slane %v19999_v39, 5  ;;  %v11323_v1 = vrot.slane %v11322_v52, 4 }
 0x381   : > { %14596 = vmatprep.mubr.bf16.mxu0 %v13024_v54  ;;  %v11369_v54 = vrot.slane %v11367_v34, 5  ;;  %v8681_v38 = vsel %vm16150_vm7, %v8679_v22, %v8680_v13  ;;  %v11346_v31 = vor.u32 %v11345_v50, %v11342_v26  ;;  %v8678_v11 = vsel %vm16150_vm7, %v13002_v43, %v8677_v56  ;;  %v8621_v26 = vld [vmem:[#allocation2 + $0x60] sm:$0xe] }
 0x382   : > { %v11357_v41 = vrot.slane %v11356_v58, 4  ;;  %v8686_v51 = vrot.slane %v8684_v6, 4  ;;  %v13026_v0 = vcombine.low %v8678_v11, %v8681_v38  ;;  %v11380_v18 = vor.u32 %v11379_v37, %v20344_v57 }
 0x383   : > { %14867 = vmatpush3.bf16.msra.mxu1 %v15686_v7  ;;  %v13300_v7 = vcombine.low %v11304_v10, %v11314_v28  ;;  %v11370_v34 = vor.u32 %v11369_v54, %v11366_v36  ;;  %v11383_v39 = vshll.u32 %v20352_v59, 16  ;;  %v11347_v10 = vrot.slane %v11346_v31, 4  ;;  %v15691_v36 = vld [vmem:[%s20553_s4 + $0x228] sm:$0xff]  }
 0x384   : > { %14868 = vmatprep.subr.bf16.mxu1 %v15688_v4  ;;  %v11361_v53 = vrot.slane %v11359_v12, 5  ;;  %v8687_v56 = vrot.slane %v20038_v16, 5  ;;  %v8693_v62 = vrot.slane %v8691_v23, 4  ;;  %v11338_v49 = vsel %vm15821_vm4, %v11333_v48, %v11337_v24 }
 0x385   : > { %v13003_v22 = vrot.slane %v8620_v42, 9  ;;  %v8694_v52 = vrot.slane %v20069_v45, 5  ;;  %v11630_v16 = vrot.slane %v20029_v14, 5  ;;  %v11371_v19 = vrot.slane %v11370_v34, 4 }
 0x386   : > { %14853 = vmatmul.mubr.bf16.gmra.mrb[20].mxu1 %v13299_v3  ;;  %v15690_v3 = vld [vmem:[%s20553_s4 + $0x220] sm:$0xff]   ;;  %v11362_v50 = vsel %vm15821_vm4, %v11357_v41, %v11361_v53  ;;  %v8688_v28 = vsel %vm16150_vm7, %v8686_v51, %v8687_v56  ;;  %v11381_v21 = vrot.slane %v11380_v18, 4  ;;  %v8698_v43 = vrot.slane %v20065_v63, 5 }
 0x387   : > { %14869 = vmatpush3.bf16.msra.mxu1 %v15688_v4  ;;  %14856 = vmatprep.mubr.bf16.mxu1 %v13300_v7  ;;  %v11328_v4 = vsel %vm15821_vm4, %v11323_v1, %v20312_v5  ;;  %v11385_v5 = vrot.slane %v11383_v39, 5  ;;  %v11352_v58 = vsel %vm15821_vm4, %v11347_v10, %v20323_v60  ;;  %v13004_v54 = vrot.slane %v8621_v26, 9  ;;  %v11596_v7 = vld [vmem:[#allocation2 + $0x78] sm:$0xe]  ;;  %v8622_v1 = vld [vmem:[#allocation2 + $0x6c] sm:$0xe] }
 0x388   : > { %14870 = vmatprep.subr.bf16.mxu1 %v15689_v9  ;;  %14597 = vmatmul.mubr.bf16.gmra.mrb[20].mxu0 %v13025_v20  ;;  %v13301_v13 = vcombine.low %v11328_v4, %v11338_v49  ;;  %v8695_v14 = vsel %vm16150_vm7, %v8693_v62, %v8694_v52  ;;  %v13302_v45 = vcombine.low %v11352_v58, %v11362_v50  ;;  %v11632_v38 = vrot.slane %v11630_v16, 4  ;;  %v11597_v18 = vld [vmem:[#allocation2 + $0x84] sm:$0xe]  ;;  %v11598_v10 = vld [vmem:[#allocation2 + $0x90] sm:$0xe] }
 0x389   : > { %14600 = vmatprep.mubr.bf16.mxu0 %v13026_v0  ;;  %v8685_v37 = vsel %vm16150_vm7, %v13003_v22, %v8684_v6  ;;  %v11376_v60 = vsel %vm15821_vm4, %v11371_v19, %v20344_v57  ;;  %v11386_v31 = vsel %vm15821_vm4, %v11381_v21, %v11385_v5  ;;  %v8700_v20 = vrot.slane %v8698_v43, 4  ;;  %v15692_v6 = vld [vmem:[%s20553_s4 + $0x230] sm:$0xff]   ;;  %v11600_v21 = vld [vmem:[#allocation2 + $0xa8] sm:$0xe] }
 0x38a   : > { %v13027_v63 = vcombine.low %v8685_v37, %v8688_v28  ;;  %v8701_v48 = vrot.slane %v20109_v15, 5  ;;  %v11637_v57 = vrot.slane %v20100_v17, 5  ;;  %v13303_v24 = vcombine.low %v11376_v60, %v11386_v31  ;;  %v15693_v17 = vld [vmem:[%s20553_s4 + $0x238] sm:$0xff]   ;;  %v11603_v31 = vld [vmem:[#allocation2 + $0xcc] sm:$0xe] }
 0x38b   : > { %14871 = vmatpush3.bf16.msra.mxu1 %v15689_v9  ;;  %v8692_v9 = vsel %vm16150_vm7, %v13004_v54, %v8691_v23  ;;  %v11633_v23 = vrot.slane %v20096_v27, 5  ;;  %v13312_v29 = vrot.slane %v11596_v7, 9  ;;  %v11644_v41 = vrot.slane %v20127_v47, 5 }
 0x38c   : > { %14872 = vmatprep.subr.bf16.mxu1 %v15690_v3  ;;  %v13028_v12 = vcombine.low %v8692_v9, %v8695_v14  ;;  %v13005_v42 = vrot.slane %v8622_v1, 9  ;;  %v8702_v51 = vsel %vm16150_vm7, %v8700_v20, %v8701_v48  ;;  %v11639_v34 = vrot.slane %v11637_v57, 4 }
 0x38d   : > { %v11634_v11 = vsel %vm16150_vm7, %v11632_v38, %v11633_v23  ;;  %v11631_v27 = vsel %vm16150_vm7, %v13312_v29, %v11630_v16  ;;  %v11646_v39 = vrot.slane %v11644_v41, 4  ;;  %v11647_v53 = vrot.slane %v20185_v30, 5  ;;  %v11599_v16 = vld [vmem:[#allocation2 + $0x9c] sm:$0xe]  ;;  %v11602_v38 = vld [vmem:[#allocation2 + $0xc0] sm:$0xe] }
 0x38e   : > { %14857 = vmatmul.mubr.bf16.gmra.mrb[24].mxu1 %v13301_v13  ;;  %v13336_v15 = vcombine.low %v11631_v27, %v11634_v11  ;;  %v8699_v0 = vsel %vm16150_vm7, %v13005_v42, %v8698_v43  ;;  %v13313_v56 = vrot.slane %v11597_v18, 9  ;;  %v11651_v4 = vrot.slane %v20158_v25, 5 }
 0x38f   : > { %14873 = vmatpush3.bf16.msra.mxu1 %v15690_v3  ;;  %14860 = vmatprep.mubr.bf16.mxu1 %v13302_v45  ;;  %v13029_v47 = vcombine.low %v8699_v0, %v8702_v51  ;;  %v11640_v3 = vrot.slane %v20134_v8, 5  ;;  %v13314_v49 = vrot.slane %v11598_v10, 9  ;;  %v11648_v22 = vsel %vm16150_vm7, %v11646_v39, %v11647_v53 }
 0x390   : > { %14874 = vmatprep.subr.bf16.mxu1 %v15691_v36  ;;  %14601 = vmatmul.mubr.bf16.gmra.mrb[24].mxu0 %v13027_v63  ;;  %v11658_v26 = vrot.slane %v20206_v61, 5  ;;  %v11638_v8 = vsel %vm16150_vm7, %v13313_v56, %v11637_v57  ;;  %v11653_v52 = vrot.slane %v11651_v4, 4  ;;  %v11654_v25 = vrot.slane %v20221_v32, 5  ;;  %v11601_v63 = vld [vmem:[#allocation2 + $0xb4] sm:$0xe] }
 0x391   : > { %14604 = vmatprep.mubr.bf16.mxu0 %v13028_v12  ;;  %v11641_v62 = vsel %vm16150_vm7, %v11639_v34, %v11640_v3  ;;  %v11645_v30 = vsel %vm16150_vm7, %v13314_v49, %v11644_v41  ;;  %v11661_v5 = vrot.slane %v20256_v40, 5  ;;  %v13315_v61 = vrot.slane %v11599_v16, 9  ;;  %v20458_v41 = vld [vmem:[%s20555_s6] ss:$0 sm:$0xff] }
 0x392   : > { %v13337_v50 = vcombine.low %v11638_v8, %v11641_v62  ;;  %v13338_v28 = vcombine.low %v11645_v30, %v11648_v22  ;;  %v11660_v19 = vrot.slane %v11658_v26, 4  ;;  %v11655_v43 = vsel %vm16150_vm7, %v11653_v52, %v11654_v25 }
 0x393   : > { %14875 = vmatpush3.bf16.msra.mxu1 %v15691_v36  ;;  %v11665_v13 = vrot.slane %v20272_v2, 5  ;;  %v13316_v58 = vrot.slane %v11600_v21, 9  ;;  %v11672_v54 = vrot.slane %v20286_v33, 5  ;;  %v11652_v14 = vsel %vm16150_vm7, %v13315_v61, %v11651_v4 }
 0x394   : > { %14876 = vmatprep.subr.bf16.mxu1 %v15692_v6  ;;  %v11662_v36 = vsel %vm16150_vm7, %v11660_v19, %v11661_v5  ;;  %v13339_v45 = vcombine.low %v11652_v14, %v11655_v43  ;;  %v11668_v2 = vrot.slane %v20321_v44, 5  ;;  %v11679_v60 = vrot.slane %v20309_v46, 5 }
 0x395   : > { %v11659_v32 = vsel %vm16150_vm7, %v13316_v58, %v11658_v26  ;;  %v11667_v37 = vrot.slane %v11665_v13, 4  ;;  %v11674_v9 = vrot.slane %v11672_v54, 4  ;;  %v11675_v33 = vrot.slane %v20339_v35, 5 }
 0x396   : > { %14861 = vmatmul.mubr.bf16.gmra.mrb[28].mxu1 %v13303_v24  ;;  %v13340_v40 = vcombine.low %v11659_v32, %v11662_v36  ;;  %v13317_v12 = vrot.slane %v11601_v63, 9  ;;  %v13318_v20 = vrot.slane %v11602_v38, 9  ;;  %v13319_v1 = vrot.slane %v11603_v31, 9 }
 0x397   : > { %14877 = vmatpush3.bf16.msra.mxu1 %v15692_v6  ;;  %14880 = vmatprep.mubr.bf16.mxu1 %v13336_v15  ;;  %v11669_v7 = vsel %vm16150_vm7, %v11667_v37, %v11668_v2  ;;  %v11676_v6 = vsel %vm16150_vm7, %v11674_v9, %v11675_v33  ;;  %v11681_v48 = vrot.slane %v11679_v60, 4  ;;  %v11682_v44 = vrot.slane %v20352_v59, 5  ;;  %v20453_v59 = vld [vmem:[%s20554_s5] ss:$0 sm:$0xff] }
 0x398   : > { %14878 = vmatprep.subr.bf16.mxu1 %v15693_v17  ;;  %14605 = vmatmul.mubr.bf16.gmra.mrb[28].mxu0 %v13029_v47  ;;  %v11666_v23 = vsel %vm16150_vm7, %v13317_v12, %v11665_v13  ;;  %v11673_v46 = vsel %vm16150_vm7, %v13318_v20, %v11672_v54  ;;  %v11680_v24 = vsel %vm16150_vm7, %v13319_v1, %v11679_v60 }
 0x399   : > { %v13341_v57 = vcombine.low %v11666_v23, %v11669_v7  ;;  %v13342_v35 = vcombine.low %v11673_v46, %v11676_v6  ;;  %v11683_v29 = vsel %vm16150_vm7, %v11681_v48, %v11682_v44 }
 0x39a   : > { %v13343_v11 = vcombine.low %v11680_v24, %v11683_v29 }
 0x39b   : > { %14879 = vmatpush3.bf16.msra.mxu1 %v15693_v17 }
 0x39e   : > { %14881 = vmatmul.mubr.bf16.vlgmr.msra.gmra.mrb[16].mxu1 %v13337_v50 }
 0x39f   : > { %14884 = vmatprep.mubr.bf16.mxu1 %v13338_v28 }
 0x3a6   : > { %14885 = vmatmul.mubr.bf16.gmra.mrb[20].mxu1 %v13339_v45 }
 0x3a7   : > { %14888 = vmatprep.mubr.bf16.mxu1 %v13340_v40 }
 0x3ae   : > { %14889 = vmatmul.mubr.bf16.gmra.mrb[24].mxu1 %v13341_v57 }
 0x3af   : > { %14892 = vmatprep.mubr.bf16.mxu1 %v13342_v35 }
 0x3b6   : > { %14893 = vmatmul.mubr.bf16.gmra.mrb[28].mxu1 %v13343_v11 }
 0x453   : > { %v14594_v42 = vpop.f32.mrb[16].mxu0 }
 0x454   : > { %v8921_v51 = vmul.f32 %v14594_v42, %v20453_v59  ;;  %v8834_v27 = vpop.f32.mrb[17].mxu0 }
 0x455   : > { %v8919_v55 = vmul.f32 %v20453_v59, %v8834_v27  ;;  %v14595_v17 = vpop.f32.mrb[18].mxu0 }
 0x456   : > { %v8943_v15 = vadd.f32 %v20458_v41, %v8921_v51  ;;  %v8922_v0 = vmul.f32 %v14595_v17, %v20453_v59  ;;  %v8837_v34 = vpop.f32.mrb[19].mxu0 }
 0x457   : > { %v8941_v47 = vadd.f32 %v20458_v41, %v8919_v55  ;;  %v8920_v18 = vmul.f32 %v20453_v59, %v8837_v34 }
 0x458   : > { %v8944_v39 = vadd.f32 %v20458_v41, %v8922_v0  ;;  %v8959_v10 = vmax.f32 %v8943_v15, 0.0 }
 0x459   : > { %v8942_v3 = vadd.f32 %v20458_v41, %v8920_v18  ;;  %v8957_v56 = vmax.f32 %v8941_v47, 0.0 }
 0x45a   : > { %v8960_v53 = vmax.f32 %v8944_v39, 0.0 }
 0x45b   : > { %v8958_v62 = vmax.f32 %v8942_v3, 0.0  ;;  %v14598_v4 = vpop.f32.mrb[20].mxu0 }
 0x45c   : > { %v13459_v49 = vpack.c.bf16 %v8960_v53, %v8959_v10  ;;  %v8925_v22 = vmul.f32 %v14598_v4, %v20453_v59  ;;  %v8850_v26 = vpop.f32.mrb[21].mxu0 }
 0x45d   : > { %v13454_v8 = vpack.c.bf16 %v8958_v62, %v8957_v56  ;;  %v8923_v50 = vmul.f32 %v20453_v59, %v8850_v26  ;;  %v14599_v30 = vpop.f32.mrb[22].mxu0 }
 0x45e   : > { %13531 = vst [vmem:[%s20472_s10 + $0x8] sm:$0xff] %v13459_v49   ;;  %v8947_v28 = vadd.f32 %v20458_v41, %v8925_v22  ;;  %v8926_v52 = vmul.f32 %v14599_v30, %v20453_v59  ;;  %v8853_v16 = vpop.f32.mrb[23].mxu0 }
 0x45f   : > { %13455 = vst [vmem:[%s20472_s10] sm:$0xff] %v13454_v8   ;;  %v8945_v19 = vadd.f32 %v20458_v41, %v8923_v50  ;;  %v8924_v25 = vmul.f32 %v20453_v59, %v8853_v16 }
 0x460   : > { %v8948_v21 = vadd.f32 %v20458_v41, %v8926_v52  ;;  %v8963_v61 = vmax.f32 %v8947_v28, 0.0 }
 0x461   : > { %v8946_v5 = vadd.f32 %v20458_v41, %v8924_v25  ;;  %v8961_v13 = vmax.f32 %v8945_v19, 0.0 }
 0x462   : > { %v8964_v43 = vmax.f32 %v8948_v21, 0.0 }
 0x463   : > { %v8962_v58 = vmax.f32 %v8946_v5, 0.0  ;;  %v14602_v36 = vpop.f32.mrb[24].mxu0 }
 0x464   : > { %v13469_v54 = vpack.c.bf16 %v8964_v43, %v8963_v61  ;;  %v8929_v14 = vmul.f32 %v14602_v36, %v20453_v59  ;;  %v8866_v45 = vpop.f32.mrb[25].mxu0 }
 0x465   : > { %v13464_v32 = vpack.c.bf16 %v8962_v58, %v8961_v13  ;;  %v8927_v40 = vmul.f32 %v20453_v59, %v8866_v45  ;;  %v14603_v37 = vpop.f32.mrb[26].mxu0 }
 0x466   : > { %13533 = vst [vmem:[%s20472_s10 + $0x18] sm:$0xff] %v13469_v54   ;;  %v8951_v63 = vadd.f32 %v20458_v41, %v8929_v14  ;;  %v8930_v9 = vmul.f32 %v14603_v37, %v20453_v59  ;;  %v8869_v2 = vpop.f32.mrb[27].mxu0 }
 0x467   : > { %13532 = vst [vmem:[%s20472_s10 + $0x10] sm:$0xff] %v13464_v32   ;;  %v8949_v38 = vadd.f32 %v20458_v41, %v8927_v40  ;;  %v8928_v60 = vmul.f32 %v20453_v59, %v8869_v2 }
 0x468   : > { %v8952_v33 = vadd.f32 %v20458_v41, %v8930_v9  ;;  %v8967_v12 = vmax.f32 %v8951_v63, 0.0 }
 0x469   : > { %v8950_v31 = vadd.f32 %v20458_v41, %v8928_v60  ;;  %v8965_v20 = vmax.f32 %v8949_v38, 0.0 }
 0x46a   : > { %v8968_v7 = vmax.f32 %v8952_v33, 0.0 }
 0x46b   : > { %v8966_v6 = vmax.f32 %v8950_v31, 0.0  ;;  %v14606_v23 = vpop.f32.mrb[28].mxu0 }
 0x46c   : > { %v13479_v1 = vpack.c.bf16 %v8968_v7, %v8967_v12  ;;  %v8933_v48 = vmul.f32 %v14606_v23, %v20453_v59  ;;  %v8882_v44 = vpop.f32.mrb[29].mxu0 }
 0x46d   : > { %v13474_v57 = vpack.c.bf16 %v8966_v6, %v8965_v20  ;;  %v8931_v46 = vmul.f32 %v20453_v59, %v8882_v44  ;;  %v14607_v35 = vpop.f32.mrb[30].mxu0 }
 0x46e   : > { %13535 = vst [vmem:[%s20472_s10 + $0x28] sm:$0xff] %v13479_v1   ;;  %v8955_v24 = vadd.f32 %v20458_v41, %v8933_v48  ;;  %v8934_v29 = vmul.f32 %v14607_v35, %v20453_v59  ;;  %v8885_v11 = vpop.f32.mrb[31].mxu0 }
 0x46f   : > { %13534 = vst [vmem:[%s20472_s10 + $0x20] sm:$0xff] %v13474_v57   ;;  %v8953_v42 = vadd.f32 %v20458_v41, %v8931_v46  ;;  %v8932_v51 = vmul.f32 %v20453_v59, %v8885_v11 }
 0x470   : > { %v8956_v27 = vadd.f32 %v20458_v41, %v8934_v29  ;;  %v8971_v15 = vmax.f32 %v8955_v24, 0.0 }
 0x471   : > { %v14882_v55 = vpop.f32.mrb[16].mxu1  ;;  %v8954_v17 = vadd.f32 %v20458_v41, %v8932_v51  ;;  %v8969_v18 = vmax.f32 %v8953_v42, 0.0 }
 0x472   : > { %v11895_v0 = vmul.f32 %v14882_v55, %v20453_v59  ;;  %v11814_v34 = vpop.f32.mrb[17].mxu1  ;;  %v8972_v47 = vmax.f32 %v8956_v27, 0.0 }
 0x473   : > { %v11893_v39 = vmul.f32 %v20453_v59, %v11814_v34  ;;  %v14883_v3 = vpop.f32.mrb[18].mxu1  ;;  %v8970_v10 = vmax.f32 %v8954_v17, 0.0 }
 0x474   : > { %v11911_v53 = vadd.f32 %v20458_v41, %v11895_v0  ;;  %v13489_v56 = vpack.c.bf16 %v8972_v47, %v8971_v15  ;;  %v11896_v62 = vmul.f32 %v14883_v3, %v20453_v59  ;;  %v11817_v4 = vpop.f32.mrb[19].mxu1 }
 0x475   : > { %v11909_v49 = vadd.f32 %v20458_v41, %v11893_v39  ;;  %v13484_v22 = vpack.c.bf16 %v8970_v10, %v8969_v18  ;;  %v11894_v26 = vmul.f32 %v20453_v59, %v11817_v4 }
 0x476   : > { %13537 = vst [vmem:[%s20472_s10 + $0x38] sm:$0xff] %v13489_v56   ;;  %v11912_v8 = vadd.f32 %v20458_v41, %v11896_v62  ;;  %v11927_v30 = vmax.f32 %v11911_v53, 0.0 }
 0x477   : > { %13536 = vst [vmem:[%s20472_s10 + $0x30] sm:$0xff] %v13484_v22   ;;  %v11910_v50 = vadd.f32 %v20458_v41, %v11894_v26  ;;  %v11925_v52 = vmax.f32 %v11909_v49, 0.0 }
 0x478   : > { %v11928_v28 = vmax.f32 %v11912_v8, 0.0 }
 0x479   : > { %v11926_v16 = vmax.f32 %v11910_v50, 0.0  ;;  %v14886_v19 = vpop.f32.mrb[20].mxu1 }
 0x47a   : > { %v13499_v25 = vpack.c.bf16 %v11928_v28, %v11927_v30  ;;  %v11899_v21 = vmul.f32 %v14886_v19, %v20453_v59  ;;  %v11830_v5 = vpop.f32.mrb[21].mxu1 }
 0x47b   : > { %v13494_v61 = vpack.c.bf16 %v11926_v16, %v11925_v52  ;;  %v11897_v43 = vmul.f32 %v20453_v59, %v11830_v5  ;;  %v14887_v13 = vpop.f32.mrb[22].mxu1 }
 0x47c   : > { %13539 = vst [vmem:[%s20472_s10 + $0x48] sm:$0xff] %v13499_v25   ;;  %v11915_v58 = vadd.f32 %v20458_v41, %v11899_v21  ;;  %v11900_v36 = vmul.f32 %v14887_v13, %v20453_v59  ;;  %v11833_v54 = vpop.f32.mrb[23].mxu1 }
 0x47d   : > { %13538 = vst [vmem:[%s20472_s10 + $0x40] sm:$0xff] %v13494_v61   ;;  %v11913_v14 = vadd.f32 %v20458_v41, %v11897_v43  ;;  %v11898_v45 = vmul.f32 %v20453_v59, %v11833_v54 }
 0x47e   : > { %v11916_v32 = vadd.f32 %v20458_v41, %v11900_v36  ;;  %v11931_v37 = vmax.f32 %v11915_v58, 0.0 }
 0x47f   : > { %v11914_v40 = vadd.f32 %v20458_v41, %v11898_v45  ;;  %v11929_v9 = vmax.f32 %v11913_v14, 0.0 }
 0x480   : > { %v11932_v63 = vmax.f32 %v11916_v32, 0.0 }
 0x481   : > { %v11930_v2 = vmax.f32 %v11914_v40, 0.0  ;;  %v14890_v38 = vpop.f32.mrb[24].mxu1 }
 0x482   : > { %v13509_v60 = vpack.c.bf16 %v11932_v63, %v11931_v37  ;;  %v11903_v33 = vmul.f32 %v14890_v38, %v20453_v59  ;;  %v11846_v31 = vpop.f32.mrb[25].mxu1 }
 0x483   : > { %v13504_v12 = vpack.c.bf16 %v11930_v2, %v11929_v9  ;;  %v11901_v7 = vmul.f32 %v20453_v59, %v11846_v31  ;;  %v14891_v20 = vpop.f32.mrb[26].mxu1 }
 0x484   : > { %13541 = vst [vmem:[%s20472_s10 + $0x58] sm:$0xff] %v13509_v60   ;;  %v11919_v6 = vadd.f32 %v20458_v41, %v11903_v33  ;;  %v11904_v23 = vmul.f32 %v14891_v20, %v20453_v59  ;;  %v11849_v1 = vpop.f32.mrb[27].mxu1 }
 0x485   : > { %13540 = vst [vmem:[%s20472_s10 + $0x50] sm:$0xff] %v13504_v12   ;;  %v11917_v48 = vadd.f32 %v20458_v41, %v11901_v7  ;;  %v11902_v44 = vmul.f32 %v20453_v59, %v11849_v1 }
 0x486   : > { %v11920_v57 = vadd.f32 %v20458_v41, %v11904_v23  ;;  %v11935_v35 = vmax.f32 %v11919_v6, 0.0 }
 0x487   : > { %v11918_v46 = vadd.f32 %v20458_v41, %v11902_v44  ;;  %v11933_v29 = vmax.f32 %v11917_v48, 0.0 }
 0x488   : > { %v11936_v24 = vmax.f32 %v11920_v57, 0.0 }
 0x489   : > { %v11934_v11 = vmax.f32 %v11918_v46, 0.0  ;;  %v14894_v42 = vpop.f32.mrb[28].mxu1 }
 0x48a   : > { %v13519_v51 = vpack.c.bf16 %v11936_v24, %v11935_v35  ;;  %v11907_v27 = vmul.f32 %v14894_v42, %v20453_v59  ;;  %v11862_v55 = vpop.f32.mrb[29].mxu1 }
 0x48b   : > { %v13514_v17 = vpack.c.bf16 %v11934_v11, %v11933_v29  ;;  %v11905_v15 = vmul.f32 %v20453_v59, %v11862_v55  ;;  %v14895_v0 = vpop.f32.mrb[30].mxu1 }
 0x48c   : > { %13543 = vst [vmem:[%s20472_s10 + $0x68] sm:$0xff] %v13519_v51   ;;  %v11923_v34 = vadd.f32 %v20458_v41, %v11907_v27  ;;  %v11908_v47 = vmul.f32 %v14895_v0, %v20453_v59  ;;  %v11865_v18 = vpop.f32.mrb[31].mxu1 }
 0x48d   : > { %13542 = vst [vmem:[%s20472_s10 + $0x60] sm:$0xff] %v13514_v17   ;;  %v11921_v39 = vadd.f32 %v20458_v41, %v11905_v15  ;;  %v11906_v3 = vmul.f32 %v20453_v59, %v11865_v18 }
 0x48e   : > { %v11924_v10 = vadd.f32 %v20458_v41, %v11908_v47  ;;  %v11939_v56 = vmax.f32 %v11923_v34, 0.0 }
 0x48f   : > { %v11922_v53 = vadd.f32 %v20458_v41, %v11906_v3  ;;  %v11937_v4 = vmax.f32 %v11921_v39, 0.0 }
 0x490   : > { %v11940_v62 = vmax.f32 %v11924_v10, 0.0 }
 0x491   : > { %v11938_v49 = vmax.f32 %v11922_v53, 0.0 }
 0x492   : > { %v13529_v22 = vpack.c.bf16 %v11940_v62, %v11939_v56 }
 0x493   : > { %v13524_v26 = vpack.c.bf16 %v11938_v49, %v11937_v4 }
 0x494   : > { %13545 = vst [vmem:[%s20472_s10 + $0x78] sm:$0xff] %v13529_v22  }
 0x495   : > { %13544 = vst [vmem:[%s20472_s10 + $0x70] sm:$0xff] %v13524_v26  }
 0x496 PF: > { %s17_s24 = sadd.s32 1, %s15705_s24  }
 0x497   : > { %p14_p4 = scmp.ge.s32.totalorder %s17_s24, 4  }
 0x499   :  { %16 = sbr.rel (!%p14_p4) target bundleno = 1 (0x1), region = 109 }

</bundles_post_ra>
